<compile_context>
chip_gen: v6e
topology: v6e:2x2x1
jax: 0.10.0
libtpu: 0.0.40
codegen_flags: <defaults>
</compile_context>

<pallas_src>
import jax
import jax.numpy as jnp
import numpy as np
from jax import lax
from jax.experimental import pallas as pl
from jax.experimental.pallas import tpu as pltpu

_EPS = 1e-5


def _vmem_capacity_bytes():
    """Physical VMEM per core at trace time; conservative v7x fallback (64 MiB)."""
    try:
        cap = getattr(pltpu.get_tpu_info(), "vmem_capacity_bytes", None)
        if cap:
            return int(cap)
    except Exception:
        pass
    return 64 * 1024 * 1024


_VMEM_CAP = _vmem_capacity_bytes()
# Scoped-VMEM request: ~3/4 of physical (96 MiB on v5e/v6e, 48 MiB on v7x).
_VMEM_LIMIT_BYTES = int(max(32 << 20, min(_VMEM_CAP * 3 // 4, 96 << 20)))
# Per-grid-step working-set budget (~1/4 of physical VMEM).
_TILE_BUDGET_BYTES = int(max(8 << 20, min(_VMEM_CAP // 4, 48 << 20)))


# ---------------------------------------------------------------------------
# In-kernel helpers
# ---------------------------------------------------------------------------
def _pad_to_bf16(xp_scr, x_val):
    """Zero-pad a (TN,H,W,C) tile by 1 on H/W into a bf16 VMEM scratch.

    Only the 4 halo strips are zeroed (the interior is written exactly once),
    and the cast to bf16 happens here so the 9 im2col tap copies move half the
    bytes and need no per-tap casts.
    """
    tn, h, w, c = x_val.shape
    zrow = jnp.zeros((tn, 1, w + 2, c), jnp.bfloat16)
    zcol = jnp.zeros((tn, h, 1, c), jnp.bfloat16)
    xp_scr[:, 0:1, :, :] = zrow
    xp_scr[:, h + 1:h + 2, :, :] = zrow
    xp_scr[:, 1:h + 1, 0:1, :] = zcol
    xp_scr[:, 1:h + 1, w + 1:w + 2, :] = zcol
    xp_scr[:, 1:h + 1, 1:w + 1, :] = x_val.astype(jnp.bfloat16)


def _im2col_conv3x3(xp_scr, pat_scr, w_ref):
    """3x3 conv (stride 1) on a zero-padded bf16 VMEM tile.

    Packs the 9 taps into the contraction dim (K = 9*Cin) via a bf16 im2col
    scratch and issues ONE bf16 MXU matmul with f32 accumulation.
    Returns (TN*H*W, Cout) f32.
    """
    tn, hp, wp, cin = xp_scr.shape
    h, w = hp - 2, wp - 2
    for dy in range(3):
        for dx in range(3):
            k = dy * 3 + dx
            pat_scr[:, k * cin:(k + 1) * cin] = (
                xp_scr[:, dy:dy + h, dx:dx + w, :].reshape(tn * h * w, cin))
    return jnp.dot(pat_scr[...], w_ref[...],
                   preferred_element_type=jnp.float32)


def _write_stats(stats_ref, acc):
    """Per-tile per-channel [sum; sum-of-squares] for two-pass BatchNorm."""
    cout = acc.shape[-1]
    stats_ref[:, 0:1, :] = jnp.sum(acc, axis=0, keepdims=True).reshape(1, 1, cout)
    stats_ref[:, 1:2, :] = jnp.sum(acc * acc, axis=0, keepdims=True).reshape(1, 1, cout)


# ---------------------------------------------------------------------------
# Kernels
# ---------------------------------------------------------------------------
def _conv_stats_kernel(x_ref, w_ref, o_ref, stats_ref, xp_scr, pat_scr):
    """Pass A: conv1 (no bias) + per-tile BN1 statistics; bf16 output."""
    tn, h, w, cin = x_ref.shape
    cout = w_ref.shape[1]
    _pad_to_bf16(xp_scr, x_ref[...])
    acc = _im2col_conv3x3(xp_scr, pat_scr, w_ref)
    o_ref[...] = acc.reshape(tn, h, w, cout).astype(o_ref.dtype)
    _write_stats(stats_ref, acc)


def _bn_relu_conv_stats_kernel(y_ref, sc_ref, sh_ref, w_ref,
                               o_ref, stats_ref, xp_scr, pat_scr):
    """Pass B: bn1 (precomputed scale/shift) + relu + conv2 + BN2 statistics.

    The intermediate activation `h` lives only in VMEM (never hits HBM).
    """
    tn, h, w, cin = y_ref.shape
    cout = w_ref.shape[1]
    sc = sc_ref[...].reshape(1, 1, 1, cin)
    sh = sh_ref[...].reshape(1, 1, 1, cin)
    hact = jnp.maximum(y_ref[...].astype(jnp.float32) * sc + sh, 0.0)
    _pad_to_bf16(xp_scr, hact)
    acc = _im2col_conv3x3(xp_scr, pat_scr, w_ref)
    o_ref[...] = acc.reshape(tn, h, w, cout).astype(o_ref.dtype)
    _write_stats(stats_ref, acc)


def _bn_add_relu_kernel(y_ref, sc_ref, sh_ref, x_ref, o_ref):
    """Pass C: bn2 + residual add + relu, lane-dense (N, H, W*C) layout."""
    wc = y_ref.shape[-1]
    sc = sc_ref[...].reshape(1, 1, wc)
    sh = sh_ref[...].reshape(1, 1, wc)
    o_ref[...] = jnp.maximum(
        x_ref[...] + y_ref[...].astype(jnp.float32) * sc + sh, 0.0)


# ---------------------------------------------------------------------------
# Wrappers
# ---------------------------------------------------------------------------
def _pick_batch_tile(n, bytes_per_sample, budget_bytes=_TILE_BUDGET_BYTES):
    """Largest batch tile fitting the per-step VMEM budget.

    Prefers an even grid length so v7x's two TensorCores split the "parallel"
    batch axis evenly; within that, picks the largest tile (fewest steps, so
    the ~0.35 us fixed per-step overhead is amortized).
    """
    candidates = [tn for tn in range(1, n + 1)
                  if n % tn == 0 and tn * bytes_per_sample <= budget_bytes]
    if not candidates:
        return 1
    even = [tn for tn in candidates if (n // tn) % 2 == 0]
    return max(even) if even else max(candidates)


def _conv_bytes_per_sample(h, w, cin, cout, in_itemsize):
    xp = (h + 2) * (w + 2) * cin * 2                 # bf16 padded scratch
    pat = h * w * 9 * cin * 2                        # bf16 im2col scratch
    io = 2 * (h * w * cin * in_itemsize + h * w * cout * 2)  # dbl-buffered I/O
    return xp + pat + io


def _compiler_params(grid_len):
    return pltpu.CompilerParams(
        dimension_semantics=("parallel",) * grid_len,
        vmem_limit_bytes=_VMEM_LIMIT_BYTES)


def _conv_stats_call(x, w_packed):
    n, h, w, cin = x.shape
    cout = w_packed.shape[1]
    tn = _pick_batch_tile(n, _conv_bytes_per_sample(h, w, cin, cout,
                                                    x.dtype.itemsize))
    grid = (n // tn,)
    return pl.pallas_call(
        _conv_stats_kernel,
        grid=grid,
        in_specs=[
            pl.BlockSpec((tn, h, w, cin), lambda i: (i, 0, 0, 0)),
            pl.BlockSpec((9 * cin, cout), lambda i: (0, 0)),
        ],
        out_specs=(
            pl.BlockSpec((tn, h, w, cout), lambda i: (i, 0, 0, 0)),
            pl.BlockSpec((1, 2, cout), lambda i: (i, 0, 0)),
        ),
        out_shape=(
            jax.ShapeDtypeStruct((n, h, w, cout), jnp.bfloat16),
            jax.ShapeDtypeStruct((n // tn, 2, cout), jnp.float32),
        ),
        scratch_shapes=[
            pltpu.VMEM((tn, h + 2, w + 2, cin), jnp.bfloat16),
            pltpu.VMEM((tn * h * w, 9 * cin), jnp.bfloat16),
        ],
        compiler_params=_compiler_params(len(grid)),
    )(x, w_packed)


def _bn_relu_conv_stats_call(y_raw, scale, shift, w_packed):
    n, h, w, cin = y_raw.shape
    cout = w_packed.shape[1]
    tn = _pick_batch_tile(n, _conv_bytes_per_sample(h, w, cin, cout,
                                                    y_raw.dtype.itemsize))
    grid = (n // tn,)
    return pl.pallas_call(
        _bn_relu_conv_stats_kernel,
        grid=grid,
        in_specs=[
            pl.BlockSpec((tn, h, w, cin), lambda i: (i, 0, 0, 0)),
            pl.BlockSpec((1, cin), lambda i: (0, 0)),
            pl.BlockSpec((1, cin), lambda i: (0, 0)),
            pl.BlockSpec((9 * cin, cout), lambda i: (0, 0)),
        ],
        out_specs=(
            pl.BlockSpec((tn, h, w, cout), lambda i: (i, 0, 0, 0)),
            pl.BlockSpec((1, 2, cout), lambda i: (i, 0, 0)),
        ),
        out_shape=(
            jax.ShapeDtypeStruct((n, h, w, cout), jnp.bfloat16),
            jax.ShapeDtypeStruct((n // tn, 2, cout), jnp.float32),
        ),
        scratch_shapes=[
            pltpu.VMEM((tn, h + 2, w + 2, cin), jnp.bfloat16),
            pltpu.VMEM((tn * h * w, 9 * cin), jnp.bfloat16),
        ],
        compiler_params=_compiler_params(len(grid)),
    )(y_raw, scale, shift, w_packed)


def _bn_add_relu_call(y_raw, scale, shift, x_res):
    """Pass C: lane-dense elementwise pass; x buffer aliased with the output."""
    n, h, w, c = y_raw.shape
    wc = w * c
    y2 = y_raw.reshape(n, h, wc)                      # free trailing-dim merge
    x2 = x_res.reshape(n, h, wc)
    sc_row = jnp.tile(scale.reshape(1, c), (1, w))    # per-channel, tiled over W
    sh_row = jnp.tile(shift.reshape(1, c), (1, w))
    bytes_per_sample = 2 * (h * wc * (2 + 4) + h * wc * 4)
    tn = _pick_batch_tile(n, bytes_per_sample)
    grid = (n // tn,)
    out = pl.pallas_call(
        _bn_add_relu_kernel,
        grid=grid,
        in_specs=[
            pl.BlockSpec((tn, h, wc), lambda i: (i, 0, 0)),
            pl.BlockSpec((1, wc), lambda i: (0, 0)),
            pl.BlockSpec((1, wc), lambda i: (0, 0)),
            pl.BlockSpec((tn, h, wc), lambda i: (i, 0, 0)),
        ],
        out_specs=pl.BlockSpec((tn, h, wc), lambda i: (i, 0, 0)),
        out_shape=jax.ShapeDtypeStruct((n, h, wc), jnp.float32),
        input_output_aliases={3: 0},
        compiler_params=_compiler_params(len(grid)),
    )(y2, sc_row, sh_row, x2)
    return out.reshape(n, h, w, c)


def _bn_scale_shift(stats, count, gamma, beta):
    """Finalize two-pass BN: per-channel scale/shift from tile partial sums.

    E[x^2]-E[x]^2 in f32 over a tiny (tiles,2,C) array; clamped at 0.
    """
    s = stats.sum(axis=0)                               # (2, C)
    mean = s[0] / count
    var = jnp.maximum(s[1] / count - mean * mean, 0.0)
    scale = gamma.reshape(-1) * lax.rsqrt(var + _EPS)
    shift = beta.reshape(-1) - mean * scale
    return scale.reshape(1, -1), shift.reshape(1, -1)


def basic_block_forward_nhwc(x, params):
    """BasicBlock forward in NHWC (use this when chaining blocks in a ResNet)."""
    n, h, w, c = x.shape
    count = n * h * w

    # Pack 3x3 taps into the contraction dim; bf16 MXU operands.
    w1 = params["w1"].reshape(9 * c, c).astype(jnp.bfloat16)
    w2 = params["w2"].reshape(9 * c, c).astype(jnp.bfloat16)

    # Pass A: conv1 + per-tile BN1 stats (conv bias dropped -- cancels under BN).
    y1, st1 = _conv_stats_call(x, w1)
    sc1, sh1 = _bn_scale_shift(st1, count, params["g1"], params["be1"])

    # Pass B: bn1 + relu + conv2 + per-tile BN2 stats (activation stays in VMEM).
    y2, st2 = _bn_relu_conv_stats_call(y1, sc1, sh1, w2)
    sc2, sh2 = _bn_scale_shift(st2, count, params["g2"], params["be2"])

    # Pass C: bn2 + residual add + relu (lane-dense, in-place on x's buffer).
    return _bn_add_relu_call(y2, sc2, sh2, x)


def basic_block_forward(x_nchw, params):
    """NCHW entry point (transposes only at the block boundary)."""
    x = jnp.transpose(x_nchw, (0, 2, 3, 1)).astype(jnp.float32)  # NCHW -> NHWC
    out = basic_block_forward_nhwc(x, params)
    return jnp.transpose(out, (0, 3, 1, 2))                      # NHWC -> NCHW


# ---------------------------------------------------------------------------
# Pure-JAX reference (exact PyTorch semantics incl. conv bias) + test harness
# ---------------------------------------------------------------------------
def reference_forward(x_nchw, params):
    x = jnp.transpose(x_nchw, (0, 2, 3, 1)).astype(jnp.float32)

    def conv(inp, w, b):
        y = lax.conv_general_dilated(
            inp, w, window_strides=(1, 1), padding="SAME",
            dimension_numbers=("NHWC", "HWIO", "NHWC"))
        return y + b.reshape(1, 1, 1, -1)

    def bn(y, g, be):
        mean = jnp.mean(y, axis=(0, 1, 2), keepdims=True)
        var = jnp.mean(jnp.square(y - mean), axis=(0, 1, 2), keepdims=True)
        return ((y - mean) * lax.rsqrt(var + _EPS)
                * g.reshape(1, 1, 1, -1) + be.reshape(1, 1, 1, -1))

    hh = jnp.maximum(bn(conv(x, params["w1"], params["b1"]),
                        params["g1"], params["be1"]), 0.0)
    out = jnp.maximum(
        x + bn(conv(hh, params["w2"], params["b2"]), params["g2"], params["be2"]),
        0.0)
    return jnp.transpose(out, (0, 3, 1, 2))


def make_params(key, channels):
    k1, k2, k3, k4 = jax.random.split(key, 4)
    # Conv weights (kH, kW, Cin, Cout); BN gamma=1, beta=0 (PyTorch defaults).
    # b1/b2 are only used by the reference: they cancel exactly under batch-stat
    # BatchNorm, so the Pallas kernels omit them.
    return {
        "w1": 0.1 * jax.random.normal(k1, (3, 3, channels, channels), jnp.float32),
        "b1": 0.1 * jax.random.normal(k2, (1, channels), jnp.float32),
        "g1": jnp.ones((1, channels), jnp.float32),
        "be1": jnp.zeros((1, channels), jnp.float32),
        "w2": 0.1 * jax.random.normal(k3, (3, 3, channels, channels), jnp.float32),
        "b2": 0.1 * jax.random.normal(k4, (1, channels), jnp.float32),
        "g2": jnp.ones((1, channels), jnp.float32),
        "be2": jnp.zeros((1, channels), jnp.float32),
    }


if __name__ == "__main__":
    key = jax.random.PRNGKey(0)
    kx, kp = jax.random.split(key)

    N, C, H, W = 2, 4, 16, 16  # stride=1, in_channels == out_channels == C
    x_nchw = jax.random.normal(kx, (N, C, H, W), jnp.float32)
    params = make_params(kp, C)

    fwd = jax.jit(basic_block_forward)
    out = jax.block_until_ready(fwd(x_nchw, params))
    ref = jax.block_until_ready(reference_forward(x_nchw, params))

    assert out.shape == (N, C, H, W)
    # Tolerance covers bf16 MXU operands AND bf16 HBM intermediates (y1/y2)
    # vs the all-f32 reference.
    np.testing.assert_allclose(np.asarray(out), np.asarray(ref),
                               rtol=3e-2, atol=3e-2)
    print("KERNEL_OK")
</pallas_src>

<mosaic_0001>
module attributes {stable_mosaic.version = 11 : i64} {
  func.func @_conv_stats_kernel(%arg0: i32, %arg1: memref<1x16x16x4xf32, #tpu.memory_space<vmem>>, %arg2: memref<36x4xbf16, #tpu.memory_space<vmem>>, %arg3: memref<1x16x16x4xbf16, #tpu.memory_space<vmem>>, %arg4: memref<1x2x4xf32, #tpu.memory_space<vmem>>, %arg5: memref<1x18x18x4xbf16, #tpu.memory_space<vmem>>, %arg6: memref<256x36xbf16, #tpu.memory_space<vmem>>) attributes {dimension_semantics = [#tpu.dimension_semantics<parallel>], iteration_bounds = array<i64: 2>, scalar_prefetch = 0 : i64, scratch_operands = 2 : i64, tpu.core_type = #tpu.core_type<tc>, window_params = [{transform_indices = @transform_0, window_bounds = array<i64: 1, 16, 16, 4>}, {pipeline_mode = #tpu.pipeline_mode<synchronous>, transform_indices = @transform_1, window_bounds = array<i64: 36, 4>}, {transform_indices = @transform_2, window_bounds = array<i64: 1, 16, 16, 4>}, {transform_indices = @transform_3, window_bounds = array<i64: 1, 2, 4>}]} {
    %c0 = arith.constant 0 : index
    %c0_0 = arith.constant 0 : index
    %c0_1 = arith.constant 0 : index
    %c0_2 = arith.constant 0 : index
    %0 = vector.load %arg1[%c0, %c0_0, %c0_1, %c0_2] : memref<1x16x16x4xf32, #tpu.memory_space<vmem>>, vector<1x16x16x4xf32>
    %cst = arith.constant 0.000000e+00 : bf16
    %1 = vector.broadcast %cst : bf16 to vector<1x1x18x4xbf16>
    %cst_3 = arith.constant 0.000000e+00 : bf16
    %2 = vector.broadcast %cst_3 : bf16 to vector<1x16x1x4xbf16>
    %c0_4 = arith.constant 0 : index
    %c0_5 = arith.constant 0 : index
    %c0_6 = arith.constant 0 : index
    %c0_7 = arith.constant 0 : index
    %3 = vector.load %arg5[%c0_4, %c0_5, %c0_6, %c0_7] : memref<1x18x18x4xbf16, #tpu.memory_space<vmem>>, vector<1x1x18x4xbf16>
    tpu.vector_store %arg5[%c0_4, %c0_5, %c0_6, %c0_7], %1 {strides = array<i32>} : memref<1x18x18x4xbf16, #tpu.memory_space<vmem>>, vector<1x1x18x4xbf16>,
    %c0_8 = arith.constant 0 : index
    %c17 = arith.constant 17 : index
    %c0_9 = arith.constant 0 : index
    %c0_10 = arith.constant 0 : index
    %4 = vector.load %arg5[%c0_8, %c17, %c0_9, %c0_10] : memref<1x18x18x4xbf16, #tpu.memory_space<vmem>>, vector<1x1x18x4xbf16>
    tpu.vector_store %arg5[%c0_8, %c17, %c0_9, %c0_10], %1 {strides = array<i32>} : memref<1x18x18x4xbf16, #tpu.memory_space<vmem>>, vector<1x1x18x4xbf16>,
    %c0_11 = arith.constant 0 : index
    %c1 = arith.constant 1 : index
    %c0_12 = arith.constant 0 : index
    %c0_13 = arith.constant 0 : index
    %5 = vector.load %arg5[%c0_11, %c1, %c0_12, %c0_13] : memref<1x18x18x4xbf16, #tpu.memory_space<vmem>>, vector<1x16x1x4xbf16>
    tpu.vector_store %arg5[%c0_11, %c1, %c0_12, %c0_13], %2 {strides = array<i32>} : memref<1x18x18x4xbf16, #tpu.memory_space<vmem>>, vector<1x16x1x4xbf16>,
    %c0_14 = arith.constant 0 : index
    %c1_15 = arith.constant 1 : index
    %c17_16 = arith.constant 17 : index
    %c0_17 = arith.constant 0 : index
    %6 = vector.load %arg5[%c0_14, %c1_15, %c17_16, %c0_17] : memref<1x18x18x4xbf16, #tpu.memory_space<vmem>>, vector<1x16x1x4xbf16>
    tpu.vector_store %arg5[%c0_14, %c1_15, %c17_16, %c0_17], %2 {strides = array<i32>} : memref<1x18x18x4xbf16, #tpu.memory_space<vmem>>, vector<1x16x1x4xbf16>,
    %7 = arith.truncf %0 : vector<1x16x16x4xf32> to vector<1x16x16x4xbf16>
    %c0_18 = arith.constant 0 : index
    %c1_19 = arith.constant 1 : index
    %c1_20 = arith.constant 1 : index
    %c0_21 = arith.constant 0 : index
    %8 = vector.load %arg5[%c0_18, %c1_19, %c1_20, %c0_21] : memref<1x18x18x4xbf16, #tpu.memory_space<vmem>>, vector<1x16x16x4xbf16>
    tpu.vector_store %arg5[%c0_18, %c1_19, %c1_20, %c0_21], %7 {strides = array<i32>} : memref<1x18x18x4xbf16, #tpu.memory_space<vmem>>, vector<1x16x16x4xbf16>,
    %c0_22 = arith.constant 0 : index
    %c0_23 = arith.constant 0 : index
    %c0_24 = arith.constant 0 : index
    %c0_25 = arith.constant 0 : index
    %9 = vector.load %arg5[%c0_22, %c0_23, %c0_24, %c0_25] : memref<1x18x18x4xbf16, #tpu.memory_space<vmem>>, vector<1x16x16x4xbf16>
    %10 = vector.shape_cast %9 : vector<1x16x16x4xbf16> to vector<256x4xbf16>
    %c0_26 = arith.constant 0 : index
    %c0_27 = arith.constant 0 : index
    %11 = vector.load %arg6[%c0_26, %c0_27] : memref<256x36xbf16, #tpu.memory_space<vmem>>, vector<256x4xbf16>
    tpu.vector_store %arg6[%c0_26, %c0_27], %10 {strides = array<i32>} : memref<256x36xbf16, #tpu.memory_space<vmem>>, vector<256x4xbf16>,
    %c0_28 = arith.constant 0 : index
    %c0_29 = arith.constant 0 : index
    %c1_30 = arith.constant 1 : index
    %c0_31 = arith.constant 0 : index
    %12 = vector.load %arg5[%c0_28, %c0_29, %c1_30, %c0_31] : memref<1x18x18x4xbf16, #tpu.memory_space<vmem>>, vector<1x16x16x4xbf16>
    %13 = vector.shape_cast %12 : vector<1x16x16x4xbf16> to vector<256x4xbf16>
    %c0_32 = arith.constant 0 : index
    %c4 = arith.constant 4 : index
    %14 = vector.load %arg6[%c0_32, %c4] : memref<256x36xbf16, #tpu.memory_space<vmem>>, vector<256x4xbf16>
    tpu.vector_store %arg6[%c0_32, %c4], %13 {strides = array<i32>} : memref<256x36xbf16, #tpu.memory_space<vmem>>, vector<256x4xbf16>,
    %c0_33 = arith.constant 0 : index
    %c0_34 = arith.constant 0 : index
    %c2 = arith.constant 2 : index
    %c0_35 = arith.constant 0 : index
    %15 = vector.load %arg5[%c0_33, %c0_34, %c2, %c0_35] : memref<1x18x18x4xbf16, #tpu.memory_space<vmem>>, vector<1x16x16x4xbf16>
    %16 = vector.shape_cast %15 : vector<1x16x16x4xbf16> to vector<256x4xbf16>
    %c0_36 = arith.constant 0 : index
    %c8 = arith.constant 8 : index
    %17 = vector.load %arg6[%c0_36, %c8] : memref<256x36xbf16, #tpu.memory_space<vmem>>, vector<256x4xbf16>
    tpu.vector_store %arg6[%c0_36, %c8], %16 {strides = array<i32>} : memref<256x36xbf16, #tpu.memory_space<vmem>>, vector<256x4xbf16>,
    %c0_37 = arith.constant 0 : index
    %c1_38 = arith.constant 1 : index
    %c0_39 = arith.constant 0 : index
    %c0_40 = arith.constant 0 : index
    %18 = vector.load %arg5[%c0_37, %c1_38, %c0_39, %c0_40] : memref<1x18x18x4xbf16, #tpu.memory_space<vmem>>, vector<1x16x16x4xbf16>
    %19 = vector.shape_cast %18 : vector<1x16x16x4xbf16> to vector<256x4xbf16>
    %c0_41 = arith.constant 0 : index
    %c12 = arith.constant 12 : index
    %20 = vector.load %arg6[%c0_41, %c12] : memref<256x36xbf16, #tpu.memory_space<vmem>>, vector<256x4xbf16>
    tpu.vector_store %arg6[%c0_41, %c12], %19 {strides = array<i32>} : memref<256x36xbf16, #tpu.memory_space<vmem>>, vector<256x4xbf16>,
    %c0_42 = arith.constant 0 : index
    %c1_43 = arith.constant 1 : index
    %c1_44 = arith.constant 1 : index
    %c0_45 = arith.constant 0 : index
    %21 = vector.load %arg5[%c0_42, %c1_43, %c1_44, %c0_45] : memref<1x18x18x4xbf16, #tpu.memory_space<vmem>>, vector<1x16x16x4xbf16>
    %22 = vector.shape_cast %21 : vector<1x16x16x4xbf16> to vector<256x4xbf16>
    %c0_46 = arith.constant 0 : index
    %c16 = arith.constant 16 : index
    %23 = vector.load %arg6[%c0_46, %c16] : memref<256x36xbf16, #tpu.memory_space<vmem>>, vector<256x4xbf16>
    tpu.vector_store %arg6[%c0_46, %c16], %22 {strides = array<i32>} : memref<256x36xbf16, #tpu.memory_space<vmem>>, vector<256x4xbf16>,
    %c0_47 = arith.constant 0 : index
    %c1_48 = arith.constant 1 : index
    %c2_49 = arith.constant 2 : index
    %c0_50 = arith.constant 0 : index
    %24 = vector.load %arg5[%c0_47, %c1_48, %c2_49, %c0_50] : memref<1x18x18x4xbf16, #tpu.memory_space<vmem>>, vector<1x16x16x4xbf16>
    %25 = vector.shape_cast %24 : vector<1x16x16x4xbf16> to vector<256x4xbf16>
    %c0_51 = arith.constant 0 : index
    %c20 = arith.constant 20 : index
    %26 = vector.load %arg6[%c0_51, %c20] : memref<256x36xbf16, #tpu.memory_space<vmem>>, vector<256x4xbf16>
    tpu.vector_store %arg6[%c0_51, %c20], %25 {strides = array<i32>} : memref<256x36xbf16, #tpu.memory_space<vmem>>, vector<256x4xbf16>,
    %c0_52 = arith.constant 0 : index
    %c2_53 = arith.constant 2 : index
    %c0_54 = arith.constant 0 : index
    %c0_55 = arith.constant 0 : index
    %27 = vector.load %arg5[%c0_52, %c2_53, %c0_54, %c0_55] : memref<1x18x18x4xbf16, #tpu.memory_space<vmem>>, vector<1x16x16x4xbf16>
    %28 = vector.shape_cast %27 : vector<1x16x16x4xbf16> to vector<256x4xbf16>
    %c0_56 = arith.constant 0 : index
    %c24 = arith.constant 24 : index
    %29 = vector.load %arg6[%c0_56, %c24] : memref<256x36xbf16, #tpu.memory_space<vmem>>, vector<256x4xbf16>
    tpu.vector_store %arg6[%c0_56, %c24], %28 {strides = array<i32>} : memref<256x36xbf16, #tpu.memory_space<vmem>>, vector<256x4xbf16>,
    %c0_57 = arith.constant 0 : index
    %c2_58 = arith.constant 2 : index
    %c1_59 = arith.constant 1 : index
    %c0_60 = arith.constant 0 : index
    %30 = vector.load %arg5[%c0_57, %c2_58, %c1_59, %c0_60] : memref<1x18x18x4xbf16, #tpu.memory_space<vmem>>, vector<1x16x16x4xbf16>
    %31 = vector.shape_cast %30 : vector<1x16x16x4xbf16> to vector<256x4xbf16>
    %c0_61 = arith.constant 0 : index
    %c28 = arith.constant 28 : index
    %32 = vector.load %arg6[%c0_61, %c28] : memref<256x36xbf16, #tpu.memory_space<vmem>>, vector<256x4xbf16>
    tpu.vector_store %arg6[%c0_61, %c28], %31 {strides = array<i32>} : memref<256x36xbf16, #tpu.memory_space<vmem>>, vector<256x4xbf16>,
    %c0_62 = arith.constant 0 : index
    %c2_63 = arith.constant 2 : index
    %c2_64 = arith.constant 2 : index
    %c0_65 = arith.constant 0 : index
    %33 = vector.load %arg5[%c0_62, %c2_63, %c2_64, %c0_65] : memref<1x18x18x4xbf16, #tpu.memory_space<vmem>>, vector<1x16x16x4xbf16>
    %34 = vector.shape_cast %33 : vector<1x16x16x4xbf16> to vector<256x4xbf16>
    %c0_66 = arith.constant 0 : index
    %c32 = arith.constant 32 : index
    %35 = vector.load %arg6[%c0_66, %c32] : memref<256x36xbf16, #tpu.memory_space<vmem>>, vector<256x4xbf16>
    tpu.vector_store %arg6[%c0_66, %c32], %34 {strides = array<i32>} : memref<256x36xbf16, #tpu.memory_space<vmem>>, vector<256x4xbf16>,
    %c0_67 = arith.constant 0 : index
    %c0_68 = arith.constant 0 : index
    %36 = vector.load %arg6[%c0_67, %c0_68] : memref<256x36xbf16, #tpu.memory_space<vmem>>, vector<256x36xbf16>
    %c0_69 = arith.constant 0 : index
    %c0_70 = arith.constant 0 : index
    %37 = vector.load %arg2[%c0_69, %c0_70] : memref<36x4xbf16, #tpu.memory_space<vmem>>, vector<36x4xbf16>
    %cst_71 = arith.constant dense<0.000000e+00> : vector<256x4xf32>
    %38 = tpu.matmul %36, %37, %cst_71 {dimension_numbers = #tpu.dot_dimension_numbers<[1], [0], [0], [1], [0, 0, 1, 1], [], []>} : vector<256x36xbf16>, vector<36x4xbf16>, vector<256x4xf32> -> vector<256x4xf32>
    %39 = vector.shape_cast %38 : vector<256x4xf32> to vector<1x16x16x4xf32>
    %40 = arith.truncf %39 : vector<1x16x16x4xf32> to vector<1x16x16x4xbf16>
    %c0_72 = arith.constant 0 : index
    %c0_73 = arith.constant 0 : index
    %c0_74 = arith.constant 0 : index
    %c0_75 = arith.constant 0 : index
    %41 = vector.load %arg3[%c0_72, %c0_73, %c0_74, %c0_75] : memref<1x16x16x4xbf16, #tpu.memory_space<vmem>>, vector<1x16x16x4xbf16>
    tpu.vector_store %arg3[%c0_72, %c0_73, %c0_74, %c0_75], %40 {strides = array<i32>} : memref<1x16x16x4xbf16, #tpu.memory_space<vmem>>, vector<1x16x16x4xbf16>,
    %cst_76 = arith.constant dense<0.000000e+00> : vector<4xf32>
    %42 = vector.multi_reduction <add>, %38, %cst_76 [0] : vector<256x4xf32> to vector<4xf32>
    %43 = vector.shape_cast %42 : vector<4xf32> to vector<1x4xf32>
    %44 = vector.shape_cast %43 : vector<1x4xf32> to vector<1x1x4xf32>
    %c0_77 = arith.constant 0 : index
    %c0_78 = arith.constant 0 : index
    %c0_79 = arith.constant 0 : index
    %45 = vector.load %arg4[%c0_77, %c0_78, %c0_79] : memref<1x2x4xf32, #tpu.memory_space<vmem>>, vector<1x1x4xf32>
    tpu.vector_store %arg4[%c0_77, %c0_78, %c0_79], %44 {strides = array<i32>} : memref<1x2x4xf32, #tpu.memory_space<vmem>>, vector<1x1x4xf32>,
    %46 = arith.mulf %38, %38 : vector<256x4xf32>
    %cst_80 = arith.constant dense<0.000000e+00> : vector<4xf32>
    %47 = vector.multi_reduction <add>, %46, %cst_80 [0] : vector<256x4xf32> to vector<4xf32>
    %48 = vector.shape_cast %47 : vector<4xf32> to vector<1x4xf32>
    %49 = vector.shape_cast %48 : vector<1x4xf32> to vector<1x1x4xf32>
    %c0_81 = arith.constant 0 : index
    %c1_82 = arith.constant 1 : index
    %c0_83 = arith.constant 0 : index
    %50 = vector.load %arg4[%c0_81, %c1_82, %c0_83] : memref<1x2x4xf32, #tpu.memory_space<vmem>>, vector<1x1x4xf32>
    tpu.vector_store %arg4[%c0_81, %c1_82, %c0_83], %49 {strides = array<i32>} : memref<1x2x4xf32, #tpu.memory_space<vmem>>, vector<1x1x4xf32>,
    return
  }
  func.func @transform_0(%arg0: i32) -> (i32, i32, i32, i32) {
    %c0_i32 = arith.constant 0 : i32
    %c0_i32_0 = arith.constant 0 : i32
    %c0_i32_1 = arith.constant 0 : i32
    %c0_i32_2 = arith.constant 0 : i32
    return %arg0, %c0_i32, %c0_i32_0, %c0_i32_1 : i32, i32, i32, i32
  }
  func.func @transform_1(%arg0: i32) -> (i32, i32) {
    %c0_i32 = arith.constant 0 : i32
    %c0_i32_0 = arith.constant 0 : i32
    %c0_i32_1 = arith.constant 0 : i32
    return %c0_i32, %c0_i32_0 : i32, i32
  }
  func.func @transform_2(%arg0: i32) -> (i32, i32, i32, i32) {
    %c0_i32 = arith.constant 0 : i32
    %c0_i32_0 = arith.constant 0 : i32
    %c0_i32_1 = arith.constant 0 : i32
    %c0_i32_2 = arith.constant 0 : i32
    return %arg0, %c0_i32, %c0_i32_0, %c0_i32_1 : i32, i32, i32, i32
  }
  func.func @transform_3(%arg0: i32) -> (i32, i32, i32) {
    %c0_i32 = arith.constant 0 : i32
    %c0_i32_0 = arith.constant 0 : i32
    %c0_i32_1 = arith.constant 0 : i32
    return %arg0, %c0_i32, %c0_i32_0 : i32, i32, i32
  }
}

module attributes {stable_mosaic.version = 11 : i64} {
  func.func @_bn_relu_conv_stats_kernel(%arg0: i32, %arg1: memref<1x16x16x4xbf16, #tpu.memory_space<vmem>>, %arg2: memref<1x4xf32, #tpu.memory_space<vmem>>, %arg3: memref<1x4xf32, #tpu.memory_space<vmem>>, %arg4: memref<36x4xbf16, #tpu.memory_space<vmem>>, %arg5: memref<1x16x16x4xbf16, #tpu.memory_space<vmem>>, %arg6: memref<1x2x4xf32, #tpu.memory_space<vmem>>, %arg7: memref<1x18x18x4xbf16, #tpu.memory_space<vmem>>, %arg8: memref<256x36xbf16, #tpu.memory_space<vmem>>) attributes {dimension_semantics = [#tpu.dimension_semantics<parallel>], iteration_bounds = array<i64: 2>, scalar_prefetch = 0 : i64, scratch_operands = 2 : i64, tpu.core_type = #tpu.core_type<tc>, window_params = [{transform_indices = @transform_0, window_bounds = array<i64: 1, 16, 16, 4>}, {pipeline_mode = #tpu.pipeline_mode<synchronous>, transform_indices = @transform_1, window_bounds = array<i64: 1, 4>}, {pipeline_mode = #tpu.pipeline_mode<synchronous>, transform_indices = @transform_2, window_bounds = array<i64: 1, 4>}, {pipeline_mode = #tpu.pipeline_mode<synchronous>, transform_indices = @transform_3, window_bounds = array<i64: 36, 4>}, {transform_indices = @transform_4, window_bounds = array<i64: 1, 16, 16, 4>}, {transform_indices = @transform_5, window_bounds = array<i64: 1, 2, 4>}]} {
    %c0 = arith.constant 0 : index
    %c0_0 = arith.constant 0 : index
    %0 = vector.load %arg2[%c0, %c0_0] : memref<1x4xf32, #tpu.memory_space<vmem>>, vector<1x4xf32>
    %1 = vector.shape_cast %0 : vector<1x4xf32> to vector<1x1x1x4xf32>
    %c0_1 = arith.constant 0 : index
    %c0_2 = arith.constant 0 : index
    %2 = vector.load %arg3[%c0_1, %c0_2] : memref<1x4xf32, #tpu.memory_space<vmem>>, vector<1x4xf32>
    %3 = vector.shape_cast %2 : vector<1x4xf32> to vector<1x1x1x4xf32>
    %c0_3 = arith.constant 0 : index
    %c0_4 = arith.constant 0 : index
    %c0_5 = arith.constant 0 : index
    %c0_6 = arith.constant 0 : index
    %4 = vector.load %arg1[%c0_3, %c0_4, %c0_5, %c0_6] : memref<1x16x16x4xbf16, #tpu.memory_space<vmem>>, vector<1x16x16x4xbf16>
    %5 = arith.extf %4 : vector<1x16x16x4xbf16> to vector<1x16x16x4xf32>
    %6 = vector.broadcast %1 : vector<1x1x1x4xf32> to vector<1x16x16x4xf32>
    %7 = arith.mulf %5, %6 : vector<1x16x16x4xf32>
    %8 = vector.broadcast %3 : vector<1x1x1x4xf32> to vector<1x16x16x4xf32>
    %9 = arith.addf %7, %8 : vector<1x16x16x4xf32>
    %cst = arith.constant 0.000000e+00 : f32
    %10 = vector.broadcast %cst : f32 to vector<1x16x16x4xf32>
    %11 = arith.maximumf %9, %10 : vector<1x16x16x4xf32>
    %cst_7 = arith.constant 0.000000e+00 : bf16
    %12 = vector.broadcast %cst_7 : bf16 to vector<1x1x18x4xbf16>
    %cst_8 = arith.constant 0.000000e+00 : bf16
    %13 = vector.broadcast %cst_8 : bf16 to vector<1x16x1x4xbf16>
    %c0_9 = arith.constant 0 : index
    %c0_10 = arith.constant 0 : index
    %c0_11 = arith.constant 0 : index
    %c0_12 = arith.constant 0 : index
    %14 = vector.load %arg7[%c0_9, %c0_10, %c0_11, %c0_12] : memref<1x18x18x4xbf16, #tpu.memory_space<vmem>>, vector<1x1x18x4xbf16>
    tpu.vector_store %arg7[%c0_9, %c0_10, %c0_11, %c0_12], %12 {strides = array<i32>} : memref<1x18x18x4xbf16, #tpu.memory_space<vmem>>, vector<1x1x18x4xbf16>,
    %c0_13 = arith.constant 0 : index
    %c17 = arith.constant 17 : index
    %c0_14 = arith.constant 0 : index
    %c0_15 = arith.constant 0 : index
    %15 = vector.load %arg7[%c0_13, %c17, %c0_14, %c0_15] : memref<1x18x18x4xbf16, #tpu.memory_space<vmem>>, vector<1x1x18x4xbf16>
    tpu.vector_store %arg7[%c0_13, %c17, %c0_14, %c0_15], %12 {strides = array<i32>} : memref<1x18x18x4xbf16, #tpu.memory_space<vmem>>, vector<1x1x18x4xbf16>,
    %c0_16 = arith.constant 0 : index
    %c1 = arith.constant 1 : index
    %c0_17 = arith.constant 0 : index
    %c0_18 = arith.constant 0 : index
    %16 = vector.load %arg7[%c0_16, %c1, %c0_17, %c0_18] : memref<1x18x18x4xbf16, #tpu.memory_space<vmem>>, vector<1x16x1x4xbf16>
    tpu.vector_store %arg7[%c0_16, %c1, %c0_17, %c0_18], %13 {strides = array<i32>} : memref<1x18x18x4xbf16, #tpu.memory_space<vmem>>, vector<1x16x1x4xbf16>,
    %c0_19 = arith.constant 0 : index
    %c1_20 = arith.constant 1 : index
    %c17_21 = arith.constant 17 : index
    %c0_22 = arith.constant 0 : index
    %17 = vector.load %arg7[%c0_19, %c1_20, %c17_21, %c0_22] : memref<1x18x18x4xbf16, #tpu.memory_space<vmem>>, vector<1x16x1x4xbf16>
    tpu.vector_store %arg7[%c0_19, %c1_20, %c17_21, %c0_22], %13 {strides = array<i32>} : memref<1x18x18x4xbf16, #tpu.memory_space<vmem>>, vector<1x16x1x4xbf16>,
    %18 = arith.truncf %11 : vector<1x16x16x4xf32> to vector<1x16x16x4xbf16>
    %c0_23 = arith.constant 0 : index
    %c1_24 = arith.constant 1 : index
    %c1_25 = arith.constant 1 : index
    %c0_26 = arith.constant 0 : index
    %19 = vector.load %arg7[%c0_23, %c1_24, %c1_25, %c0_26] : memref<1x18x18x4xbf16, #tpu.memory_space<vmem>>, vector<1x16x16x4xbf16>
    tpu.vector_store %arg7[%c0_23, %c1_24, %c1_25, %c0_26], %18 {strides = array<i32>} : memref<1x18x18x4xbf16, #tpu.memory_space<vmem>>, vector<1x16x16x4xbf16>,
    %c0_27 = arith.constant 0 : index
    %c0_28 = arith.constant 0 : index
    %c0_29 = arith.constant 0 : index
    %c0_30 = arith.constant 0 : index
    %20 = vector.load %arg7[%c0_27, %c0_28, %c0_29, %c0_30] : memref<1x18x18x4xbf16, #tpu.memory_space<vmem>>, vector<1x16x16x4xbf16>
    %21 = vector.shape_cast %20 : vector<1x16x16x4xbf16> to vector<256x4xbf16>
    %c0_31 = arith.constant 0 : index
    %c0_32 = arith.constant 0 : index
    %22 = vector.load %arg8[%c0_31, %c0_32] : memref<256x36xbf16, #tpu.memory_space<vmem>>, vector<256x4xbf16>
    tpu.vector_store %arg8[%c0_31, %c0_32], %21 {strides = array<i32>} : memref<256x36xbf16, #tpu.memory_space<vmem>>, vector<256x4xbf16>,
    %c0_33 = arith.constant 0 : index
    %c0_34 = arith.constant 0 : index
    %c1_35 = arith.constant 1 : index
    %c0_36 = arith.constant 0 : index
    %23 = vector.load %arg7[%c0_33, %c0_34, %c1_35, %c0_36] : memref<1x18x18x4xbf16, #tpu.memory_space<vmem>>, vector<1x16x16x4xbf16>
    %24 = vector.shape_cast %23 : vector<1x16x16x4xbf16> to vector<256x4xbf16>
    %c0_37 = arith.constant 0 : index
    %c4 = arith.constant 4 : index
    %25 = vector.load %arg8[%c0_37, %c4] : memref<256x36xbf16, #tpu.memory_space<vmem>>, vector<256x4xbf16>
    tpu.vector_store %arg8[%c0_37, %c4], %24 {strides = array<i32>} : memref<256x36xbf16, #tpu.memory_space<vmem>>, vector<256x4xbf16>,
    %c0_38 = arith.constant 0 : index
    %c0_39 = arith.constant 0 : index
    %c2 = arith.constant 2 : index
    %c0_40 = arith.constant 0 : index
    %26 = vector.load %arg7[%c0_38, %c0_39, %c2, %c0_40] : memref<1x18x18x4xbf16, #tpu.memory_space<vmem>>, vector<1x16x16x4xbf16>
    %27 = vector.shape_cast %26 : vector<1x16x16x4xbf16> to vector<256x4xbf16>
    %c0_41 = arith.constant 0 : index
    %c8 = arith.constant 8 : index
    %28 = vector.load %arg8[%c0_41, %c8] : memref<256x36xbf16, #tpu.memory_space<vmem>>, vector<256x4xbf16>
    tpu.vector_store %arg8[%c0_41, %c8], %27 {strides = array<i32>} : memref<256x36xbf16, #tpu.memory_space<vmem>>, vector<256x4xbf16>,
    %c0_42 = arith.constant 0 : index
    %c1_43 = arith.constant 1 : index
    %c0_44 = arith.constant 0 : index
    %c0_45 = arith.constant 0 : index
    %29 = vector.load %arg7[%c0_42, %c1_43, %c0_44, %c0_45] : memref<1x18x18x4xbf16, #tpu.memory_space<vmem>>, vector<1x16x16x4xbf16>
    %30 = vector.shape_cast %29 : vector<1x16x16x4xbf16> to vector<256x4xbf16>
    %c0_46 = arith.constant 0 : index
    %c12 = arith.constant 12 : index
    %31 = vector.load %arg8[%c0_46, %c12] : memref<256x36xbf16, #tpu.memory_space<vmem>>, vector<256x4xbf16>
    tpu.vector_store %arg8[%c0_46, %c12], %30 {strides = array<i32>} : memref<256x36xbf16, #tpu.memory_space<vmem>>, vector<256x4xbf16>,
    %c0_47 = arith.constant 0 : index
    %c1_48 = arith.constant 1 : index
    %c1_49 = arith.constant 1 : index
    %c0_50 = arith.constant 0 : index
    %32 = vector.load %arg7[%c0_47, %c1_48, %c1_49, %c0_50] : memref<1x18x18x4xbf16, #tpu.memory_space<vmem>>, vector<1x16x16x4xbf16>
    %33 = vector.shape_cast %32 : vector<1x16x16x4xbf16> to vector<256x4xbf16>
    %c0_51 = arith.constant 0 : index
    %c16 = arith.constant 16 : index
    %34 = vector.load %arg8[%c0_51, %c16] : memref<256x36xbf16, #tpu.memory_space<vmem>>, vector<256x4xbf16>
    tpu.vector_store %arg8[%c0_51, %c16], %33 {strides = array<i32>} : memref<256x36xbf16, #tpu.memory_space<vmem>>, vector<256x4xbf16>,
    %c0_52 = arith.constant 0 : index
    %c1_53 = arith.constant 1 : index
    %c2_54 = arith.constant 2 : index
    %c0_55 = arith.constant 0 : index
    %35 = vector.load %arg7[%c0_52, %c1_53, %c2_54, %c0_55] : memref<1x18x18x4xbf16, #tpu.memory_space<vmem>>, vector<1x16x16x4xbf16>
    %36 = vector.shape_cast %35 : vector<1x16x16x4xbf16> to vector<256x4xbf16>
    %c0_56 = arith.constant 0 : index
    %c20 = arith.constant 20 : index
    %37 = vector.load %arg8[%c0_56, %c20] : memref<256x36xbf16, #tpu.memory_space<vmem>>, vector<256x4xbf16>
    tpu.vector_store %arg8[%c0_56, %c20], %36 {strides = array<i32>} : memref<256x36xbf16, #tpu.memory_space<vmem>>, vector<256x4xbf16>,
    %c0_57 = arith.constant 0 : index
    %c2_58 = arith.constant 2 : index
    %c0_59 = arith.constant 0 : index
    %c0_60 = arith.constant 0 : index
    %38 = vector.load %arg7[%c0_57, %c2_58, %c0_59, %c0_60] : memref<1x18x18x4xbf16, #tpu.memory_space<vmem>>, vector<1x16x16x4xbf16>
    %39 = vector.shape_cast %38 : vector<1x16x16x4xbf16> to vector<256x4xbf16>
    %c0_61 = arith.constant 0 : index
    %c24 = arith.constant 24 : index
    %40 = vector.load %arg8[%c0_61, %c24] : memref<256x36xbf16, #tpu.memory_space<vmem>>, vector<256x4xbf16>
    tpu.vector_store %arg8[%c0_61, %c24], %39 {strides = array<i32>} : memref<256x36xbf16, #tpu.memory_space<vmem>>, vector<256x4xbf16>,
    %c0_62 = arith.constant 0 : index
    %c2_63 = arith.constant 2 : index
    %c1_64 = arith.constant 1 : index
    %c0_65 = arith.constant 0 : index
    %41 = vector.load %arg7[%c0_62, %c2_63, %c1_64, %c0_65] : memref<1x18x18x4xbf16, #tpu.memory_space<vmem>>, vector<1x16x16x4xbf16>
    %42 = vector.shape_cast %41 : vector<1x16x16x4xbf16> to vector<256x4xbf16>
    %c0_66 = arith.constant 0 : index
    %c28 = arith.constant 28 : index
    %43 = vector.load %arg8[%c0_66, %c28] : memref<256x36xbf16, #tpu.memory_space<vmem>>, vector<256x4xbf16>
    tpu.vector_store %arg8[%c0_66, %c28], %42 {strides = array<i32>} : memref<256x36xbf16, #tpu.memory_space<vmem>>, vector<256x4xbf16>,
    %c0_67 = arith.constant 0 : index
    %c2_68 = arith.constant 2 : index
    %c2_69 = arith.constant 2 : index
    %c0_70 = arith.constant 0 : index
    %44 = vector.load %arg7[%c0_67, %c2_68, %c2_69, %c0_70] : memref<1x18x18x4xbf16, #tpu.memory_space<vmem>>, vector<1x16x16x4xbf16>
    %45 = vector.shape_cast %44 : vector<1x16x16x4xbf16> to vector<256x4xbf16>
    %c0_71 = arith.constant 0 : index
    %c32 = arith.constant 32 : index
    %46 = vector.load %arg8[%c0_71, %c32] : memref<256x36xbf16, #tpu.memory_space<vmem>>, vector<256x4xbf16>
    tpu.vector_store %arg8[%c0_71, %c32], %45 {strides = array<i32>} : memref<256x36xbf16, #tpu.memory_space<vmem>>, vector<256x4xbf16>,
    %c0_72 = arith.constant 0 : index
    %c0_73 = arith.constant 0 : index
    %47 = vector.load %arg8[%c0_72, %c0_73] : memref<256x36xbf16, #tpu.memory_space<vmem>>, vector<256x36xbf16>
    %c0_74 = arith.constant 0 : index
    %c0_75 = arith.constant 0 : index
    %48 = vector.load %arg4[%c0_74, %c0_75] : memref<36x4xbf16, #tpu.memory_space<vmem>>, vector<36x4xbf16>
    %cst_76 = arith.constant dense<0.000000e+00> : vector<256x4xf32>
    %49 = tpu.matmul %47, %48, %cst_76 {dimension_numbers = #tpu.dot_dimension_numbers<[1], [0], [0], [1], [0, 0, 1, 1], [], []>} : vector<256x36xbf16>, vector<36x4xbf16>, vector<256x4xf32> -> vector<256x4xf32>
    %50 = vector.shape_cast %49 : vector<256x4xf32> to vector<1x16x16x4xf32>
    %51 = arith.truncf %50 : vector<1x16x16x4xf32> to vector<1x16x16x4xbf16>
    %c0_77 = arith.constant 0 : index
    %c0_78 = arith.constant 0 : index
    %c0_79 = arith.constant 0 : index
    %c0_80 = arith.constant 0 : index
    %52 = vector.load %arg5[%c0_77, %c0_78, %c0_79, %c0_80] : memref<1x16x16x4xbf16, #tpu.memory_space<vmem>>, vector<1x16x16x4xbf16>
    tpu.vector_store %arg5[%c0_77, %c0_78, %c0_79, %c0_80], %51 {strides = array<i32>} : memref<1x16x16x4xbf16, #tpu.memory_space<vmem>>, vector<1x16x16x4xbf16>,
    %cst_81 = arith.constant dense<0.000000e+00> : vector<4xf32>
    %53 = vector.multi_reduction <add>, %49, %cst_81 [0] : vector<256x4xf32> to vector<4xf32>
    %54 = vector.shape_cast %53 : vector<4xf32> to vector<1x4xf32>
    %55 = vector.shape_cast %54 : vector<1x4xf32> to vector<1x1x4xf32>
    %c0_82 = arith.constant 0 : index
    %c0_83 = arith.constant 0 : index
    %c0_84 = arith.constant 0 : index
    %56 = vector.load %arg6[%c0_82, %c0_83, %c0_84] : memref<1x2x4xf32, #tpu.memory_space<vmem>>, vector<1x1x4xf32>
    tpu.vector_store %arg6[%c0_82, %c0_83, %c0_84], %55 {strides = array<i32>} : memref<1x2x4xf32, #tpu.memory_space<vmem>>, vector<1x1x4xf32>,
    %57 = arith.mulf %49, %49 : vector<256x4xf32>
    %cst_85 = arith.constant dense<0.000000e+00> : vector<4xf32>
    %58 = vector.multi_reduction <add>, %57, %cst_85 [0] : vector<256x4xf32> to vector<4xf32>
    %59 = vector.shape_cast %58 : vector<4xf32> to vector<1x4xf32>
    %60 = vector.shape_cast %59 : vector<1x4xf32> to vector<1x1x4xf32>
    %c0_86 = arith.constant 0 : index
    %c1_87 = arith.constant 1 : index
    %c0_88 = arith.constant 0 : index
    %61 = vector.load %arg6[%c0_86, %c1_87, %c0_88] : memref<1x2x4xf32, #tpu.memory_space<vmem>>, vector<1x1x4xf32>
    tpu.vector_store %arg6[%c0_86, %c1_87, %c0_88], %60 {strides = array<i32>} : memref<1x2x4xf32, #tpu.memory_space<vmem>>, vector<1x1x4xf32>,
    return
  }
  func.func @transform_0(%arg0: i32) -> (i32, i32, i32, i32) {
    %c0_i32 = arith.constant 0 : i32
    %c0_i32_0 = arith.constant 0 : i32
    %c0_i32_1 = arith.constant 0 : i32
    %c0_i32_2 = arith.constant 0 : i32
    return %arg0, %c0_i32, %c0_i32_0, %c0_i32_1 : i32, i32, i32, i32
  }
  func.func @transform_1(%arg0: i32) -> (i32, i32) {
    %c0_i32 = arith.constant 0 : i32
    %c0_i32_0 = arith.constant 0 : i32
    %c0_i32_1 = arith.constant 0 : i32
    return %c0_i32, %c0_i32_0 : i32, i32
  }
  func.func @transform_2(%arg0: i32) -> (i32, i32) {
    %c0_i32 = arith.constant 0 : i32
    %c0_i32_0 = arith.constant 0 : i32
    %c0_i32_1 = arith.constant 0 : i32
    return %c0_i32, %c0_i32_0 : i32, i32
  }
  func.func @transform_3(%arg0: i32) -> (i32, i32) {
    %c0_i32 = arith.constant 0 : i32
    %c0_i32_0 = arith.constant 0 : i32
    %c0_i32_1 = arith.constant 0 : i32
    return %c0_i32, %c0_i32_0 : i32, i32
  }
  func.func @transform_4(%arg0: i32) -> (i32, i32, i32, i32) {
    %c0_i32 = arith.constant 0 : i32
    %c0_i32_0 = arith.constant 0 : i32
    %c0_i32_1 = arith.constant 0 : i32
    %c0_i32_2 = arith.constant 0 : i32
    return %arg0, %c0_i32, %c0_i32_0, %c0_i32_1 : i32, i32, i32, i32
  }
  func.func @transform_5(%arg0: i32) -> (i32, i32, i32) {
    %c0_i32 = arith.constant 0 : i32
    %c0_i32_0 = arith.constant 0 : i32
    %c0_i32_1 = arith.constant 0 : i32
    return %arg0, %c0_i32, %c0_i32_0 : i32, i32, i32
  }
}

module attributes {stable_mosaic.version = 11 : i64} {
  func.func @_bn_add_relu_kernel(%arg0: i32, %arg1: memref<1x16x64xbf16, #tpu.memory_space<vmem>>, %arg2: memref<1x64xf32, #tpu.memory_space<vmem>>, %arg3: memref<1x64xf32, #tpu.memory_space<vmem>>, %arg4: memref<1x16x64xf32, #tpu.memory_space<vmem>>, %arg5: memref<1x16x64xf32, #tpu.memory_space<vmem>>) attributes {dimension_semantics = [#tpu.dimension_semantics<parallel>], iteration_bounds = array<i64: 2>, scalar_prefetch = 0 : i64, scratch_operands = 0 : i64, tpu.core_type = #tpu.core_type<tc>, window_params = [{transform_indices = @transform_0, window_bounds = array<i64: 1, 16, 64>}, {pipeline_mode = #tpu.pipeline_mode<synchronous>, transform_indices = @transform_1, window_bounds = array<i64: 1, 64>}, {pipeline_mode = #tpu.pipeline_mode<synchronous>, transform_indices = @transform_2, window_bounds = array<i64: 1, 64>}, {transform_indices = @transform_3, window_bounds = array<i64: 1, 16, 64>}, {transform_indices = @transform_4, window_bounds = array<i64: 1, 16, 64>}]} {
    %c0 = arith.constant 0 : index
    %c0_0 = arith.constant 0 : index
    %0 = vector.load %arg2[%c0, %c0_0] : memref<1x64xf32, #tpu.memory_space<vmem>>, vector<1x64xf32>
    %1 = vector.shape_cast %0 : vector<1x64xf32> to vector<1x1x64xf32>
    %c0_1 = arith.constant 0 : index
    %c0_2 = arith.constant 0 : index
    %2 = vector.load %arg3[%c0_1, %c0_2] : memref<1x64xf32, #tpu.memory_space<vmem>>, vector<1x64xf32>
    %3 = vector.shape_cast %2 : vector<1x64xf32> to vector<1x1x64xf32>
    %c0_3 = arith.constant 0 : index
    %c0_4 = arith.constant 0 : index
    %c0_5 = arith.constant 0 : index
    %4 = vector.load %arg4[%c0_3, %c0_4, %c0_5] : memref<1x16x64xf32, #tpu.memory_space<vmem>>, vector<1x16x64xf32>
    %c0_6 = arith.constant 0 : index
    %c0_7 = arith.constant 0 : index
    %c0_8 = arith.constant 0 : index
    %5 = vector.load %arg1[%c0_6, %c0_7, %c0_8] : memref<1x16x64xbf16, #tpu.memory_space<vmem>>, vector<1x16x64xbf16>
    %6 = arith.extf %5 : vector<1x16x64xbf16> to vector<1x16x64xf32>
    %7 = vector.broadcast %1 : vector<1x1x64xf32> to vector<1x16x64xf32>
    %8 = arith.mulf %6, %7 : vector<1x16x64xf32>
    %9 = arith.addf %4, %8 : vector<1x16x64xf32>
    %10 = vector.broadcast %3 : vector<1x1x64xf32> to vector<1x16x64xf32>
    %11 = arith.addf %9, %10 : vector<1x16x64xf32>
    %cst = arith.constant 0.000000e+00 : f32
    %12 = vector.broadcast %cst : f32 to vector<1x16x64xf32>
    %13 = arith.maximumf %11, %12 : vector<1x16x64xf32>
    %c0_9 = arith.constant 0 : index
    %c0_10 = arith.constant 0 : index
    %c0_11 = arith.constant 0 : index
    %14 = vector.load %arg5[%c0_9, %c0_10, %c0_11] : memref<1x16x64xf32, #tpu.memory_space<vmem>>, vector<1x16x64xf32>
    tpu.vector_store %arg5[%c0_9, %c0_10, %c0_11], %13 {strides = array<i32>} : memref<1x16x64xf32, #tpu.memory_space<vmem>>, vector<1x16x64xf32>,
    return
  }
  func.func @transform_0(%arg0: i32) -> (i32, i32, i32) {
    %c0_i32 = arith.constant 0 : i32
    %c0_i32_0 = arith.constant 0 : i32
    %c0_i32_1 = arith.constant 0 : i32
    return %arg0, %c0_i32, %c0_i32_0 : i32, i32, i32
  }
  func.func @transform_1(%arg0: i32) -> (i32, i32) {
    %c0_i32 = arith.constant 0 : i32
    %c0_i32_0 = arith.constant 0 : i32
    %c0_i32_1 = arith.constant 0 : i32
    return %c0_i32, %c0_i32_0 : i32, i32
  }
  func.func @transform_2(%arg0: i32) -> (i32, i32) {
    %c0_i32 = arith.constant 0 : i32
    %c0_i32_0 = arith.constant 0 : i32
    %c0_i32_1 = arith.constant 0 : i32
    return %c0_i32, %c0_i32_0 : i32, i32
  }
  func.func @transform_3(%arg0: i32) -> (i32, i32, i32) {
    %c0_i32 = arith.constant 0 : i32
    %c0_i32_0 = arith.constant 0 : i32
    %c0_i32_1 = arith.constant 0 : i32
    return %arg0, %c0_i32, %c0_i32_0 : i32, i32, i32
  }
  func.func @transform_4(%arg0: i32) -> (i32, i32, i32) {
    %c0_i32 = arith.constant 0 : i32
    %c0_i32_0 = arith.constant 0 : i32
    %c0_i32_1 = arith.constant 0 : i32
    return %arg0, %c0_i32, %c0_i32_0 : i32, i32, i32
  }
}

</mosaic_0001>

<bundles_post_ra>
// kernel: basic_block_forward.5
= control target key start
LH: loop header
LB: loop body
LE: loop exit
PB: predicated region body
PF: predicated region fallthrough
CT: control target
= control target key end

     0   :  { %s379_s15 = smov 0   ;;  %s405_s0 = inlined_call_operand.vmem [shape: bf16[2,16,64], index: 0, kind: input, shape index: {}]   ;;  %s406_s1 = inlined_call_operand.vmem [shape: f32[1,64], index: 1, kind: input, shape index: {}]   ;;  %s407_s2 = inlined_call_operand.vmem [shape: f32[1,64], index: 2, kind: input, shape index: {}]   ;;  %s408_s3 = inlined_call_operand.vmem [shape: f32[2,16,64], index: 3, kind: input, shape index: {}, may-alias: {3,4}]   ;;  %s409_s4 = inlined_call_operand.vmem [shape: f32[2,16,64], index: 4, kind: output, shape index: {}, may-alias: {3,4}]  }
   0x1 LB: > { %s316_s16 = sadd.s32 4294967295, %s352_s15   ;;  %p320_p0 = scmp.ge.s32.totalorder %s352_s15, 1  ;;  %s352_s15 = sphi %s379_s15, %s14_s15  }
   0x2   : > { %p172_p1 = scmp.lt.s32.totalorder %s352_s15, 3 }
   0x4   : > { %p173_p2 = pnand %p320_p0, %p172_p1 }
   0x5   : > { %p203_p3 = scmp.lt.s32.totalorder (!%p173_p2), %s316_s16, 1 }
   0x6   : > { %176 = sbr.rel (%p173_p2) target bundleno = 26 (0x1a), region = 36 }
   0xb   : > { %s411_s16 = smov (!%p203_p3, %s316_s16), 1  ;;  %v327_v0 = vld [vmem:[%s406_s1] ss:$0 sm:$0xff]  ;;  %vm246_vm0 = vcmask 523264  }
   0xc   : > { %s331_s17 = sshll.u32 %s411_s16, 3  ;;  %s332_s18 = sshll.u32 %s411_s16, 4  ;;  %v328_v8 = vld [vmem:[%s407_s2] ss:$0 sm:$0xff] }
   0xd   : > { %s207_s21 = scalar_lea.vmem %s405_s0, %s331_s17  ;;  %s212_s24 = scalar_lea.vmem %s408_s3, %s332_s18 }
   0xe   : > { %v335_v1 = vld [vmem:[%s207_s21] sm:$0xff]   ;;  %v221_v5 = vld [vmem:[%s212_s24 + $0x8] sm:$0xff]  ;;  %s217_s5 = scalar_lea.vmem %s409_s4, %s332_s18 }
   0xf   : > { %v336_v2 = vunpack.c.l.bf16 %v335_v1  ;;  %v337_v3 = vunpack.c.h.bf16 %v335_v1  ;;  %v220_v4 = vld [vmem:[%s212_s24] sm:$0xff] }
  0x11   : > { %v232_v6 = vmul.f32 %v336_v2, %v327_v0  ;;  %v233_v7 = vmul.f32 %v337_v3, %v327_v0 }
  0x13   : > { %v234_v9 = vadd.f32 %v232_v6, %v220_v4  ;;  %v235_v10 = vadd.f32 %v233_v7, %v221_v5 }
  0x15   : > { %v242_v11 = vadd.f32 %v328_v8, %v234_v9  ;;  %v243_v12 = vadd.f32 %v328_v8, %v235_v10 }
  0x17   : > { %v244_v13 = vmax.f32 %v242_v11, 0.0  ;;  %v245_v14 = vmax.f32 %v243_v12, 0.0 }
  0x19   : > { %247 = vst.msk [vmem:[%s217_s5] sm:$0xff] %vm246_vm0, %v244_v13  ;;  %248 = vst.msk [vmem:[%s217_s5 + $0x8] sm:$0xff] %vm246_vm0, %v245_v14 }
  0x1a PF: > { %s14_s15 = sadd.s32 1, %s352_s15  }
  0x1b   : > { %p11_p4 = scmp.ge.s32.totalorder %s14_s15, 4  }
  0x1d   :  { %13 = sbr.rel (!%p11_p4) target bundleno = 1 (0x1), region = 69 }

// kernel: basic_block_forward.4
= control target key start
LH: loop header
LB: loop body
LE: loop exit
PB: predicated region body
PF: predicated region fallthrough
CT: control target
= control target key end

     0   :  { %s5428_s18 = smov 0   ;;  %s6952_s0 = inlined_call_operand.vmem [shape: bf16[2,16,16,4], index: 0, kind: input, shape index: {}]   ;;  %s6953_s1 = inlined_call_operand.vmem [shape: f32[1,4], index: 1, kind: input, shape index: {}]   ;;  %s6954_s2 = inlined_call_operand.vmem [shape: f32[1,4], index: 2, kind: input, shape index: {}]   ;;  %s6955_s3 = inlined_call_operand.vmem [shape: bf16[36,4], index: 3, kind: input, shape index: {}]   ;;  %s6956_s4 = inlined_call_operand.vmem [shape: bf16[2,16,16,4], index: 4, kind: output, shape index: {0}]   ;;  %s6957_s5 = inlined_call_operand.vmem [shape: f32[2,2,4], index: 5, kind: output, shape index: {1}]  }
   0x1 LB: > { %s4970_s19 = sadd.s32 4294967295, %s5387_s18   ;;  %p4974_p0 = scmp.ge.s32.totalorder %s5387_s18, 1  ;;  %s5387_s18 = sphi %s5428_s18, %s16_s18  }
   0x2   : > { %p190_p1 = scmp.lt.s32.totalorder %s5387_s18, 3 }
   0x4   : > { %p191_p2 = pnand %p4974_p0, %p190_p1 }
   0x5   : > { %p222_p3 = scmp.lt.s32.totalorder (!%p191_p2), %s4970_s19, 1  ;;  %s5390_s28 = smov (!%p191_p2), 4  }
   0x6   : > { %194 = sbr.rel (%p191_p2) target bundleno = 986 (0x3da), region = 36  ;;  %s5391_s8 = smov (!%p191_p2), 8  }
   0x7   : > { %s5392_s9 = smov (!%p191_p2), 12   ;;  %s5393_s10 = smov (!%p191_p2), 16  }
   0x8   : > { %s5394_s11 = smov (!%p191_p2), 20   ;;  %s5395_s12 = smov (!%p191_p2), 24  }
   0x9   : > { %s5396_s15 = smov (!%p191_p2), 28   ;;  %s5397_s24 = smov (!%p191_p2), 32  }
   0xb   : > { %vm411_vm0 = vcmask 27648   ;;  %v5389_v0 = vmov 0   ;;  %vm414_vm1 = vcmask 24576   ;;  %vm422_vm2 = vsmask.f32 256  ;;  %s6971_s19 = smov (!%p222_p3, %s4970_s19), 1 }
   0xc   : > { %412 = vst.msk [vmem:[#allocation2] sm:$0xf] %vm411_vm0, %v5389_v0  ;;  %413 = vst.msk [vmem:[#allocation2 + $0x4] sm:$0xf] %vm411_vm0, %v5389_v0  ;;  %v424_v1 = vld [vmem:[#allocation2 + $0xc] sm:$0x1] }
   0xd   : > { %417 = vst.msk [vmem:[#allocation2 + $0xcc] sm:$0xf] %vm411_vm0, %v5389_v0  ;;  %418 = vst.msk [vmem:[#allocation2 + $0xd0] sm:$0xf] %vm411_vm0, %v5389_v0  ;;  %vm1166_vm3 = vsmask.f32 3328 }
   0xe   : > { %vm1167_vm4 = vsmask.f32 7440  ;;  %vm5444_vm5 = vmand %vm414_vm1, %vm422_vm2  ;;  %vm472_vm6 = vsmask.f32 7938  ;;  %415 = vst.msk [vmem:[#allocation2 + $0x8] sm:$0x1] %vm414_vm1, %v5389_v0 }
   0xf   : > { %419 = vst.msk [vmem:[#allocation2 + $0xd4] sm:$0x1] %vm414_vm1, %v5389_v0  ;;  %v425_v3 = vsel %vm5444_vm5, 0, %v424_v1  ;;  %v474_v4 = vld [vmem:[#allocation2 + $0x14] sm:$0x1]  ;;  %s5131_s20 = sshll.u32 %s6971_s19, 7  ;;  %vm5469_vm7 = vmand %vm414_vm1, %vm472_vm6 }
  0x10   : > { %v427_v5 = vld [vmem:[#allocation2 + $0x18] sm:$0x1]  ;;  %426 = vst [vmem:[#allocation2 + $0xc] sm:$0x1] %v425_v3  ;;  %v477_v7 = vld [vmem:[#allocation2 + $0x20] sm:$0x1]  ;;  %s5460_s23 = scalar_lea.vmem %s6952_s0, %s5131_s20  ;;  %vm5499_vm9 = vmor %vm1166_vm3, %vm1167_vm4  ;;  %s6753_s30 = scalar_lea.vmem %s6956_s4, %s5131_s20 }
  0x11   : > { %v428_v6 = vsel %vm5444_vm5, 0, %v427_v5  ;;  %v430_v8 = vld [vmem:[#allocation2 + $0x24] sm:$0x1]  ;;  %v5465_v9 = vld [vmem:[%s6953_s1] ss:$0 sm:$0xff]  ;;  %v475_v14 = vsel %vm5469_vm7, 0, %v474_v4  ;;  %vm5521_vm11 = vmand %vm411_vm0, %vm472_vm6 }
  0x12   : > { %429 = vst [vmem:[#allocation2 + $0x18] sm:$0x1] %v428_v6  ;;  %v431_v11 = vsel %vm5444_vm5, 0, %v430_v8  ;;  %v480_v12 = vld [vmem:[#allocation2 + $0x2c] sm:$0x1]  ;;  %v5198_v13 = vld [vmem:[%s5460_s23] sm:$0xff]  }
  0x13   : > { %v5261_v15 = vld [vmem:[%s5460_s23 + $0x8] sm:$0xff]   ;;  %v478_v16 = vsel %vm5469_vm7, 0, %v477_v7  ;;  %432 = vst [vmem:[#allocation2 + $0x24] sm:$0x1] %v431_v11  ;;  %v481_v17 = vsel %vm5469_vm7, 0, %v480_v12  ;;  %v5199_v20 = vunpack.c.l.bf16 %v5198_v13  ;;  %v5200_v21 = vunpack.c.h.bf16 %v5198_v13  ;;  %v5262_v34 = vld [vmem:[%s5460_s23 + $0x10] sm:$0xff]  }
  0x14   : > { %v1118_v18 = vld [vmem:[#allocation2] sm:$0xf]  ;;  %v1119_v19 = vld [vmem:[#allocation2 + $0x4] sm:$0xf]  ;;  %476 = vst [vmem:[#allocation2 + $0x14] sm:$0x1] %v475_v14  ;;  %v5203_v22 = vunpack.c.l.bf16 %v5261_v15  ;;  %v5204_v23 = vunpack.c.h.bf16 %v5261_v15  ;;  %v5207_v46 = vunpack.c.l.bf16 %v5262_v34  ;;  %v5208_v55 = vunpack.c.h.bf16 %v5262_v34 }
  0x15   : > { %479 = vst [vmem:[#allocation2 + $0x20] sm:$0x1] %v478_v16  ;;  %482 = vst [vmem:[#allocation2 + $0x2c] sm:$0x1] %v481_v17  ;;  %v1170_v24 = vshrl.u32 %v1118_v18, 16  ;;  %v1173_v25 = vshll.u32 %v1118_v18, 16  ;;  %v309_v29 = vmul.f32 %v5199_v20, %v5465_v9  ;;  %v310_v30 = vmul.f32 %v5200_v21, %v5465_v9 }
  0x16   : > { %v1179_v26 = vshll.u32 %v1119_v19, 16  ;;  %v1183_v27 = vshrl.u32 %v1119_v19, 16  ;;  %v5486_v28 = vld [vmem:[%s6954_s2] ss:$0 sm:$0xff]  ;;  %vm618_vm8 = vsmask.f32 4368  ;;  %v311_v32 = vmul.f32 %v5203_v22, %v5465_v9 }
  0x17   : > { %v1120_v31 = vld [vmem:[#allocation2 + $0x8] sm:$0x1]  ;;  %v312_v33 = vmul.f32 %v5204_v23, %v5465_v9  ;;  %v1172_v35 = vrot.slane %v1170_v24, 4  ;;  %v1175_v36 = vrot.slane %v1173_v25, 5  ;;  %v347_v39 = vadd.f32 %v5486_v28, %v309_v29  ;;  %v5263_v5 = vld [vmem:[%s5460_s23 + $0x18] sm:$0xff]   ;;  %vm5513_vm10 = vmor %vm422_vm2, %vm618_vm8  ;;  %s4979_s20 = sshll.u32 %s6971_s19, 1 }
  0x18   : > { %v1181_v37 = vrot.slane %v1179_v26, 5  ;;  %v1185_v38 = vrot.slane %v1183_v27, 4  ;;  %v348_v40 = vadd.f32 %v5486_v28, %v310_v30  ;;  %v1189_v41 = vshll.u32 %v1120_v31, 16  ;;  %v942_v18 = vld [vmem:[#allocation2 + $0xc] sm:$0xf] }
  0x19   : > { %v349_v42 = vadd.f32 %v5486_v28, %v311_v32  ;;  %v1176_v43 = vor.u32 %v1175_v36, %v1172_v35  ;;  %v350_v45 = vadd.f32 %v5486_v28, %v312_v33  ;;  %v379_v48 = vmax.f32 %v347_v39, 0.0  ;;  %v949_v29 = vld [vmem:[#allocation2 + $0x18] sm:$0xf]  ;;  %v433_v35 = vld [vmem:[#allocation2 + $0x30] sm:$0x1] }
  0x1a   : > { %v1186_v44 = vor.u32 %v1185_v38, %v1181_v37  ;;  %v380_v49 = vmax.f32 %v348_v40, 0.0  ;;  %v1191_v50 = vrot.slane %v1189_v41, 5  ;;  %v313_v59 = vmul.f32 %v5207_v46, %v5465_v9  ;;  %v483_v40 = vld [vmem:[#allocation2 + $0x38] sm:$0x1]  ;;  %v5264_v41 = vld [vmem:[%s5460_s23 + $0x20] sm:$0xff]  }
  0x1b   : > { %v381_v51 = vmax.f32 %v349_v42, 0.0  ;;  %v1177_v52 = vrot.slane %v1176_v43, 4  ;;  %v382_v54 = vmax.f32 %v350_v45, 0.0  ;;  %v5133_v56 = vpack.c.bf16 %v379_v48, %v379_v48  ;;  %v946_v19 = vld [vmem:[#allocation2 + $0x14] sm:$0x1] }
  0x1c   : > { %v1187_v53 = vrot.slane %v1186_v44, 4  ;;  %v5134_v57 = vpack.c.bf16 %v380_v49, %v380_v49  ;;  %v314_v63 = vmul.f32 %v5208_v55, %v5465_v9  ;;  %v351_v15 = vadd.f32 %v5486_v28, %v313_v59  ;;  %v953_v30 = vld [vmem:[#allocation2 + $0x20] sm:$0x1] }
  0x1d   : > { %v5135_v58 = vpack.c.bf16 %v381_v51, %v381_v51  ;;  %v1182_v60 = vsel %vm5499_vm9, %v1177_v52, %v1181_v37  ;;  %v5136_v62 = vpack.c.bf16 %v382_v54, %v382_v54  ;;  %v621_v0 = vshrl.u32 %v5133_v56, 16  ;;  %v436_v51 = vld [vmem:[#allocation2 + $0x3c] sm:$0x1]  ;;  %v486_v52 = vld [vmem:[#allocation2 + $0x44] sm:$0x1] }
  0x1e   : > { %v1192_v61 = vsel %vm5499_vm9, %v1187_v53, %v1191_v50  ;;  %1553 = vrot.lane.b32.xlu0 %v1182_v60, %s5390_s28  ;;  %v624_v1 = vshll.u32 %v5133_v56, 16  ;;  %v629_v3 = vshrl.u32 %v5134_v57, 16  ;;  %v632_v4 = vshll.u32 %v5134_v57, 16 }
  0x1f   : > { %v638_v6 = vshrl.u32 %v5135_v58, 16  ;;  %v641_v7 = vshll.u32 %v5135_v58, 16  ;;  %v646_v8 = vshrl.u32 %v5136_v62, 16  ;;  %v649_v11 = vshll.u32 %v5136_v62, 16 }
  0x20   : > { %v623_v13 = vrot.slane %v621_v0, 7  ;;  %v631_v14 = vrot.slane %v629_v3, 7  ;;  %v352_v16 = vadd.f32 %v5486_v28, %v314_v63  ;;  %v5211_v22 = vunpack.c.l.bf16 %v5263_v5 }
  0x21   : > { %v640_v20 = vrot.slane %v638_v6, 7  ;;  %v648_v21 = vrot.slane %v646_v8, 7  ;;  %v5212_v23 = vunpack.c.h.bf16 %v5263_v5  ;;  %v383_v39 = vmax.f32 %v351_v15, 0.0 }
  0x22   : > { %v626_v24 = vor.u32 %v624_v1, %v623_v13  ;;  %v627_v25 = vrot.slane %v623_v13, 4  ;;  %v634_v26 = vor.u32 %v632_v4, %v631_v14  ;;  %1555 = vrot.lane.b32.xlu0 %v1192_v61, %s5390_s28  ;;  %v636_v27 = vrot.slane %v631_v14, 4  ;;  %v5552_v1 = vld [vmem:[%s5460_s23 + $0x28] sm:$0xff]  }
  0x23   : > { %v643_v31 = vor.u32 %v641_v7, %v640_v20  ;;  %v644_v32 = vrot.slane %v640_v20, 4  ;;  %v651_v33 = vor.u32 %v649_v11, %v648_v21  ;;  %v653_v34 = vrot.slane %v648_v21, 4 }
  0x24   : > { %v635_v36 = vsel %vm5513_vm10, %v627_v25, %v634_v26  ;;  %v943_v37 = vsel %vm5521_vm11, %v626_v24, %v942_v18  ;;  %v947_v38 = vsel %vm5444_vm5, %v636_v27, %v946_v19  ;;  %v384_v45 = vmax.f32 %v352_v16, 0.0  ;;  %v956_v27 = vld [vmem:[#allocation2 + $0x24] sm:$0xf] }
  0x25   : > { %944 = vst [vmem:[#allocation2 + $0xc] sm:$0xf] %v943_v37  ;;  %945 = vst.msk [vmem:[#allocation2 + $0x10] sm:$0xf] %vm411_vm0, %v635_v36  ;;  %v652_v42 = vsel %vm5513_vm10, %v644_v32, %v651_v33  ;;  %v950_v43 = vsel %vm5521_vm11, %v643_v31, %v949_v29  ;;  %v954_v44 = vsel %vm5444_vm5, %v653_v34, %v953_v30  ;;  %v434_v50 = vsel %vm5444_vm5, 0, %v433_v35 }
  0x26   : > { %948 = vst [vmem:[#allocation2 + $0x14] sm:$0x1] %v947_v38  ;;  %951 = vst [vmem:[#allocation2 + $0x18] sm:$0xf] %v950_v43  ;;  %v5137_v46 = vpack.c.bf16 %v383_v39, %v383_v39  ;;  %v315_v48 = vmul.f32 %v5211_v22, %v5465_v9  ;;  %v316_v49 = vmul.f32 %v5212_v23, %v5465_v9  ;;  %v484_v54 = vsel %vm5469_vm7, 0, %v483_v40 }
  0x27   : > { %952 = vst.msk [vmem:[#allocation2 + $0x1c] sm:$0xf] %vm411_vm0, %v652_v42  ;;  %955 = vst [vmem:[#allocation2 + $0x20] sm:$0x1] %v954_v44  ;;  %v5138_v53 = vpack.c.bf16 %v384_v45, %v384_v45  ;;  %v5215_v55 = vunpack.c.l.bf16 %v5264_v41  ;;  %v5216_v56 = vunpack.c.h.bf16 %v5264_v41  ;;  %v437_v6 = vsel %vm5444_vm5, 0, %v436_v51 }
  0x28   : > { %435 = vst [vmem:[#allocation2 + $0x30] sm:$0x1] %v434_v50  ;;  %v655_v57 = vshrl.u32 %v5137_v46, 16  ;;  %v658_v58 = vshll.u32 %v5137_v46, 16  ;;  %v353_v59 = vadd.f32 %v5486_v28, %v315_v48  ;;  %v354_v60 = vadd.f32 %v5486_v28, %v316_v49  ;;  %485 = vst [vmem:[#allocation2 + $0x38] sm:$0x1] %v484_v54 }
  0x29   : > { %v663_v61 = vshrl.u32 %v5138_v53, 16  ;;  %v666_v62 = vshll.u32 %v5138_v53, 16  ;;  %v317_v63 = vmul.f32 %v5215_v55, %v5465_v9  ;;  %v318_v0 = vmul.f32 %v5216_v56, %v5465_v9  ;;  %438 = vst [vmem:[#allocation2 + $0x3c] sm:$0x1] %v437_v6  ;;  %v960_v56 = vld [vmem:[#allocation2 + $0x2c] sm:$0x1] }
  0x2a   : > { %v657_v3 = vrot.slane %v655_v57, 7  ;;  %v385_v4 = vmax.f32 %v353_v59, 0.0  ;;  %v386_v5 = vmax.f32 %v354_v60, 0.0  ;;  %v487_v13 = vsel %vm5469_vm7, 0, %v486_v52 }
  0x2b   : > { %v665_v7 = vrot.slane %v663_v61, 7  ;;  %v5557_v8 = vadd.f32 %v5486_v28, %v317_v63  ;;  %v5560_v11 = vadd.f32 %v5486_v28, %v318_v0  ;;  %488 = vst [vmem:[#allocation2 + $0x44] sm:$0x1] %v487_v13  ;;  %v5219_v21 = vunpack.c.l.bf16 %v5552_v1 }
  0x2c   : > { %v1121_v14 = vld [vmem:[#allocation2 + $0xc] sm:$0xf]  ;;  %v1122_v15 = vld [vmem:[#allocation2 + $0x10] sm:$0xf]  ;;  %v660_v18 = vor.u32 %v658_v58, %v657_v3  ;;  %v5139_v19 = vpack.c.bf16 %v385_v4, %v385_v4  ;;  %v5564_v20 = vpack.c.bf16 %v386_v5, %v386_v5  ;;  %v661_v33 = vrot.slane %v657_v3, 4 }
  0x2d   : > { %v1123_v16 = vld [vmem:[#allocation2 + $0x14] sm:$0x1]  ;;  %v1194_v22 = vshrl.u32 %v1121_v14, 16  ;;  %v1197_v23 = vshll.u32 %v1121_v14, 16  ;;  %v1203_v24 = vshll.u32 %v1122_v15, 16  ;;  %v1207_v25 = vshrl.u32 %v1122_v15, 16 }
  0x2e   : > { %v1124_v26 = vld [vmem:[#allocation2 + $0x18] sm:$0xf]  ;;  %v1213_v29 = vshll.u32 %v1123_v16, 16  ;;  %v1125_v30 = vld [vmem:[#allocation2 + $0x1c] sm:$0xf]  ;;  %v668_v50 = vor.u32 %v666_v62, %v665_v7  ;;  %v957_v51 = vsel %vm5521_vm11, %v660_v18, %v956_v27  ;;  %v670_v59 = vrot.slane %v665_v7, 4 }
  0x2f   : > { %v1218_v31 = vshrl.u32 %v1124_v26, 16  ;;  %v1221_v32 = vshll.u32 %v1124_v26, 16  ;;  %v1196_v34 = vrot.slane %v1194_v22, 4  ;;  %v1199_v35 = vrot.slane %v1197_v23, 5  ;;  %v1126_v38 = vld [vmem:[#allocation2 + $0x20] sm:$0x1] }
  0x30   : > { %v1205_v36 = vrot.slane %v1203_v24, 5  ;;  %v1209_v37 = vrot.slane %v1207_v25, 4  ;;  %v1215_v39 = vrot.slane %v1213_v29, 5  ;;  %v1227_v42 = vshll.u32 %v1125_v30, 16  ;;  %958 = vst [vmem:[#allocation2 + $0x24] sm:$0xf] %v957_v51 }
  0x31   : > { %v1220_v40 = vrot.slane %v1218_v31, 4  ;;  %v1223_v41 = vrot.slane %v1221_v32, 5  ;;  %v1200_v43 = vor.u32 %v1199_v35, %v1196_v34  ;;  %v1231_v45 = vshrl.u32 %v1125_v30, 16  ;;  %v963_v14 = vld [vmem:[#allocation2 + $0x30] sm:$0xf] }
  0x32   : > { %v1210_v44 = vor.u32 %v1209_v37, %v1205_v36  ;;  %v1237_v46 = vshll.u32 %v1126_v38, 16  ;;  %v1229_v49 = vrot.slane %v1227_v42, 5  ;;  %v669_v58 = vsel %vm5513_vm10, %v661_v33, %v668_v50  ;;  %v967_v25 = vld [vmem:[#allocation2 + $0x38] sm:$0x1] }
  0x33   : > { %v1224_v48 = vor.u32 %v1223_v41, %v1220_v40  ;;  %v1201_v52 = vrot.slane %v1200_v43, 4  ;;  %v1233_v54 = vrot.slane %v1231_v45, 4  ;;  %v672_v60 = vshrl.u32 %v5139_v19, 16  ;;  %959 = vst.msk [vmem:[#allocation2 + $0x28] sm:$0xf] %vm411_vm0, %v669_v58 }
  0x34   : > { %v1211_v53 = vrot.slane %v1210_v44, 4  ;;  %v1239_v55 = vrot.slane %v1237_v46, 5  ;;  %v675_v0 = vshll.u32 %v5139_v19, 16  ;;  %v961_v4 = vsel %vm5444_vm5, %v670_v59, %v960_v56  ;;  %v970_v46 = vld [vmem:[#allocation2 + $0x3c] sm:$0xf] }
  0x35   : > { %v1225_v57 = vrot.slane %v1224_v48, 4  ;;  %v1206_v61 = vsel %vm5499_vm9, %v1201_v52, %v1205_v36  ;;  %v1234_v63 = vor.u32 %v1233_v54, %v1229_v49  ;;  %v674_v5 = vrot.slane %v672_v60, 7  ;;  %962 = vst [vmem:[#allocation2 + $0x2c] sm:$0x1] %v961_v4  ;;  %v974_v54 = vld [vmem:[#allocation2 + $0x44] sm:$0x1] }
  0x36   : > { %v1216_v62 = vsel %vm5499_vm9, %v1211_v53, %v1215_v39  ;;  %1557 = vrot.lane.b32.xlu1 %v1206_v61, %s5390_s28  ;;  %v680_v6 = vshrl.u32 %v5564_v20, 16  ;;  %v683_v13 = vshll.u32 %v5564_v20, 16  ;;  %v387_v15 = vmax.f32 %v5557_v8, 0.0  ;;  %v439_v59 = vld [vmem:[#allocation2 + $0x48] sm:$0x1] }
  0x37   : > { %v1230_v3 = vsel %vm5499_vm9, %v1225_v57, %v1229_v49  ;;  %v1235_v7 = vrot.slane %v1234_v63, 4  ;;  %v388_v16 = vmax.f32 %v5560_v11, 0.0  ;;  %v677_v18 = vor.u32 %v675_v0, %v674_v5  ;;  %v1127_v8 = vld [vmem:[#allocation2 + $0x24] sm:$0xf]  ;;  %v489_v0 = vld [vmem:[#allocation2 + $0x50] sm:$0x1] }
  0x38   : > { %1561 = vrot.lane.b32.xlu0 %v1230_v3, %s5390_s28  ;;  %v678_v19 = vrot.slane %v674_v5, 4  ;;  %v682_v22 = vrot.slane %v680_v6, 7  ;;  %v5220_v23 = vunpack.c.h.bf16 %v5552_v1  ;;  %v5141_v26 = vpack.c.bf16 %v387_v15, %v387_v15 }
  0x39   : > { %v1240_v24 = vsel %vm5499_vm9, %v1235_v7, %v1239_v55  ;;  %v5142_v27 = vpack.c.bf16 %v388_v16, %v388_v16  ;;  %v319_v20 = vmul.f32 %v5219_v21, %v5465_v9  ;;  %v964_v11 = vsel %vm5521_vm11, %v677_v18, %v963_v14 }
  0x3a   : > { %1559 = vrot.lane.b32.xlu1 %v1216_v62, %s5390_s28  ;;  %v685_v29 = vor.u32 %v683_v13, %v682_v22  ;;  %v687_v30 = vrot.slane %v682_v22, 4  ;;  %v320_v31 = vmul.f32 %v5220_v23, %v5465_v9  ;;  %v1242_v32 = vshrl.u32 %v1127_v8, 16  ;;  %965 = vst [vmem:[#allocation2 + $0x30] sm:$0xf] %v964_v11  ;;  %v1128_v36 = vld [vmem:[#allocation2 + $0x28] sm:$0xf] }
  0x3b   : > { %v1245_v33 = vshll.u32 %v1127_v8, 16  ;;  %v689_v34 = vshrl.u32 %v5141_v26, 16  ;;  %v692_v35 = vshll.u32 %v5141_v26, 16  ;;  %v697_v37 = vshrl.u32 %v5142_v27, 16 }
  0x3c   : > { %v686_v1 = vsel %vm5513_vm10, %v678_v19, %v685_v29  ;;  %v968_v21 = vsel %vm5444_vm5, %v687_v30, %v967_v25  ;;  %v700_v38 = vshll.u32 %v5142_v27, 16  ;;  %v1244_v39 = vrot.slane %v1242_v32, 4  ;;  %v1129_v43 = vld [vmem:[#allocation2 + $0x2c] sm:$0x1]  ;;  %v5266_v29 = vld [vmem:[%s5460_s23 + $0x30] sm:$0xff]  }
  0x3d   : > { %v1247_v40 = vrot.slane %v1245_v33, 5  ;;  %v1251_v41 = vshll.u32 %v1128_v36, 16  ;;  %v1255_v42 = vshrl.u32 %v1128_v36, 16  ;;  %966 = vst.msk [vmem:[#allocation2 + $0x34] sm:$0xf] %vm411_vm0, %v686_v1  ;;  %v691_v44 = vrot.slane %v689_v34, 7 }
  0x3e   : > { %969 = vst [vmem:[#allocation2 + $0x38] sm:$0x1] %v968_v21  ;;  %1563 = vrot.lane.b32.xlu1 %v1240_v24, %s5390_s28  ;;  %v699_v45 = vrot.slane %v697_v37, 7  ;;  %v357_v48 = vadd.f32 %v5486_v28, %v319_v20  ;;  %v358_v49 = vadd.f32 %v5486_v28, %v320_v31  ;;  %v1261_v53 = vshll.u32 %v1129_v43, 16  ;;  %v442_v33 = vld [vmem:[#allocation2 + $0x54] sm:$0x1] }
  0x3f   : > { %v1248_v50 = vor.u32 %v1247_v40, %v1244_v39  ;;  %v1253_v51 = vrot.slane %v1251_v41, 5  ;;  %v1257_v52 = vrot.slane %v1255_v42, 4  ;;  %v694_v55 = vor.u32 %v692_v35, %v691_v44  ;;  %v5267_v21 = vld [vmem:[%s5460_s23 + $0x38] sm:$0xff]  }
  0x40   : > { %v695_v56 = vrot.slane %v691_v44, 4  ;;  %v702_v57 = vor.u32 %v700_v38, %v699_v45  ;;  %v704_v58 = vrot.slane %v699_v45, 4  ;;  %v1263_v62 = vrot.slane %v1261_v53, 5 }
  0x41   : > { %v1249_v60 = vrot.slane %v1248_v50, 4  ;;  %v1258_v61 = vor.u32 %v1257_v52, %v1253_v51  ;;  %v389_v63 = vmax.f32 %v357_v48, 0.0  ;;  %v1130_v3 = vld [vmem:[#allocation2 + $0x30] sm:$0xf]  ;;  %v971_v5 = vsel %vm5521_vm11, %v694_v55, %v970_v46 }
  0x42   : > { %v703_v4 = vsel %vm5513_vm10, %v695_v56, %v702_v57  ;;  %v975_v6 = vsel %vm5444_vm5, %v704_v58, %v974_v54  ;;  %v390_v7 = vmax.f32 %v358_v49, 0.0  ;;  %v1266_v15 = vshrl.u32 %v1130_v3, 16  ;;  %972 = vst [vmem:[#allocation2 + $0x3c] sm:$0xf] %v971_v5 }
  0x43   : > { %v1254_v13 = vsel %vm5499_vm9, %v1249_v60, %v1253_v51  ;;  %v1259_v14 = vrot.slane %v1258_v61, 4  ;;  %v1269_v16 = vshll.u32 %v1130_v3, 16  ;;  %973 = vst.msk [vmem:[#allocation2 + $0x40] sm:$0xf] %vm411_vm0, %v703_v4  ;;  %976 = vst [vmem:[#allocation2 + $0x44] sm:$0x1] %v975_v6  ;;  %v5143_v23 = vpack.c.bf16 %v389_v63, %v389_v63 }
  0x44   : > { %1565 = vrot.lane.b32.xlu0 %v1254_v13, %s5390_s28  ;;  %v1131_v18 = vld [vmem:[#allocation2 + $0x34] sm:$0xf]  ;;  %v440_v22 = vsel %vm5444_vm5, 0, %v439_v59  ;;  %v5144_v24 = vpack.c.bf16 %v390_v7, %v390_v7  ;;  %v490_v25 = vsel %vm5469_vm7, 0, %v489_v0  ;;  %v1268_v27 = vrot.slane %v1266_v15, 4 }
  0x45   : > { %v1132_v19 = vld [vmem:[#allocation2 + $0x38] sm:$0x1]  ;;  %v1264_v26 = vsel %vm5499_vm9, %v1259_v14, %v1263_v62  ;;  %v1271_v20 = vrot.slane %v1269_v16, 5  ;;  %v1275_v8 = vshll.u32 %v1131_v18, 16  ;;  %441 = vst [vmem:[#allocation2 + $0x48] sm:$0x1] %v440_v22  ;;  %v5223_v40 = vunpack.c.l.bf16 %v5266_v29 }
  0x46   : > { %491 = vst [vmem:[#allocation2 + $0x50] sm:$0x1] %v490_v25  ;;  %1567 = vrot.lane.b32.xlu1 %v1264_v26, %s5390_s28  ;;  %v1279_v11 = vshrl.u32 %v1131_v18, 16  ;;  %v1285_v30 = vshll.u32 %v1132_v19, 16  ;;  %v706_v31 = vshrl.u32 %v5143_v23, 16  ;;  %v709_v32 = vshll.u32 %v5143_v23, 16 }
  0x47   : > { %v1272_v34 = vor.u32 %v1271_v20, %v1268_v27  ;;  %v1277_v35 = vrot.slane %v1275_v8, 5  ;;  %v714_v36 = vshrl.u32 %v5144_v24, 16  ;;  %v717_v1 = vshll.u32 %v5144_v24, 16  ;;  %v492_v4 = vld [vmem:[#allocation2 + $0x5c] sm:$0x1] }
  0x48   : > { %v1281_v37 = vrot.slane %v1279_v11, 4  ;;  %v1287_v38 = vrot.slane %v1285_v30, 5  ;;  %v708_v39 = vrot.slane %v706_v31, 7  ;;  %v5224_v43 = vunpack.c.h.bf16 %v5266_v29  ;;  %v445_v22 = vld [vmem:[#allocation2 + $0x60] sm:$0x1] }
  0x49   : > { %v1273_v41 = vrot.slane %v1272_v34, 4  ;;  %v716_v42 = vrot.slane %v714_v36, 7  ;;  %v443_v44 = vsel %vm5444_vm5, 0, %v442_v33  ;;  %v1133_v46 = vld [vmem:[#allocation2 + $0x3c] sm:$0xf]  ;;  %v321_v51 = vmul.f32 %v5223_v40, %v5465_v9  ;;  %v5646_v30 = vld [vmem:[%s5460_s23 + $0x40] sm:$0xff]  }
  0x4a   : > { %v1282_v45 = vor.u32 %v1281_v37, %v1277_v35  ;;  %v1134_v48 = vld [vmem:[#allocation2 + $0x40] sm:$0xf]  ;;  %v1135_v49 = vld [vmem:[#allocation2 + $0x44] sm:$0x1]  ;;  %v711_v50 = vor.u32 %v709_v32, %v708_v39  ;;  %444 = vst [vmem:[#allocation2 + $0x54] sm:$0x1] %v443_v44  ;;  %v5227_v52 = vunpack.c.l.bf16 %v5267_v21  ;;  %v322_v19 = vmul.f32 %v5224_v43, %v5465_v9 }
  0x4b   : > { %v1278_v53 = vsel %vm5499_vm9, %v1273_v41, %v1277_v35  ;;  %v1290_v54 = vshrl.u32 %v1133_v46, 16  ;;  %v1293_v55 = vshll.u32 %v1133_v46, 16  ;;  %v1299_v56 = vshll.u32 %v1134_v48, 16  ;;  %v495_v27 = vld [vmem:[#allocation2 + $0x68] sm:$0x1] }
  0x4c   : > { %1569 = vrot.lane.b32.xlu0 %v1278_v53, %s5390_s28  ;;  %v1283_v57 = vrot.slane %v1282_v45, 4  ;;  %v1303_v58 = vshrl.u32 %v1134_v48, 16  ;;  %v1309_v59 = vshll.u32 %v1135_v49, 16  ;;  %v712_v60 = vrot.slane %v708_v39, 4  ;;  %v977_v61 = vld [vmem:[#allocation2 + $0x48] sm:$0xf] }
  0x4d   : > { %v1292_v62 = vrot.slane %v1290_v54, 4  ;;  %v1295_v63 = vrot.slane %v1293_v55, 5  ;;  %v1301_v0 = vrot.slane %v1299_v56, 5  ;;  %v719_v3 = vor.u32 %v717_v1, %v716_v42  ;;  %v981_v14 = vld [vmem:[#allocation2 + $0x50] sm:$0x1] }
  0x4e   : > { %v1288_v5 = vsel %vm5499_vm9, %v1283_v57, %v1287_v38  ;;  %v1305_v6 = vrot.slane %v1303_v58, 4  ;;  %v1311_v7 = vrot.slane %v1309_v59, 5  ;;  %v978_v13 = vsel %vm5521_vm11, %v711_v50, %v977_v61  ;;  %v448_v35 = vld [vmem:[#allocation2 + $0x6c] sm:$0x1] }
  0x4f   : > { %1571 = vrot.lane.b32.xlu1 %v1288_v5, %s5390_s28  ;;  %v1296_v15 = vor.u32 %v1295_v63, %v1292_v62  ;;  %v720_v16 = vsel %vm5513_vm10, %v712_v60, %v719_v3  ;;  %979 = vst [vmem:[#allocation2 + $0x48] sm:$0xf] %v978_v13  ;;  %v721_v18 = vrot.slane %v716_v42, 4  ;;  %v359_v24 = vadd.f32 %v5486_v28, %v321_v51 }
  0x50   : > { %v1306_v23 = vor.u32 %v1305_v6, %v1301_v0  ;;  %980 = vst.msk [vmem:[#allocation2 + $0x4c] sm:$0xf] %vm411_vm0, %v720_v16  ;;  %v493_v25 = vsel %vm5469_vm7, 0, %v492_v4  ;;  %v5228_v26 = vunpack.c.h.bf16 %v5267_v21  ;;  %v360_v29 = vadd.f32 %v5486_v28, %v322_v19 }
  0x51   : > { %v1297_v20 = vrot.slane %v1296_v15, 4  ;;  %v982_v8 = vsel %vm5444_vm5, %v721_v18, %v981_v14  ;;  %494 = vst [vmem:[#allocation2 + $0x5c] sm:$0x1] %v493_v25  ;;  %v323_v11 = vmul.f32 %v5227_v52, %v5465_v9  ;;  %v391_v32 = vmax.f32 %v359_v24, 0.0  ;;  %v984_v60 = vld [vmem:[#allocation2 + $0x54] sm:$0xf] }
  0x52   : > { %v1307_v31 = vrot.slane %v1306_v23, 4  ;;  %983 = vst [vmem:[#allocation2 + $0x50] sm:$0x1] %v982_v8  ;;  %v324_v33 = vmul.f32 %v5228_v26, %v5465_v9  ;;  %v446_v34 = vsel %vm5444_vm5, 0, %v445_v22  ;;  %v392_v1 = vmax.f32 %v360_v29, 0.0 }
  0x53   : > { %v1302_v36 = vsel %vm5499_vm9, %v1297_v20, %v1301_v0  ;;  %v361_v21 = vadd.f32 %v5486_v28, %v323_v11  ;;  %447 = vst [vmem:[#allocation2 + $0x60] sm:$0x1] %v446_v34  ;;  %v496_v37 = vsel %vm5469_vm7, 0, %v495_v27  ;;  %v5145_v39 = vpack.c.bf16 %v391_v32, %v391_v32  ;;  %v498_v26 = vld [vmem:[#allocation2 + $0x74] sm:$0x1] }
  0x54   : > { %1573 = vrot.lane.b32.xlu0 %v1302_v36, %s5390_s28  ;;  %v1312_v38 = vsel %vm5499_vm9, %v1307_v31, %v1311_v7  ;;  %v362_v40 = vadd.f32 %v5486_v28, %v324_v33  ;;  %497 = vst [vmem:[#allocation2 + $0x68] sm:$0x1] %v496_v37  ;;  %v5231_v41 = vunpack.c.l.bf16 %v5646_v30  ;;  %v5146_v42 = vpack.c.bf16 %v392_v1, %v392_v1  ;;  %v5269_v33 = vld [vmem:[%s5460_s23 + $0x48] sm:$0xff]   ;;  %v451_v37 = vld [vmem:[#allocation2 + $0x78] sm:$0x1] }
  0x55   : > { %1575 = vrot.lane.b32.xlu1 %v1312_v38, %s5390_s28  ;;  %v393_v43 = vmax.f32 %v361_v21, 0.0  ;;  %v5232_v44 = vunpack.c.h.bf16 %v5646_v30  ;;  %v449_v45 = vsel %vm5444_vm5, 0, %v448_v35  ;;  %v723_v48 = vshrl.u32 %v5145_v39, 16 }
  0x56   : > { %v1136_v46 = vld [vmem:[#allocation2 + $0x48] sm:$0xf]  ;;  %v726_v49 = vshll.u32 %v5145_v39, 16  ;;  %v394_v50 = vmax.f32 %v362_v40, 0.0  ;;  %v325_v51 = vmul.f32 %v5231_v41, %v5465_v9  ;;  %450 = vst [vmem:[#allocation2 + $0x6c] sm:$0x1] %v449_v45  ;;  %v5235_v45 = vunpack.c.l.bf16 %v5269_v33 }
  0x57   : > { %v1137_v52 = vld [vmem:[#allocation2 + $0x4c] sm:$0xf]  ;;  %v1314_v53 = vshrl.u32 %v1136_v46, 16  ;;  %v1317_v54 = vshll.u32 %v1136_v46, 16  ;;  %v731_v55 = vshrl.u32 %v5146_v42, 16  ;;  %v734_v56 = vshll.u32 %v5146_v42, 16 }
  0x58   : > { %v1323_v57 = vshll.u32 %v1137_v52, 16  ;;  %v1327_v58 = vshrl.u32 %v1137_v52, 16  ;;  %v725_v59 = vrot.slane %v723_v48, 7  ;;  %v5147_v61 = vpack.c.bf16 %v393_v43, %v393_v43  ;;  %v988_v14 = vld [vmem:[#allocation2 + $0x5c] sm:$0x1] }
  0x59   : > { %v1316_v62 = vrot.slane %v1314_v53, 4  ;;  %v1319_v63 = vrot.slane %v1317_v54, 5  ;;  %v1138_v0 = vld [vmem:[#allocation2 + $0x50] sm:$0x1]  ;;  %v733_v3 = vrot.slane %v731_v55, 7  ;;  %v5148_v4 = vpack.c.bf16 %v394_v50, %v394_v50 }
  0x5a   : > { %v1325_v5 = vrot.slane %v1323_v57, 5  ;;  %v1329_v6 = vrot.slane %v1327_v58, 4  ;;  %v1333_v7 = vshll.u32 %v1138_v0, 16  ;;  %v728_v13 = vor.u32 %v726_v49, %v725_v59  ;;  %v991_v35 = vld [vmem:[#allocation2 + $0x60] sm:$0xf]  ;;  %v5686_v49 = vld [vmem:[%s5460_s23 + $0x50] sm:$0xff]  }
  0x5b   : > { %v1320_v15 = vor.u32 %v1319_v63, %v1316_v62  ;;  %v729_v16 = vrot.slane %v725_v59, 4  ;;  %v736_v18 = vor.u32 %v734_v56, %v733_v3  ;;  %v738_v19 = vrot.slane %v733_v3, 4  ;;  %v995_v42 = vld [vmem:[#allocation2 + $0x68] sm:$0x1]  ;;  %v501_v48 = vld [vmem:[#allocation2 + $0x80] sm:$0x1] }
  0x5c   : > { %v1330_v22 = vor.u32 %v1329_v6, %v1325_v5  ;;  %v1335_v23 = vrot.slane %v1333_v7, 5  ;;  %v985_v24 = vsel %vm5521_vm11, %v728_v13, %v984_v60  ;;  %v740_v25 = vshrl.u32 %v5147_v61, 16 }
  0x5d   : > { %v1321_v27 = vrot.slane %v1320_v15, 4  ;;  %v737_v20 = vsel %vm5513_vm10, %v729_v16, %v736_v18  ;;  %986 = vst [vmem:[#allocation2 + $0x54] sm:$0xf] %v985_v24  ;;  %v989_v8 = vsel %vm5444_vm5, %v738_v19, %v988_v14  ;;  %v743_v29 = vshll.u32 %v5147_v61, 16 }
  0x5e   : > { %v1331_v11 = vrot.slane %v1330_v22, 4  ;;  %987 = vst.msk [vmem:[#allocation2 + $0x58] sm:$0xf] %vm411_vm0, %v737_v20  ;;  %990 = vst [vmem:[#allocation2 + $0x5c] sm:$0x1] %v989_v8  ;;  %v742_v30 = vrot.slane %v740_v25, 7  ;;  %v326_v36 = vmul.f32 %v5232_v44, %v5465_v9  ;;  %v363_v1 = vadd.f32 %v5486_v28, %v325_v51 }
  0x5f   : > { %v748_v31 = vshrl.u32 %v5148_v4, 16  ;;  %v751_v32 = vshll.u32 %v5148_v4, 16  ;;  %v1326_v34 = vsel %vm5499_vm9, %v1321_v27, %v1325_v5  ;;  %v499_v21 = vsel %vm5469_vm7, 0, %v498_v26  ;;  %v998_v8 = vld [vmem:[#allocation2 + $0x6c] sm:$0xf] }
  0x60   : > { %1577 = vrot.lane.b32.xlu0 %v1326_v34, %s5390_s28  ;;  %v1336_v38 = vsel %vm5499_vm9, %v1331_v11, %v1335_v23  ;;  %v745_v39 = vor.u32 %v743_v29, %v742_v30  ;;  %v746_v40 = vrot.slane %v742_v30, 4  ;;  %500 = vst [vmem:[#allocation2 + $0x74] sm:$0x1] %v499_v21  ;;  %v364_v43 = vadd.f32 %v5486_v28, %v326_v36 }
  0x61   : > { %v750_v41 = vrot.slane %v748_v31, 7  ;;  %1579 = vrot.lane.b32.xlu1 %v1336_v38, %s5390_s28  ;;  %v395_v44 = vmax.f32 %v363_v1, 0.0  ;;  %v5236_v46 = vunpack.c.h.bf16 %v5269_v33  ;;  %v452_v53 = vsel %vm5444_vm5, 0, %v451_v37 }
  0x62   : > { %v992_v51 = vsel %vm5521_vm11, %v745_v39, %v991_v35  ;;  %v396_v54 = vmax.f32 %v364_v43, 0.0  ;;  %v327_v56 = vmul.f32 %v5235_v45, %v5465_v9  ;;  %453 = vst [vmem:[#allocation2 + $0x78] sm:$0x1] %v452_v53  ;;  %v502_v61 = vsel %vm5469_vm7, 0, %v501_v48 }
  0x63   : > { %v753_v50 = vor.u32 %v751_v32, %v750_v41  ;;  %v755_v52 = vrot.slane %v750_v41, 4  ;;  %993 = vst [vmem:[#allocation2 + $0x60] sm:$0xf] %v992_v51  ;;  %v5149_v55 = vpack.c.bf16 %v395_v44, %v395_v44  ;;  %v328_v57 = vmul.f32 %v5236_v46, %v5465_v9  ;;  %503 = vst [vmem:[#allocation2 + $0x80] sm:$0x1] %v502_v61 }
  0x64   : > { %v1139_v58 = vld [vmem:[#allocation2 + $0x54] sm:$0xf]  ;;  %v5239_v62 = vunpack.c.l.bf16 %v5686_v49  ;;  %v5150_v9 = vpack.c.bf16 %v396_v54, %v396_v54  ;;  %v365_v5 = vadd.f32 %v5486_v28, %v327_v56  ;;  %v454_v56 = vld [vmem:[#allocation2 + $0x84] sm:$0x1]  ;;  %vm1778_vm12 = vcmask 1042432  }
  0x65   : > { %v754_v59 = vsel %vm5513_vm10, %v746_v40, %v753_v50  ;;  %v996_v60 = vsel %vm5444_vm5, %v755_v52, %v995_v42  ;;  %v1140_v63 = vld [vmem:[#allocation2 + $0x58] sm:$0xf]  ;;  %v1338_v0 = vshrl.u32 %v1139_v58, 16  ;;  %v1341_v3 = vshll.u32 %v1139_v58, 16  ;;  %v1141_v4 = vld [vmem:[#allocation2 + $0x5c] sm:$0x1] }
  0x66   : > { %994 = vst.msk [vmem:[#allocation2 + $0x64] sm:$0xf] %vm411_vm0, %v754_v59  ;;  %997 = vst [vmem:[#allocation2 + $0x68] sm:$0x1] %v996_v60  ;;  %v1347_v6 = vshll.u32 %v1140_v63, 16  ;;  %v1351_v7 = vshrl.u32 %v1140_v63, 16  ;;  %v366_v29 = vadd.f32 %v5486_v28, %v328_v57 }
  0x67   : > { %v1357_v13 = vshll.u32 %v1141_v4, 16  ;;  %v757_v14 = vshrl.u32 %v5149_v55, 16  ;;  %v1340_v15 = vrot.slane %v1338_v0, 4  ;;  %v1343_v16 = vrot.slane %v1341_v3, 5  ;;  %v1002_v21 = vld [vmem:[#allocation2 + $0x74] sm:$0x1] }
  0x68   : > { %v760_v18 = vshll.u32 %v5149_v55, 16  ;;  %v765_v19 = vshrl.u32 %v5150_v9, 16  ;;  %v1349_v22 = vrot.slane %v1347_v6, 5  ;;  %v1353_v23 = vrot.slane %v1351_v7, 4  ;;  %v504_v57 = vld [vmem:[#allocation2 + $0x8c] sm:$0x1] }
  0x69   : > { %v1359_v24 = vrot.slane %v1357_v13, 5  ;;  %v759_v25 = vrot.slane %v757_v14, 7  ;;  %v1344_v26 = vor.u32 %v1343_v16, %v1340_v15  ;;  %v768_v20 = vshll.u32 %v5150_v9, 16  ;;  %v5721_v4 = vld [vmem:[%s6953_s1] ss:$0 sm:$0xff]  ;;  %v5731_v14 = vld [vmem:[%s5460_s23 + $0x58] sm:$0xff]  }
  0x6a   : > { %v767_v27 = vrot.slane %v765_v19, 7  ;;  %v1354_v11 = vor.u32 %v1353_v23, %v1349_v22  ;;  %v1142_v30 = vld [vmem:[#allocation2 + $0x60] sm:$0xf]  ;;  %v397_v33 = vmax.f32 %v365_v5, 0.0  ;;  %v398_v55 = vmax.f32 %v366_v29, 0.0 }
  0x6b   : > { %v762_v31 = vor.u32 %v760_v18, %v759_v25  ;;  %v763_v32 = vrot.slane %v759_v25, 4  ;;  %v1345_v34 = vrot.slane %v1344_v26, 4  ;;  %v1362_v35 = vshrl.u32 %v1142_v30, 16  ;;  %v1054_v15 = vld [vmem:[#allocation2] sm:$0xf] }
  0x6c   : > { %v1365_v36 = vshll.u32 %v1142_v30, 16  ;;  %v770_v1 = vor.u32 %v768_v20, %v767_v27  ;;  %v1355_v37 = vrot.slane %v1354_v11, 4  ;;  %v772_v41 = vrot.slane %v767_v27, 4  ;;  %1086 = vst.msk [vmem:[#allocation3] sm:$0xf] %vm411_vm0, %v1054_v15 }
  0x6d   : > { %v1143_v38 = vld [vmem:[#allocation2 + $0x64] sm:$0xf]  ;;  %v1144_v39 = vld [vmem:[#allocation2 + $0x68] sm:$0x1]  ;;  %v999_v40 = vsel %vm5521_vm11, %v762_v31, %v998_v8  ;;  %v5151_v42 = vpack.c.bf16 %v397_v33, %v397_v33  ;;  %v1350_v28 = vsel %vm5499_vm9, %v1345_v34, %v1349_v22  ;;  %v1364_v43 = vrot.slane %v1362_v35, 4 }
  0x6e   : > { %v1367_v44 = vrot.slane %v1365_v36, 5  ;;  %v1371_v45 = vshll.u32 %v1143_v38, 16  ;;  %1000 = vst [vmem:[#allocation2 + $0x6c] sm:$0xf] %v999_v40  ;;  %1581 = vrot.lane.b32.xlu0 %v1350_v28, %s5390_s28  ;;  %v1360_v46 = vsel %vm5499_vm9, %v1355_v37, %v1359_v24  ;;  %v1375_v48 = vshrl.u32 %v1143_v38, 16 }
  0x6f   : > { %v1381_v50 = vshll.u32 %v1144_v39, 16  ;;  %v771_v51 = vsel %vm5513_vm10, %v763_v32, %v770_v1  ;;  %1583 = vrot.lane.b32.xlu1 %v1360_v46, %s5390_s28  ;;  %v1003_v54 = vsel %vm5444_vm5, %v772_v41, %v1002_v21  ;;  %v774_v60 = vshrl.u32 %v5151_v42, 16  ;;  %v1005_v22 = vld [vmem:[#allocation2 + $0x78] sm:$0xf]  ;;  %v5741_v27 = vld [vmem:[%s6954_s2] ss:$0 sm:$0xff] }
  0x70   : > { %v1368_v52 = vor.u32 %v1367_v44, %v1364_v43  ;;  %v1373_v53 = vrot.slane %v1371_v45, 5  ;;  %1001 = vst.msk [vmem:[#allocation2 + $0x70] sm:$0xf] %vm411_vm0, %v771_v51  ;;  %v1377_v58 = vrot.slane %v1375_v48, 4  ;;  %1004 = vst [vmem:[#allocation2 + $0x74] sm:$0x1] %v1003_v54  ;;  %v5152_v0 = vpack.c.bf16 %v398_v55, %v398_v55 }
  0x71   : > { %v1383_v59 = vrot.slane %v1381_v50, 5  ;;  %v777_v61 = vshll.u32 %v5151_v42, 16  ;;  %v5240_v3 = vunpack.c.h.bf16 %v5686_v49  ;;  %v329_v9 = vmul.f32 %v5721_v4, %v5239_v62  ;;  %v1056_v62 = vld [vmem:[#allocation2 + $0xc] sm:$0xf]  ;;  %v1009_v34 = vld [vmem:[#allocation2 + $0x80] sm:$0x1] }
  0x72   : > { %v1369_v63 = vrot.slane %v1368_v52, 4  ;;  %v1378_v5 = vor.u32 %v1377_v58, %v1373_v53  ;;  %v776_v6 = vrot.slane %v774_v60, 7  ;;  %v455_v7 = vsel %vm5444_vm5, 0, %v454_v56  ;;  %1088 = vst.msk [vmem:[#allocation3 + $0x8] sm:$0xf] %vm411_vm0, %v1056_v62 }
  0x73   : > { %v505_v13 = vsel %vm5469_vm7, 0, %v504_v57  ;;  %v782_v18 = vshrl.u32 %v5152_v0, 16  ;;  %v785_v19 = vshll.u32 %v5152_v0, 16  ;;  %v330_v49 = vmul.f32 %v5721_v4, %v5240_v3  ;;  %456 = vst [vmem:[#allocation2 + $0x84] sm:$0x1] %v455_v7 }
  0x74   : > { %v1374_v16 = vsel %vm5499_vm9, %v1369_v63, %v1373_v53  ;;  %506 = vst [vmem:[#allocation2 + $0x8c] sm:$0x1] %v505_v13  ;;  %v1379_v23 = vrot.slane %v1378_v5, 4  ;;  %v779_v25 = vor.u32 %v777_v61, %v776_v6  ;;  %v780_v26 = vrot.slane %v776_v6, 4  ;;  %v1055_v48 = vld [vmem:[#allocation2 + $0x4] sm:$0xf] }
  0x75   : > { %1585 = vrot.lane.b32.xlu0 %v1374_v16, %s5390_s28  ;;  %v1145_v24 = vld [vmem:[#allocation2 + $0x6c] sm:$0xf]  ;;  %v367_v20 = vadd.f32 %v5741_v27, %v329_v9  ;;  %v784_v11 = vrot.slane %v782_v18, 7  ;;  %v368_v30 = vadd.f32 %v5741_v27, %v330_v49  ;;  %v5243_v36 = vunpack.c.l.bf16 %v5731_v14  ;;  %v1057_v50 = vld [vmem:[#allocation2 + $0x10] sm:$0xf]  ;;  %v5767_v18 = vld [vmem:[%s5460_s23 + $0x60] sm:$0xff]  }
  0x76   : > { %v1386_v8 = vshrl.u32 %v1145_v24, 16  ;;  %v1389_v29 = vshll.u32 %v1145_v24, 16  ;;  %v1384_v31 = vsel %vm5499_vm9, %v1379_v23, %v1383_v59  ;;  %v1006_v33 = vsel %vm5521_vm11, %v779_v25, %v1005_v22  ;;  %v457_v55 = vld [vmem:[#allocation2 + $0x90] sm:$0x1]  ;;  %v507_v56 = vld [vmem:[#allocation2 + $0x98] sm:$0x1] }
  0x77   : > { %v1146_v32 = vld [vmem:[#allocation2 + $0x70] sm:$0xf]  ;;  %v399_v35 = vmax.f32 %v367_v20, 0.0  ;;  %1587 = vrot.lane.b32.xlu1 %v1384_v31, %s5390_s28  ;;  %v1147_v39 = vld [vmem:[#allocation2 + $0x74] sm:$0x1]  ;;  %v787_v41 = vor.u32 %v785_v19, %v784_v11  ;;  %v789_v42 = vrot.slane %v784_v11, 4  ;;  %v5244_v3 = vunpack.c.h.bf16 %v5731_v14 }
  0x78   : > { %v1388_v1 = vrot.slane %v1386_v8, 4  ;;  %v1391_v21 = vrot.slane %v1389_v29, 5  ;;  %v1395_v37 = vshll.u32 %v1146_v32, 16  ;;  %v1399_v38 = vshrl.u32 %v1146_v32, 16  ;;  %1007 = vst [vmem:[#allocation2 + $0x78] sm:$0xf] %v1006_v33 }
  0x79   : > { %v1405_v40 = vshll.u32 %v1147_v39, 16  ;;  %v400_v28 = vmax.f32 %v368_v30, 0.0  ;;  %v5153_v46 = vpack.c.bf16 %v399_v35, %v399_v35  ;;  %v788_v52 = vsel %vm5513_vm10, %v780_v26, %v787_v41  ;;  %1087 = vst.msk [vmem:[#allocation3 + $0x4] sm:$0xf] %vm411_vm0, %v1055_v48  ;;  %1089 = vst.msk [vmem:[#allocation3 + $0xc] sm:$0xf] %vm411_vm0, %v1057_v50 }
  0x7a   : > { %v1392_v43 = vor.u32 %v1391_v21, %v1388_v1  ;;  %v1397_v44 = vrot.slane %v1395_v37, 5  ;;  %v1401_v45 = vrot.slane %v1399_v38, 4  ;;  %v1010_v53 = vsel %vm5444_vm5, %v789_v42, %v1009_v34  ;;  %1008 = vst.msk [vmem:[#allocation2 + $0x7c] sm:$0xf] %vm411_vm0, %v788_v52  ;;  %v1058_v61 = vld [vmem:[#allocation2 + $0x18] sm:$0xf] }
  0x7b   : > { %v1407_v51 = vrot.slane %v1405_v40, 5  ;;  %v5154_v54 = vpack.c.bf16 %v400_v28, %v400_v28  ;;  %1011 = vst [vmem:[#allocation2 + $0x80] sm:$0x1] %v1010_v53  ;;  %v791_v59 = vshrl.u32 %v5153_v46, 16  ;;  %v794_v60 = vshll.u32 %v5153_v46, 16 }
  0x7c   : > { %v1393_v57 = vrot.slane %v1392_v43, 4  ;;  %v1402_v58 = vor.u32 %v1401_v45, %v1397_v44  ;;  %v331_v9 = vmul.f32 %v5721_v4, %v5243_v36  ;;  %1090 = vst.msk [vmem:[#allocation3 + $0x10] sm:$0xf] %vm411_vm0, %v1058_v61  ;;  %v1059_v5 = vld [vmem:[#allocation2 + $0x1c] sm:$0xf]  ;;  %v458_v16 = vsel %vm5444_vm5, 0, %v457_v55 }
  0x7d   : > { %v799_v63 = vshrl.u32 %v5154_v54, 16  ;;  %v802_v0 = vshll.u32 %v5154_v54, 16  ;;  %v793_v13 = vrot.slane %v791_v59, 7  ;;  %v1012_v15 = vld [vmem:[#allocation2 + $0x84] sm:$0xf]  ;;  %v332_v49 = vmul.f32 %v5721_v4, %v5244_v3 }
  0x7e   : > { %v1398_v6 = vsel %vm5499_vm9, %v1393_v57, %v1397_v44  ;;  %v1403_v7 = vrot.slane %v1402_v58, 4  ;;  %1091 = vst.msk [vmem:[#allocation3 + $0x14] sm:$0xf] %vm411_vm0, %v1059_v5  ;;  %v1016_v22 = vld [vmem:[#allocation2 + $0x8c] sm:$0x1]  ;;  %v369_v62 = vadd.f32 %v5741_v27, %v331_v9  ;;  %v508_v23 = vsel %vm5469_vm7, 0, %v507_v56 }
  0x7f   : > { %1589 = vrot.lane.b32.xlu0 %v1398_v6, %s5390_s28  ;;  %v1148_v14 = vld [vmem:[#allocation2 + $0x78] sm:$0xf]  ;;  %v801_v19 = vrot.slane %v799_v63, 7  ;;  %459 = vst [vmem:[#allocation2 + $0x90] sm:$0x1] %v458_v16  ;;  %v796_v20 = vor.u32 %v794_v60, %v793_v13  ;;  %v797_v11 = vrot.slane %v793_v13, 4  ;;  %v370_v32 = vadd.f32 %v5741_v27, %v332_v49 }
  0x80   : > { %v1408_v24 = vsel %vm5499_vm9, %v1403_v7, %v1407_v51  ;;  %v1410_v25 = vshrl.u32 %v1148_v14, 16  ;;  %v1413_v26 = vshll.u32 %v1148_v14, 16  ;;  %509 = vst [vmem:[#allocation2 + $0x98] sm:$0x1] %v508_v23  ;;  %v1060_v8 = vld [vmem:[#allocation2 + $0x24] sm:$0xf]  ;;  %v5247_v40 = vunpack.c.l.bf16 %v5767_v18 }
  0x81   : > { %v1061_v29 = vld [vmem:[#allocation2 + $0x28] sm:$0xf]  ;;  %1591 = vrot.lane.b32.xlu1 %v1408_v24, %s5390_s28  ;;  %v804_v30 = vor.u32 %v802_v0, %v801_v19  ;;  %v806_v31 = vrot.slane %v801_v19, 4  ;;  %1092 = vst.msk [vmem:[#allocation3 + $0x18] sm:$0xf] %vm411_vm0, %v1060_v8  ;;  %v1013_v35 = vsel %vm5521_vm11, %v796_v20, %v1012_v15  ;;  %v401_v36 = vmax.f32 %v369_v62, 0.0 }
  0x82   : > { %1093 = vst.msk [vmem:[#allocation3 + $0x1c] sm:$0xf] %vm411_vm0, %v1061_v29  ;;  %v1412_v33 = vrot.slane %v1410_v25, 4  ;;  %v1415_v34 = vrot.slane %v1413_v26, 5  ;;  %v1149_v1 = vld [vmem:[#allocation2 + $0x7c] sm:$0xf]  ;;  %v5248_v46 = vunpack.c.h.bf16 %v5767_v18  ;;  %v333_v48 = vmul.f32 %v5721_v4, %v5247_v40 }
  0x83   : > { %v1150_v21 = vld [vmem:[#allocation2 + $0x80] sm:$0x1]  ;;  %v805_v37 = vsel %vm5513_vm10, %v797_v11, %v804_v30  ;;  %1014 = vst [vmem:[#allocation2 + $0x84] sm:$0xf] %v1013_v35  ;;  %v1017_v38 = vsel %vm5444_vm5, %v806_v31, %v1016_v22  ;;  %v402_v39 = vmax.f32 %v370_v32, 0.0  ;;  %v1419_v42 = vshll.u32 %v1149_v1, 16 }
  0x84   : > { %v1416_v41 = vor.u32 %v1415_v34, %v1412_v33  ;;  %v1423_v28 = vshrl.u32 %v1149_v1, 16  ;;  %v1429_v43 = vshll.u32 %v1150_v21, 16  ;;  %1015 = vst.msk [vmem:[#allocation2 + $0x88] sm:$0xf] %vm411_vm0, %v805_v37  ;;  %1018 = vst [vmem:[#allocation2 + $0x8c] sm:$0x1] %v1017_v38  ;;  %v5155_v44 = vpack.c.bf16 %v401_v36, %v401_v36 }
  0x85   : > { %v5156_v45 = vpack.c.bf16 %v402_v39, %v402_v39  ;;  %v460_v50 = vld [vmem:[#allocation2 + $0x9c] sm:$0x1]  ;;  %v1062_v51 = vld [vmem:[#allocation2 + $0x30] sm:$0xf]  ;;  %v1063_v52 = vld [vmem:[#allocation2 + $0x34] sm:$0xf]  ;;  %v334_v9 = vmul.f32 %v5721_v4, %v5248_v46  ;;  %v371_v5 = vadd.f32 %v5741_v27, %v333_v48 }
  0x86   : > { %v1417_v53 = vrot.slane %v1416_v41, 4  ;;  %v1421_v54 = vrot.slane %v1419_v42, 5  ;;  %v1425_v55 = vrot.slane %v1423_v28, 4  ;;  %v1431_v56 = vrot.slane %v1429_v43, 5  ;;  %v510_v57 = vld [vmem:[#allocation2 + $0xa4] sm:$0x1] }
  0x87   : > { %1094 = vst.msk [vmem:[#allocation3 + $0x20] sm:$0xf] %vm411_vm0, %v1062_v51  ;;  %1095 = vst.msk [vmem:[#allocation3 + $0x24] sm:$0xf] %vm411_vm0, %v1063_v52  ;;  %v808_v58 = vshrl.u32 %v5155_v44, 16  ;;  %v811_v59 = vshll.u32 %v5155_v44, 16  ;;  %v372_v49 = vadd.f32 %v5741_v27, %v334_v9 }
  0x88   : > { %v816_v60 = vshrl.u32 %v5156_v45, 16  ;;  %v819_v61 = vshll.u32 %v5156_v45, 16  ;;  %v5794_v63 = vld [vmem:[%s5460_s23 + $0x68] sm:$0xff]   ;;  %v1422_v0 = vsel %vm5499_vm9, %v1417_v53, %v1421_v54  ;;  %v1426_v3 = vor.u32 %v1425_v55, %v1421_v54  ;;  %v1064_v6 = vld [vmem:[#allocation2 + $0x3c] sm:$0xf] }
  0x89   : > { %1593 = vrot.lane.b32.xlu0 %v1422_v0, %s5390_s28  ;;  %v810_v7 = vrot.slane %v808_v58, 7  ;;  %v461_v15 = vsel %vm5444_vm5, 0, %v460_v50  ;;  %v511_v16 = vsel %vm5469_vm7, 0, %v510_v57  ;;  %1096 = vst.msk [vmem:[#allocation3 + $0x28] sm:$0xf] %vm411_vm0, %v1064_v6  ;;  %v403_v62 = vmax.f32 %v371_v5, 0.0 }
  0x8a   : > { %v818_v13 = vrot.slane %v816_v60, 7  ;;  %v1065_v18 = vld [vmem:[#allocation2 + $0x40] sm:$0xf]  ;;  %v1427_v14 = vrot.slane %v1426_v3, 4  ;;  %v1151_v19 = vld [vmem:[#allocation2 + $0x84] sm:$0xf]  ;;  %v5251_v23 = vunpack.c.l.bf16 %v5794_v63  ;;  %v5252_v48 = vunpack.c.h.bf16 %v5794_v63 }
  0x8b   : > { %v1019_v22 = vld [vmem:[#allocation2 + $0x90] sm:$0xf]  ;;  %462 = vst [vmem:[#allocation2 + $0x9c] sm:$0x1] %v461_v15  ;;  %512 = vst [vmem:[#allocation2 + $0xa4] sm:$0x1] %v511_v16  ;;  %v813_v8 = vor.u32 %v811_v59, %v810_v7  ;;  %v5157_v28 = vpack.c.bf16 %v403_v62, %v403_v62 }
  0x8c   : > { %1097 = vst.msk [vmem:[#allocation3 + $0x2c] sm:$0xf] %vm411_vm0, %v1065_v18  ;;  %v1152_v24 = vld [vmem:[#allocation2 + $0x88] sm:$0xf]  ;;  %v1434_v25 = vshrl.u32 %v1151_v19, 16  ;;  %v1437_v26 = vshll.u32 %v1151_v19, 16  ;;  %v821_v29 = vor.u32 %v819_v61, %v818_v13  ;;  %v1432_v11 = vsel %vm5499_vm9, %v1427_v14, %v1431_v56 }
  0x8d   : > { %v1153_v20 = vld [vmem:[#allocation2 + $0x8c] sm:$0x1]  ;;  %v1443_v30 = vshll.u32 %v1152_v24, 16  ;;  %v1447_v31 = vshrl.u32 %v1152_v24, 16  ;;  %1595 = vrot.lane.b32.xlu1 %v1432_v11, %s5390_s28  ;;  %v814_v35 = vrot.slane %v810_v7, 4  ;;  %v1020_v36 = vsel %vm5521_vm11, %v813_v8, %v1019_v22  ;;  %v5828_v61 = vld [vmem:[%s5460_s23 + $0x70] sm:$0xff]  }
  0x8e   : > { %v1453_v32 = vshll.u32 %v1153_v20, 16  ;;  %v1436_v33 = vrot.slane %v1434_v25, 4  ;;  %v1439_v34 = vrot.slane %v1437_v26, 5  ;;  %v1023_v1 = vld [vmem:[#allocation2 + $0x98] sm:$0x1]  ;;  %v823_v39 = vrot.slane %v818_v13, 4 }
  0x8f   : > { %v1445_v21 = vrot.slane %v1443_v30, 5  ;;  %v1449_v37 = vrot.slane %v1447_v31, 4  ;;  %1021 = vst [vmem:[#allocation2 + $0x90] sm:$0xf] %v1020_v36  ;;  %v822_v41 = vsel %vm5513_vm10, %v814_v35, %v821_v29  ;;  %v404_v42 = vmax.f32 %v372_v49, 0.0 }
  0x90   : > { %v1455_v38 = vrot.slane %v1453_v32, 5  ;;  %v1440_v40 = vor.u32 %v1439_v34, %v1436_v33  ;;  %v463_v43 = vld [vmem:[#allocation2 + $0xa8] sm:$0x1]  ;;  %1022 = vst.msk [vmem:[#allocation2 + $0x94] sm:$0xf] %vm411_vm0, %v822_v41  ;;  %v1024_v46 = vsel %vm5444_vm5, %v823_v39, %v1023_v1  ;;  %v335_v50 = vmul.f32 %v5721_v4, %v5251_v23 }
  0x91   : > { %v1066_v44 = vld [vmem:[#allocation2 + $0x48] sm:$0xf]  ;;  %v1450_v45 = vor.u32 %v1449_v37, %v1445_v21  ;;  %v1067_v51 = vld [vmem:[#allocation2 + $0x4c] sm:$0xf]  ;;  %1025 = vst [vmem:[#allocation2 + $0x98] sm:$0x1] %v1024_v46  ;;  %v5158_v53 = vpack.c.bf16 %v404_v42, %v404_v42  ;;  %v336_v58 = vmul.f32 %v5721_v4, %v5252_v48  ;;  %v5255_v23 = vunpack.c.l.bf16 %v5828_v61 }
  0x92   : > { %1098 = vst.msk [vmem:[#allocation3 + $0x30] sm:$0xf] %vm411_vm0, %v1066_v44  ;;  %v1441_v52 = vrot.slane %v1440_v40, 4  ;;  %v825_v54 = vshrl.u32 %v5157_v28, 16  ;;  %v828_v55 = vshll.u32 %v5157_v28, 16  ;;  %v373_v59 = vadd.f32 %v5741_v27, %v335_v50 }
  0x93   : > { %v513_v56 = vld [vmem:[#allocation2 + $0xb0] sm:$0x1]  ;;  %1099 = vst.msk [vmem:[#allocation3 + $0x34] sm:$0xf] %vm411_vm0, %v1067_v51  ;;  %v1451_v57 = vrot.slane %v1450_v45, 4  ;;  %v464_v60 = vsel %vm5444_vm5, 0, %v463_v43  ;;  %v374_v15 = vadd.f32 %v5741_v27, %v336_v58  ;;  %v5256_v32 = vunpack.c.h.bf16 %v5828_v61 }
  0x94   : > { %v1068_v63 = vld [vmem:[#allocation2 + $0x54] sm:$0xf]  ;;  %v1446_v0 = vsel %vm5499_vm9, %v1441_v52, %v1445_v21  ;;  %v827_v3 = vrot.slane %v825_v54, 7  ;;  %v833_v9 = vshrl.u32 %v5158_v53, 16  ;;  %v836_v5 = vshll.u32 %v5158_v53, 16 }
  0x95   : > { %465 = vst [vmem:[#allocation2 + $0xa8] sm:$0x1] %v464_v60  ;;  %1100 = vst.msk [vmem:[#allocation3 + $0x38] sm:$0xf] %vm411_vm0, %v1068_v63  ;;  %v1069_v6 = vld [vmem:[#allocation2 + $0x58] sm:$0xf]  ;;  %1597 = vrot.lane.b32.xlu0 %v1446_v0, %s5390_s28  ;;  %v1456_v7 = vsel %vm5499_vm9, %v1451_v57, %v1455_v38  ;;  %v338_v58 = vmul.f32 %v5721_v4, %v5256_v32 }
  0x96   : > { %v1026_v13 = vld [vmem:[#allocation2 + $0x9c] sm:$0xf]  ;;  %v405_v16 = vmax.f32 %v373_v59, 0.0  ;;  %v514_v18 = vsel %vm5469_vm7, 0, %v513_v56  ;;  %1101 = vst.msk [vmem:[#allocation3 + $0x3c] sm:$0xf] %vm411_vm0, %v1069_v6  ;;  %1599 = vrot.lane.b32.xlu1 %v1456_v7, %s5390_s28  ;;  %v830_v19 = vor.u32 %v828_v55, %v827_v3  ;;  %v337_v56 = vmul.f32 %v5721_v4, %v5255_v23 }
  0x97   : > { %v1154_v14 = vld [vmem:[#allocation2 + $0x90] sm:$0xf]  ;;  %v831_v22 = vrot.slane %v827_v3, 4  ;;  %v835_v49 = vrot.slane %v833_v9, 7  ;;  %v1030_v62 = vld [vmem:[#allocation2 + $0xa4] sm:$0x1] }
  0x98   : > { %515 = vst [vmem:[#allocation2 + $0xb0] sm:$0x1] %v514_v18  ;;  %v1458_v24 = vshrl.u32 %v1154_v14, 16  ;;  %v1461_v25 = vshll.u32 %v1154_v14, 16  ;;  %v406_v26 = vmax.f32 %v374_v15, 0.0  ;;  %v5159_v20 = vpack.c.bf16 %v405_v16, %v405_v16 }
  0x99   : > { %v1070_v8 = vld [vmem:[#allocation2 + $0x60] sm:$0xf]  ;;  %v1155_v29 = vld [vmem:[#allocation2 + $0x94] sm:$0xf]  ;;  %v838_v11 = vor.u32 %v836_v5, %v835_v49  ;;  %v1027_v30 = vsel %vm5521_vm11, %v830_v19, %v1026_v13  ;;  %v840_v31 = vrot.slane %v835_v49, 4  ;;  %v375_v15 = vadd.f32 %v5741_v27, %v337_v56 }
  0x9a   : > { %1102 = vst.msk [vmem:[#allocation3 + $0x40] sm:$0xf] %vm411_vm0, %v1070_v8  ;;  %v1460_v33 = vrot.slane %v1458_v24, 4  ;;  %v1463_v34 = vrot.slane %v1461_v25, 5  ;;  %v1467_v35 = vshll.u32 %v1155_v29, 16  ;;  %v1471_v36 = vshrl.u32 %v1155_v29, 16 }
  0x9b   : > { %v1156_v1 = vld [vmem:[#allocation2 + $0x98] sm:$0x1]  ;;  %1028 = vst [vmem:[#allocation2 + $0x9c] sm:$0xf] %v1027_v30  ;;  %v839_v37 = vsel %vm5513_vm10, %v831_v22, %v838_v11  ;;  %v1031_v38 = vsel %vm5444_vm5, %v840_v31, %v1030_v62  ;;  %v5160_v39 = vpack.c.bf16 %v406_v26, %v406_v26  ;;  %v466_v40 = vld [vmem:[#allocation2 + $0xb4] sm:$0x1]  ;;  %v376_v16 = vadd.f32 %v5741_v27, %v338_v58 }
  0x9c   : > { %v1477_v21 = vshll.u32 %v1156_v1, 16  ;;  %v1071_v41 = vld [vmem:[#allocation2 + $0x64] sm:$0xf]  ;;  %v1464_v42 = vor.u32 %v1463_v34, %v1460_v33  ;;  %v1469_v28 = vrot.slane %v1467_v35, 5  ;;  %v1473_v43 = vrot.slane %v1471_v36, 4 }
  0x9d   : > { %1029 = vst.msk [vmem:[#allocation2 + $0xa0] sm:$0xf] %vm411_vm0, %v839_v37  ;;  %1032 = vst [vmem:[#allocation2 + $0xa4] sm:$0x1] %v1031_v38  ;;  %v842_v44 = vshrl.u32 %v5159_v20, 16  ;;  %v845_v48 = vshll.u32 %v5159_v20, 16 }
  0x9e   : > { %v516_v45 = vld [vmem:[#allocation2 + $0xbc] sm:$0x1]  ;;  %1103 = vst.msk [vmem:[#allocation3 + $0x44] sm:$0xf] %vm411_vm0, %v1071_v41  ;;  %v1479_v46 = vrot.slane %v1477_v21, 5  ;;  %v850_v50 = vshrl.u32 %v5160_v39, 16  ;;  %v1474_v53 = vor.u32 %v1473_v43, %v1469_v28 }
  0x9f   : > { %v853_v51 = vshll.u32 %v5160_v39, 16  ;;  %v1465_v52 = vrot.slane %v1464_v42, 4  ;;  %v844_v54 = vrot.slane %v842_v44, 7  ;;  %v1033_v55 = vld [vmem:[#allocation2 + $0xa8] sm:$0xf]  ;;  %v467_v59 = vsel %vm5444_vm5, 0, %v466_v40 }
  0xa0   : > { %v852_v57 = vrot.slane %v850_v50, 7  ;;  %v517_v60 = vsel %vm5469_vm7, 0, %v516_v45  ;;  %v1072_v61 = vld [vmem:[#allocation2 + $0x6c] sm:$0xf]  ;;  %v1475_v0 = vrot.slane %v1474_v53, 4  ;;  %v407_v25 = vmax.f32 %v375_v15, 0.0 }
  0xa1   : > { %v1470_v63 = vsel %vm5499_vm9, %v1465_v52, %v1469_v28  ;;  %v847_v3 = vor.u32 %v845_v48, %v844_v54  ;;  %v848_v9 = vrot.slane %v844_v54, 4  ;;  %v1037_v5 = vld [vmem:[#allocation2 + $0xb0] sm:$0x1]  ;;  %468 = vst [vmem:[#allocation2 + $0xb4] sm:$0x1] %v467_v59  ;;  %v408_v26 = vmax.f32 %v376_v16, 0.0 }
  0xa2   : > { %518 = vst [vmem:[#allocation2 + $0xbc] sm:$0x1] %v517_v60  ;;  %1104 = vst.msk [vmem:[#allocation3 + $0x48] sm:$0xf] %vm411_vm0, %v1072_v61  ;;  %v1073_v6 = vld [vmem:[#allocation2 + $0x70] sm:$0xf]  ;;  %1601 = vrot.lane.b32.xlu0 %v1470_v63, %s5390_s28  ;;  %v855_v7 = vor.u32 %v853_v51, %v852_v57  ;;  %v1480_v18 = vsel %vm5499_vm9, %v1475_v0, %v1479_v46  ;;  %v5161_v31 = vpack.c.bf16 %v407_v25, %v407_v25 }
  0xa3   : > { %v1157_v4 = vld [vmem:[#allocation2 + $0x9c] sm:$0xf]  ;;  %v857_v13 = vrot.slane %v852_v57, 4  ;;  %1105 = vst.msk [vmem:[#allocation3 + $0x4c] sm:$0xf] %vm411_vm0, %v1073_v6  ;;  %v1034_v22 = vsel %vm5521_vm11, %v847_v3, %v1033_v55  ;;  %1603 = vrot.lane.b32.xlu1 %v1480_v18, %s5390_s28  ;;  %v5162_v32 = vpack.c.bf16 %v408_v26, %v408_v26  ;;  %v5880_v55 = vpop.permute.xlu0 %1553  ;;  %vm1779_vm13 = vcmask 1046532  }
  0xa4   : > { %v1482_v14 = vshrl.u32 %v1157_v4, 16  ;;  %v1485_v19 = vshll.u32 %v1157_v4, 16  ;;  %v1074_v49 = vld [vmem:[#allocation2 + $0x78] sm:$0xf]  ;;  %v1158_v62 = vld [vmem:[#allocation2 + $0xa0] sm:$0xf]  ;;  %v856_v24 = vsel %vm5513_vm10, %v848_v9, %v855_v7  ;;  %vm5915_vm14 = vmor %vm1778_vm12, %vm1779_vm13 }
  0xa5   : > { %v1159_v23 = vld [vmem:[#allocation2 + $0xa4] sm:$0x1]  ;;  %1035 = vst [vmem:[#allocation2 + $0xa8] sm:$0xf] %v1034_v22  ;;  %v1038_v27 = vsel %vm5444_vm5, %v857_v13, %v1037_v5  ;;  %1106 = vst.msk [vmem:[#allocation3 + $0x50] sm:$0xf] %vm411_vm0, %v1074_v49 }
  0xa6   : > { %v1484_v20 = vrot.slane %v1482_v14, 4  ;;  %v1487_v8 = vrot.slane %v1485_v19, 5  ;;  %v1491_v29 = vshll.u32 %v1158_v62, 16  ;;  %v1495_v11 = vshrl.u32 %v1158_v62, 16  ;;  %1036 = vst.msk [vmem:[#allocation2 + $0xac] sm:$0xf] %vm411_vm0, %v856_v24 }
  0xa7   : > { %1039 = vst [vmem:[#allocation2 + $0xb0] sm:$0x1] %v1038_v27  ;;  %v1501_v30 = vshll.u32 %v1159_v23, 16  ;;  %v1075_v33 = vld [vmem:[#allocation2 + $0x7c] sm:$0xf]  ;;  %v859_v1 = vshrl.u32 %v5161_v31, 16  ;;  %v5896_v49 = vpop.permute.xlu0 %1555 }
  0xa8   : > { %v1488_v34 = vor.u32 %v1487_v8, %v1484_v20  ;;  %v1493_v35 = vrot.slane %v1491_v29, 5  ;;  %v1497_v36 = vrot.slane %v1495_v11, 4  ;;  %1107 = vst.msk [vmem:[#allocation3 + $0x54] sm:$0xf] %vm411_vm0, %v1075_v33  ;;  %v862_v21 = vshll.u32 %v5161_v31, 16  ;;  %v5884_v60 = vpop.permute.xlu1 %1557 }
  0xa9   : > { %v867_v37 = vshrl.u32 %v5162_v32, 16  ;;  %v1503_v40 = vrot.slane %v1501_v30, 5  ;;  %v870_v41 = vshll.u32 %v5162_v32, 16  ;;  %v861_v42 = vrot.slane %v859_v1, 7  ;;  %v1040_v46 = vld [vmem:[#allocation2 + $0xb4] sm:$0xf] }
  0xaa   : > { %v1489_v38 = vrot.slane %v1488_v34, 4  ;;  %v1498_v39 = vor.u32 %v1497_v36, %v1493_v35  ;;  %v1044_v9 = vld [vmem:[#allocation2 + $0xbc] sm:$0x1]  ;;  %v1076_v15 = vld [vmem:[#allocation2 + $0x84] sm:$0xf]  ;;  %vm1649_vm15 = vcmask 60448  }
  0xab   : > { %v869_v28 = vrot.slane %v867_v37, 7  ;;  %v864_v53 = vor.u32 %v862_v21, %v861_v42  ;;  %v865_v0 = vrot.slane %v861_v42, 4  ;;  %v1077_v16 = vld [vmem:[#allocation2 + $0x88] sm:$0xf]  ;;  %1108 = vst.msk [vmem:[#allocation3 + $0x58] sm:$0xf] %vm411_vm0, %v1076_v15  ;;  %v5909_v33 = vpop.permute.xlu0 %1561 }
  0xac   : > { %v1494_v43 = vsel %vm5499_vm9, %v1489_v38, %v1493_v35  ;;  %v1499_v44 = vrot.slane %v1498_v39, 4  ;;  %v1160_v45 = vld [vmem:[#allocation2 + $0xa8] sm:$0xf]  ;;  %1109 = vst.msk [vmem:[#allocation3 + $0x5c] sm:$0xf] %vm411_vm0, %v1077_v16  ;;  %v5898_v24 = vpop.permute.xlu1 %1559  ;;  %vm1989_vm2 = vcmask 93248  }
  0xad   : > { %1605 = vrot.lane.b32.xlu0 %v1494_v43, %s5390_s28  ;;  %v1161_v48 = vld [vmem:[#allocation2 + $0xac] sm:$0xf]  ;;  %v1506_v50 = vshrl.u32 %v1160_v45, 16  ;;  %v1509_v51 = vshll.u32 %v1160_v45, 16  ;;  %v872_v54 = vor.u32 %v870_v41, %v869_v28  ;;  %v1041_v3 = vsel %vm5521_vm11, %v864_v53, %v1040_v46  ;;  %v1078_v62 = vld [vmem:[#allocation2 + $0x90] sm:$0xf] }
  0xae   : > { %v1162_v52 = vld [vmem:[#allocation2 + $0xb0] sm:$0x1]  ;;  %v1504_v56 = vsel %vm5499_vm9, %v1499_v44, %v1503_v40  ;;  %v1515_v57 = vshll.u32 %v1161_v48, 16  ;;  %v1519_v58 = vshrl.u32 %v1161_v48, 16  ;;  %1042 = vst [vmem:[#allocation2 + $0xb4] sm:$0xf] %v1041_v3 }
  0xaf   : > { %v1525_v59 = vshll.u32 %v1162_v52, 16  ;;  %1607 = vrot.lane.b32.xlu1 %v1504_v56, %s5390_s28  ;;  %v1508_v61 = vrot.slane %v1506_v50, 4  ;;  %v1511_v63 = vrot.slane %v1509_v51, 5  ;;  %v874_v4 = vrot.slane %v869_v28, 4  ;;  %1110 = vst.msk [vmem:[#allocation3 + $0x60] sm:$0xf] %vm411_vm0, %v1078_v62 }
  0xb0   : > { %v1517_v5 = vrot.slane %v1515_v57, 5  ;;  %v1521_v6 = vrot.slane %v1519_v58, 4  ;;  %v873_v13 = vsel %vm5513_vm10, %v865_v0, %v872_v54  ;;  %v1079_v27 = vld [vmem:[#allocation2 + $0x94] sm:$0xf]  ;;  %v1080_v20 = vld [vmem:[#allocation2 + $0x9c] sm:$0xf]  ;;  %v5911_v37 = vpop.permute.xlu1 %1563 }
  0xb1   : > { %v1512_v7 = vor.u32 %v1511_v63, %v1508_v61  ;;  %v1527_v14 = vrot.slane %v1525_v59, 5  ;;  %1043 = vst.msk [vmem:[#allocation2 + $0xb8] sm:$0xf] %vm411_vm0, %v873_v13  ;;  %v1045_v19 = vsel %vm5444_vm5, %v874_v4, %v1044_v9  ;;  %1111 = vst.msk [vmem:[#allocation3 + $0x64] sm:$0xf] %vm411_vm0, %v1079_v27  ;;  %vm4386_vm3 = vcmask 1041408  }
  0xb2   : > { %v1522_v18 = vor.u32 %v1521_v6, %v1517_v5  ;;  %1046 = vst [vmem:[#allocation2 + $0xbc] sm:$0x1] %v1045_v19  ;;  %1112 = vst.msk [vmem:[#allocation3 + $0x68] sm:$0xf] %vm411_vm0, %v1080_v20  ;;  %v1682_v31 = vld [vmem:[#allocation2] sm:$0xe] }
  0xb3   : > { %v1513_v22 = vrot.slane %v1512_v7, 4  ;;  %v1683_v32 = vld [vmem:[#allocation2 + $0x4] sm:$0xf]  ;;  %v1081_v39 = vld [vmem:[#allocation2 + $0xa0] sm:$0xf]  ;;  %v5014_v50 = vrot.slane %v1682_v31, 9 }
  0xb4   : > { %v1523_v23 = vrot.slane %v1522_v18, 4  ;;  %v1783_v28 = vrot.slane %v1683_v32, 5  ;;  %v1684_v43 = vld [vmem:[#allocation2 + $0x8] sm:$0x1]  ;;  %1113 = vst.msk [vmem:[#allocation3 + $0x6c] sm:$0xf] %vm411_vm0, %v1081_v39 }
  0xb5   : > { %v1518_v25 = vsel %vm5499_vm9, %v1513_v22, %v1517_v5  ;;  %v1163_v8 = vld [vmem:[#allocation2 + $0xb4] sm:$0xf]  ;;  %v1686_v44 = vld [vmem:[#allocation2 + $0x10] sm:$0xf]  ;;  %v1082_v51 = vld [vmem:[#allocation2 + $0xa8] sm:$0xf] }
  0xb6   : > { %1609 = vrot.lane.b32.xlu0 %v1518_v25, %s5390_s28  ;;  %v1528_v26 = vsel %vm5499_vm9, %v1523_v23, %v1527_v14  ;;  %v1530_v29 = vshrl.u32 %v1163_v8, 16  ;;  %v1533_v11 = vshll.u32 %v1163_v8, 16  ;;  %v1786_v53 = vrot.slane %v1684_v43, 5  ;;  %v1685_v54 = vld [vmem:[#allocation2 + $0xc] sm:$0xe]  ;;  %v1566_v56 = vpop.permute.xlu0 %1565 }
  0xb7   : > { %1611 = vrot.lane.b32.xlu1 %v1528_v26, %s5390_s28  ;;  %1114 = vst.msk [vmem:[#allocation3 + $0x70] sm:$0xf] %vm411_vm0, %v1082_v51  ;;  %v1083_v57 = vld [vmem:[#allocation2 + $0xac] sm:$0xf]  ;;  %v1785_v61 = vrot.slane %v1783_v28, 4  ;;  %v1790_v63 = vrot.slane %v1686_v44, 5  ;;  %v1784_v6 = vsel %vm5915_vm14, %v5014_v50, %v1783_v28 }
  0xb8   : > { %v1164_v30 = vld [vmem:[#allocation2 + $0xb8] sm:$0xf]  ;;  %v1532_v34 = vrot.slane %v1530_v29, 4  ;;  %v1535_v35 = vrot.slane %v1533_v11, 5  ;;  %v1568_v0 = vpop.permute.xlu1 %1567  ;;  %1115 = vst.msk [vmem:[#allocation3 + $0x74] sm:$0xf] %vm411_vm0, %v1083_v57 }
  0xb9   : > { %v1539_v36 = vshll.u32 %v1164_v30, 16  ;;  %v1543_v1 = vshrl.u32 %v1164_v30, 16  ;;  %v1165_v21 = vld [vmem:[#allocation2 + $0xbc] sm:$0x1]  ;;  %v1687_v3 = vld [vmem:[#allocation2 + $0x14] sm:$0x1]  ;;  %v1787_v16 = vsel %vm5915_vm14, %v1785_v61, %v1786_v53 }
  0xba   : > { %v1549_v38 = vshll.u32 %v1165_v21, 16  ;;  %v1536_v40 = vor.u32 %v1535_v35, %v1532_v34  ;;  %v1689_v9 = vld [vmem:[#allocation2 + $0x1c] sm:$0xf]  ;;  %v5015_v4 = vrot.slane %v1685_v54, 9  ;;  %v1084_v7 = vld [vmem:[#allocation2 + $0xb4] sm:$0xf] }
  0xbb   : > { %v1541_v41 = vrot.slane %v1539_v36, 5  ;;  %v1545_v42 = vrot.slane %v1543_v1, 4  ;;  %v1085_v13 = vld [vmem:[#allocation2 + $0xb8] sm:$0xf]  ;;  %1116 = vst.msk [vmem:[#allocation3 + $0x78] sm:$0xf] %vm411_vm0, %v1084_v7 }
  0xbc   : > { %v1537_v45 = vrot.slane %v1536_v40, 4  ;;  %v1551_v48 = vrot.slane %v1549_v38, 5  ;;  %v1688_v15 = vld [vmem:[#allocation2 + $0x18] sm:$0xe]  ;;  %1117 = vst.msk [vmem:[#allocation3 + $0x7c] sm:$0xf] %vm411_vm0, %v1085_v13  ;;  %v1791_v27 = vsel %vm5915_vm14, %v5015_v4, %v1790_v63 }
  0xbd   : > { %v1546_v46 = vor.u32 %v1545_v42, %v1541_v41  ;;  %v1792_v18 = vrot.slane %v1790_v63, 4  ;;  %v1793_v14 = vrot.slane %v1687_v3, 5  ;;  %v1797_v19 = vrot.slane %v1689_v9, 5  ;;  %v1690_v22 = vld [vmem:[#allocation2 + $0x20] sm:$0x1] }
  0xbe   : > { %v1542_v58 = vsel %vm5499_vm9, %v1537_v45, %v1541_v41  ;;  %v1692_v62 = vld [vmem:[#allocation2 + $0x28] sm:$0xf]  ;;  %v1570_v23 = vpop.permute.xlu0 %1569  ;;  %v5016_v25 = vrot.slane %v1688_v15, 9  ;;  %v1800_v20 = vrot.slane %v1690_v22, 5  ;;  %v1691_v8 = vld [vmem:[#allocation2 + $0x24] sm:$0xe] }
  0xbf   : > { %v1547_v59 = vrot.slane %v1546_v46, 4  ;;  %1613 = vrot.lane.b32.xlu0 %v1542_v58, %s5390_s28  ;;  %v1794_v29 = vsel %vm5915_vm14, %v1792_v18, %v1793_v14  ;;  %v1799_v11 = vrot.slane %v1797_v19, 4  ;;  %v1804_v30 = vrot.slane %v1692_v62, 5  ;;  %v1693_v31 = vld [vmem:[#allocation2 + $0x2c] sm:$0x1] }
  0xc0   : > { %v1695_v32 = vld [vmem:[#allocation2 + $0x34] sm:$0xf]  ;;  %1650 = vst.msk [vmem:[#allocation3] sm:$0xf] %vm1649_vm15, %v5880_v55  ;;  %1652 = vst.msk [vmem:[#allocation3 + $0x8] sm:$0xf] %vm1649_vm15, %v5884_v60  ;;  %v1798_v55 = vsel %vm5915_vm14, %v5016_v25, %v1797_v19 }
  0xc1   : > { %v1552_v5 = vsel %vm5499_vm9, %v1547_v59, %v1551_v48  ;;  %v1572_v26 = vpop.permute.xlu1 %1571  ;;  %1651 = vst.msk [vmem:[#allocation3 + $0x4] sm:$0xf] %vm1649_vm15, %v5896_v49  ;;  %1653 = vst.msk [vmem:[#allocation3 + $0xc] sm:$0xf] %vm1649_vm15, %v5898_v24  ;;  %v5017_v60 = vrot.slane %v1691_v8, 9  ;;  %v1806_v34 = vrot.slane %v1804_v30, 4 }
  0xc2   : > { %1615 = vrot.lane.b32.xlu1 %v1552_v5, %s5390_s28  ;;  %1654 = vst.msk [vmem:[#allocation3 + $0x10] sm:$0xf] %vm1649_vm15, %v5909_v33  ;;  %1655 = vst.msk [vmem:[#allocation3 + $0x14] sm:$0xf] %vm1649_vm15, %v5911_v37  ;;  %v1694_v49 = vld [vmem:[#allocation2 + $0x30] sm:$0xe]  ;;  %v1801_v33 = vsel %vm5915_vm14, %v1799_v11, %v1800_v20 }
  0xc3   : > { %1893 = vrot.lane.b32.xlu0 %v1784_v6, %s5391_s8  ;;  %1656 = vst.msk [vmem:[#allocation3 + $0x18] sm:$0xf] %vm1649_vm15, %v1566_v56  ;;  %1657 = vst.msk [vmem:[#allocation3 + $0x1c] sm:$0xf] %vm1649_vm15, %v1568_v0  ;;  %v1807_v35 = vrot.slane %v1693_v31, 5  ;;  %v1811_v36 = vrot.slane %v1695_v32, 5  ;;  %v1805_v38 = vsel %vm5915_vm14, %v5017_v60, %v1804_v30 }
  0xc4   : > { %1658 = vst.msk [vmem:[#allocation3 + $0x20] sm:$0xf] %vm1649_vm15, %v1570_v23  ;;  %1659 = vst.msk [vmem:[#allocation3 + $0x24] sm:$0xf] %vm1649_vm15, %v1572_v26  ;;  %v1696_v21 = vld [vmem:[#allocation2 + $0x38] sm:$0x1] }
  0xc5   : > { %v1698_v37 = vld [vmem:[#allocation2 + $0x40] sm:$0xf]  ;;  %v5018_v39 = vrot.slane %v1694_v49, 9  ;;  %v1697_v40 = vld [vmem:[#allocation2 + $0x3c] sm:$0xe]  ;;  %v1808_v41 = vsel %vm5915_vm14, %v1806_v34, %v1807_v35  ;;  %v1813_v42 = vrot.slane %v1811_v36, 4 }
  0xc6   : > { %1895 = vrot.lane.b32.xlu1 %v1787_v16, %s5391_s8  ;;  %v1574_v24 = vpop.permute.xlu0 %1573  ;;  %v1814_v28 = vrot.slane %v1696_v21, 5  ;;  %v1818_v43 = vrot.slane %v1698_v37, 5  ;;  %v1699_v44 = vld [vmem:[#allocation2 + $0x44] sm:$0x1]  ;;  %v1701_v45 = vld [vmem:[#allocation2 + $0x4c] sm:$0xf] }
  0xc7   : > { %1897 = vrot.lane.b32.xlu0 %v1791_v27, %s5391_s8  ;;  %1660 = vst.msk [vmem:[#allocation3 + $0x28] sm:$0xf] %vm1649_vm15, %v1574_v24  ;;  %v1576_v1 = vpop.permute.xlu1 %1575  ;;  %v1812_v46 = vsel %vm5915_vm14, %v5018_v39, %v1811_v36  ;;  %v5019_v48 = vrot.slane %v1697_v40, 9  ;;  %v1700_v50 = vld [vmem:[#allocation2 + $0x48] sm:$0xe]  ;;  %v1821_v54 = vrot.slane %v1699_v44, 5 }
  0xc8   : > { %1661 = vst.msk [vmem:[#allocation3 + $0x2c] sm:$0xf] %vm1649_vm15, %v1576_v1  ;;  %v1815_v51 = vsel %vm5915_vm14, %v1813_v42, %v1814_v28  ;;  %v1820_v53 = vrot.slane %v1818_v43, 4  ;;  %v1825_v56 = vrot.slane %v1701_v45, 5  ;;  %v1702_v57 = vld [vmem:[#allocation2 + $0x50] sm:$0x1] }
  0xc9   : > { %v1704_v58 = vld [vmem:[#allocation2 + $0x58] sm:$0xf]  ;;  %v1819_v59 = vsel %vm5915_vm14, %v5019_v48, %v1818_v43  ;;  %v5020_v61 = vrot.slane %v1700_v50, 9  ;;  %v1703_v63 = vld [vmem:[#allocation2 + $0x54] sm:$0xe]  ;;  %v1828_v5 = vrot.slane %v1702_v57, 5 }
  0xca   : > { %1899 = vrot.lane.b32.xlu1 %v1794_v29, %s5391_s8  ;;  %v1822_v3 = vsel %vm5915_vm14, %v1820_v53, %v1821_v54  ;;  %v1827_v9 = vrot.slane %v1825_v56, 4  ;;  %v1832_v6 = vrot.slane %v1704_v58, 5  ;;  %v1705_v7 = vld [vmem:[#allocation2 + $0x5c] sm:$0x1]  ;;  %v1707_v13 = vld [vmem:[#allocation2 + $0x64] sm:$0xf] }
  0xcb   : > { %1901 = vrot.lane.b32.xlu0 %v1798_v55, %s5391_s8  ;;  %v1826_v15 = vsel %vm5915_vm14, %v5020_v61, %v1825_v56  ;;  %v5021_v16 = vrot.slane %v1703_v63, 9  ;;  %v1706_v18 = vld [vmem:[#allocation2 + $0x60] sm:$0xe]  ;;  %v1835_v22 = vrot.slane %v1705_v7, 5  ;;  %v1839_v62 = vrot.slane %v1707_v13, 5 }
  0xcc   : > { %v1829_v14 = vsel %vm5915_vm14, %v1827_v9, %v1828_v5  ;;  %v1834_v19 = vrot.slane %v1832_v6, 4  ;;  %v1708_v23 = vld [vmem:[#allocation2 + $0x68] sm:$0x1]  ;;  %v1710_v27 = vld [vmem:[#allocation2 + $0x70] sm:$0xf]  ;;  %v5022_v26 = vrot.slane %v1706_v18, 9 }
  0xcd   : > { %v1833_v25 = vsel %vm5915_vm14, %v5021_v16, %v1832_v6  ;;  %v1709_v20 = vld [vmem:[#allocation2 + $0x6c] sm:$0xe]  ;;  %v1841_v29 = vrot.slane %v1839_v62, 4  ;;  %v1842_v11 = vrot.slane %v1708_v23, 5  ;;  %v1846_v30 = vrot.slane %v1710_v27, 5 }
  0xce   : > { %1903 = vrot.lane.b32.xlu1 %v1801_v33, %s5391_s8  ;;  %v1836_v8 = vsel %vm5915_vm14, %v1834_v19, %v1835_v22  ;;  %v1711_v31 = vld [vmem:[#allocation2 + $0x74] sm:$0x1]  ;;  %v1713_v32 = vld [vmem:[#allocation2 + $0x7c] sm:$0xf]  ;;  %v1840_v55 = vsel %vm5915_vm14, %v5022_v26, %v1839_v62  ;;  %v5023_v60 = vrot.slane %v1709_v20, 9  ;;  %vm2182_vm4 = vcmask 126048  }
  0xcf   : > { %1905 = vrot.lane.b32.xlu0 %v1805_v38, %s5391_s8  ;;  %v1712_v49 = vld [vmem:[#allocation2 + $0x78] sm:$0xe]  ;;  %v1843_v24 = vsel %vm5915_vm14, %v1841_v29, %v1842_v11  ;;  %v1848_v33 = vrot.slane %v1846_v30, 4  ;;  %v1849_v34 = vrot.slane %v1711_v31, 5  ;;  %v1853_v35 = vrot.slane %v1713_v32, 5 }
  0xd0   : > { %v1714_v36 = vld [vmem:[#allocation2 + $0x80] sm:$0x1]  ;;  %v1716_v1 = vld [vmem:[#allocation2 + $0x88] sm:$0xf]  ;;  %v1847_v37 = vsel %vm5915_vm14, %v5023_v60, %v1846_v30  ;;  %v5024_v38 = vrot.slane %v1712_v49, 9  ;;  %vm2743_vm6 = vcmask 158848  }
  0xd1   : > { %v1715_v40 = vld [vmem:[#allocation2 + $0x84] sm:$0xe]  ;;  %v1855_v42 = vrot.slane %v1853_v35, 4  ;;  %v1856_v28 = vrot.slane %v1714_v36, 5  ;;  %v1860_v43 = vrot.slane %v1716_v1, 5  ;;  %vm3080_vm8 = vcmask 191648  }
  0xd2   : > { %1907 = vrot.lane.b32.xlu1 %v1808_v41, %s5391_s8  ;;  %v1578_v0 = vpop.permute.xlu0 %1577  ;;  %v1850_v41 = vsel %vm5915_vm14, %v1848_v33, %v1849_v34  ;;  %v1717_v44 = vld [vmem:[#allocation2 + $0x8c] sm:$0x1]  ;;  %v1719_v45 = vld [vmem:[#allocation2 + $0x94] sm:$0xf]  ;;  %v5025_v48 = vrot.slane %v1715_v40, 9  ;;  %vm3274_vm12 = vcmask 224448  }
  0xd3   : > { %1909 = vrot.lane.b32.xlu0 %v1812_v46, %s5391_s8  ;;  %1662 = vst.msk [vmem:[#allocation3 + $0x30] sm:$0xf] %vm1649_vm15, %v1578_v0  ;;  %v1580_v4 = vpop.permute.xlu1 %1579  ;;  %v1854_v46 = vsel %vm5915_vm14, %v5024_v38, %v1853_v35  ;;  %v1718_v50 = vld [vmem:[#allocation2 + $0x90] sm:$0xe]  ;;  %v1857_v53 = vsel %vm5915_vm14, %v1855_v42, %v1856_v28  ;;  %v1862_v54 = vrot.slane %v1860_v43, 4  ;;  %v1863_v56 = vrot.slane %v1717_v44, 5 }
  0xd4   : > { %1663 = vst.msk [vmem:[#allocation3 + $0x34] sm:$0xf] %vm1649_vm15, %v1580_v4  ;;  %v1867_v57 = vrot.slane %v1719_v45, 5  ;;  %v1720_v58 = vld [vmem:[#allocation2 + $0x98] sm:$0x1]  ;;  %v1861_v61 = vsel %vm5915_vm14, %v5025_v48, %v1860_v43  ;;  %v5026_v63 = vrot.slane %v1718_v50, 9 }
  0xd5   : > { %v1864_v9 = vsel %vm5915_vm14, %v1862_v54, %v1863_v56  ;;  %v1870_v6 = vrot.slane %v1720_v58, 5  ;;  %v1723_v7 = vld [vmem:[#allocation2 + $0xa4] sm:$0x1]  ;;  %v1725_v13 = vld [vmem:[#allocation2 + $0xac] sm:$0xf]  ;;  %vm3835_vm13 = vcmask 257248  }
  0xd6   : > { %1911 = vrot.lane.b32.xlu1 %v1815_v51, %s5391_s8  ;;  %v1869_v5 = vrot.slane %v1867_v57, 4  ;;  %v1724_v18 = vld [vmem:[#allocation2 + $0xa8] sm:$0xe]  ;;  %v1877_v22 = vrot.slane %v1723_v7, 5  ;;  %v1881_v62 = vrot.slane %v1725_v13, 5 }
  0xd7   : > { %1913 = vrot.lane.b32.xlu0 %v1819_v59, %s5391_s8  ;;  %v1722_v59 = vld [vmem:[#allocation2 + $0xa0] sm:$0xf]  ;;  %v1726_v23 = vld [vmem:[#allocation2 + $0xb0] sm:$0x1]  ;;  %v1728_v27 = vld [vmem:[#allocation2 + $0xb8] sm:$0xf] }
  0xd8   : > { %v1874_v4 = vrot.slane %v1722_v59, 5  ;;  %v5028_v20 = vrot.slane %v1724_v18, 9  ;;  %v1883_v30 = vrot.slane %v1881_v62, 4  ;;  %v1884_v31 = vrot.slane %v1726_v23, 5  ;;  %v2023_v38 = vld [vmem:[#allocation2 + $0x10] sm:$0xf] }
  0xd9   : > { %v1888_v32 = vrot.slane %v1728_v27, 5  ;;  %v2025_v40 = vld [vmem:[#allocation2 + $0x1c] sm:$0xf]  ;;  %v2027_v43 = vld [vmem:[#allocation2 + $0x28] sm:$0xf] }
  0xda   : > { %1915 = vrot.lane.b32.xlu1 %v1822_v3, %s5391_s8  ;;  %v1721_v3 = vld [vmem:[#allocation2 + $0x9c] sm:$0xe]  ;;  %v1876_v19 = vrot.slane %v1874_v4, 4  ;;  %v1882_v60 = vsel %vm5915_vm14, %v5028_v20, %v1881_v62  ;;  %v2028_v44 = vld [vmem:[#allocation2 + $0x30] sm:$0xf] }
  0xdb   : > { %1917 = vrot.lane.b32.xlu0 %v1826_v15, %s5391_s8  ;;  %v1868_v15 = vsel %vm5915_vm14, %v5026_v63, %v1867_v57  ;;  %v5027_v16 = vrot.slane %v1721_v3, 9  ;;  %v1890_v33 = vrot.slane %v1888_v32, 4  ;;  %v2029_v45 = vld [vmem:[#allocation2 + $0x34] sm:$0xf]  ;;  %v2215_v48 = vld [vmem:[#allocation2 + $0xc] sm:$0xf] }
  0xdc   : > { %v1878_v11 = vsel %vm5915_vm14, %v1876_v19, %v1877_v22  ;;  %v2031_v50 = vld [vmem:[#allocation2 + $0x40] sm:$0xf]  ;;  %v2032_v54 = vld [vmem:[#allocation2 + $0x48] sm:$0xf]  ;;  %v2264_v56 = vshrl.u32 %v2215_v48, 16  ;;  %v2267_v57 = vshll.u32 %v2215_v48, 16 }
  0xdd   : > { %v1875_v26 = vsel %vm5915_vm14, %v5027_v16, %v1874_v4  ;;  %v2218_v59 = vld [vmem:[#allocation2 + $0x18] sm:$0xf]  ;;  %v2219_v3 = vld [vmem:[#allocation2 + $0x1c] sm:$0xf]  ;;  %v2217_v19 = vld [vmem:[#allocation2 + $0x14] sm:$0x1] }
  0xde   : > { %1919 = vrot.lane.b32.xlu1 %v1829_v14, %s5391_s8  ;;  %v1871_v14 = vsel %vm5915_vm14, %v1869_v5, %v1870_v6  ;;  %v2266_v5 = vrot.slane %v2264_v56, 4  ;;  %v2269_v6 = vrot.slane %v2267_v57, 5  ;;  %v2288_v4 = vshrl.u32 %v2218_v59, 16  ;;  %v2035_v13 = vld [vmem:[#allocation2 + $0x58] sm:$0xf] }
  0xdf   : > { %1921 = vrot.lane.b32.xlu0 %v1833_v25, %s5391_s8  ;;  %v2291_v7 = vshll.u32 %v2218_v59, 16  ;;  %v2297_v18 = vshll.u32 %v2219_v3, 16  ;;  %v2036_v22 = vld [vmem:[#allocation2 + $0x60] sm:$0xf] }
  0xe0   : > { %v1582_v21 = vpop.permute.xlu0 %1581  ;;  %v2270_v62 = vor.u32 %v2269_v6, %v2266_v5  ;;  %v2290_v23 = vrot.slane %v2288_v4, 4  ;;  %v2781_v57 = vld [vmem:[#allocation2 + $0x20] sm:$0x1] }
  0xe1   : > { %1664 = vst.msk [vmem:[#allocation3 + $0x38] sm:$0xf] %vm1649_vm15, %v1582_v21  ;;  %v1584_v39 = vpop.permute.xlu1 %1583  ;;  %v2022_v21 = vld [vmem:[#allocation2 + $0xc] sm:$0xf]  ;;  %v2293_v27 = vrot.slane %v2291_v7, 5  ;;  %v2884_v6 = vrot.slane %v2781_v57, 5 }
  0xe2   : > { %1923 = vrot.lane.b32.xlu1 %v1836_v8, %s5391_s8  ;;  %1665 = vst.msk [vmem:[#allocation3 + $0x3c] sm:$0xf] %vm1649_vm15, %v1584_v39  ;;  %v1727_v8 = vld [vmem:[#allocation2 + $0xb4] sm:$0xe]  ;;  %v2024_v39 = vld [vmem:[#allocation2 + $0x18] sm:$0xf] }
  0xe3   : > { %1925 = vrot.lane.b32.xlu0 %v1840_v55, %s5391_s8  ;;  %v1729_v55 = vld [vmem:[#allocation2 + $0xbc] sm:$0x1]  ;;  %v5029_v49 = vrot.slane %v1727_v8, 9  ;;  %v2283_v8 = vshll.u32 %v2217_v19, 16 }
  0xe4   : > { %v1891_v34 = vrot.slane %v1729_v55, 5  ;;  %v2271_v55 = vrot.slane %v2270_v62, 4 }
  0xe5   : > { %v1889_v35 = vsel %vm5915_vm14, %v5029_v49, %v1888_v32  ;;  %v2038_v32 = vld [vmem:[#allocation2 + $0x6c] sm:$0xf]  ;;  %v2039_v49 = vld [vmem:[#allocation2 + $0x70] sm:$0xf] }
  0xe6   : > { %1927 = vrot.lane.b32.xlu1 %v1843_v24, %s5391_s8  ;;  %v1885_v24 = vsel %vm5915_vm14, %v1883_v30, %v1884_v31  ;;  %v1892_v1 = vsel %vm5915_vm14, %v1890_v33, %v1891_v34  ;;  %v2220_v31 = vld [vmem:[#allocation2 + $0x20] sm:$0x1]  ;;  %v2285_v33 = vrot.slane %v2283_v8, 5 }
  0xe7   : > { %1929 = vrot.lane.b32.xlu0 %v1847_v37, %s5391_s8  ;;  %v1586_v51 = vpop.permute.xlu0 %1585  ;;  %v3309_v8 = vld [vmem:[#allocation2 + $0x20] sm:$0x1] }
  0xe8   : > { %1666 = vst.msk [vmem:[#allocation3 + $0x40] sm:$0xf] %vm1649_vm15, %v1586_v51 }
  0xe9   : > { %v1588_v0 = vpop.permute.xlu1 %1587 }
  0xea   : > { %1931 = vrot.lane.b32.xlu1 %v1850_v41, %s5391_s8  ;;  %1667 = vst.msk [vmem:[#allocation3 + $0x44] sm:$0xf] %vm1649_vm15, %v1588_v0  ;;  %v2026_v41 = vld [vmem:[#allocation2 + $0x24] sm:$0xf] }
  0xeb   : > { %1933 = vrot.lane.b32.xlu0 %v1854_v46, %s5391_s8  ;;  %v2030_v46 = vld [vmem:[#allocation2 + $0x3c] sm:$0xf] }
  0xee   : > { %1935 = vrot.lane.b32.xlu1 %v1857_v53, %s5391_s8  ;;  %v2216_v53 = vld [vmem:[#allocation2 + $0x10] sm:$0xf] }
  0xef   : > { %1937 = vrot.lane.b32.xlu0 %v1861_v61, %s5391_s8  ;;  %v2033_v61 = vld [vmem:[#allocation2 + $0x4c] sm:$0xf]  ;;  %v2273_v63 = vshll.u32 %v2216_v53, 16  ;;  %v2277_v0 = vshrl.u32 %v2216_v53, 16  ;;  %v3307_v53 = vld [vmem:[#allocation2 + $0x18] sm:$0xf] }
  0xf1   : > { %v1590_v25 = vpop.permute.xlu0 %1589  ;;  %v2279_v16 = vrot.slane %v2277_v0, 4  ;;  %v3359_v0 = vshll.u32 %v3307_v53, 16 }
  0xf2   : > { %1939 = vrot.lane.b32.xlu1 %v1864_v9, %s5391_s8  ;;  %1668 = vst.msk [vmem:[#allocation3 + $0x48] sm:$0xf] %vm1649_vm15, %v1590_v25  ;;  %v2034_v9 = vld [vmem:[#allocation2 + $0x54] sm:$0xf] }
  0xf3   : > { %1941 = vrot.lane.b32.xlu0 %v1868_v15, %s5391_s8  ;;  %v1592_v29 = vpop.permute.xlu1 %1591  ;;  %v2275_v15 = vrot.slane %v2273_v63, 5  ;;  %v3356_v63 = vshrl.u32 %v3307_v53, 16  ;;  %v3361_v19 = vrot.slane %v3359_v0, 5 }
  0xf4   : > { %1669 = vst.msk [vmem:[#allocation3 + $0x4c] sm:$0xf] %vm1649_vm15, %v1592_v29  ;;  %v2299_v29 = vrot.slane %v2297_v18, 5 }
  0xf5   : > { %v2280_v20 = vor.u32 %v2279_v16, %v2275_v15 }
  0xf6   : > { %1943 = vrot.lane.b32.xlu1 %v1871_v14, %s5391_s8  ;;  %v2301_v14 = vshrl.u32 %v2219_v3, 16  ;;  %v3310_v3 = vld [vmem:[#allocation2 + $0x24] sm:$0xf] }
  0xf7   : > { %1945 = vrot.lane.b32.xlu0 %v1875_v26, %s5391_s8  ;;  %v2037_v26 = vld [vmem:[#allocation2 + $0x64] sm:$0xf]  ;;  %v3383_v16 = vshll.u32 %v3310_v3, 16 }
  0xfa   : > { %1947 = vrot.lane.b32.xlu1 %v1878_v11, %s5391_s8  ;;  %v2303_v11 = vrot.slane %v2301_v14, 4  ;;  %v3358_v14 = vrot.slane %v3356_v63, 4 }
  0xfb   : > { %1949 = vrot.lane.b32.xlu0 %v1882_v60, %s5391_s8  ;;  %v1594_v36 = vpop.permute.xlu0 %1593  ;;  %v2294_v60 = vor.u32 %v2293_v27, %v2290_v23 }
  0xfc   : > { %1670 = vst.msk [vmem:[#allocation3 + $0x50] sm:$0xf] %vm1649_vm15, %v1594_v36  ;;  %v2304_v34 = vor.u32 %v2303_v11, %v2299_v29  ;;  %v2777_v36 = vld [vmem:[#allocation2 + $0x10] sm:$0xf]  ;;  %v3385_v11 = vrot.slane %v3383_v16, 5  ;;  %v5359_v16 = vld [vmem:[%s6955_s3 + $0x8] sm:$0xff]  }
  0xfe   : > { %1951 = vrot.lane.b32.xlu1 %v1885_v24, %s5391_s8  ;;  %v2281_v24 = vrot.slane %v2280_v20, 4 }
  0xff   : > { %1953 = vrot.lane.b32.xlu0 %v1889_v35, %s5391_s8  ;;  %v1596_v37 = vpop.permute.xlu1 %1595  ;;  %v2307_v35 = vshll.u32 %v2220_v31, 16  ;;  %v3362_v31 = vor.u32 %v3361_v19, %v3358_v14 }
 0x100   : > { %1671 = vst.msk [vmem:[#allocation3 + $0x54] sm:$0xf] %vm1649_vm15, %v1596_v37  ;;  %v2776_v37 = vld [vmem:[#allocation2 + $0xc] sm:$0xe] }
 0x102   : > { %1955 = vrot.lane.b32.xlu1 %v1892_v1, %s5391_s8  ;;  %v2276_v1 = vsel %vm5499_vm9, %v2271_v55, %v2275_v15  ;;  %v3380_v15 = vshrl.u32 %v3310_v3, 16  ;;  %v3870_v3 = vld [vmem:[#allocation2 + $0x20] sm:$0x1]  ;;  %s235_s8 = scalar_lea.vmem %s6957_s5, %s4979_s20 }
 0x103   : > { %2086 = vrot.lane.b32.xlu0 %v2022_v21, %s5392_s9  ;;  %v2295_v21 = vrot.slane %v2294_v60, 4 }
 0x106   : > { %2088 = vrot.lane.b32.xlu1 %v2023_v38, %s5392_s9  ;;  %v2874_v38 = vrot.slane %v2777_v36, 5 }
 0x107   : > { %2090 = vrot.lane.b32.xlu0 %v2024_v39, %s5392_s9  ;;  %v1598_v42 = vpop.permute.xlu0 %1597  ;;  %v2286_v39 = vsel %vm5499_vm9, %v2281_v24, %v2285_v33  ;;  %v3375_v33 = vshll.u32 %v3309_v8, 16  ;;  %v3873_v8 = vld [vmem:[#allocation2 + $0x2c] sm:$0x1] }
 0x108   : > { %1672 = vst.msk [vmem:[#allocation3 + $0x58] sm:$0xf] %vm1649_vm15, %v1598_v42  ;;  %v1600_v28 = vpop.permute.xlu1 %1599  ;;  %v2876_v48 = vrot.slane %v2874_v38, 4 }
 0x109   : > { %1673 = vst.msk [vmem:[#allocation3 + $0x5c] sm:$0xf] %vm1649_vm15, %v1600_v28  ;;  %v2778_v28 = vld [vmem:[#allocation2 + $0x14] sm:$0x1] }
 0x10a   : > { %2092 = vrot.lane.b32.xlu1 %v2025_v40, %s5392_s9  ;;  %v2305_v40 = vrot.slane %v2304_v34, 4  ;;  %v3312_v34 = vld [vmem:[#allocation2 + $0x2c] sm:$0x1] }
 0x10b   : > { %2094 = vrot.lane.b32.xlu0 %v2026_v41, %s5392_s9  ;;  %v2309_v41 = vrot.slane %v2307_v35, 5 }
 0x10e   : > { %2096 = vrot.lane.b32.xlu1 %v2027_v43, %s5392_s9 }
 0x10f   : > { %2098 = vrot.lane.b32.xlu0 %v2028_v44, %s5392_s9  ;;  %v2780_v44 = vld [vmem:[#allocation2 + $0x1c] sm:$0xf] }
 0x110   : > { %v2881_v56 = vrot.slane %v2780_v44, 5 }
 0x112   : > { %2100 = vrot.lane.b32.xlu1 %v2029_v45, %s5392_s9  ;;  %v2300_v45 = vsel %vm5499_vm9, %v2295_v21, %v2299_v29  ;;  %v2883_v5 = vrot.slane %v2881_v56, 4  ;;  %v3382_v29 = vrot.slane %v3380_v15, 4  ;;  %v3363_v21 = vrot.slane %v3362_v31, 4  ;;  %v2225_v15 = vld [vmem:[#allocation2 + $0x34] sm:$0xf] }
 0x113   : > { %2102 = vrot.lane.b32.xlu0 %v2030_v46, %s5392_s9  ;;  %v5030_v46 = vrot.slane %v2776_v37, 9  ;;  %v2349_v31 = vshrl.u32 %v2225_v15, 16 }
 0x114   : > { %v1602_v51 = vpop.permute.xlu0 %1601  ;;  %v2885_v27 = vsel %vm5915_vm14, %v2883_v5, %v2884_v6  ;;  %v3386_v36 = vor.u32 %v3385_v11, %v3382_v29 }
 0x115   : > { %1674 = vst.msk [vmem:[#allocation3 + $0x60] sm:$0xf] %vm1649_vm15, %v1602_v51  ;;  %v1604_v58 = vpop.permute.xlu1 %1603  ;;  %v2779_v51 = vld [vmem:[#allocation2 + $0x18] sm:$0xe]  ;;  %v2875_v59 = vsel %vm5915_vm14, %v5030_v46, %v2874_v38  ;;  %v2222_v46 = vld [vmem:[#allocation2 + $0x28] sm:$0xf] }
 0x116   : > { %2104 = vrot.lane.b32.xlu1 %v2031_v50, %s5392_s9  ;;  %1675 = vst.msk [vmem:[#allocation3 + $0x64] sm:$0xf] %vm1649_vm15, %v1604_v58  ;;  %v2877_v50 = vrot.slane %v2778_v28, 5  ;;  %v3308_v58 = vld [vmem:[#allocation2 + $0x1c] sm:$0xf]  ;;  %v3377_v28 = vrot.slane %v3375_v33, 5 }
 0x117   : > { %2106 = vrot.lane.b32.xlu0 %v2032_v54, %s5392_s9  ;;  %v2310_v54 = vsel %vm5499_vm9, %v2305_v40, %v2309_v41  ;;  %v3365_v4 = vshll.u32 %v3308_v58, 16  ;;  %v3369_v7 = vshrl.u32 %v3308_v58, 16  ;;  %v2221_v40 = vld [vmem:[#allocation2 + $0x24] sm:$0xf]  ;;  %v3117_v41 = vld [vmem:[#allocation2 + $0x28] sm:$0xf] }
 0x118   : > { %v2312_v53 = vshrl.u32 %v2221_v40, 16  ;;  %v2321_v5 = vshll.u32 %v2222_v46, 16  ;;  %v2325_v6 = vshrl.u32 %v2222_v46, 16 }
 0x11a   : > { %2108 = vrot.lane.b32.xlu1 %v2033_v61, %s5392_s9  ;;  %v5031_v61 = vrot.slane %v2779_v51, 9  ;;  %v3868_v51 = vld [vmem:[#allocation2 + $0x18] sm:$0xe]  ;;  %v2323_v29 = vrot.slane %v2321_v5, 5  ;;  %v2327_v11 = vrot.slane %v2325_v6, 4 }
 0x11b   : > { %2110 = vrot.lane.b32.xlu0 %v2034_v9, %s5392_s9  ;;  %v2878_v9 = vsel %vm5915_vm14, %v2876_v48, %v2877_v50  ;;  %v5358_v48 = vld [vmem:[%s6955_s3 + $0x10] ss:$0 sps:$4 sm:$0x33]  }
 0x11c   : > { %v2882_v18 = vsel %vm5915_vm14, %v5031_v61, %v2881_v56  ;;  %v2224_v61 = vld [vmem:[#allocation2 + $0x30] sm:$0xf]  ;;  %5339 = vmatprep.subr.msk.bf16.mxu0 %vm4386_vm3, %v5358_v48  ;;  %v4388_v63 = vsel %vm4386_vm3, %v5358_v48, 0  ;;  %5340 = vmatprep.subr.msk.bf16.mxu1 %vm4386_vm3, %v5358_v48 }
 0x11d   : > { %5296 = vmatpush3.bf16.msra.mxu0 %v4388_v63  ;;  %5336 = vmatpush3.bf16.msra.mxu1 %v4388_v63  ;;  %v2336_v19 = vshrl.u32 %v2224_v61, 16  ;;  %v2782_v63 = vld [vmem:[#allocation2 + $0x24] sm:$0xe] }
 0x11e   : > { %2112 = vrot.lane.b32.xlu1 %v2035_v13, %s5392_s9  ;;  %v3311_v13 = vld [vmem:[#allocation2 + $0x28] sm:$0xf]  ;;  %5297 = vmatprep.subr.bf16.mxu0 %v5359_v16 }
 0x11f   : > { %v1606_v25 = vpop.permute.xlu0 %1605  ;;  %2114 = vrot.lane.b32.xlu0 %v2036_v22, %s5392_s9  ;;  %v3389_v62 = vshll.u32 %v3311_v13, 16  ;;  %v3393_v23 = vshrl.u32 %v3311_v13, 16  ;;  %v5046_v13 = vrot.slane %v3868_v51, 9  ;;  %5334 = vmatprep.subr.bf16.mxu1 %v5359_v16 }
 0x120   : > { %1676 = vst.msk [vmem:[#allocation3 + $0x68] sm:$0xf] %vm1649_vm15, %v1606_v25  ;;  %v6102_v25 = vrot.slane %v3365_v4, 5 }
 0x121   : > { %v1608_v30 = vpop.permute.xlu1 %1607  ;;  %v6107_v55 = vrot.slane %v3389_v62, 5  ;;  %v3395_v60 = vrot.slane %v3393_v23, 4  ;;  %5298 = vmatpush3.bf16.msra.mxu0 %v5359_v16  ;;  %5337 = vmatpush3.bf16.msra.mxu1 %v5359_v16 }
 0x122   : > { %1677 = vst.msk [vmem:[#allocation3 + $0x6c] sm:$0xf] %vm1649_vm15, %v1608_v30  ;;  %2116 = vrot.lane.b32.xlu1 %v2037_v26, %s5392_s9  ;;  %v3371_v26 = vrot.slane %v3369_v7, 4  ;;  %v3114_v30 = vld [vmem:[#allocation2 + $0x18] sm:$0xf]  ;;  %v3368_v50 = vsel %vm5499_vm9, %v3363_v21, %v6102_v25 }
 0x123   : > { %2118 = vrot.lane.b32.xlu0 %v2038_v32, %s5392_s9  ;;  %v3396_v38 = vor.u32 %v3395_v60, %v6107_v55  ;;  %v2223_v60 = vld [vmem:[#allocation2 + $0x2c] sm:$0x1] }
 0x124   : > { %v3372_v24 = vor.u32 %v3371_v26, %v6102_v25  ;;  %v3969_v25 = vrot.slane %v3870_v3, 5  ;;  %v3871_v26 = vld [vmem:[#allocation2 + $0x24] sm:$0xe] }
 0x125   : > { %v3397_v57 = vrot.slane %v3396_v38, 4  ;;  %v2328_v38 = vor.u32 %v2327_v11, %v2323_v29 }
 0x126   : > { %2120 = vrot.lane.b32.xlu1 %v2039_v49, %s5392_s9  ;;  %v3115_v49 = vld [vmem:[#allocation2 + $0x1c] sm:$0xf] }
 0x127   : > { %2647 = vrot.lane.b32.xlu0 %v2276_v1, %s5393_s10  ;;  %v3116_v1 = vld [vmem:[#allocation2 + $0x24] sm:$0xf] }
 0x128   : > { %v1610_v42 = vpop.permute.xlu0 %1609 }
 0x129   : > { %1678 = vst.msk [vmem:[#allocation3 + $0x70] sm:$0xf] %vm1649_vm15, %v1610_v42  ;;  %v1612_v43 = vpop.permute.xlu1 %1611  ;;  %v3373_v42 = vrot.slane %v3372_v24, 4  ;;  %v5047_v24 = vrot.slane %v3871_v26, 9  ;;  %v3314_v26 = vld [vmem:[#allocation2 + $0x34] sm:$0xf] }
 0x12a   : > { %1679 = vst.msk [vmem:[#allocation3 + $0x74] sm:$0xf] %vm1649_vm15, %v1612_v43  ;;  %2649 = vrot.lane.b32.xlu1 %v2286_v39, %s5393_s10  ;;  %v3399_v39 = vshll.u32 %v3312_v34, 16  ;;  %v3869_v43 = vld [vmem:[#allocation2 + $0x1c] sm:$0xf]  ;;  %v2338_v34 = vrot.slane %v2336_v19, 4 }
 0x12b   : > { %2651 = vrot.lane.b32.xlu0 %v2300_v45, %s5393_s10  ;;  %v3387_v45 = vrot.slane %v3386_v36, 4  ;;  %v3378_v0 = vsel %vm5499_vm9, %v3373_v42, %v3377_v28  ;;  %v2226_v28 = vld [vmem:[#allocation2 + $0x38] sm:$0x1] }
 0x12c   : > { %v3401_v58 = vrot.slane %v3399_v39, 5  ;;  %v2331_v39 = vshll.u32 %v2223_v60, 16 }
 0x12d   : > { %v3392_v7 = vsel %vm5499_vm9, %v3387_v45, %v6107_v55 }
 0x12e   : > { %2653 = vrot.lane.b32.xlu1 %v2310_v54, %s5393_s10  ;;  %v2315_v54 = vshll.u32 %v2221_v40, 16  ;;  %v3402_v23 = vsel %vm5499_vm9, %v3397_v57, %v3401_v58  ;;  %v2333_v51 = vrot.slane %v2331_v39, 5  ;;  %v2783_v57 = vld [vmem:[#allocation2 + $0x28] sm:$0xf] }
 0x12f   : > { %2984 = vrot.lane.b32.xlu0 %v2875_v59, %s5394_s11  ;;  %v3966_v59 = vrot.slane %v3869_v43, 5  ;;  %v2888_v5 = vrot.slane %v2783_v57, 5 }
 0x130   : > { %v2317_v14 = vrot.slane %v2315_v54, 5  ;;  %v2355_v54 = vshll.u32 %v2226_v28, 16 }
 0x131   : > { %v1614_v22 = vpop.permute.xlu0 %1613  ;;  %v3967_v55 = vsel %vm5915_vm14, %v5046_v13, %v3966_v59 }
 0x132   : > { %2986 = vrot.lane.b32.xlu1 %v2878_v9, %s5394_s11  ;;  %1680 = vst.msk [vmem:[#allocation3 + $0x78] sm:$0xf] %vm1649_vm15, %v1614_v22  ;;  %v6130_v9 = vld [vmem:[#allocation2 + $0x28] sm:$0xf]  ;;  %v2339_v22 = vshll.u32 %v2224_v61, 16 }
 0x133   : > { %2988 = vrot.lane.b32.xlu0 %v2882_v18, %s5394_s11  ;;  %v2314_v18 = vrot.slane %v2312_v53, 4 }
 0x134   : > { %v1616_v20 = vpop.permute.xlu1 %1615 }
 0x135   : > { %1681 = vst.msk [vmem:[#allocation3 + $0x7c] sm:$0xf] %vm1649_vm15, %v1616_v20  ;;  %v1894_v32 = vpop.permute.xlu0 %1893  ;;  %v3973_v20 = vrot.slane %v6130_v9, 5  ;;  %v2318_v33 = vor.u32 %v2317_v14, %v2314_v18  ;;  %v2357_v9 = vrot.slane %v2355_v54, 5  ;;  %v2785_v18 = vld [vmem:[#allocation2 + $0x30] sm:$0xe] }
 0x136   : > { %2990 = vrot.lane.b32.xlu1 %v2885_v27, %s5394_s11  ;;  %1990 = vst.msk [vmem:[#allocation3] sm:$0xf] %vm1989_vm2, %v1894_v32  ;;  %v3968_v27 = vrot.slane %v3966_v59, 4  ;;  %v3313_v14 = vld [vmem:[#allocation2 + $0x30] sm:$0xf]  ;;  %vm4172_vm15 = vcmask 290048  }
 0x137   : > { %3178 = vrot.lane.b32.xlu0 %v3114_v30, %s5395_s12  ;;  %v2345_v30 = vshll.u32 %v2225_v15, 16  ;;  %v3975_v21 = vrot.slane %v3973_v20, 4  ;;  %v3974_v43 = vsel %vm5915_vm14, %v5047_v24, %v3973_v20  ;;  %v5032_v15 = vrot.slane %v2782_v63, 9 }
 0x138   : > { %v1896_v35 = vpop.permute.xlu1 %1895  ;;  %v3407_v11 = vshll.u32 %v3313_v14, 16  ;;  %v3417_v24 = vshrl.u32 %v3314_v26, 16 }
 0x139   : > { %1991 = vst.msk [vmem:[#allocation3 + $0x4] sm:$0xf] %vm1989_vm2, %v1896_v35  ;;  %v1898_v37 = vpop.permute.xlu0 %1897  ;;  %v2341_v35 = vrot.slane %v2339_v22, 5  ;;  %v2347_v40 = vrot.slane %v2345_v30, 5  ;;  %v2890_v22 = vrot.slane %v2888_v5, 4  ;;  %v2889_v20 = vsel %vm5915_vm14, %v5032_v15, %v2888_v5 }
 0x13a   : > { %3180 = vrot.lane.b32.xlu1 %v3115_v49, %s5395_s12  ;;  %1992 = vst.msk [vmem:[#allocation3 + $0x8] sm:$0xf] %vm1989_vm2, %v1898_v37  ;;  %v5360_v49 = vld [vmem:[%s6955_s3] sm:$0xff]   ;;  %v3976_v37 = vrot.slane %v3873_v8, 5  ;;  %v5033_v8 = vrot.slane %v2785_v18, 9  ;;  %v3419_v28 = vrot.slane %v3417_v24, 4 }
 0x13b   : > { %3182 = vrot.lane.b32.xlu0 %v3116_v1, %s5395_s12  ;;  %v3970_v1 = vsel %vm5915_vm14, %v3968_v27, %v3969_v25  ;;  %5299 = vmatprep.subr.bf16.mxu0 %v5360_v49  ;;  %v2342_v45 = vor.u32 %v2341_v35, %v2338_v34  ;;  %v2787_v27 = vld [vmem:[#allocation2 + $0x38] sm:$0x1]  ;;  %v3316_v30 = vld [vmem:[#allocation2 + $0x3c] sm:$0xf] }
 0x13c   : > { %v1900_v44 = vpop.permute.xlu1 %1899  ;;  %5300 = vmatpush3.bf16.msra.mxu0 %v5360_v49  ;;  %5335 = vmatprep.subr.bf16.mxu1 %v5360_v49  ;;  %v3977_v48 = vsel %vm5915_vm14, %v3975_v21, %v3976_v37  ;;  %v3428_v35 = vshrl.u32 %v3316_v30, 16  ;;  %v3409_v37 = vrot.slane %v3407_v11, 5 }
 0x13d   : > { %1993 = vst.msk [vmem:[#allocation3 + $0xc] sm:$0xf] %vm1989_vm2, %v1900_v44  ;;  %v1902_v56 = vpop.permute.xlu0 %1901  ;;  %5338 = vmatpush3.bf16.msra.mxu1 %v5360_v49  ;;  %v2319_v44 = vrot.slane %v2318_v33, 4  ;;  %v2343_v59 = vrot.slane %v2342_v45, 4  ;;  %v3413_v49 = vshll.u32 %v3314_v26, 16 }
 0x13e   : > { %3184 = vrot.lane.b32.xlu1 %v3117_v41, %s5395_s12  ;;  %1994 = vst.msk [vmem:[#allocation3 + $0x10] sm:$0xf] %vm1989_vm2, %v1902_v56  ;;  %v2351_v41 = vrot.slane %v2349_v31, 4  ;;  %v3317_v33 = vld [vmem:[#allocation2 + $0x40] sm:$0xf]  ;;  %v3430_v45 = vrot.slane %v3428_v35, 4 }
 0x13f   : > { %3739 = vrot.lane.b32.xlu0 %v3368_v50, %s5396_s15  ;;  %v2329_v50 = vrot.slane %v2328_v38, 4  ;;  %v2324_v58 = vsel %vm5499_vm9, %v2319_v44, %v2323_v29  ;;  %v2348_v13 = vsel %vm5499_vm9, %v2343_v59, %v2347_v40  ;;  %v3404_v29 = vshrl.u32 %v3313_v14, 16  ;;  %v3315_v44 = vld [vmem:[#allocation2 + $0x38] sm:$0x1]  ;;  %v3318_v59 = vld [vmem:[#allocation2 + $0x44] sm:$0x1] }
 0x140   : > { %v1904_v4 = vpop.permute.xlu1 %1903  ;;  %v2352_v53 = vor.u32 %v2351_v41, %v2347_v40  ;;  %v3437_v39 = vshll.u32 %v3317_v33, 16  ;;  %v3441_v40 = vshrl.u32 %v3317_v33, 16  ;;  %v2231_v33 = vld [vmem:[#allocation2 + $0x4c] sm:$0xf] }
 0x141   : > { %1995 = vst.msk [vmem:[#allocation3 + $0x14] sm:$0xf] %vm1989_vm2, %v1904_v4  ;;  %v1906_v62 = vpop.permute.xlu0 %1905  ;;  %v2784_v4 = vld [vmem:[#allocation2 + $0x2c] sm:$0x1]  ;;  %v3406_v21 = vrot.slane %v3404_v29, 4 }
 0x142   : > { %3741 = vrot.lane.b32.xlu1 %v3378_v0, %s5396_s15  ;;  %1996 = vst.msk [vmem:[#allocation3 + $0x18] sm:$0xf] %vm1989_vm2, %v1906_v62  ;;  %v2334_v0 = vsel %vm5499_vm9, %v2329_v50, %v2333_v51  ;;  %v2353_v3 = vrot.slane %v2352_v53, 4  ;;  %v2891_v62 = vrot.slane %v2784_v4, 5  ;;  %v6200_v53 = vrot.slane %v3437_v39, 5 }
 0x143   : > { %3743 = vrot.lane.b32.xlu0 %v3392_v7, %s5396_s15  ;;  %v2786_v7 = vld [vmem:[#allocation2 + $0x34] sm:$0xf]  ;;  %v3410_v50 = vor.u32 %v3409_v37, %v3406_v21  ;;  %v3443_v54 = vrot.slane %v3441_v40, 4  ;;  %v2227_v4 = vld [vmem:[#allocation2 + $0x3c] sm:$0xf] }
 0x144   : > { %v1908_v32 = vpop.permute.xlu1 %1907  ;;  %v2358_v19 = vsel %vm5499_vm9, %v2353_v3, %v2357_v9  ;;  %v2230_v29 = vld [vmem:[#allocation2 + $0x48] sm:$0xf] }
 0x145   : > { %1997 = vst.msk [vmem:[#allocation3 + $0x1c] sm:$0xf] %vm1989_vm2, %v1908_v32  ;;  %v1910_v36 = vpop.permute.xlu0 %1909  ;;  %v2898_v32 = vrot.slane %v2787_v27, 5  ;;  %v3411_v3 = vrot.slane %v3410_v50, 4  ;;  %v3444_v5 = vor.u32 %v3443_v54, %v6200_v53  ;;  %v2363_v27 = vshll.u32 %v2227_v4, 16 }
 0x146   : > { %3745 = vrot.lane.b32.xlu1 %v3402_v23, %s5396_s15  ;;  %1998 = vst.msk [vmem:[#allocation3 + $0x20] sm:$0xf] %vm1989_vm2, %v1910_v36  ;;  %v2895_v23 = vrot.slane %v2786_v7, 5  ;;  %v3431_v36 = vshll.u32 %v3316_v30, 16  ;;  %v3121_v7 = vld [vmem:[#allocation2 + $0x40] sm:$0xf] }
 0x147   : > { %4076 = vrot.lane.b32.xlu0 %v3967_v55, %s5397_s24  ;;  %v2892_v55 = vsel %vm5915_vm14, %v2890_v22, %v2891_v62  ;;  %v3874_v62 = vld [vmem:[#allocation2 + $0x30] sm:$0xe]  ;;  %v3445_v26 = vrot.slane %v3444_v5, 4  ;;  %v3876_v30 = vld [vmem:[#allocation2 + $0x38] sm:$0x1]  ;;  %v2387_v21 = vshll.u32 %v2230_v29, 16 }
 0x148   : > { %v1912_v42 = vpop.permute.xlu1 %1911  ;;  %v2897_v60 = vrot.slane %v2895_v23, 4  ;;  %v5048_v24 = vrot.slane %v3874_v62, 9  ;;  %v3983_v40 = vrot.slane %v3876_v30, 5  ;;  %v2229_v50 = vld [vmem:[#allocation2 + $0x44] sm:$0x1] }
 0x149   : > { %1999 = vst.msk [vmem:[#allocation3 + $0x24] sm:$0xf] %vm1989_vm2, %v1912_v42  ;;  %v1914_v46 = vpop.permute.xlu0 %1913  ;;  %v3415_v42 = vrot.slane %v3413_v49, 5  ;;  %v2789_v62 = vld [vmem:[#allocation2 + $0x40] sm:$0xf] }
 0x14a   : > { %4078 = vrot.lane.b32.xlu1 %v3970_v1, %s5397_s24  ;;  %2000 = vst.msk [vmem:[#allocation3 + $0x28] sm:$0xf] %vm1989_vm2, %v1914_v46  ;;  %v2896_v1 = vsel %vm5915_vm14, %v5033_v8, %v2895_v23  ;;  %v2899_v41 = vsel %vm5915_vm14, %v2897_v60, %v2898_v32  ;;  %v3433_v46 = vrot.slane %v3431_v36, 5  ;;  %v2360_v23 = vshrl.u32 %v2227_v4, 16 }
 0x14b   : > { %4080 = vrot.lane.b32.xlu0 %v3974_v43, %s5397_s24  ;;  %v3420_v57 = vor.u32 %v3419_v28, %v3415_v42  ;;  %v3416_v22 = vsel %vm5499_vm9, %v3411_v3, %v3415_v42  ;;  %v2365_v36 = vrot.slane %v2363_v27, 5  ;;  %v3879_v42 = vld [vmem:[#allocation2 + $0x44] sm:$0x1] }
 0x14c   : > { %v1916_v56 = vpop.permute.xlu1 %1915  ;;  %v3434_v63 = vor.u32 %v3433_v46, %v3430_v45  ;;  %v2362_v35 = vrot.slane %v2360_v23, 4  ;;  %v2397_v45 = vshrl.u32 %v2231_v33, 16 }
 0x14d   : > { %2001 = vst.msk [vmem:[#allocation3 + $0x2c] sm:$0xf] %vm1989_vm2, %v1916_v56  ;;  %v1918_v61 = vpop.permute.xlu0 %1917  ;;  %v3119_v56 = vld [vmem:[#allocation2 + $0x34] sm:$0xf] }
 0x14e   : > { %4082 = vrot.lane.b32.xlu1 %v3977_v48, %s5397_s24  ;;  %2002 = vst.msk [vmem:[#allocation3 + $0x30] sm:$0xf] %vm1989_vm2, %v1918_v61  ;;  %v3118_v48 = vld [vmem:[#allocation2 + $0x30] sm:$0xf]  ;;  %v3435_v14 = vrot.slane %v3434_v63, 4 }
 0x14f   : > { %2655 = vrot.lane.b32.xlu0 %v2324_v58, %s5393_s10  ;;  %v3423_v58 = vshll.u32 %v3315_v44, 16  ;;  %v2393_v44 = vshll.u32 %v2231_v33, 16 }
 0x150   : > { %v1920_v6 = vpop.permute.xlu1 %1919  ;;  %v3440_v49 = vsel %vm5499_vm9, %v3435_v14, %v6200_v53  ;;  %v2366_v53 = vor.u32 %v2365_v36, %v2362_v35  ;;  %v2791_v35 = vld [vmem:[#allocation2 + $0x48] sm:$0xe] }
 0x151   : > { %2003 = vst.msk [vmem:[#allocation3 + $0x34] sm:$0xf] %vm1989_vm2, %v1920_v6  ;;  %v1922_v16 = vpop.permute.xlu0 %1921  ;;  %v3447_v6 = vshll.u32 %v3318_v59, 16  ;;  %v3425_v15 = vrot.slane %v3423_v58, 5  ;;  %v2395_v3 = vrot.slane %v2393_v44, 5 }
 0x152   : > { %2657 = vrot.lane.b32.xlu1 %v2334_v0, %s5393_s10  ;;  %2004 = vst.msk [vmem:[#allocation3 + $0x38] sm:$0xf] %vm1989_vm2, %v1922_v16  ;;  %v3120_v0 = vld [vmem:[#allocation2 + $0x3c] sm:$0xf]  ;;  %v3875_v16 = vld [vmem:[#allocation2 + $0x34] sm:$0xf] }
 0x153   : > { %2659 = vrot.lane.b32.xlu0 %v2348_v13, %s5393_s10  ;;  %v3421_v13 = vrot.slane %v3420_v57, 4  ;;  %v3980_v8 = vrot.slane %v3875_v16, 5  ;;  %v3319_v36 = vld [vmem:[#allocation2 + $0x48] sm:$0xf] }
 0x154   : > { %v1924_v25 = vpop.permute.xlu1 %1923 }
 0x155   : > { %2005 = vst.msk [vmem:[#allocation3 + $0x3c] sm:$0xf] %vm1989_vm2, %v1924_v25  ;;  %v1926_v31 = vpop.permute.xlu0 %1925  ;;  %v3426_v11 = vsel %vm5499_vm9, %v3421_v13, %v3425_v15  ;;  %v3982_v39 = vrot.slane %v3980_v8, 4 }
 0x156   : > { %2661 = vrot.lane.b32.xlu1 %v2358_v19, %s5393_s10  ;;  %2006 = vst.msk [vmem:[#allocation3 + $0x40] sm:$0xf] %vm1989_vm2, %v1926_v31  ;;  %v2228_v19 = vld [vmem:[#allocation2 + $0x40] sm:$0xf] }
 0x157   : > { %2992 = vrot.lane.b32.xlu0 %v2889_v20, %s5394_s11  ;;  %v3449_v20 = vrot.slane %v3447_v6, 5  ;;  %v3878_v31 = vld [vmem:[#allocation2 + $0x40] sm:$0xf]  ;;  %v2369_v32 = vshll.u32 %v2228_v19, 16  ;;  %v3984_v58 = vsel %vm5915_vm14, %v3982_v39, %v3983_v40  ;;  %v2232_v6 = vld [vmem:[#allocation2 + $0x50] sm:$0x1] }
 0x158   : > { %v1928_v34 = vpop.permute.xlu1 %1927  ;;  %v3320_v39 = vld [vmem:[#allocation2 + $0x4c] sm:$0xf] }
 0x159   : > { %2007 = vst.msk [vmem:[#allocation3 + $0x44] sm:$0xf] %vm1989_vm2, %v1928_v34  ;;  %v1930_v38 = vpop.permute.xlu0 %1929  ;;  %v3877_v34 = vld [vmem:[#allocation2 + $0x3c] sm:$0xe]  ;;  %v2371_v28 = vrot.slane %v2369_v32, 5 }
 0x15a   : > { %2994 = vrot.lane.b32.xlu1 %v2892_v55, %s5394_s11  ;;  %2008 = vst.msk [vmem:[#allocation3 + $0x48] sm:$0xf] %vm1989_vm2, %v1930_v38  ;;  %v2373_v55 = vshrl.u32 %v2228_v19, 16  ;;  %v3450_v38 = vsel %vm5499_vm9, %v3445_v26, %v3449_v20  ;;  %v2788_v20 = vld [vmem:[#allocation2 + $0x3c] sm:$0xe] }
 0x15b   : > { %2996 = vrot.lane.b32.xlu0 %v2896_v1, %s5394_s11  ;;  %v2384_v1 = vshrl.u32 %v2230_v29, 16 }
 0x15c   : > { %v1932_v43 = vpop.permute.xlu1 %1931 }
 0x15d   : > { %2009 = vst.msk [vmem:[#allocation3 + $0x4c] sm:$0xf] %vm1989_vm2, %v1932_v43  ;;  %v1934_v51 = vpop.permute.xlu0 %1933  ;;  %v2375_v43 = vrot.slane %v2373_v55, 4  ;;  %v2386_v54 = vrot.slane %v2384_v1, 4  ;;  %v2792_v55 = vld [vmem:[#allocation2 + $0x4c] sm:$0xf] }
 0x15e   : > { %2998 = vrot.lane.b32.xlu1 %v2899_v41, %s5394_s11  ;;  %2010 = vst.msk [vmem:[#allocation3 + $0x50] sm:$0xf] %vm1989_vm2, %v1934_v51  ;;  %v3987_v41 = vrot.slane %v3878_v31, 5  ;;  %v3981_v51 = vsel %vm5915_vm14, %v5048_v24, %v3980_v8  ;;  %v2902_v8 = vrot.slane %v2789_v62, 5  ;;  %v2790_v31 = vld [vmem:[#allocation2 + $0x44] sm:$0x1] }
 0x15f   : > { %3186 = vrot.lane.b32.xlu0 %v3118_v48, %s5395_s12  ;;  %v5049_v48 = vrot.slane %v3877_v34, 9  ;;  %v2376_v63 = vor.u32 %v2375_v43, %v2371_v28  ;;  %v2905_v34 = vrot.slane %v2790_v31, 5  ;;  %v3322_v43 = vld [vmem:[#allocation2 + $0x54] sm:$0xf]  ;;  %v3123_v62 = vld [vmem:[#allocation2 + $0x4c] sm:$0xf] }
 0x160   : > { %v1936_v61 = vpop.permute.xlu1 %1935  ;;  %v3989_v59 = vrot.slane %v3987_v41, 4  ;;  %v2904_v33 = vrot.slane %v2902_v8, 4 }
 0x161   : > { %2011 = vst.msk [vmem:[#allocation3 + $0x54] sm:$0xf] %vm1989_vm2, %v1936_v61  ;;  %v1938_v9 = vpop.permute.xlu0 %1937  ;;  %v3990_v61 = vrot.slane %v3879_v42, 5  ;;  %v3988_v4 = vsel %vm5915_vm14, %v5049_v48, %v3987_v41  ;;  %v5035_v41 = vrot.slane %v2791_v35, 9  ;;  %v3452_v42 = vshrl.u32 %v3319_v36, 16 }
 0x162   : > { %3188 = vrot.lane.b32.xlu1 %v3119_v56, %s5395_s12  ;;  %2012 = vst.msk [vmem:[#allocation3 + $0x58] sm:$0xf] %vm1989_vm2, %v1938_v9  ;;  %v2389_v56 = vrot.slane %v2387_v21, 5  ;;  %v2399_v9 = vrot.slane %v2397_v45, 4  ;;  %v2909_v21 = vrot.slane %v2792_v55, 5  ;;  %v2906_v45 = vsel %vm5915_vm14, %v2904_v33, %v2905_v34 }
 0x163   : > { %3190 = vrot.lane.b32.xlu0 %v3120_v0, %s5395_s12  ;;  %v2379_v0 = vshll.u32 %v2229_v50, 16  ;;  %v3991_v16 = vsel %vm5915_vm14, %v3989_v59, %v3990_v61  ;;  %v3461_v50 = vshll.u32 %v3320_v39, 16  ;;  %v3454_v59 = vrot.slane %v3452_v42, 4  ;;  %v3125_v55 = vld [vmem:[#allocation2 + $0x58] sm:$0xf] }
 0x164   : > { %v1940_v18 = vpop.permute.xlu1 %1939  ;;  %v2390_v13 = vor.u32 %v2389_v56, %v2386_v54  ;;  %v2400_v19 = vor.u32 %v2399_v9, %v2395_v3  ;;  %v3476_v56 = vshrl.u32 %v3322_v43, 16  ;;  %v2234_v35 = vld [vmem:[#allocation2 + $0x58] sm:$0xf]  ;;  %v2236_v42 = vld [vmem:[#allocation2 + $0x60] sm:$0xf] }
 0x165   : > { %2013 = vst.msk [vmem:[#allocation3 + $0x5c] sm:$0xf] %vm1989_vm2, %v1940_v18  ;;  %v1942_v25 = vpop.permute.xlu0 %1941  ;;  %v2377_v18 = vrot.slane %v2376_v63, 4  ;;  %v2381_v14 = vrot.slane %v2379_v0, 5 }
 0x166   : > { %3192 = vrot.lane.b32.xlu1 %v3121_v7, %s5395_s12  ;;  %2014 = vst.msk [vmem:[#allocation3 + $0x60] sm:$0xf] %vm1989_vm2, %v1942_v25  ;;  %v2367_v7 = vrot.slane %v2366_v53, 4  ;;  %v2391_v25 = vrot.slane %v2390_v13, 4  ;;  %v3323_v53 = vld [vmem:[#allocation2 + $0x58] sm:$0xf] }
 0x167   : > { %3747 = vrot.lane.b32.xlu0 %v3416_v22, %s5396_s15  ;;  %v2403_v22 = vshll.u32 %v2232_v6, 16  ;;  %v2382_v29 = vsel %vm5499_vm9, %v2377_v18, %v2381_v14  ;;  %v3485_v0 = vshll.u32 %v3323_v53, 16  ;;  %v3478_v13 = vrot.slane %v3476_v56, 4 }
 0x168   : > { %v1944_v60 = vpop.permute.xlu1 %1943  ;;  %v2372_v27 = vsel %vm5499_vm9, %v2367_v7, %v2371_v28  ;;  %v3455_v28 = vshll.u32 %v3319_v36, 16  ;;  %v3321_v7 = vld [vmem:[#allocation2 + $0x50] sm:$0x1] }
 0x169   : > { %2015 = vst.msk [vmem:[#allocation3 + $0x64] sm:$0xf] %vm1989_vm2, %v1944_v60  ;;  %v1946_v37 = vpop.permute.xlu0 %1945  ;;  %v2405_v30 = vrot.slane %v2403_v22, 5  ;;  %v2396_v60 = vsel %vm5499_vm9, %v2391_v25, %v2395_v3  ;;  %v3489_v3 = vshrl.u32 %v3323_v53, 16  ;;  %v3324_v25 = vld [vmem:[#allocation2 + $0x5c] sm:$0x1] }
 0x16a   : > { %3749 = vrot.lane.b32.xlu1 %v3426_v11, %s5396_s15  ;;  %2016 = vst.msk [vmem:[#allocation3 + $0x68] sm:$0xf] %vm1989_vm2, %v1946_v37  ;;  %v2401_v11 = vrot.slane %v2400_v19, 4  ;;  %v3457_v61 = vrot.slane %v3455_v28, 5  ;;  %v6276_v19 = vrot.slane %v3485_v0, 5  ;;  %v3495_v31 = vshll.u32 %v3324_v25, 16 }
 0x16b   : > { %3751 = vrot.lane.b32.xlu0 %v3440_v49, %s5396_s15  ;;  %v5034_v49 = vrot.slane %v2788_v20, 9  ;;  %v3491_v22 = vrot.slane %v3489_v3, 4  ;;  %v2237_v53 = vld [vmem:[#allocation2 + $0x64] sm:$0xf]  ;;  %v3883_v3 = vld [vmem:[#allocation2 + $0x54] sm:$0xe] }
 0x16c   : > { %v1948_v46 = vpop.permute.xlu1 %1947  ;;  %v2406_v1 = vsel %vm5499_vm9, %v2401_v11, %v2405_v30  ;;  %v3458_v18 = vor.u32 %v3457_v61, %v3454_v59 }
 0x16d   : > { %2017 = vst.msk [vmem:[#allocation3 + $0x6c] sm:$0xf] %vm1989_vm2, %v1948_v46  ;;  %v1950_v57 = vpop.permute.xlu0 %1949  ;;  %v2903_v40 = vsel %vm5915_vm14, %v5034_v49, %v2902_v8  ;;  %v2911_v46 = vrot.slane %v2909_v21, 4  ;;  %v3124_v8 = vld [vmem:[#allocation2 + $0x54] sm:$0xf]  ;;  %v3492_v30 = vor.u32 %v3491_v22, %v6276_v19 }
 0x16e   : > { %3753 = vrot.lane.b32.xlu1 %v3450_v38, %s5396_s15  ;;  %2018 = vst.msk [vmem:[#allocation3 + $0x70] sm:$0xf] %vm1989_vm2, %v1950_v57  ;;  %v2793_v38 = vld [vmem:[#allocation2 + $0x50] sm:$0x1]  ;;  %v3479_v57 = vshll.u32 %v3322_v43, 16 }
 0x16f   : > { %4084 = vrot.lane.b32.xlu0 %v3981_v51, %s5397_s24  ;;  %v2912_v48 = vrot.slane %v2793_v38, 5  ;;  %v3465_v51 = vshrl.u32 %v3320_v39, 16  ;;  %v3493_v39 = vrot.slane %v3492_v30, 4  ;;  %v3882_v43 = vld [vmem:[#allocation2 + $0x50] sm:$0x1] }
 0x170   : > { %v1952_v5 = vpop.permute.xlu1 %1951  ;;  %v3997_v0 = vrot.slane %v3882_v43, 5 }
 0x171   : > { %2019 = vst.msk [vmem:[#allocation3 + $0x74] sm:$0xf] %vm1989_vm2, %v1952_v5  ;;  %v1954_v15 = vpop.permute.xlu0 %1953  ;;  %v2913_v9 = vsel %vm5915_vm14, %v2911_v46, %v2912_v48  ;;  %v3463_v5 = vrot.slane %v3461_v50, 5  ;;  %v3467_v6 = vrot.slane %v3465_v51, 4  ;;  %v2421_v46 = vshrl.u32 %v2234_v35, 16 }
 0x172   : > { %4086 = vrot.lane.b32.xlu1 %v3984_v58, %s5397_s24  ;;  %2020 = vst.msk [vmem:[#allocation3 + $0x78] sm:$0xf] %vm1989_vm2, %v1954_v15  ;;  %v2910_v58 = vsel %vm5915_vm14, %v5035_v41, %v2909_v21  ;;  %v3481_v15 = vrot.slane %v3479_v57, 5  ;;  %v2432_v57 = vshrl.u32 %v2236_v42, 16 }
 0x173   : > { %4088 = vrot.lane.b32.xlu0 %v3988_v4, %s5397_s24 }
 0x174   : > { %v1956_v23 = vpop.permute.xlu1 %1955  ;;  %v3482_v20 = vor.u32 %v3481_v15, %v3478_v13  ;;  %v2445_v13 = vshrl.u32 %v2237_v53, 16  ;;  %v2434_v22 = vrot.slane %v2432_v57, 4 }
 0x175   : > { %2021 = vst.msk [vmem:[#allocation3 + $0x7c] sm:$0xf] %vm1989_vm2, %v1956_v23  ;;  %v2087_v26 = vpop.permute.xlu0 %2086  ;;  %v3468_v23 = vor.u32 %v3467_v6, %v3463_v5  ;;  %vm4337_vm2 = vcmask 293888  }
 0x176   : > { %4090 = vrot.lane.b32.xlu1 %v3991_v16, %s5397_s24  ;;  %2183 = vst.msk [vmem:[#allocation3] sm:$0xf] %vm2182_vm4, %v2087_v26  ;;  %v3122_v16 = vld [vmem:[#allocation2 + $0x48] sm:$0xf]  ;;  %v3483_v34 = vrot.slane %v3482_v20, 4 }
 0x177   : > { %2663 = vrot.lane.b32.xlu0 %v2372_v27, %s5393_s10  ;;  %v3471_v27 = vshll.u32 %v3321_v7, 16  ;;  %v2441_v7 = vshll.u32 %v2237_v53, 16 }
 0x178   : > { %v2089_v32 = vpop.permute.xlu1 %2088  ;;  %v3488_v50 = vsel %vm5499_vm9, %v3483_v34, %v6276_v19 }
 0x179   : > { %2184 = vst.msk [vmem:[#allocation3 + $0x4] sm:$0xf] %vm2182_vm4, %v2089_v32  ;;  %v2091_v24 = vpop.permute.xlu0 %2090  ;;  %v2233_v32 = vld [vmem:[#allocation2 + $0x54] sm:$0xf]  ;;  %v3473_v49 = vrot.slane %v3471_v27, 5 }
 0x17a   : > { %2665 = vrot.lane.b32.xlu1 %v2382_v29, %s5393_s10  ;;  %2185 = vst.msk [vmem:[#allocation3 + $0x8] sm:$0xf] %vm2182_vm4, %v2091_v24  ;;  %v3459_v29 = vrot.slane %v3458_v18, 4  ;;  %v3881_v24 = vld [vmem:[#allocation2 + $0x4c] sm:$0xf]  ;;  %v2408_v21 = vshrl.u32 %v2233_v32, 16 }
 0x17b   : > { %2667 = vrot.lane.b32.xlu0 %v2396_v60, %s5393_s10  ;;  %v3469_v60 = vrot.slane %v3468_v23, 4  ;;  %v3994_v41 = vrot.slane %v3881_v24, 5  ;;  %v2235_v18 = vld [vmem:[#allocation2 + $0x5c] sm:$0x1] }
 0x17c   : > { %v2093_v37 = vpop.permute.xlu1 %2092  ;;  %v3464_v36 = vsel %vm5499_vm9, %v3459_v29, %v3463_v5  ;;  %v3885_v5 = vld [vmem:[#allocation2 + $0x5c] sm:$0x1]  ;;  %v2443_v29 = vrot.slane %v2441_v7, 5 }
 0x17d   : > { %2186 = vst.msk [vmem:[#allocation3 + $0xc] sm:$0xf] %vm2182_vm4, %v2093_v37  ;;  %v2095_v44 = vpop.permute.xlu0 %2094  ;;  %v2411_v37 = vshll.u32 %v2233_v32, 16  ;;  %v3474_v28 = vsel %vm5499_vm9, %v3469_v60, %v3473_v49 }
 0x17e   : > { %2669 = vrot.lane.b32.xlu1 %v2406_v1, %s5393_s10  ;;  %2187 = vst.msk [vmem:[#allocation3 + $0x10] sm:$0xf] %vm2182_vm4, %v2095_v44  ;;  %v3880_v1 = vld [vmem:[#allocation2 + $0x48] sm:$0xe]  ;;  %v3884_v44 = vld [vmem:[#allocation2 + $0x58] sm:$0xf] }
 0x17f   : > { %3000 = vrot.lane.b32.xlu0 %v2903_v40, %s5394_s11  ;;  %v3497_v40 = vrot.slane %v3495_v31, 5  ;;  %v5050_v51 = vrot.slane %v3880_v1, 9  ;;  %v2413_v56 = vrot.slane %v2411_v37, 5  ;;  %v2238_v31 = vld [vmem:[#allocation2 + $0x68] sm:$0x1] }
 0x180   : > { %v2097_v54 = vpop.permute.xlu1 %2096 }
 0x181   : > { %2188 = vst.msk [vmem:[#allocation3 + $0x14] sm:$0xf] %vm2182_vm4, %v2097_v54  ;;  %v2099_v63 = vpop.permute.xlu0 %2098  ;;  %v2410_v54 = vrot.slane %v2408_v21, 4  ;;  %v3498_v61 = vsel %vm5499_vm9, %v3493_v39, %v3497_v40  ;;  %v2795_v21 = vld [vmem:[#allocation2 + $0x58] sm:$0xf] }
 0x182   : > { %3002 = vrot.lane.b32.xlu1 %v2906_v45, %s5394_s11  ;;  %2189 = vst.msk [vmem:[#allocation3 + $0x18] sm:$0xf] %vm2182_vm4, %v2099_v63  ;;  %v2417_v45 = vshll.u32 %v2234_v35, 16  ;;  %v3996_v63 = vrot.slane %v3994_v41, 4  ;;  %v2794_v40 = vld [vmem:[#allocation2 + $0x54] sm:$0xe] }
 0x183   : > { %3004 = vrot.lane.b32.xlu0 %v2910_v58, %s5394_s11  ;;  %v2435_v58 = vshll.u32 %v2236_v42, 16  ;;  %v2414_v19 = vor.u32 %v2413_v56, %v2410_v54  ;;  %v2916_v43 = vrot.slane %v2795_v21, 5  ;;  %v3325_v56 = vld [vmem:[#allocation2 + $0x60] sm:$0xf] }
 0x184   : > { %v2101_v4 = vpop.permute.xlu1 %2100  ;;  %v2419_v6 = vrot.slane %v2417_v45, 5  ;;  %v3998_v27 = vsel %vm5915_vm14, %v3996_v63, %v3997_v0 }
 0x185   : > { %2190 = vst.msk [vmem:[#allocation3 + $0x1c] sm:$0xf] %vm2182_vm4, %v2101_v4  ;;  %v2103_v14 = vpop.permute.xlu0 %2102  ;;  %v2423_v4 = vrot.slane %v2421_v46, 4  ;;  %v2796_v46 = vld [vmem:[#allocation2 + $0x5c] sm:$0x1] }
 0x186   : > { %3006 = vrot.lane.b32.xlu1 %v2913_v9, %s5394_s11  ;;  %2191 = vst.msk [vmem:[#allocation3 + $0x20] sm:$0xf] %vm2182_vm4, %v2103_v14  ;;  %v4001_v9 = vrot.slane %v3884_v44, 5  ;;  %v5051_v14 = vrot.slane %v3883_v3, 9  ;;  %v2798_v44 = vld [vmem:[#allocation2 + $0x64] sm:$0xf] }
 0x187   : > { %3194 = vrot.lane.b32.xlu0 %v3122_v16, %s5395_s12  ;;  %v3995_v16 = vsel %vm5915_vm14, %v5050_v51, %v3994_v41  ;;  %v2424_v20 = vor.u32 %v2423_v4, %v2419_v6  ;;  %v2797_v51 = vld [vmem:[#allocation2 + $0x60] sm:$0xe]  ;;  %v2923_v54 = vrot.slane %v2798_v44, 5  ;;  %v3326_v3 = vld [vmem:[#allocation2 + $0x64] sm:$0xf] }
 0x188   : > { %v2105_v26 = vpop.permute.xlu1 %2104  ;;  %v4003_v25 = vrot.slane %v4001_v9, 4  ;;  %v4002_v32 = vsel %vm5915_vm14, %v5051_v14, %v4001_v9  ;;  %v5037_v0 = vrot.slane %v2797_v51, 9  ;;  %v3513_v14 = vshrl.u32 %v3326_v3, 16 }
 0x189   : > { %2192 = vst.msk [vmem:[#allocation3 + $0x24] sm:$0xf] %vm2182_vm4, %v2105_v26  ;;  %v2107_v11 = vpop.permute.xlu0 %2106  ;;  %v4004_v26 = vrot.slane %v3885_v5, 5  ;;  %v3500_v5 = vshrl.u32 %v3325_v56, 16  ;;  %v2925_v7 = vrot.slane %v2923_v54, 4 }
 0x18a   : > { %3196 = vrot.lane.b32.xlu1 %v3123_v62, %s5395_s12  ;;  %2193 = vst.msk [vmem:[#allocation3 + $0x28] sm:$0xf] %vm2182_vm4, %v2107_v11  ;;  %v2437_v62 = vrot.slane %v2435_v58, 5  ;;  %v2447_v11 = vrot.slane %v2445_v13, 4  ;;  %v2918_v58 = vrot.slane %v2916_v43, 4 }
 0x18b   : > { %3198 = vrot.lane.b32.xlu0 %v3124_v8, %s5395_s12  ;;  %v2427_v8 = vshll.u32 %v2235_v18, 16  ;;  %v4005_v24 = vsel %vm5915_vm14, %v4003_v25, %v4004_v26  ;;  %v3509_v18 = vshll.u32 %v3326_v3, 16  ;;  %v3888_v3 = vld [vmem:[#allocation2 + $0x68] sm:$0x1] }
 0x18c   : > { %v2109_v33 = vpop.permute.xlu1 %2108  ;;  %v2438_v60 = vor.u32 %v2437_v62, %v2434_v22  ;;  %v2448_v35 = vor.u32 %v2447_v11, %v2443_v29  ;;  %v2924_v22 = vsel %vm5915_vm14, %v5037_v0, %v2923_v54  ;;  %v3329_v62 = vld [vmem:[#allocation2 + $0x70] sm:$0xf]  ;;  %v3515_v11 = vrot.slane %v3513_v14, 4 }
 0x18d   : > { %2194 = vst.msk [vmem:[#allocation3 + $0x2c] sm:$0xf] %vm2182_vm4, %v2109_v33  ;;  %v2111_v38 = vpop.permute.xlu0 %2110  ;;  %v2425_v33 = vrot.slane %v2424_v20, 4  ;;  %v2429_v34 = vrot.slane %v2427_v8, 5  ;;  %v4011_v14 = vrot.slane %v3888_v3, 5 }
 0x18e   : > { %3200 = vrot.lane.b32.xlu1 %v3125_v55, %s5395_s12  ;;  %2195 = vst.msk [vmem:[#allocation3 + $0x30] sm:$0xf] %vm2182_vm4, %v2111_v38  ;;  %v2415_v55 = vrot.slane %v2414_v19, 4  ;;  %v2439_v38 = vrot.slane %v2438_v60, 4  ;;  %v2449_v42 = vrot.slane %v2448_v35, 4 }
 0x18f   : > { %3755 = vrot.lane.b32.xlu0 %v3464_v36, %s5396_s15  ;;  %v2451_v36 = vshll.u32 %v2238_v31, 16  ;;  %v2430_v41 = vsel %vm5499_vm9, %v2425_v33, %v2429_v34  ;;  %v3537_v31 = vshrl.u32 %v3329_v62, 16  ;;  %v3126_v60 = vld [vmem:[#allocation2 + $0x60] sm:$0xf]  ;;  %v3127_v35 = vld [vmem:[#allocation2 + $0x64] sm:$0xf] }
 0x190   : > { %v2113_v48 = vpop.permute.xlu1 %2112  ;;  %v2420_v37 = vsel %vm5499_vm9, %v2415_v55, %v2419_v6  ;;  %v3503_v6 = vshll.u32 %v3325_v56, 16  ;;  %v3327_v55 = vld [vmem:[#allocation2 + $0x68] sm:$0x1]  ;;  %v2239_v56 = vld [vmem:[#allocation2 + $0x6c] sm:$0xf] }
 0x191   : > { %2196 = vst.msk [vmem:[#allocation3 + $0x34] sm:$0xf] %vm2182_vm4, %v2113_v48  ;;  %v2115_v59 = vpop.permute.xlu0 %2114  ;;  %v2444_v48 = vsel %vm5499_vm9, %v2439_v38, %v2443_v29  ;;  %v3511_v29 = vrot.slane %v3509_v18, 5  ;;  %v2040_v3 = vld [vmem:[#allocation2 + $0x78] sm:$0xf] }
 0x192   : > { %3757 = vrot.lane.b32.xlu1 %v3474_v28, %s5396_s15  ;;  %2197 = vst.msk [vmem:[#allocation3 + $0x38] sm:$0xf] %vm2182_vm4, %v2115_v59  ;;  %v2453_v28 = vrot.slane %v2451_v36, 5  ;;  %v2919_v59 = vrot.slane %v2796_v46, 5 }
 0x193   : > { %3759 = vrot.lane.b32.xlu0 %v3488_v50, %s5396_s15  ;;  %v5036_v50 = vrot.slane %v2794_v40, 9  ;;  %v3516_v36 = vor.u32 %v3515_v11, %v3511_v29  ;;  %v3128_v40 = vld [vmem:[#allocation2 + $0x6c] sm:$0xf] }
 0x194   : > { %v2117_v15 = vpop.permute.xlu1 %2116  ;;  %v2454_v57 = vsel %vm5499_vm9, %v2449_v42, %v2453_v28 }
 0x195   : > { %2198 = vst.msk [vmem:[#allocation3 + $0x3c] sm:$0xf] %vm2182_vm4, %v2117_v15  ;;  %v2119_v23 = vpop.permute.xlu0 %2118  ;;  %v2917_v9 = vsel %vm5915_vm14, %v5036_v50, %v2916_v43  ;;  %v3328_v15 = vld [vmem:[#allocation2 + $0x6c] sm:$0xf]  ;;  %v3129_v43 = vld [vmem:[#allocation2 + $0x70] sm:$0xf] }
 0x196   : > { %3761 = vrot.lane.b32.xlu1 %v3498_v61, %s5396_s15  ;;  %2199 = vst.msk [vmem:[#allocation3 + $0x40] sm:$0xf] %vm2182_vm4, %v2119_v23  ;;  %v2799_v61 = vld [vmem:[#allocation2 + $0x68] sm:$0x1]  ;;  %v3502_v23 = vrot.slane %v3500_v5, 4  ;;  %v3524_v25 = vshrl.u32 %v3328_v15, 16 }
 0x197   : > { %4092 = vrot.lane.b32.xlu0 %v3995_v16, %s5397_s24  ;;  %v2926_v13 = vrot.slane %v2799_v61, 5  ;;  %v2920_v16 = vsel %vm5915_vm14, %v2918_v58, %v2919_v59  ;;  %v3527_v26 = vshll.u32 %v3328_v15, 16  ;;  %v3517_v44 = vrot.slane %v3516_v36, 4  ;;  %v3887_v50 = vld [vmem:[#allocation2 + $0x64] sm:$0xf] }
 0x198   : > { %v2121_v30 = vpop.permute.xlu1 %2120  ;;  %v3886_v58 = vld [vmem:[#allocation2 + $0x60] sm:$0xe]  ;;  %v4008_v59 = vrot.slane %v3887_v50, 5  ;;  %v3890_v5 = vld [vmem:[#allocation2 + $0x70] sm:$0xf] }
 0x199   : > { %2200 = vst.msk [vmem:[#allocation3 + $0x44] sm:$0xf] %vm2182_vm4, %v2121_v30  ;;  %v2648_v49 = vpop.permute.xlu0 %2647  ;;  %v2927_v8 = vsel %vm5915_vm14, %v2925_v7, %v2926_v13  ;;  %v3533_v30 = vshll.u32 %v3329_v62, 16  ;;  %v3529_v33 = vrot.slane %v3527_v26, 5  ;;  %v2459_v7 = vshll.u32 %v2239_v56, 16 }
 0x19a   : > { %4094 = vrot.lane.b32.xlu1 %v3998_v27, %s5397_s24  ;;  %2744 = vst.msk [vmem:[#allocation3] sm:$0xf] %vm2743_vm6, %v2648_v49  ;;  %v3505_v27 = vrot.slane %v3503_v6, 5  ;;  %v2240_v6 = vld [vmem:[#allocation2 + $0x70] sm:$0xf]  ;;  %v5052_v15 = vrot.slane %v3886_v58, 9 }
 0x19b   : > { %4096 = vrot.lane.b32.xlu0 %v4002_v32, %s5397_s24  ;;  %v3535_v21 = vrot.slane %v3533_v30, 5  ;;  %v4010_v18 = vrot.slane %v4008_v59, 4  ;;  %v2243_v26 = vld [vmem:[#allocation2 + $0x7c] sm:$0xf]  ;;  %v2461_v11 = vrot.slane %v2459_v7, 5 }
 0x19c   : > { %v2650_v1 = vpop.permute.xlu1 %2649  ;;  %v3506_v49 = vor.u32 %v3505_v27, %v3502_v23  ;;  %v4015_v23 = vrot.slane %v3890_v5, 5  ;;  %v2465_v27 = vshll.u32 %v2240_v6, 16  ;;  %v4009_v30 = vsel %vm5915_vm14, %v5052_v15, %v4008_v59 }
 0x19d   : > { %2745 = vst.msk [vmem:[#allocation3 + $0x4] sm:$0xf] %vm2743_vm6, %v2650_v1  ;;  %v2652_v39 = vpop.permute.xlu0 %2651  ;;  %v3519_v1 = vshll.u32 %v3327_v55, 16 }
 0x19e   : > { %4098 = vrot.lane.b32.xlu1 %v4005_v24, %s5397_s24  ;;  %2746 = vst.msk [vmem:[#allocation3 + $0x8] sm:$0xf] %vm2743_vm6, %v2652_v39  ;;  %v3526_v24 = vrot.slane %v3524_v25, 4  ;;  %v3330_v39 = vld [vmem:[#allocation2 + $0x74] sm:$0x1]  ;;  %v2469_v25 = vshrl.u32 %v2240_v6, 16 }
 0x19f   : > { %2671 = vrot.lane.b32.xlu0 %v2420_v37, %s5393_s10  ;;  %v3539_v37 = vrot.slane %v3537_v31, 4 }
 0x1a0   : > { %v2654_v45 = vpop.permute.xlu1 %2653  ;;  %v3530_v42 = vor.u32 %v3529_v33, %v3526_v24  ;;  %v2241_v24 = vld [vmem:[#allocation2 + $0x74] sm:$0x1]  ;;  %v2489_v33 = vshll.u32 %v2243_v26, 16 }
 0x1a1   : > { %2747 = vst.msk [vmem:[#allocation3 + $0xc] sm:$0xf] %vm2743_vm6, %v2654_v45  ;;  %v2985_v53 = vpop.permute.xlu0 %2984  ;;  %v3521_v45 = vrot.slane %v3519_v1, 5  ;;  %v3540_v46 = vor.u32 %v3539_v37, %v3535_v21  ;;  %v6381_v1 = vrot.slane %v2465_v27, 5  ;;  %v5275_v37 = vld [vmem:[%s5460_s23 + $0x78] sm:$0xff]  }
 0x1a2   : > { %2673 = vrot.lane.b32.xlu1 %v2430_v41, %s5393_s10  ;;  %3081 = vst.msk [vmem:[#allocation3] sm:$0xf] %vm3080_vm8, %v2985_v53  ;;  %v3507_v41 = vrot.slane %v3506_v49, 4  ;;  %v3531_v54 = vrot.slane %v3530_v42, 4  ;;  %v4012_v49 = vsel %vm5915_vm14, %v4010_v18, %v4011_v14  ;;  %v2801_v14 = vld [vmem:[#allocation2 + $0x70] sm:$0xf] }
 0x1a3   : > { %2675 = vrot.lane.b32.xlu0 %v2444_v48, %s5393_s10  ;;  %v3543_v48 = vshll.u32 %v3330_v39, 16  ;;  %v3522_v61 = vsel %vm5499_vm9, %v3517_v44, %v3521_v45 }
 0x1a4   : > { %v2987_v63 = vpop.permute.xlu1 %2986  ;;  %v3512_v53 = vsel %vm5499_vm9, %v3507_v41, %v3511_v29  ;;  %v3536_v13 = vsel %vm5499_vm9, %v3531_v54, %v3535_v21  ;;  %v2471_v21 = vrot.slane %v2469_v25, 4  ;;  %v5260_v41 = vunpack.c.h.bf16 %v5275_v37 }
 0x1a5   : > { %3082 = vst.msk [vmem:[#allocation3 + $0x4] sm:$0xf] %vm3080_vm8, %v2987_v63  ;;  %v2989_v4 = vpop.permute.xlu0 %2988  ;;  %v3541_v63 = vrot.slane %v3540_v46, 4  ;;  %v3545_v0 = vrot.slane %v3543_v48, 5  ;;  %v6389_v46 = vrot.slane %v2489_v33, 5 }
 0x1a6   : > { %2677 = vrot.lane.b32.xlu1 %v2454_v57, %s5393_s10  ;;  %3083 = vst.msk [vmem:[#allocation3 + $0x8] sm:$0xf] %vm3080_vm8, %v2989_v4  ;;  %v2456_v4 = vshrl.u32 %v2239_v56, 16  ;;  %v2244_v48 = vld [vmem:[#allocation2 + $0x80] sm:$0x1] }
 0x1a7   : > { %3008 = vrot.lane.b32.xlu0 %v2917_v9, %s5394_s11  ;;  %v3546_v62 = vsel %vm5499_vm9, %v3541_v63, %v3545_v0  ;;  %v5380_v63 = vld [vmem:[%s6954_s2] ss:$0 sm:$0xff]  ;;  %v2499_v6 = vshll.u32 %v2244_v48, 16 }
 0x1a8   : > { %v2991_v19 = vpop.permute.xlu1 %2990  ;;  %v2458_v29 = vrot.slane %v2456_v4, 4 }
 0x1a9   : > { %3084 = vst.msk [vmem:[#allocation3 + $0xc] sm:$0xf] %vm3080_vm8, %v2991_v19  ;;  %v3179_v20 = vpop.permute.xlu0 %3178  ;;  %v3889_v19 = vld [vmem:[#allocation2 + $0x6c] sm:$0xe] }
 0x1aa   : > { %3010 = vrot.lane.b32.xlu1 %v2920_v16, %s5394_s11  ;;  %3275 = vst.msk [vmem:[#allocation3] sm:$0xf] %vm3274_vm12, %v3179_v20  ;;  %v5053_v31 = vrot.slane %v3889_v19, 9  ;;  %v2462_v39 = vor.u32 %v2461_v11, %v2458_v29 }
 0x1ab   : > { %3012 = vrot.lane.b32.xlu0 %v2924_v22, %s5394_s11  ;;  %v2242_v22 = vld [vmem:[#allocation2 + $0x78] sm:$0xf] }
 0x1ac   : > { %v3181_v32 = vpop.permute.xlu1 %3180  ;;  %v2483_v55 = vshll.u32 %v2242_v22, 16  ;;  %v4016_v42 = vsel %vm5915_vm14, %v5053_v31, %v4015_v23  ;;  %v2800_v31 = vld [vmem:[#allocation2 + $0x6c] sm:$0xe] }
 0x1ad   : > { %3276 = vst.msk [vmem:[#allocation3 + $0x4] sm:$0xf] %vm3274_vm12, %v3181_v32  ;;  %v3183_v34 = vpop.permute.xlu0 %3182  ;;  %v2480_v32 = vshrl.u32 %v2242_v22, 16 }
 0x1ae   : > { %3014 = vrot.lane.b32.xlu1 %v2927_v8, %s5394_s11  ;;  %3277 = vst.msk [vmem:[#allocation3 + $0x8] sm:$0xf] %vm3274_vm12, %v3183_v34  ;;  %v3891_v8 = vld [vmem:[#allocation2 + $0x74] sm:$0x1]  ;;  %v2493_v34 = vshrl.u32 %v2243_v26, 16  ;;  %v2485_v44 = vrot.slane %v2483_v55, 5 }
 0x1af   : > { %3202 = vrot.lane.b32.xlu0 %v3126_v60, %s5395_s12  ;;  %v4018_v36 = vrot.slane %v3891_v8, 5  ;;  %v2802_v55 = vld [vmem:[#allocation2 + $0x74] sm:$0x1] }
 0x1b0   : > { %v3185_v38 = vpop.permute.xlu1 %3184  ;;  %v2495_v50 = vrot.slane %v2493_v34, 4  ;;  %v519_v34 = vld [vmem:[#allocation2 + $0xc8] sm:$0x1] }
 0x1b1   : > { %3278 = vst.msk [vmem:[#allocation3 + $0xc] sm:$0xf] %vm3274_vm12, %v3185_v38  ;;  %v3740_v28 = vpop.permute.xlu0 %3739 }
 0x1b2   : > { %3204 = vrot.lane.b32.xlu1 %v3127_v35, %s5395_s12  ;;  %3836 = vst.msk [vmem:[#allocation3] sm:$0xf] %vm3835_vm13, %v3740_v28  ;;  %v4017_v35 = vrot.slane %v4015_v23, 4  ;;  %v2475_v28 = vshll.u32 %v2241_v24, 16  ;;  %v2496_v15 = vor.u32 %v2495_v50, %v6389_v46  ;;  %v3332_v50 = vld [vmem:[#allocation2 + $0x7c] sm:$0xf] }
 0x1b3   : > { %3206 = vrot.lane.b32.xlu0 %v3128_v40, %s5395_s12  ;;  %v5259_v40 = vunpack.c.l.bf16 %v5275_v37  ;;  %v5038_v37 = vrot.slane %v2800_v31, 9  ;;  %v3130_v31 = vld [vmem:[#allocation2 + $0x78] sm:$0xf] }
 0x1b4   : > { %v3742_v51 = vpop.permute.xlu1 %3741  ;;  %v4019_v56 = vsel %vm5915_vm14, %v4017_v35, %v4018_v36 }
 0x1b5   : > { %3837 = vst.msk [vmem:[#allocation3 + $0x4] sm:$0xf] %vm3835_vm13, %v3742_v51  ;;  %v3744_v57 = vpop.permute.xlu0 %3743  ;;  %v5379_v51 = vld [vmem:[%s6953_s1] ss:$0 sm:$0xff] }
 0x1b6   : > { %3208 = vrot.lane.b32.xlu1 %v3129_v43, %s5395_s12  ;;  %3838 = vst.msk [vmem:[#allocation3 + $0x8] sm:$0xf] %vm3835_vm13, %v3744_v57  ;;  %v2482_v43 = vrot.slane %v2480_v32, 4  ;;  %v340_v54 = vmul.f32 %v5379_v51, %v5260_v41  ;;  %v2472_v57 = vor.u32 %v2471_v21, %v6381_v1  ;;  %v2930_v32 = vrot.slane %v2801_v14, 5 }
 0x1b7   : > { %3763 = vrot.lane.b32.xlu0 %v3512_v53, %s5396_s15  ;;  %v339_v53 = vmul.f32 %v5379_v51, %v5259_v40 }
 0x1b8   : > { %v3746_v9 = vpop.permute.xlu1 %3745  ;;  %v2486_v5 = vor.u32 %v2485_v44, %v2482_v43  ;;  %v378_v4 = vadd.f32 %v5380_v63, %v340_v54  ;;  %v2473_v18 = vrot.slane %v2472_v57, 4  ;;  %v3331_v44 = vld [vmem:[#allocation2 + $0x78] sm:$0xf]  ;;  %v2931_v10 = vsel %vm5915_vm14, %v5038_v37, %v2930_v32 }
 0x1b9   : > { %3839 = vst.msk [vmem:[#allocation3 + $0xc] sm:$0xf] %vm3835_vm13, %v3746_v9  ;;  %v4077_v16 = vpop.permute.xlu0 %4076  ;;  %v377_v0 = vadd.f32 %v5380_v63, %v339_v53  ;;  %v2041_v9 = vld [vmem:[#allocation2 + $0x7c] sm:$0xf] }
 0x1ba   : > { %3765 = vrot.lane.b32.xlu1 %v3522_v61, %s5396_s15  ;;  %4173 = vst.msk [vmem:[#allocation3] sm:$0xf] %vm4172_vm15, %v4077_v16  ;;  %v2463_v61 = vrot.slane %v2462_v39, 4  ;;  %v469_v16 = vld [vmem:[#allocation2 + $0xc0] sm:$0x1]  ;;  %v2487_v26 = vrot.slane %v2486_v5, 4 }
 0x1bb   : > { %3767 = vrot.lane.b32.xlu0 %v3536_v13, %s5396_s15  ;;  %v2477_v13 = vrot.slane %v2475_v28, 5  ;;  %v409_v19 = vmax.f32 %v377_v0, 0.0  ;;  %v470_v22 = vsel %vm5444_vm5, 0, %v469_v16  ;;  %v2933_v28 = vrot.slane %v2802_v55, 5 }
 0x1bc   : > { %v4079_v20 = vpop.permute.xlu1 %4078  ;;  %v2468_v25 = vsel %vm5499_vm9, %v2463_v61, %v6381_v1  ;;  %471 = vst [vmem:[#allocation2 + $0xc0] sm:$0x1] %v470_v22  ;;  %v2492_v21 = vsel %vm5499_vm9, %v2487_v26, %v6389_v46  ;;  %v2805_v46 = vld [vmem:[#allocation2 + $0x80] sm:$0x1]  ;;  %v3551_v61 = vshll.u32 %v3331_v44, 16  ;;  %v3557_v5 = vshll.u32 %v3332_v50, 16 }
 0x1bd   : > { %4174 = vst.msk [vmem:[#allocation3 + $0x4] sm:$0xf] %vm4172_vm15, %v4079_v20  ;;  %v4081_v60 = vpop.permute.xlu0 %4080  ;;  %v2501_v20 = vrot.slane %v2499_v6, 5  ;;  %v5163_v8 = vpack.c.bf16 %v409_v19, %v409_v19  ;;  %v3334_v6 = vld [vmem:[#allocation2 + $0x84] sm:$0xf] }
 0x1be   : > { %3769 = vrot.lane.b32.xlu1 %v3546_v62, %s5396_s15  ;;  %4175 = vst.msk [vmem:[#allocation3 + $0x8] sm:$0xf] %vm4172_vm15, %v4081_v60  ;;  %v410_v62 = vmax.f32 %v378_v4, 0.0  ;;  %v2478_v60 = vsel %vm5499_vm9, %v2473_v18, %v2477_v13  ;;  %v3561_v13 = vshrl.u32 %v3332_v50, 16  ;;  %v3335_v18 = vld [vmem:[#allocation2 + $0x88] sm:$0xf] }
 0x1bf   : > { %4100 = vrot.lane.b32.xlu0 %v4009_v30, %s5397_s24  ;;  %v2497_v30 = vrot.slane %v2496_v15, 4  ;;  %v876_v24 = vshrl.u32 %v5163_v8, 16  ;;  %v879_v36 = vshll.u32 %v5163_v8, 16  ;;  %v3553_v14 = vrot.slane %v3551_v61, 5 }
 0x1c0   : > { %v4083_v38 = vpop.permute.xlu1 %4082  ;;  %v5164_v29 = vpack.c.bf16 %v410_v62, %v410_v62  ;;  %v3572_v19 = vshrl.u32 %v3334_v6, 16  ;;  %v3575_v22 = vshll.u32 %v3334_v6, 16  ;;  %v3563_v26 = vrot.slane %v3561_v13, 4  ;;  %v3897_v13 = vld [vmem:[#allocation2 + $0x8c] sm:$0x1] }
 0x1c1   : > { %4176 = vst.msk [vmem:[#allocation3 + $0xc] sm:$0xf] %vm4172_vm15, %v4083_v38  ;;  %v2656_v45 = vpop.permute.xlu0 %2655  ;;  %v2803_v38 = vld [vmem:[#allocation2 + $0x78] sm:$0xe]  ;;  %v878_v39 = vrot.slane %v876_v24, 7  ;;  %v2502_v48 = vsel %vm5499_vm9, %v2497_v30, %v2501_v20  ;;  %v3581_v20 = vshll.u32 %v3335_v18, 16 }
 0x1c2   : > { %4102 = vrot.lane.b32.xlu1 %v4012_v49, %s5397_s24  ;;  %2748 = vst.msk [vmem:[#allocation3 + $0x10] sm:$0xf] %vm2743_vm6, %v2656_v45  ;;  %v2804_v49 = vld [vmem:[#allocation2 + $0x7c] sm:$0xf]  ;;  %v884_v33 = vshrl.u32 %v5164_v29, 16  ;;  %v887_v1 = vshll.u32 %v5164_v29, 16 }
 0x1c3   : > { %4104 = vrot.lane.b32.xlu0 %v4016_v42, %s5397_s24  ;;  %v2932_v42 = vrot.slane %v2930_v32, 4  ;;  %v2937_v43 = vrot.slane %v2804_v49, 5  ;;  %v520_v45 = vsel %vm5469_vm7, 0, %v519_v34  ;;  %v881_v51 = vor.u32 %v879_v36, %v878_v39  ;;  %v1047_v53 = vld [vmem:[#allocation2 + $0xc0] sm:$0xf] }
 0x1c4   : > { %v2658_v58 = vpop.permute.xlu1 %2657  ;;  %v5361_v59 = vld [vmem:[#allocation3] sm:$0xff]   ;;  %v886_v40 = vrot.slane %v884_v33, 7  ;;  %521 = vst [vmem:[#allocation2 + $0xc8] sm:$0x1] %v520_v45  ;;  %v882_v57 = vrot.slane %v878_v39, 4  ;;  %v3585_v8 = vshrl.u32 %v3335_v18, 16 }
 0x1c5   : > { %2749 = vst.msk [vmem:[#allocation3 + $0x14] sm:$0xf] %vm2743_vm6, %v2658_v58  ;;  %5301 = vmatprep.mubr.msk.bf16.mxu0 %vm4337_vm2, %v5361_v59  ;;  %v2660_v7 = vpop.permute.xlu0 %2659  ;;  %v3548_v59 = vshrl.u32 %v3331_v44, 16  ;;  %v1048_v63 = vsel %vm5521_vm11, %v881_v51, %v1047_v53  ;;  %v3333_v30 = vld [vmem:[#allocation2 + $0x80] sm:$0x1]  ;;  %v3574_v55 = vrot.slane %v3572_v19, 4 }
 0x1c6   : > { %4106 = vrot.lane.b32.xlu1 %v4019_v56, %s5397_s24  ;;  %2750 = vst.msk [vmem:[#allocation3 + $0x18] sm:$0xf] %vm2743_vm6, %v2660_v7  ;;  %v5039_v56 = vrot.slane %v2803_v38, 9  ;;  %v889_v58 = vor.u32 %v887_v1, %v886_v40  ;;  %1049 = vst [vmem:[#allocation2 + $0xc0] sm:$0xf] %v1048_v63  ;;  %v2934_v7 = vsel %vm5915_vm14, %v2932_v42, %v2933_v28  ;;  %v891_v15 = vrot.slane %v886_v40, 4 }
 0x1c7   : > { %2122 = vrot.lane.b32.xlu0 %v2040_v3, %s5392_s9  ;;  %v2939_v3 = vrot.slane %v2937_v43, 4  ;;  %v3550_v12 = vrot.slane %v3548_v59, 4  ;;  %v3131_v24 = vld [vmem:[#allocation2 + $0x7c] sm:$0xf]  ;;  %v3567_v2 = vshll.u32 %v3333_v30, 16  ;;  %v3583_v34 = vrot.slane %v3581_v20, 5 }
 0x1c8   : > { %v2662_v23 = vpop.permute.xlu1 %2661  ;;  %v5362_v27 = vld [vmem:[#allocation3 + $0x8] sm:$0xff]   ;;  %v890_v4 = vsel %vm5513_vm10, %v882_v57, %v889_v58  ;;  %v2938_v16 = vsel %vm5915_vm14, %v5039_v56, %v2937_v43  ;;  %v3336_v1 = vld [vmem:[#allocation2 + $0x8c] sm:$0x1]  ;;  %v3133_v40 = vld [vmem:[#allocation2 + $0x88] sm:$0xf] }
 0x1c9   : > { %2751 = vst.msk [vmem:[#allocation3 + $0x1c] sm:$0xf] %vm2743_vm6, %v2662_v23  ;;  %5302 = vmatmul.mubr.msk.bf16.vlgmr.msra.gmra.mxu0 %vm4337_vm2, %v5362_v27  ;;  %v2993_v11 = vpop.permute.xlu0 %2992  ;;  %v3559_v27 = vrot.slane %v3557_v5, 5  ;;  %v3554_v32 = vor.u32 %v3553_v14, %v3550_v12  ;;  %v3569_v42 = vrot.slane %v3567_v2, 5  ;;  %v3591_v43 = vshll.u32 %v3336_v1, 16 }
 0x1ca   : > { %2124 = vrot.lane.b32.xlu1 %v2041_v9, %s5392_s9  ;;  %3085 = vst.msk [vmem:[#allocation3 + $0x10] sm:$0xf] %vm3080_vm8, %v2993_v11  ;;  %v2940_v9 = vrot.slane %v2805_v46, 5  ;;  %v3893_v45 = vld [vmem:[#allocation2 + $0x7c] sm:$0xf] }
 0x1cb   : > { %2679 = vrot.lane.b32.xlu0 %v2468_v25, %s5393_s10  ;;  %1050 = vst.msk [vmem:[#allocation2 + $0xc4] sm:$0xf] %vm411_vm0, %v890_v4  ;;  %v1051_v25 = vld [vmem:[#allocation2 + $0xc8] sm:$0x1]  ;;  %v3564_v33 = vor.u32 %v3563_v26, %v3559_v27  ;;  %v3555_v37 = vrot.slane %v3554_v32, 4  ;;  %v3593_v56 = vrot.slane %v3591_v43, 5 }
 0x1cc   : > { %v2995_v35 = vpop.permute.xlu1 %2994  ;;  %v2941_v23 = vsel %vm5915_vm14, %v2939_v3, %v2940_v9  ;;  %v1052_v29 = vsel %vm5444_vm5, %v891_v15, %v1051_v25  ;;  %v3892_v51 = vld [vmem:[#allocation2 + $0x78] sm:$0xe]  ;;  %v4022_v57 = vrot.slane %v3893_v45, 5  ;;  %v3896_v58 = vld [vmem:[#allocation2 + $0x88] sm:$0xf]  ;;  %vm4711_vm5 = vcmask 31744  }
 0x1cd   : > { %3086 = vst.msk [vmem:[#allocation3 + $0x14] sm:$0xf] %vm3080_vm8, %v2995_v35  ;;  %v2997_v41 = vpop.permute.xlu0 %2996  ;;  %1053 = vst [vmem:[#allocation2 + $0xc8] sm:$0x1] %v1052_v29  ;;  %v3587_v35 = vrot.slane %v3585_v8, 4  ;;  %v5054_v63 = vrot.slane %v3892_v51, 9 }
 0x1ce   : > { %2681 = vrot.lane.b32.xlu1 %v2478_v60, %s5393_s10  ;;  %3087 = vst.msk [vmem:[#allocation3 + $0x18] sm:$0xf] %vm3080_vm8, %v2997_v41  ;;  %v3577_v60 = vrot.slane %v3575_v22, 5  ;;  %v3565_v41 = vrot.slane %v3564_v33, 4  ;;  %v3894_v59 = vld [vmem:[#allocation2 + $0x80] sm:$0x1] }
 0x1cf   : > { %2683 = vrot.lane.b32.xlu0 %v2492_v21, %s5393_s10  ;;  %v3132_v21 = vld [vmem:[#allocation2 + $0x84] sm:$0xf]  ;;  %v3588_v28 = vor.u32 %v3587_v35, %v3583_v34  ;;  %v4029_v9 = vrot.slane %v3896_v58, 5  ;;  %v4024_v4 = vrot.slane %v4022_v57, 4  ;;  %v4023_v18 = vsel %vm5915_vm14, %v5054_v63, %v4022_v57  ;;  %v2247_v1 = vld [vmem:[#allocation2 + $0x8c] sm:$0x1] }
 0x1d0   : > { %v2999_v54 = vpop.permute.xlu1 %2998  ;;  %v3578_v38 = vor.u32 %v3577_v60, %v3574_v55  ;;  %v3570_v53 = vsel %vm5499_vm9, %v3565_v41, %v3569_v42  ;;  %v2245_v5 = vld [vmem:[#allocation2 + $0x84] sm:$0xf]  ;;  %v2043_v41 = vld [vmem:[#allocation2 + $0x88] sm:$0xf] }
 0x1d1   : > { %3088 = vst.msk [vmem:[#allocation3 + $0x1c] sm:$0xf] %vm3080_vm8, %v2999_v54  ;;  %v3187_v0 = vpop.permute.xlu0 %3186  ;;  %v3589_v54 = vrot.slane %v3588_v28, 4  ;;  %v2504_v12 = vshrl.u32 %v2245_v5, 16  ;;  %v2507_v14 = vshll.u32 %v2245_v5, 16  ;;  %v4031_v22 = vrot.slane %v4029_v9, 4 }
 0x1d2   : > { %2685 = vrot.lane.b32.xlu1 %v2502_v48, %s5393_s10  ;;  %3279 = vst.msk [vmem:[#allocation3 + $0x10] sm:$0xf] %vm3274_vm12, %v3187_v0  ;;  %v3560_v48 = vsel %vm5499_vm9, %v3555_v37, %v3559_v27  ;;  %v3579_v46 = vrot.slane %v3578_v38, 4  ;;  %v3895_v0 = vld [vmem:[#allocation2 + $0x84] sm:$0xe]  ;;  %v2523_v28 = vshll.u32 %v2247_v1, 16 }
 0x1d3   : > { %3016 = vrot.lane.b32.xlu0 %v2931_v10, %s5394_s11  ;;  %v3594_v6 = vsel %vm5499_vm9, %v3589_v54, %v3593_v56  ;;  %v2506_v30 = vrot.slane %v2504_v12, 4  ;;  %v2045_v54 = vld [vmem:[#allocation2 + $0x94] sm:$0xf]  ;;  %v2809_v12 = vld [vmem:[#allocation2 + $0x90] sm:$0xe] }
 0x1d4   : > { %v3189_v17 = vpop.permute.xlu1 %3188  ;;  %v3584_v61 = vsel %vm5499_vm9, %v3579_v46, %v3583_v34  ;;  %v2044_v46 = vld [vmem:[#allocation2 + $0x90] sm:$0xf]  ;;  %v2525_v57 = vrot.slane %v2523_v28, 5 }
 0x1d5   : > { %3280 = vst.msk [vmem:[#allocation3 + $0x14] sm:$0xf] %vm3274_vm12, %v3189_v17  ;;  %v3191_v62 = vpop.permute.xlu0 %3190  ;;  %v5055_v17 = vrot.slane %v3895_v0, 9 }
 0x1d6   : > { %3018 = vrot.lane.b32.xlu1 %v2934_v7, %s5394_s11  ;;  %3281 = vst.msk [vmem:[#allocation3 + $0x18] sm:$0xf] %vm3274_vm12, %v3191_v62  ;;  %v4025_v7 = vrot.slane %v3894_v59, 5  ;;  %v4032_v62 = vrot.slane %v3897_v13, 5  ;;  %v2810_v13 = vld [vmem:[#allocation2 + $0x94] sm:$0xf] }
 0x1d7   : > { %3020 = vrot.lane.b32.xlu0 %v2938_v16, %s5394_s11  ;;  %v2246_v16 = vld [vmem:[#allocation2 + $0x88] sm:$0xf]  ;;  %v4030_v29 = vsel %vm5915_vm14, %v5055_v17, %v4029_v9  ;;  %v2806_v9 = vld [vmem:[#allocation2 + $0x84] sm:$0xe]  ;;  %v2808_v17 = vld [vmem:[#allocation2 + $0x8c] sm:$0x1] }
 0x1d8   : > { %v3193_v11 = vpop.permute.xlu1 %3192  ;;  %v4026_v27 = vsel %vm5915_vm14, %v4024_v4, %v4025_v7  ;;  %v2513_v25 = vshll.u32 %v2246_v16, 16  ;;  %v2517_v26 = vshrl.u32 %v2246_v16, 16 }
 0x1d9   : > { %3282 = vst.msk [vmem:[#allocation3 + $0x1c] sm:$0xf] %vm3274_vm12, %v3193_v11  ;;  %v3748_v49 = vpop.permute.xlu0 %3747  ;;  %v2249_v11 = vld [vmem:[#allocation2 + $0x94] sm:$0xf] }
 0x1da   : > { %3022 = vrot.lane.b32.xlu1 %v2941_v23, %s5394_s11  ;;  %3840 = vst.msk [vmem:[#allocation3 + $0x10] sm:$0xf] %vm3835_vm13, %v3748_v49  ;;  %v2248_v23 = vld [vmem:[#allocation2 + $0x90] sm:$0xf]  ;;  %v4033_v49 = vsel %vm5915_vm14, %v4031_v22, %v4032_v62  ;;  %v2519_v33 = vrot.slane %v2517_v26, 4  ;;  %v2537_v2 = vshll.u32 %v2249_v11, 16 }
 0x1db   : > { %3210 = vrot.lane.b32.xlu0 %v3130_v31, %s5395_s12  ;;  %v2509_v31 = vrot.slane %v2507_v14, 5  ;;  %v2528_v32 = vshrl.u32 %v2248_v23, 16  ;;  %v2531_v55 = vshll.u32 %v2248_v23, 16  ;;  %v2541_v34 = vshrl.u32 %v2249_v11, 16  ;;  %v3337_v22 = vld [vmem:[#allocation2 + $0x90] sm:$0xf] }
 0x1dc   : > { %v3750_v36 = vpop.permute.xlu1 %3749  ;;  %v2539_v43 = vrot.slane %v2537_v2, 5  ;;  %v3596_v11 = vshrl.u32 %v3337_v22, 16 }
 0x1dd   : > { %3841 = vst.msk [vmem:[#allocation3 + $0x14] sm:$0xf] %vm3835_vm13, %v3750_v36  ;;  %v3752_v39 = vpop.permute.xlu0 %3751  ;;  %v2510_v37 = vor.u32 %v2509_v31, %v2506_v30  ;;  %v2530_v38 = vrot.slane %v2528_v32, 4  ;;  %v3599_v30 = vshll.u32 %v3337_v22, 16 }
 0x1de   : > { %3212 = vrot.lane.b32.xlu1 %v3131_v24, %s5395_s12  ;;  %3842 = vst.msk [vmem:[#allocation3 + $0x18] sm:$0xf] %vm3835_vm13, %v3752_v39  ;;  %v2515_v24 = vrot.slane %v2513_v25, 5  ;;  %v2533_v39 = vrot.slane %v2531_v55, 5  ;;  %v2811_v25 = vld [vmem:[#allocation2 + $0x98] sm:$0x1] }
 0x1df   : > { %3214 = vrot.lane.b32.xlu0 %v3132_v21, %s5395_s12  ;;  %v2042_v21 = vld [vmem:[#allocation2 + $0x84] sm:$0xf]  ;;  %v2954_v55 = vrot.slane %v2811_v25, 5  ;;  %v3601_v1 = vrot.slane %v3599_v30, 5 }
 0x1e0   : > { %v3754_v44 = vpop.permute.xlu1 %3753  ;;  %v2520_v42 = vor.u32 %v2519_v33, %v2515_v24  ;;  %v2534_v51 = vor.u32 %v2533_v39, %v2530_v38 }
 0x1e1   : > { %3843 = vst.msk [vmem:[#allocation3 + $0x1c] sm:$0xf] %vm3835_vm13, %v3754_v44  ;;  %v4085_v50 = vpop.permute.xlu0 %4084  ;;  %v2543_v44 = vrot.slane %v2541_v34, 4 }
 0x1e2   : > { %3216 = vrot.lane.b32.xlu1 %v3133_v40, %s5395_s12  ;;  %4177 = vst.msk [vmem:[#allocation3 + $0x10] sm:$0xf] %vm4172_vm15, %v4085_v50  ;;  %v2511_v50 = vrot.slane %v2510_v37, 4  ;;  %v2521_v56 = vrot.slane %v2520_v42, 4  ;;  %v2535_v0 = vrot.slane %v2534_v51, 4 }
 0x1e3   : > { %3771 = vrot.lane.b32.xlu0 %v3560_v48, %s5396_s15  ;;  %v2250_v48 = vld [vmem:[#allocation2 + $0x98] sm:$0x1]  ;;  %v2544_v58 = vor.u32 %v2543_v44, %v2539_v43 }
 0x1e4   : > { %v4087_v10 = vpop.permute.xlu1 %4086  ;;  %v2516_v63 = vsel %vm5499_vm9, %v2511_v50, %v2515_v24  ;;  %v2526_v5 = vsel %vm5499_vm9, %v2521_v56, %v2525_v57  ;;  %v2540_v16 = vsel %vm5499_vm9, %v2535_v0, %v2539_v43  ;;  %v3339_v44 = vld [vmem:[#allocation2 + $0x98] sm:$0x1] }
 0x1e5   : > { %4178 = vst.msk [vmem:[#allocation3 + $0x14] sm:$0xf] %vm4172_vm15, %v4087_v10  ;;  %v4089_v3 = vpop.permute.xlu0 %4088  ;;  %v2547_v10 = vshll.u32 %v2250_v48, 16  ;;  %v3615_v56 = vshll.u32 %v3339_v44, 16  ;;  %v2255_v44 = vld [vmem:[#allocation2 + $0xac] sm:$0xf] }
 0x1e6   : > { %3773 = vrot.lane.b32.xlu1 %v3570_v53, %s5396_s15  ;;  %4179 = vst.msk [vmem:[#allocation3 + $0x18] sm:$0xf] %vm4172_vm15, %v4089_v3 }
 0x1e7   : > { %3775 = vrot.lane.b32.xlu0 %v3584_v61, %s5396_s15  ;;  %v2807_v61 = vld [vmem:[#allocation2 + $0x88] sm:$0xf]  ;;  %v2549_v4 = vrot.slane %v2547_v10, 5 }
 0x1e8   : > { %v4091_v15 = vpop.permute.xlu1 %4090  ;;  %v2944_v7 = vrot.slane %v2807_v61, 5  ;;  %v3136_v61 = vld [vmem:[#allocation2 + $0x9c] sm:$0xf] }
 0x1e9   : > { %4180 = vst.msk [vmem:[#allocation3 + $0x1c] sm:$0xf] %vm4172_vm15, %v4091_v15  ;;  %v2664_v19 = vpop.permute.xlu0 %2663 }
 0x1ea   : > { %3777 = vrot.lane.b32.xlu1 %v3594_v6, %s5396_s15  ;;  %2752 = vst.msk [vmem:[#allocation3 + $0x20] sm:$0xf] %vm2743_vm6, %v2664_v19  ;;  %v2545_v6 = vrot.slane %v2544_v58, 4  ;;  %v2951_v19 = vrot.slane %v2810_v13, 5  ;;  %v2946_v23 = vrot.slane %v2944_v7, 4 }
 0x1eb   : > { %4108 = vrot.lane.b32.xlu0 %v4023_v18, %s5397_s24  ;;  %v5040_v18 = vrot.slane %v2806_v9, 9  ;;  %v3137_v9 = vld [vmem:[#allocation2 + $0xa0] sm:$0xf] }
 0x1ec   : > { %v2666_v20 = vpop.permute.xlu1 %2665  ;;  %v5363_v8 = vld [vmem:[#allocation3 + $0x10] sm:$0xff]   ;;  %v2550_v62 = vsel %vm5499_vm9, %v2545_v6, %v2549_v4  ;;  %v2953_v32 = vrot.slane %v2951_v19, 4  ;;  %v3617_v6 = vrot.slane %v3615_v56, 5 }
 0x1ed   : > { %2753 = vst.msk [vmem:[#allocation3 + $0x24] sm:$0xf] %vm2743_vm6, %v2666_v20  ;;  %5305 = vmatprep.mubr.msk.bf16.mxu0 %vm4337_vm2, %v5363_v8  ;;  %v2668_v60 = vpop.permute.xlu0 %2667  ;;  %v5041_v20 = vrot.slane %v2809_v12, 9  ;;  %v3338_v8 = vld [vmem:[#allocation2 + $0x94] sm:$0xf] }
 0x1ee   : > { %4110 = vrot.lane.b32.xlu1 %v4026_v27, %s5397_s24  ;;  %2754 = vst.msk [vmem:[#allocation3 + $0x28] sm:$0xf] %vm2743_vm6, %v2668_v60  ;;  %v2947_v27 = vrot.slane %v2808_v17, 5  ;;  %v3340_v60 = vld [vmem:[#allocation2 + $0x9c] sm:$0xf]  ;;  %v3605_v24 = vshll.u32 %v3338_v8, 16  ;;  %v2955_v39 = vsel %vm5915_vm14, %v2953_v32, %v2954_v55 }
 0x1ef   : > { %4112 = vrot.lane.b32.xlu0 %v4030_v29, %s5397_s24  ;;  %v2945_v29 = vsel %vm5915_vm14, %v5040_v18, %v2944_v7  ;;  %v3609_v33 = vshrl.u32 %v3338_v8, 16  ;;  %v2952_v34 = vsel %vm5915_vm14, %v5041_v20, %v2951_v19  ;;  %v3623_v37 = vshll.u32 %v3340_v60, 16  ;;  %v3898_v12 = vld [vmem:[#allocation2 + $0x90] sm:$0xe] }
 0x1f0   : > { %v2670_v35 = vpop.permute.xlu1 %2669  ;;  %v5364_v36 = vld [vmem:[#allocation3 + $0x18] sm:$0xff]   ;;  %v5056_v8 = vrot.slane %v3898_v12, 9 }
 0x1f1   : > { %2755 = vst.msk [vmem:[#allocation3 + $0x2c] sm:$0xf] %vm2743_vm6, %v2670_v35  ;;  %5306 = vmatmul.mubr.msk.bf16.gmra.mxu0 %vm4337_vm2, %v5364_v36  ;;  %v3001_v40 = vpop.permute.xlu0 %3000  ;;  %v3341_v35 = vld [vmem:[#allocation2 + $0xa0] sm:$0xf]  ;;  %v3598_v36 = vrot.slane %v3596_v11, 4  ;;  %v3625_v50 = vrot.slane %v3623_v37, 5 }
 0x1f2   : > { %4114 = vrot.lane.b32.xlu1 %v4033_v49, %s5397_s24  ;;  %3089 = vst.msk [vmem:[#allocation3 + $0x20] sm:$0xf] %vm3080_vm8, %v3001_v40  ;;  %v2948_v49 = vsel %vm5915_vm14, %v2946_v23, %v2947_v27  ;;  %v3607_v40 = vrot.slane %v3605_v24, 5  ;;  %v3629_v42 = vshll.u32 %v3341_v35, 16  ;;  %v3633_v28 = vshrl.u32 %v3341_v35, 16 }
 0x1f3   : > { %2126 = vrot.lane.b32.xlu0 %v2042_v21, %s5392_s9  ;;  %v3620_v21 = vshrl.u32 %v3340_v60, 16  ;;  %v3602_v48 = vor.u32 %v3601_v1, %v3598_v36  ;;  %v3902_v23 = vld [vmem:[#allocation2 + $0xa0] sm:$0xf] }
 0x1f4   : > { %v3003_v45 = vpop.permute.xlu1 %3002  ;;  %v3631_v57 = vrot.slane %v3629_v42, 5  ;;  %v3635_v58 = vrot.slane %v3633_v28, 4  ;;  %v4043_v30 = vrot.slane %v3902_v23, 5 }
 0x1f5   : > { %3090 = vst.msk [vmem:[#allocation3 + $0x24] sm:$0xf] %vm3080_vm8, %v3003_v45  ;;  %v3005_v53 = vpop.permute.xlu0 %3004  ;;  %v3134_v45 = vld [vmem:[#allocation2 + $0x90] sm:$0xf] }
 0x1f6   : > { %2128 = vrot.lane.b32.xlu1 %v2043_v41, %s5392_s9  ;;  %3091 = vst.msk [vmem:[#allocation3 + $0x28] sm:$0xf] %vm3080_vm8, %v3005_v53  ;;  %v3611_v41 = vrot.slane %v3609_v33, 4  ;;  %v3135_v53 = vld [vmem:[#allocation2 + $0x94] sm:$0xf]  ;;  %v3636_v4 = vor.u32 %v3635_v58, %v3631_v57  ;;  %v4045_v37 = vrot.slane %v4043_v30, 4 }
 0x1f7   : > { %2130 = vrot.lane.b32.xlu0 %v2044_v46, %s5392_s9  ;;  %v3622_v46 = vrot.slane %v3620_v21, 4  ;;  %v2589_v58 = vshrl.u32 %v2255_v44, 16 }
 0x1f8   : > { %v3007_v59 = vpop.permute.xlu1 %3006  ;;  %v3637_v19 = vrot.slane %v3636_v4, 4 }
 0x1f9   : > { %3092 = vst.msk [vmem:[#allocation3 + $0x2c] sm:$0xf] %vm3080_vm8, %v3007_v59  ;;  %v3195_v3 = vpop.permute.xlu0 %3194  ;;  %v3342_v59 = vld [vmem:[#allocation2 + $0xa4] sm:$0x1]  ;;  %v3626_v0 = vor.u32 %v3625_v50, %v3622_v46 }
 0x1fa   : > { %2132 = vrot.lane.b32.xlu1 %v2045_v54, %s5392_s9  ;;  %3283 = vst.msk [vmem:[#allocation3 + $0x20] sm:$0xf] %vm3274_vm12, %v3195_v3  ;;  %v3612_v54 = vor.u32 %v3611_v41, %v3607_v40  ;;  %v3639_v7 = vshll.u32 %v3342_v59, 16  ;;  %v2253_v59 = vld [vmem:[#allocation2 + $0xa4] sm:$0x1] }
 0x1fb   : > { %2687 = vrot.lane.b32.xlu0 %v2516_v63, %s5393_s10  ;;  %v3603_v63 = vrot.slane %v3602_v48, 4  ;;  %v2571_v4 = vshll.u32 %v2253_v59, 16 }
 0x1fc   : > { %v3197_v15 = vpop.permute.xlu1 %3196  ;;  %v3641_v22 = vrot.slane %v3639_v7, 5 }
 0x1fd   : > { %3284 = vst.msk [vmem:[#allocation3 + $0x24] sm:$0xf] %vm3274_vm12, %v3197_v15  ;;  %v3199_v14 = vpop.permute.xlu0 %3198  ;;  %v3899_v15 = vld [vmem:[#allocation2 + $0x94] sm:$0xf]  ;;  %v3608_v17 = vsel %vm5499_vm9, %v3603_v63, %v3607_v40 }
 0x1fe   : > { %2689 = vrot.lane.b32.xlu1 %v2526_v5, %s5393_s10  ;;  %3285 = vst.msk [vmem:[#allocation3 + $0x28] sm:$0xf] %vm3274_vm12, %v3199_v14  ;;  %v3613_v5 = vrot.slane %v3612_v54, 4  ;;  %v3642_v32 = vsel %vm5499_vm9, %v3637_v19, %v3641_v22  ;;  %v2049_v19 = vld [vmem:[#allocation2 + $0xac] sm:$0xf] }
 0x1ff   : > { %2691 = vrot.lane.b32.xlu0 %v2540_v16, %s5393_s10  ;;  %v3627_v16 = vrot.slane %v3626_v0, 4 }
 0x200   : > { %v3201_v26 = vpop.permute.xlu1 %3200  ;;  %v3618_v14 = vsel %vm5499_vm9, %v3613_v5, %v3617_v6  ;;  %v2047_v5 = vld [vmem:[#allocation2 + $0xa0] sm:$0xf] }
 0x201   : > { %3286 = vst.msk [vmem:[#allocation3 + $0x2c] sm:$0xf] %vm3274_vm12, %v3201_v26  ;;  %v3756_v31 = vpop.permute.xlu0 %3755  ;;  %v3900_v26 = vld [vmem:[#allocation2 + $0x98] sm:$0x1]  ;;  %v3632_v20 = vsel %vm5499_vm9, %v3627_v16, %v3631_v57  ;;  %v2585_v57 = vshll.u32 %v2255_v44, 16 }
 0x202   : > { %2693 = vrot.lane.b32.xlu1 %v2550_v62, %s5393_s10  ;;  %3844 = vst.msk [vmem:[#allocation3 + $0x20] sm:$0xf] %vm3835_vm13, %v3756_v31  ;;  %v4036_v62 = vrot.slane %v3899_v15, 5  ;;  %v2251_v31 = vld [vmem:[#allocation2 + $0x9c] sm:$0xf]  ;;  %v4039_v60 = vrot.slane %v3900_v26, 5 }
 0x203   : > { %3024 = vrot.lane.b32.xlu0 %v2945_v29, %s5394_s11  ;;  %v3901_v29 = vld [vmem:[#allocation2 + $0x9c] sm:$0xe]  ;;  %v2552_v36 = vshrl.u32 %v2251_v31, 16  ;;  %v2555_v1 = vshll.u32 %v2251_v31, 16  ;;  %v2587_v7 = vrot.slane %v2585_v57, 5 }
 0x204   : > { %v3758_v2 = vpop.permute.xlu1 %3757  ;;  %v4038_v55 = vrot.slane %v4036_v62, 4  ;;  %v4037_v35 = vsel %vm5915_vm14, %v5056_v8, %v4036_v62  ;;  %v2048_v16 = vld [vmem:[#allocation2 + $0xa8] sm:$0xf]  ;;  %v2573_v62 = vrot.slane %v2571_v4, 5  ;;  %v2813_v26 = vld [vmem:[#allocation2 + $0xa0] sm:$0xf] }
 0x205   : > { %3845 = vst.msk [vmem:[#allocation3 + $0x24] sm:$0xf] %vm3835_vm13, %v3758_v2  ;;  %v3760_v38 = vpop.permute.xlu0 %3759  ;;  %v5057_v2 = vrot.slane %v3901_v29, 9  ;;  %v2557_v48 = vrot.slane %v2555_v1, 5  ;;  %v3343_v1 = vld [vmem:[#allocation2 + $0xa8] sm:$0xf] }
 0x206   : > { %3026 = vrot.lane.b32.xlu1 %v2948_v49, %s5394_s11  ;;  %3846 = vst.msk [vmem:[#allocation3 + $0x28] sm:$0xf] %vm3835_vm13, %v3760_v38  ;;  %v3903_v49 = vld [vmem:[#allocation2 + $0xa4] sm:$0x1]  ;;  %v4040_v40 = vsel %vm5915_vm14, %v4038_v55, %v4039_v60  ;;  %v2958_v55 = vrot.slane %v2813_v26, 5  ;;  %v3647_v44 = vshll.u32 %v3343_v1, 16 }
 0x207   : > { %3028 = vrot.lane.b32.xlu0 %v2952_v34, %s5394_s11  ;;  %v2252_v34 = vld [vmem:[#allocation2 + $0xa0] sm:$0xf]  ;;  %v4046_v38 = vrot.slane %v3903_v49, 5  ;;  %v2816_v60 = vld [vmem:[#allocation2 + $0xac] sm:$0xf] }
 0x208   : > { %v3762_v43 = vpop.permute.xlu1 %3761  ;;  %v2561_v41 = vshll.u32 %v2252_v34, 16  ;;  %v2565_v42 = vshrl.u32 %v2252_v34, 16  ;;  %v2815_v34 = vld [vmem:[#allocation2 + $0xa8] sm:$0xe]  ;;  %v3649_v59 = vrot.slane %v3647_v44, 5 }
 0x209   : > { %3847 = vst.msk [vmem:[#allocation3 + $0x2c] sm:$0xf] %vm3835_vm13, %v3762_v43  ;;  %v4093_v51 = vpop.permute.xlu0 %4092  ;;  %v4044_v43 = vsel %vm5915_vm14, %v5057_v2, %v4043_v30  ;;  %v3348_v26 = vld [vmem:[#allocation2 + $0xbc] sm:$0x1] }
 0x20a   : > { %3030 = vrot.lane.b32.xlu1 %v2955_v39, %s5394_s11  ;;  %4181 = vst.msk [vmem:[#allocation3 + $0x20] sm:$0xf] %vm4172_vm15, %v4093_v51  ;;  %v2254_v39 = vld [vmem:[#allocation2 + $0xa8] sm:$0xf]  ;;  %v2563_v54 = vrot.slane %v2561_v41, 5  ;;  %v2567_v56 = vrot.slane %v2565_v42, 4 }
 0x20b   : > { %3218 = vrot.lane.b32.xlu0 %v3134_v45, %s5395_s12  ;;  %v2554_v45 = vrot.slane %v2552_v36, 4  ;;  %v2576_v46 = vshrl.u32 %v2254_v39, 16  ;;  %v2579_v50 = vshll.u32 %v2254_v39, 16  ;;  %v2965_v36 = vrot.slane %v2816_v60, 5  ;;  %v2817_v39 = vld [vmem:[#allocation2 + $0xb0] sm:$0x1] }
 0x20c   : > { %v4095_v10 = vpop.permute.xlu1 %4094  ;;  %v2568_v6 = vor.u32 %v2567_v56, %v2563_v54  ;;  %v5043_v41 = vrot.slane %v2815_v34, 9  ;;  %v3344_v42 = vld [vmem:[#allocation2 + $0xac] sm:$0xf]  ;;  %v3687_v60 = vshll.u32 %v3348_v26, 16  ;;  %v2050_v26 = vld [vmem:[#allocation2 + $0xb4] sm:$0xf] }
 0x20d   : > { %4182 = vst.msk [vmem:[#allocation3 + $0x24] sm:$0xf] %vm4172_vm15, %v4095_v10  ;;  %v4097_v3 = vpop.permute.xlu0 %4096  ;;  %v2558_v63 = vor.u32 %v2557_v48, %v2554_v45  ;;  %v2578_v0 = vrot.slane %v2576_v46, 4  ;;  %v2967_v48 = vrot.slane %v2965_v36, 4  ;;  %v2968_v46 = vrot.slane %v2817_v39, 5 }
 0x20e   : > { %3220 = vrot.lane.b32.xlu1 %v3135_v53, %s5395_s12  ;;  %4183 = vst.msk [vmem:[#allocation3 + $0x28] sm:$0xf] %vm4172_vm15, %v4097_v3  ;;  %v4047_v53 = vsel %vm5915_vm14, %v4045_v37, %v4046_v38  ;;  %v2581_v3 = vrot.slane %v2579_v50, 5  ;;  %v2569_v22 = vrot.slane %v2568_v6, 4  ;;  %v2960_v37 = vrot.slane %v2958_v55, 4 }
 0x20f   : > { %3222 = vrot.lane.b32.xlu0 %v3136_v61, %s5395_s12  ;;  %v2046_v61 = vld [vmem:[#allocation2 + $0x9c] sm:$0xf]  ;;  %v3346_v50 = vld [vmem:[#allocation2 + $0xb4] sm:$0xf]  ;;  %v2966_v57 = vsel %vm5915_vm14, %v5043_v41, %v2965_v36  ;;  %v3904_v36 = vld [vmem:[#allocation2 + $0xa8] sm:$0xe] }
 0x210   : > { %v4099_v13 = vpop.permute.xlu1 %4098  ;;  %v2582_v12 = vor.u32 %v2581_v3, %v2578_v0  ;;  %v2574_v30 = vsel %vm5499_vm9, %v2569_v22, %v2573_v62  ;;  %v2969_v3 = vsel %vm5915_vm14, %v2967_v48, %v2968_v46  ;;  %v3908_v39 = vld [vmem:[#allocation2 + $0xb8] sm:$0xf]  ;;  %v3906_v41 = vld [vmem:[#allocation2 + $0xb0] sm:$0x1]  ;;  %v2257_v48 = vld [vmem:[#allocation2 + $0xb4] sm:$0xf] }
 0x211   : > { %4184 = vst.msk [vmem:[#allocation3 + $0x2c] sm:$0xf] %vm4172_vm15, %v4099_v13  ;;  %v2672_v18 = vpop.permute.xlu0 %2671  ;;  %v2591_v13 = vrot.slane %v2589_v58, 4  ;;  %v3347_v58 = vld [vmem:[#allocation2 + $0xb8] sm:$0xf] }
 0x212   : > { %3224 = vrot.lane.b32.xlu1 %v3137_v9, %s5395_s12  ;;  %2756 = vst.msk [vmem:[#allocation3 + $0x30] sm:$0xf] %vm2743_vm6, %v2672_v18  ;;  %v2559_v18 = vrot.slane %v2558_v63, 4  ;;  %v2583_v8 = vrot.slane %v2582_v12, 4  ;;  %v3671_v63 = vshll.u32 %v3346_v50, 16  ;;  %v3677_v6 = vshll.u32 %v3347_v58, 16 }
 0x213   : > { %3779 = vrot.lane.b32.xlu0 %v3608_v17, %s5396_s15  ;;  %v2256_v17 = vld [vmem:[#allocation2 + $0xb0] sm:$0x1]  ;;  %v2592_v23 = vor.u32 %v2591_v13, %v2587_v7  ;;  %v3681_v4 = vshrl.u32 %v3347_v58, 16 }
 0x214   : > { %v2674_v27 = vpop.permute.xlu1 %2673  ;;  %v5365_v25 = vld [vmem:[#allocation3 + $0x20] sm:$0xff]   ;;  %v3345_v13 = vld [vmem:[#allocation2 + $0xb0] sm:$0x1]  ;;  %v3679_v62 = vrot.slane %v3677_v6, 5 }
 0x215   : > { %2757 = vst.msk [vmem:[#allocation3 + $0x34] sm:$0xf] %vm2743_vm6, %v2674_v27  ;;  %5309 = vmatprep.mubr.msk.bf16.mxu0 %vm4337_vm2, %v5365_v25  ;;  %v2676_v11 = vpop.permute.xlu0 %2675  ;;  %v2595_v27 = vshll.u32 %v2256_v17, 16  ;;  %v2593_v31 = vrot.slane %v2592_v23, 4  ;;  %v3663_v22 = vshll.u32 %v3345_v13, 16  ;;  %v3683_v23 = vrot.slane %v3681_v4, 4 }
 0x216   : > { %3781 = vrot.lane.b32.xlu1 %v3618_v14, %s5396_s15  ;;  %2758 = vst.msk [vmem:[#allocation3 + $0x38] sm:$0xf] %vm2743_vm6, %v2676_v11  ;;  %v2812_v11 = vld [vmem:[#allocation2 + $0x9c] sm:$0xe]  ;;  %v2261_v13 = vld [vmem:[#allocation2 + $0xc4] sm:$0xf] }
 0x217   : > { %3783 = vrot.lane.b32.xlu0 %v3632_v20, %s5396_s15  ;;  %v2564_v20 = vsel %vm5499_vm9, %v2559_v18, %v2563_v54  ;;  %v5042_v2 = vrot.slane %v2812_v11, 9  ;;  %v3657_v54 = vshrl.u32 %v3344_v42, 16  ;;  %v3673_v18 = vrot.slane %v3671_v63, 5 }
 0x218   : > { %v2678_v24 = vpop.permute.xlu1 %2677  ;;  %v5366_v33 = vld [vmem:[#allocation3 + $0x28] sm:$0xff]  }
 0x219   : > { %2759 = vst.msk [vmem:[#allocation3 + $0x3c] sm:$0xf] %vm2743_vm6, %v2678_v24  ;;  %5310 = vmatmul.mubr.msk.bf16.gmra.mxu0 %vm4337_vm2, %v5366_v33  ;;  %v3009_v21 = vpop.permute.xlu0 %3008  ;;  %v2814_v24 = vld [vmem:[#allocation2 + $0xa4] sm:$0x1]  ;;  %v2588_v33 = vsel %vm5499_vm9, %v2583_v8, %v2587_v7 }
 0x21a   : > { %3785 = vrot.lane.b32.xlu1 %v3642_v32, %s5396_s15  ;;  %3093 = vst.msk [vmem:[#allocation3 + $0x30] sm:$0xf] %vm3080_vm8, %v3009_v21  ;;  %v2597_v32 = vrot.slane %v2595_v27, 5  ;;  %v2961_v38 = vrot.slane %v2814_v24, 5 }
 0x21b   : > { %4116 = vrot.lane.b32.xlu0 %v4037_v35, %s5397_s24 }
 0x21c   : > { %v3011_v28 = vpop.permute.xlu1 %3010  ;;  %v2598_v21 = vsel %vm5499_vm9, %v2593_v31, %v2597_v32  ;;  %v3665_v32 = vrot.slane %v3663_v22, 5 }
 0x21d   : > { %3094 = vst.msk [vmem:[#allocation3 + $0x34] sm:$0xf] %vm3080_vm8, %v3011_v28  ;;  %v3013_v51 = vpop.permute.xlu0 %3012  ;;  %v2959_v28 = vsel %vm5915_vm14, %v5042_v2, %v2958_v55  ;;  %v3684_v55 = vor.u32 %v3683_v23, %v3679_v62  ;;  %v2637_v23 = vshrl.u32 %v2261_v13, 16 }
 0x21e   : > { %4118 = vrot.lane.b32.xlu1 %v4040_v40, %s5397_s24  ;;  %3095 = vst.msk [vmem:[#allocation3 + $0x38] sm:$0xf] %vm3080_vm8, %v3013_v51  ;;  %v2962_v51 = vsel %vm5915_vm14, %v2960_v37, %v2961_v38  ;;  %v3689_v37 = vrot.slane %v3687_v60, 5 }
 0x21f   : > { %4120 = vrot.lane.b32.xlu0 %v4044_v43, %s5397_s24  ;;  %v3644_v43 = vshrl.u32 %v3343_v1, 16  ;;  %v2639_v60 = vrot.slane %v2637_v23, 4  ;;  %v3353_v23 = vld [vmem:[#allocation2 + $0xd0] sm:$0xf] }
 0x220   : > { %v3015_v10 = vpop.permute.xlu1 %3014 }
 0x221   : > { %3096 = vst.msk [vmem:[#allocation3 + $0x3c] sm:$0xf] %vm3080_vm8, %v3015_v10  ;;  %v3203_v9 = vpop.permute.xlu0 %3202  ;;  %v3646_v10 = vrot.slane %v3644_v43, 4  ;;  %v3907_v43 = vld [vmem:[#allocation2 + $0xb4] sm:$0xe] }
 0x222   : > { %4122 = vrot.lane.b32.xlu1 %v4047_v53, %s5397_s24  ;;  %3287 = vst.msk [vmem:[#allocation3 + $0x30] sm:$0xf] %vm3274_vm12, %v3203_v9  ;;  %v3653_v53 = vshll.u32 %v3344_v42, 16 }
 0x223   : > { %2134 = vrot.lane.b32.xlu0 %v2046_v61, %s5392_s9  ;;  %v3668_v61 = vshrl.u32 %v3346_v50, 16  ;;  %v3650_v17 = vor.u32 %v3649_v59, %v3646_v10  ;;  %v2600_v10 = vshrl.u32 %v2257_v48, 16  ;;  %v2603_v59 = vshll.u32 %v2257_v48, 16 }
 0x224   : > { %v3205_v15 = vpop.permute.xlu1 %3204  ;;  %v3655_v9 = vrot.slane %v3653_v53, 5  ;;  %v3909_v53 = vld [vmem:[#allocation2 + $0xbc] sm:$0x1] }
 0x225   : > { %3288 = vst.msk [vmem:[#allocation3 + $0x34] sm:$0xf] %vm3274_vm12, %v3205_v15  ;;  %v3207_v14 = vpop.permute.xlu0 %3206  ;;  %v3138_v15 = vld [vmem:[#allocation2 + $0xa8] sm:$0xf]  ;;  %v3651_v8 = vrot.slane %v3650_v17, 4  ;;  %v2605_v17 = vrot.slane %v2603_v59, 5 }
 0x226   : > { %2136 = vrot.lane.b32.xlu1 %v2047_v5, %s5392_s9  ;;  %3289 = vst.msk [vmem:[#allocation3 + $0x38] sm:$0xf] %vm3274_vm12, %v3207_v14  ;;  %v3659_v5 = vrot.slane %v3657_v54, 4  ;;  %v3139_v14 = vld [vmem:[#allocation2 + $0xac] sm:$0xf] }
 0x227   : > { %2138 = vrot.lane.b32.xlu0 %v2048_v16, %s5392_s9  ;;  %v3670_v16 = vrot.slane %v3668_v61, 4  ;;  %v3656_v2 = vsel %vm5499_vm9, %v3651_v8, %v3655_v9  ;;  %v3349_v59 = vld [vmem:[#allocation2 + $0xc0] sm:$0xf] }
 0x228   : > { %v3209_v25 = vpop.permute.xlu1 %3208 }
 0x229   : > { %3290 = vst.msk [vmem:[#allocation3 + $0x3c] sm:$0xf] %vm3274_vm12, %v3209_v25  ;;  %v3764_v29 = vpop.permute.xlu0 %3763 }
 0x22a   : > { %2140 = vrot.lane.b32.xlu1 %v2049_v19, %s5392_s9  ;;  %3848 = vst.msk [vmem:[#allocation3 + $0x30] sm:$0xf] %vm3835_vm13, %v3764_v29  ;;  %v3660_v19 = vor.u32 %v3659_v5, %v3655_v9  ;;  %v3674_v29 = vor.u32 %v3673_v18, %v3670_v16 }
 0x22b   : > { %2695 = vrot.lane.b32.xlu0 %v2564_v20, %s5393_s10  ;;  %v3140_v20 = vld [vmem:[#allocation2 + $0xb4] sm:$0xf] }
 0x22c   : > { %v3766_v49 = vpop.permute.xlu1 %3765  ;;  %v3661_v31 = vrot.slane %v3660_v19, 4  ;;  %v3675_v34 = vrot.slane %v3674_v29, 4 }
 0x22d   : > { %3849 = vst.msk [vmem:[#allocation3 + $0x34] sm:$0xf] %vm3835_vm13, %v3766_v49  ;;  %v3768_v35 = vpop.permute.xlu0 %3767 }
 0x22e   : > { %2697 = vrot.lane.b32.xlu1 %v2574_v30, %s5393_s10  ;;  %3850 = vst.msk [vmem:[#allocation3 + $0x38] sm:$0xf] %vm3835_vm13, %v3768_v35  ;;  %v3141_v30 = vld [vmem:[#allocation2 + $0xb8] sm:$0xf]  ;;  %v3666_v1 = vsel %vm5499_vm9, %v3661_v31, %v3665_v32  ;;  %v3680_v42 = vsel %vm5499_vm9, %v3675_v34, %v3679_v62  ;;  %v2633_v62 = vshll.u32 %v2261_v13, 16  ;;  %v3695_v13 = vshll.u32 %v3349_v59, 16 }
 0x22f   : > { %2699 = vrot.lane.b32.xlu0 %v2588_v33, %s5393_s10  ;;  %v3905_v33 = vld [vmem:[#allocation2 + $0xac] sm:$0xf] }
 0x230   : > { %v3770_v40 = vpop.permute.xlu1 %3769  ;;  %v4050_v38 = vrot.slane %v3905_v33, 5  ;;  %v2052_v33 = vld [vmem:[#allocation2 + $0xc0] sm:$0xf] }
 0x231   : > { %3851 = vst.msk [vmem:[#allocation3 + $0x3c] sm:$0xf] %vm3835_vm13, %v3770_v40  ;;  %v4101_v45 = vpop.permute.xlu0 %4100 }
 0x232   : > { %2701 = vrot.lane.b32.xlu1 %v2598_v21, %s5393_s10  ;;  %4185 = vst.msk [vmem:[#allocation3 + $0x30] sm:$0xf] %vm4172_vm15, %v4101_v45  ;;  %v3685_v21 = vrot.slane %v3684_v55, 4  ;;  %v4057_v45 = vrot.slane %v3908_v39, 5  ;;  %v4052_v50 = vrot.slane %v4050_v38, 4  ;;  %v2635_v55 = vrot.slane %v2633_v62, 5 }
 0x233   : > { %3032 = vrot.lane.b32.xlu0 %v2959_v28, %s5394_s11  ;;  %v5058_v28 = vrot.slane %v3904_v36, 9  ;;  %v2053_v36 = vld [vmem:[#allocation2 + $0xc4] sm:$0xf] }
 0x234   : > { %v4103_v56 = vpop.permute.xlu1 %4102  ;;  %v3690_v46 = vsel %vm5499_vm9, %v3685_v21, %v3689_v37  ;;  %v4059_v63 = vrot.slane %v4057_v45, 4  ;;  %v2640_v37 = vor.u32 %v2639_v60, %v2635_v55 }
 0x235   : > { %4186 = vst.msk [vmem:[#allocation3 + $0x34] sm:$0xf] %vm4172_vm15, %v4103_v56  ;;  %v4105_v0 = vpop.permute.xlu0 %4104  ;;  %v5059_v56 = vrot.slane %v3907_v43, 9  ;;  %v4051_v58 = vsel %vm5915_vm14, %v5058_v28, %v4050_v38  ;;  %v2818_v43 = vld [vmem:[#allocation2 + $0xb4] sm:$0xe] }
 0x236   : > { %3034 = vrot.lane.b32.xlu1 %v2962_v51, %s5394_s11  ;;  %4187 = vst.msk [vmem:[#allocation3 + $0x38] sm:$0xf] %vm4172_vm15, %v4105_v0  ;;  %v4053_v51 = vrot.slane %v3906_v41, 5  ;;  %v4060_v0 = vrot.slane %v3909_v53, 5  ;;  %v2820_v53 = vld [vmem:[#allocation2 + $0xbc] sm:$0x1] }
 0x237   : > { %3036 = vrot.lane.b32.xlu0 %v2966_v57, %s5394_s11  ;;  %v2258_v57 = vld [vmem:[#allocation2 + $0xb8] sm:$0xf] }
 0x238   : > { %v4107_v7 = vpop.permute.xlu1 %4106  ;;  %v4054_v9 = vsel %vm5915_vm14, %v4052_v50, %v4053_v51  ;;  %v2609_v5 = vshll.u32 %v2258_v57, 16  ;;  %v2613_v6 = vshrl.u32 %v2258_v57, 16  ;;  %v2822_v50 = vld [vmem:[#allocation2 + $0xc4] sm:$0xf]  ;;  %v2821_v57 = vld [vmem:[#allocation2 + $0xc0] sm:$0xe] }
 0x239   : > { %4188 = vst.msk [vmem:[#allocation3 + $0x3c] sm:$0xf] %vm4172_vm15, %v4107_v7  ;;  %v2123_v12 = vpop.permute.xlu0 %2122  ;;  %v4058_v7 = vsel %vm5915_vm14, %v5059_v56, %v4057_v45  ;;  %v2641_v45 = vrot.slane %v2640_v37, 4  ;;  %v5044_v56 = vrot.slane %v2818_v43, 9 }
 0x23a   : > { %3038 = vrot.lane.b32.xlu1 %v2969_v3, %s5394_s11  ;;  %2201 = vst.msk [vmem:[#allocation3 + $0x48] sm:$0xf] %vm2182_vm4, %v2123_v12  ;;  %v2260_v3 = vld [vmem:[#allocation2 + $0xc0] sm:$0xf]  ;;  %v2611_v19 = vrot.slane %v2609_v5, 5  ;;  %v2615_v22 = vrot.slane %v2613_v6, 4 }
 0x23b   : > { %3226 = vrot.lane.b32.xlu0 %v3138_v15, %s5395_s12  ;;  %v2602_v15 = vrot.slane %v2600_v10, 4  ;;  %v2624_v16 = vshrl.u32 %v2260_v3, 16  ;;  %v2627_v18 = vshll.u32 %v2260_v3, 16  ;;  %v2979_v10 = vrot.slane %v2822_v50, 5  ;;  %v2823_v3 = vld [vmem:[#allocation2 + $0xc8] sm:$0x1] }
 0x23c   : > { %v2125_v27 = vpop.permute.xlu1 %2124  ;;  %v5367_v25 = vld [vmem:[#allocation3 + $0x30] sm:$0xff]   ;;  %v2616_v31 = vor.u32 %v2615_v22, %v2611_v19  ;;  %v5045_v5 = vrot.slane %v2821_v57, 9  ;;  %v3350_v6 = vld [vmem:[#allocation2 + $0xc4] sm:$0xf] }
 0x23d   : > { %2202 = vst.msk [vmem:[#allocation3 + $0x4c] sm:$0xf] %vm2182_vm4, %v2125_v27  ;;  %5313 = vmatprep.mubr.msk.bf16.mxu0 %vm4337_vm2, %v5367_v25  ;;  %v2680_v11 = vpop.permute.xlu0 %2679  ;;  %v2259_v25 = vld [vmem:[#allocation2 + $0xbc] sm:$0x1]  ;;  %v2626_v8 = vrot.slane %v2624_v16, 4  ;;  %v2629_v29 = vrot.slane %v2627_v18, 5 }
 0x23e   : > { %3228 = vrot.lane.b32.xlu1 %v3139_v14, %s5395_s12  ;;  %2760 = vst.msk [vmem:[#allocation3 + $0x40] sm:$0xf] %vm2743_vm6, %v2680_v11  ;;  %v4061_v14 = vsel %vm5915_vm14, %v4059_v63, %v4060_v0  ;;  %v2619_v32 = vshll.u32 %v2259_v25, 16  ;;  %v2975_v0 = vrot.slane %v2820_v53, 5  ;;  %v2982_v16 = vrot.slane %v2823_v3, 5 }
 0x23f   : > { %3230 = vrot.lane.b32.xlu0 %v3140_v20, %s5395_s12  ;;  %v2606_v20 = vor.u32 %v2605_v17, %v2602_v15  ;;  %v2630_v34 = vor.u32 %v2629_v29, %v2626_v8  ;;  %v2981_v17 = vrot.slane %v2979_v10, 4  ;;  %v3352_v18 = vld [vmem:[#allocation2 + $0xcc] sm:$0xf]  ;;  %v2980_v62 = vsel %vm5915_vm14, %v5045_v5, %v2979_v10  ;;  %v3910_v10 = vld [vmem:[#allocation2 + $0xc0] sm:$0xe] }
 0x240   : > { %v2682_v49 = vpop.permute.xlu1 %2681  ;;  %v5368_v24 = vld [vmem:[#allocation3 + $0x38] sm:$0xff]   ;;  %v2621_v21 = vrot.slane %v2619_v32, 5  ;;  %v3697_v25 = vrot.slane %v3695_v13, 5  ;;  %v3729_v32 = vshrl.u32 %v3353_v23, 16  ;;  %v3913_v13 = vld [vmem:[#allocation2 + $0xcc] sm:$0xe] }
 0x241   : > { %2761 = vst.msk [vmem:[#allocation3 + $0x44] sm:$0xf] %vm2743_vm6, %v2682_v49  ;;  %5314 = vmatmul.mubr.msk.bf16.gmra.mxu0 %vm4337_vm2, %v5368_v24  ;;  %v2684_v35 = vpop.permute.xlu0 %2683  ;;  %v2262_v24 = vld [vmem:[#allocation2 + $0xc8] sm:$0x1]  ;;  %v2983_v29 = vsel %vm5915_vm14, %v2981_v17, %v2982_v16  ;;  %v3914_v5 = vld [vmem:[#allocation2 + $0xd0] sm:$0xf] }
 0x242   : > { %3232 = vrot.lane.b32.xlu1 %v3141_v30, %s5395_s12  ;;  %2762 = vst.msk [vmem:[#allocation3 + $0x48] sm:$0xf] %vm2743_vm6, %v2684_v35  ;;  %v2051_v30 = vld [vmem:[#allocation2 + $0xb8] sm:$0xf]  ;;  %v2643_v38 = vshll.u32 %v2262_v24, 16 }
 0x243   : > { %3787 = vrot.lane.b32.xlu0 %v3656_v2, %s5396_s15  ;;  %v2607_v2 = vrot.slane %v2606_v20, 4  ;;  %v3719_v20 = vshll.u32 %v3352_v18, 16  ;;  %v3142_v24 = vld [vmem:[#allocation2 + $0xc0] sm:$0xf] }
 0x244   : > { %v2686_v40 = vpop.permute.xlu1 %2685  ;;  %v2645_v48 = vrot.slane %v2643_v38, 5  ;;  %v3731_v38 = vrot.slane %v3729_v32, 4 }
 0x245   : > { %2763 = vst.msk [vmem:[#allocation3 + $0x4c] sm:$0xf] %vm2743_vm6, %v2686_v40  ;;  %v3017_v44 = vpop.permute.xlu0 %3016  ;;  %v2819_v40 = vld [vmem:[#allocation2 + $0xb8] sm:$0xf]  ;;  %v2612_v41 = vsel %vm5499_vm9, %v2607_v2, %v2611_v19  ;;  %v3705_v19 = vshrl.u32 %v3350_v6, 16 }
 0x246   : > { %3789 = vrot.lane.b32.xlu1 %v3666_v1, %s5396_s15  ;;  %3097 = vst.msk [vmem:[#allocation3 + $0x40] sm:$0xf] %vm3080_vm8, %v3017_v44  ;;  %v2617_v1 = vrot.slane %v2616_v31, 4  ;;  %v3725_v31 = vshll.u32 %v3353_v23, 16 }
 0x247   : > { %3791 = vrot.lane.b32.xlu0 %v3680_v42, %s5396_s15  ;;  %v2631_v42 = vrot.slane %v2630_v34, 4  ;;  %v3721_v34 = vrot.slane %v3719_v20, 5 }
 0x248   : > { %v3019_v54 = vpop.permute.xlu1 %3018  ;;  %v2622_v44 = vsel %vm5499_vm9, %v2617_v1, %v2621_v21  ;;  %v3727_v37 = vrot.slane %v3725_v31, 5 }
 0x249   : > { %3098 = vst.msk [vmem:[#allocation3 + $0x44] sm:$0xf] %vm3080_vm8, %v3019_v54  ;;  %v3021_v61 = vpop.permute.xlu0 %3020  ;;  %v2636_v54 = vsel %vm5499_vm9, %v2631_v42, %v2635_v55  ;;  %v3144_v42 = vld [vmem:[#allocation2 + $0xcc] sm:$0xf] }
 0x24a   : > { %3793 = vrot.lane.b32.xlu1 %v3690_v46, %s5396_s15  ;;  %3099 = vst.msk [vmem:[#allocation3 + $0x48] sm:$0xf] %vm3080_vm8, %v3021_v61  ;;  %v2972_v46 = vrot.slane %v2819_v40, 5  ;;  %v2646_v61 = vsel %vm5499_vm9, %v2641_v45, %v2645_v48  ;;  %v3145_v45 = vld [vmem:[#allocation2 + $0xd0] sm:$0xf]  ;;  %v3732_v50 = vor.u32 %v3731_v38, %v3727_v37 }
 0x24b   : > { %4124 = vrot.lane.b32.xlu0 %v4051_v58, %s5397_s24 }
 0x24c   : > { %v3023_v4 = vpop.permute.xlu1 %3022  ;;  %v2974_v63 = vrot.slane %v2972_v46, 4 }
 0x24d   : > { %3100 = vst.msk [vmem:[#allocation3 + $0x4c] sm:$0xf] %vm3080_vm8, %v3023_v4  ;;  %v3211_v12 = vpop.permute.xlu0 %3210  ;;  %v2973_v4 = vsel %vm5915_vm14, %v5044_v56, %v2972_v46 }
 0x24e   : > { %4126 = vrot.lane.b32.xlu1 %v4054_v9, %s5397_s24  ;;  %3291 = vst.msk [vmem:[#allocation3 + $0x40] sm:$0xf] %vm3274_vm12, %v3211_v12  ;;  %v2976_v12 = vsel %vm5915_vm14, %v2974_v63, %v2975_v0 }
 0x24f   : > { %4128 = vrot.lane.b32.xlu0 %v4058_v7, %s5397_s24  ;;  %v3692_v7 = vshrl.u32 %v3349_v59, 16 }
 0x250   : > { %v3213_v27 = vpop.permute.xlu1 %3212 }
 0x251   : > { %3292 = vst.msk [vmem:[#allocation3 + $0x44] sm:$0xf] %vm3274_vm12, %v3213_v27  ;;  %v3215_v11 = vpop.permute.xlu0 %3214  ;;  %v3694_v27 = vrot.slane %v3692_v7, 4 }
 0x252   : > { %4130 = vrot.lane.b32.xlu1 %v4061_v14, %s5397_s24  ;;  %3293 = vst.msk [vmem:[#allocation3 + $0x48] sm:$0xf] %vm3274_vm12, %v3215_v11  ;;  %v3701_v14 = vshll.u32 %v3350_v6, 16 }
 0x253   : > { %2142 = vrot.lane.b32.xlu0 %v2050_v26, %s5392_s9  ;;  %v3716_v26 = vshrl.u32 %v3352_v18, 16  ;;  %v4071_v18 = vrot.slane %v3914_v5, 5 }
 0x254   : > { %v3217_v49 = vpop.permute.xlu1 %3216  ;;  %v3703_v11 = vrot.slane %v3701_v14, 5  ;;  %v3915_v14 = vld [vmem:[#allocation2 + $0xd4] sm:$0x1] }
 0x255   : > { %3294 = vst.msk [vmem:[#allocation3 + $0x4c] sm:$0xf] %vm3274_vm12, %v3217_v49  ;;  %v3772_v35 = vpop.permute.xlu0 %3771  ;;  %v3351_v49 = vld [vmem:[#allocation2 + $0xc8] sm:$0x1]  ;;  %v3718_v2 = vrot.slane %v3716_v26, 4  ;;  %v4073_v23 = vrot.slane %v4071_v18, 4 }
 0x256   : > { %2144 = vrot.lane.b32.xlu1 %v2051_v30, %s5392_s9  ;;  %3852 = vst.msk [vmem:[#allocation3 + $0x40] sm:$0xf] %vm3835_vm13, %v3772_v35  ;;  %v3707_v30 = vrot.slane %v3705_v19, 4  ;;  %v3711_v21 = vshll.u32 %v3351_v49, 16 }
 0x257   : > { %2146 = vrot.lane.b32.xlu0 %v2052_v33, %s5392_s9  ;;  %v3698_v33 = vor.u32 %v3697_v25, %v3694_v27  ;;  %v3722_v43 = vor.u32 %v3721_v34, %v3718_v2  ;;  %v4074_v27 = vrot.slane %v3915_v14, 5 }
 0x258   : > { %v3774_v39 = vpop.permute.xlu1 %3773  ;;  %v3708_v1 = vor.u32 %v3707_v30, %v3703_v11  ;;  %v3713_v46 = vrot.slane %v3711_v21, 5 }
 0x259   : > { %3853 = vst.msk [vmem:[#allocation3 + $0x44] sm:$0xf] %vm3835_vm13, %v3774_v39  ;;  %v3776_v28 = vpop.permute.xlu0 %3775  ;;  %v3723_v57 = vrot.slane %v3722_v43, 4 }
 0x25a   : > { %2148 = vrot.lane.b32.xlu1 %v2053_v36, %s5392_s9  ;;  %3854 = vst.msk [vmem:[#allocation3 + $0x48] sm:$0xf] %vm3835_vm13, %v3776_v28  ;;  %v3143_v36 = vld [vmem:[#allocation2 + $0xc4] sm:$0xf]  ;;  %v3699_v28 = vrot.slane %v3698_v33, 4  ;;  %v3709_v48 = vrot.slane %v3708_v1, 4 }
 0x25b   : > { %2703 = vrot.lane.b32.xlu0 %v2612_v41, %s5393_s10  ;;  %v3354_v41 = vld [vmem:[#allocation2 + $0xd4] sm:$0x1]  ;;  %v3728_v6 = vsel %vm5499_vm9, %v3723_v57, %v3727_v37 }
 0x25c   : > { %v3778_v51 = vpop.permute.xlu1 %3777  ;;  %v3704_v56 = vsel %vm5499_vm9, %v3699_v28, %v3703_v11  ;;  %v3714_v59 = vsel %vm5499_vm9, %v3709_v48, %v3713_v46 }
 0x25d   : > { %3855 = vst.msk [vmem:[#allocation3 + $0x4c] sm:$0xf] %vm3835_vm13, %v3778_v51  ;;  %v4109_v58 = vpop.permute.xlu0 %4108  ;;  %v3735_v51 = vshll.u32 %v3354_v41, 16 }
 0x25e   : > { %2705 = vrot.lane.b32.xlu1 %v2622_v44, %s5393_s10  ;;  %4189 = vst.msk [vmem:[#allocation3 + $0x40] sm:$0xf] %vm4172_vm15, %v4109_v58 }
 0x25f   : > { %2707 = vrot.lane.b32.xlu0 %v2636_v54, %s5393_s10  ;;  %v3911_v54 = vld [vmem:[#allocation2 + $0xc4] sm:$0xf]  ;;  %v3737_v63 = vrot.slane %v3735_v51, 5 }
 0x260   : > { %v4111_v9 = vpop.permute.xlu1 %4110  ;;  %v4064_v0 = vrot.slane %v3911_v54, 5 }
 0x261   : > { %4190 = vst.msk [vmem:[#allocation3 + $0x44] sm:$0xf] %vm4172_vm15, %v4111_v9  ;;  %v4113_v15 = vpop.permute.xlu0 %4112  ;;  %v3912_v9 = vld [vmem:[#allocation2 + $0xc8] sm:$0x1] }
 0x262   : > { %2709 = vrot.lane.b32.xlu1 %v2646_v61, %s5393_s10  ;;  %4191 = vst.msk [vmem:[#allocation3 + $0x48] sm:$0xf] %vm4172_vm15, %v4113_v15  ;;  %v3733_v61 = vrot.slane %v3732_v50, 4  ;;  %v4066_v17 = vrot.slane %v4064_v0, 4  ;;  %v4067_v16 = vrot.slane %v3912_v9, 5 }
 0x263   : > { %3040 = vrot.lane.b32.xlu0 %v2973_v4, %s5394_s11  ;;  %v5060_v4 = vrot.slane %v3910_v10, 9 }
 0x264   : > { %v4115_v22 = vpop.permute.xlu1 %4114  ;;  %v3738_v15 = vsel %vm5499_vm9, %v3733_v61, %v3737_v63  ;;  %v4068_v47 = vsel %vm5915_vm14, %v4066_v17, %v4067_v16 }
 0x265   : > { %4192 = vst.msk [vmem:[#allocation3 + $0x4c] sm:$0xf] %vm4172_vm15, %v4115_v22  ;;  %v2127_v8 = vpop.permute.xlu0 %2126  ;;  %v4065_v19 = vsel %vm5915_vm14, %v5060_v4, %v4064_v0  ;;  %v5061_v22 = vrot.slane %v3913_v13, 9 }
 0x266   : > { %3042 = vrot.lane.b32.xlu1 %v2976_v12, %s5394_s11  ;;  %2203 = vst.msk [vmem:[#allocation3 + $0x50] sm:$0xf] %vm2182_vm4, %v2127_v8  ;;  %v4075_v8 = vsel %vm5915_vm14, %v4073_v23, %v4074_v27 }
 0x267   : > { %3044 = vrot.lane.b32.xlu0 %v2980_v62, %s5394_s11  ;;  %v4072_v26 = vsel %vm5915_vm14, %v5061_v22, %v4071_v18 }
 0x268   : > { %v2129_v55 = vpop.permute.xlu1 %2128  ;;  %v5369_v60 = vld [vmem:[#allocation3 + $0x40] sm:$0xff]  }
 0x269   : > { %2204 = vst.msk [vmem:[#allocation3 + $0x54] sm:$0xf] %vm2182_vm4, %v2129_v55  ;;  %5317 = vmatprep.mubr.msk.bf16.mxu1 %vm4337_vm2, %v5369_v60  ;;  %v2131_v35 = vpop.permute.xlu0 %2130 }
 0x26a   : > { %3046 = vrot.lane.b32.xlu1 %v2983_v29, %s5394_s11  ;;  %2205 = vst.msk [vmem:[#allocation3 + $0x58] sm:$0xf] %vm2182_vm4, %v2131_v35 }
 0x26b   : > { %3234 = vrot.lane.b32.xlu0 %v3142_v24, %s5395_s12 }
 0x26c   : > { %v2133_v39 = vpop.permute.xlu1 %2132  ;;  %v5370_v40 = vld [vmem:[#allocation3 + $0x48] sm:$0xff]  }
 0x26d   : > { %2206 = vst.msk [vmem:[#allocation3 + $0x5c] sm:$0xf] %vm2182_vm4, %v2133_v39  ;;  %5318 = vmatmul.mubr.msk.bf16.vlgmr.msra.gmra.mxu1 %vm4337_vm2, %v5370_v40  ;;  %v2688_v44 = vpop.permute.xlu0 %2687 }
 0x26e   : > { %3236 = vrot.lane.b32.xlu1 %v3143_v36, %s5395_s12  ;;  %2764 = vst.msk [vmem:[#allocation3 + $0x50] sm:$0xf] %vm2743_vm6, %v2688_v44 }
 0x26f   : > { %3238 = vrot.lane.b32.xlu0 %v3144_v42, %s5395_s12 }
 0x270   : > { %v2690_v53 = vpop.permute.xlu1 %2689 }
 0x271   : > { %2765 = vst.msk [vmem:[#allocation3 + $0x54] sm:$0xf] %vm2743_vm6, %v2690_v53  ;;  %v2692_v58 = vpop.permute.xlu0 %2691 }
 0x272   : > { %3240 = vrot.lane.b32.xlu1 %v3145_v45, %s5395_s12  ;;  %2766 = vst.msk [vmem:[#allocation3 + $0x58] sm:$0xf] %vm2743_vm6, %v2692_v58 }
 0x273   : > { %3795 = vrot.lane.b32.xlu0 %v3704_v56, %s5396_s15 }
 0x274   : > { %v2694_v3 = vpop.permute.xlu1 %2693 }
 0x275   : > { %2767 = vst.msk [vmem:[#allocation3 + $0x5c] sm:$0xf] %vm2743_vm6, %v2694_v3  ;;  %v3025_v7 = vpop.permute.xlu0 %3024 }
 0x276   : > { %3797 = vrot.lane.b32.xlu1 %v3714_v59, %s5396_s15  ;;  %3101 = vst.msk [vmem:[#allocation3 + $0x50] sm:$0xf] %vm3080_vm8, %v3025_v7 }
 0x277   : > { %3799 = vrot.lane.b32.xlu0 %v3728_v6, %s5396_s15 }
 0x278   : > { %v3027_v12 = vpop.permute.xlu1 %3026 }
 0x279   : > { %3102 = vst.msk [vmem:[#allocation3 + $0x54] sm:$0xf] %vm3080_vm8, %v3027_v12  ;;  %v3029_v62 = vpop.permute.xlu0 %3028 }
 0x27a   : > { %3801 = vrot.lane.b32.xlu1 %v3738_v15, %s5396_s15  ;;  %3103 = vst.msk [vmem:[#allocation3 + $0x58] sm:$0xf] %vm3080_vm8, %v3029_v62 }
 0x27b   : > { %4132 = vrot.lane.b32.xlu0 %v4065_v19, %s5397_s24 }
 0x27c   : > { %v3031_v25 = vpop.permute.xlu1 %3030 }
 0x27d   : > { %3104 = vst.msk [vmem:[#allocation3 + $0x5c] sm:$0xf] %vm3080_vm8, %v3031_v25  ;;  %v3219_v20 = vpop.permute.xlu0 %3218 }
 0x27e   : > { %4134 = vrot.lane.b32.xlu1 %v4068_v47, %s5397_s24  ;;  %3295 = vst.msk [vmem:[#allocation3 + $0x50] sm:$0xf] %vm3274_vm12, %v3219_v20 }
 0x27f   : > { %4136 = vrot.lane.b32.xlu0 %v4072_v26, %s5397_s24 }
 0x280   : > { %v3221_v29 = vpop.permute.xlu1 %3220 }
 0x281   : > { %3296 = vst.msk [vmem:[#allocation3 + $0x54] sm:$0xf] %vm3274_vm12, %v3221_v29  ;;  %v3223_v11 = vpop.permute.xlu0 %3222 }
 0x282   : > { %4138 = vrot.lane.b32.xlu1 %v4075_v8, %s5397_s24  ;;  %3297 = vst.msk [vmem:[#allocation3 + $0x58] sm:$0xf] %vm3274_vm12, %v3223_v11 }
 0x284   : > { %v3225_v30 = vpop.permute.xlu1 %3224 }
 0x285   : > { %3298 = vst.msk [vmem:[#allocation3 + $0x5c] sm:$0xf] %vm3274_vm12, %v3225_v30  ;;  %v3780_v31 = vpop.permute.xlu0 %3779 }
 0x286   : > { %3856 = vst.msk [vmem:[#allocation3 + $0x50] sm:$0xf] %vm3835_vm13, %v3780_v31 }
 0x288   : > { %v3782_v32 = vpop.permute.xlu1 %3781 }
 0x289   : > { %3857 = vst.msk [vmem:[#allocation3 + $0x54] sm:$0xf] %vm3835_vm13, %v3782_v32  ;;  %v5303_v52 = vpop.f32.mrf.mxu0  ;;  %v3784_v55 = vpop.permute.xlu0 %3783 }
 0x28a   : > { %v5167_v60 = vpack.c.bf16 %v5303_v52, %v5303_v52  ;;  %3858 = vst.msk [vmem:[#allocation3 + $0x58] sm:$0xf] %vm3835_vm13, %v3784_v55  ;;  %v4784_v1 = vmul.f32 %v5303_v52, %v5303_v52  ;;  %v4715_v43 = vsel %vm4711_vm5, %v5303_v52, 0.0 }
 0x28b   : > { %v4424_v24 = vpop.f32.mrf.mxu0 }
 0x28c   : > { %v3786_v49 = vpop.permute.xlu1 %3785  ;;  %4681 = vst.msk [vmem:[%s6753_s30 + $0x8] sm:$0xf] %vm411_vm0, %v5167_v60  ;;  %v5165_v33 = vpack.c.bf16 %v4424_v24, %v4424_v24  ;;  %v4782_v35 = vmul.f32 %v4424_v24, %v4424_v24  ;;  %v4712_v38 = vsel %vm4711_vm5, %v4424_v24, 0.0  ;;  %v4817_v53 = vsel %vm4711_vm5, %v4784_v1, 0.0 }
 0x28d   : > { %3859 = vst.msk [vmem:[#allocation3 + $0x5c] sm:$0xf] %vm3835_vm13, %v3786_v49  ;;  %v5304_v2 = vpop.f32.mrf.mxu0  ;;  %v4117_v34 = vpop.permute.xlu0 %4116 }
 0x28e   : > { %4679 = vst.msk [vmem:[%s6753_s30] sm:$0xf] %vm411_vm0, %v5165_v33  ;;  %v5168_v36 = vpack.c.bf16 %v5304_v2, %v5304_v2  ;;  %v4814_v44 = vsel %vm4711_vm5, %v4782_v35, 0.0  ;;  %v4785_v45 = vmul.f32 %v5304_v2, %v5304_v2  ;;  %v4717_v54 = vsel %vm4711_vm5, %v5304_v2, 0.0 }
 0x28f   : > { %4193 = vst.msk [vmem:[#allocation3 + $0x50] sm:$0xf] %vm4172_vm15, %v4117_v34  ;;  %v4427_v37 = vpop.f32.mrf.mxu0 }
 0x290   : > { %v4119_v21 = vpop.permute.xlu1 %4118  ;;  %4682 = vst.msk [vmem:[%s6753_s30 + $0xc] sm:$0xf] %vm411_vm0, %v5168_v36  ;;  %v5166_v39 = vpack.c.bf16 %v4427_v37, %v4427_v37  ;;  %v4713_v40 = vsel %vm4711_vm5, %v4427_v37, 0.0  ;;  %v4783_v41 = vmul.f32 %v4427_v37, %v4427_v37  ;;  %v4819_v10 = vsel %vm4711_vm5, %v4785_v45, 0.0 }
 0x291   : > { %4194 = vst.msk [vmem:[#allocation3 + $0x54] sm:$0xf] %vm4172_vm15, %v4119_v21  ;;  %v4714_v42 = vadd.f32 %v4713_v40, %v4712_v38  ;;  %v4121_v28 = vpop.permute.xlu0 %4120 }
 0x292   : > { %4680 = vst.msk [vmem:[%s6753_s30 + $0x4] sm:$0xf] %vm411_vm0, %v5166_v39  ;;  %v4815_v48 = vsel %vm4711_vm5, %v4783_v41, 0.0 }
 0x293   : > { %4195 = vst.msk [vmem:[#allocation3 + $0x58] sm:$0xf] %vm4172_vm15, %v4121_v28  ;;  %v4716_v46 = vadd.f32 %v4715_v43, %v4714_v42  ;;  %v4816_v50 = vadd.f32 %v4815_v48, %v4814_v44 }
 0x294   : > { %v4123_v51 = vpop.permute.xlu1 %4122 }
 0x295   : > { %4196 = vst.msk [vmem:[#allocation3 + $0x5c] sm:$0xf] %vm4172_vm15, %v4123_v51  ;;  %v4818_v56 = vadd.f32 %v4817_v53, %v4816_v50  ;;  %v2135_v57 = vpop.permute.xlu0 %2134  ;;  %v4718_v58 = vadd.f32 %v4717_v54, %v4716_v46 }
 0x296   : > { %2207 = vst.msk [vmem:[#allocation3 + $0x60] sm:$0xf] %vm2182_vm4, %v2135_v57 }
 0x297   : > { %v4820_v63 = vadd.f32 %v4819_v10, %v4818_v56 }
 0x298   : > { %v2137_v59 = vpop.permute.xlu1 %2136  ;;  %v5371_v61 = vld [vmem:[#allocation3 + $0x50] sm:$0xff]  }
 0x299   : > { %2208 = vst.msk [vmem:[#allocation3 + $0x64] sm:$0xf] %vm2182_vm4, %v2137_v59  ;;  %5321 = vmatprep.mubr.msk.bf16.mxu1 %vm4337_vm2, %v5371_v61  ;;  %v2139_v0 = vpop.permute.xlu0 %2138 }
 0x29a   : > { %2209 = vst.msk [vmem:[#allocation3 + $0x68] sm:$0xf] %vm2182_vm4, %v2139_v0 }
 0x29c   : > { %v2141_v3 = vpop.permute.xlu1 %2140  ;;  %v5372_v9 = vld [vmem:[#allocation3 + $0x58] sm:$0xff]  }
 0x29d   : > { %2210 = vst.msk [vmem:[#allocation3 + $0x6c] sm:$0xf] %vm2182_vm4, %v2141_v3  ;;  %5322 = vmatmul.mubr.msk.bf16.gmra.mxu1 %vm4337_vm2, %v5372_v9  ;;  %v2696_v5 = vpop.permute.xlu0 %2695 }
 0x29e   : > { %2768 = vst.msk [vmem:[#allocation3 + $0x60] sm:$0xf] %vm2743_vm6, %v2696_v5 }
 0x2a0   : > { %v2698_v6 = vpop.permute.xlu1 %2697 }
 0x2a1   : > { %2769 = vst.msk [vmem:[#allocation3 + $0x64] sm:$0xf] %vm2743_vm6, %v2698_v6  ;;  %v2700_v4 = vpop.permute.xlu0 %2699 }
 0x2a2   : > { %2770 = vst.msk [vmem:[#allocation3 + $0x68] sm:$0xf] %vm2743_vm6, %v2700_v4 }
 0x2a4   : > { %v2702_v7 = vpop.permute.xlu1 %2701 }
 0x2a5   : > { %2771 = vst.msk [vmem:[#allocation3 + $0x6c] sm:$0xf] %vm2743_vm6, %v2702_v7  ;;  %v3033_v13 = vpop.permute.xlu0 %3032 }
 0x2a6   : > { %3105 = vst.msk [vmem:[#allocation3 + $0x60] sm:$0xf] %vm3080_vm8, %v3033_v13 }
 0x2a8   : > { %v3035_v15 = vpop.permute.xlu1 %3034 }
 0x2a9   : > { %3106 = vst.msk [vmem:[#allocation3 + $0x64] sm:$0xf] %vm3080_vm8, %v3035_v15  ;;  %v3037_v17 = vpop.permute.xlu0 %3036 }
 0x2aa   : > { %3107 = vst.msk [vmem:[#allocation3 + $0x68] sm:$0xf] %vm3080_vm8, %v3037_v17 }
 0x2ac   : > { %v3039_v16 = vpop.permute.xlu1 %3038 }
 0x2ad   : > { %3108 = vst.msk [vmem:[#allocation3 + $0x6c] sm:$0xf] %vm3080_vm8, %v3039_v16  ;;  %v3227_v18 = vpop.permute.xlu0 %3226 }
 0x2ae   : > { %3299 = vst.msk [vmem:[#allocation3 + $0x60] sm:$0xf] %vm3274_vm12, %v3227_v18 }
 0x2b0   : > { %v3229_v12 = vpop.permute.xlu1 %3228 }
 0x2b1   : > { %3300 = vst.msk [vmem:[#allocation3 + $0x64] sm:$0xf] %vm3274_vm12, %v3229_v12  ;;  %v5307_v14 = vpop.f32.mrf.mxu0  ;;  %v3231_v19 = vpop.permute.xlu0 %3230 }
 0x2b2   : > { %v5171_v22 = vpack.c.bf16 %v5307_v14, %v5307_v14  ;;  %3301 = vst.msk [vmem:[#allocation3 + $0x68] sm:$0xf] %vm3274_vm12, %v3231_v19  ;;  %v4788_v52 = vmul.f32 %v5307_v14, %v5307_v14  ;;  %v4723_v2 = vsel %vm4711_vm5, %v5307_v14, 0.0 }
 0x2b3   : > { %v4440_v47 = vpop.f32.mrf.mxu0 }
 0x2b4   : > { %v3233_v62 = vpop.permute.xlu1 %3232  ;;  %4685 = vst.msk [vmem:[%s6753_s30 + $0x18] sm:$0xf] %vm411_vm0, %v5171_v22  ;;  %v5169_v23 = vpack.c.bf16 %v4440_v47, %v4440_v47  ;;  %v4719_v27 = vsel %vm4711_vm5, %v4440_v47, 0.0  ;;  %v4786_v25 = vmul.f32 %v4440_v47, %v4440_v47  ;;  %v4825_v37 = vsel %vm4711_vm5, %v4788_v52, 0.0 }
 0x2b5   : > { %3302 = vst.msk [vmem:[#allocation3 + $0x6c] sm:$0xf] %vm3274_vm12, %v3233_v62  ;;  %v4720_v26 = vadd.f32 %v4719_v27, %v4718_v58  ;;  %v5308_v20 = vpop.f32.mrf.mxu0  ;;  %v3788_v8 = vpop.permute.xlu0 %3787 }
 0x2b6   : > { %4683 = vst.msk [vmem:[%s6753_s30 + $0x10] sm:$0xf] %vm411_vm0, %v5169_v23  ;;  %v4821_v29 = vsel %vm4711_vm5, %v4786_v25, 0.0  ;;  %v5172_v11 = vpack.c.bf16 %v5308_v20, %v5308_v20  ;;  %v4789_v34 = vmul.f32 %v5308_v20, %v5308_v20  ;;  %v4725_v38 = vsel %vm4711_vm5, %v5308_v20, 0.0 }
 0x2b7   : > { %3860 = vst.msk [vmem:[#allocation3 + $0x60] sm:$0xf] %vm3835_vm13, %v3788_v8  ;;  %v4822_v30 = vadd.f32 %v4821_v29, %v4820_v63  ;;  %v4443_v32 = vpop.f32.mrf.mxu0 }
 0x2b8   : > { %v3790_v31 = vpop.permute.xlu1 %3789  ;;  %4686 = vst.msk [vmem:[%s6753_s30 + $0x1c] sm:$0xf] %vm411_vm0, %v5172_v11  ;;  %v5170_v55 = vpack.c.bf16 %v4443_v32, %v4443_v32  ;;  %v4721_v60 = vsel %vm4711_vm5, %v4443_v32, 0.0  ;;  %v4787_v49 = vmul.f32 %v4443_v32, %v4443_v32  ;;  %v4827_v42 = vsel %vm4711_vm5, %v4789_v34, 0.0 }
 0x2b9   : > { %3861 = vst.msk [vmem:[#allocation3 + $0x64] sm:$0xf] %vm3835_vm13, %v3790_v31  ;;  %v4722_v24 = vadd.f32 %v4721_v60, %v4720_v26  ;;  %v3792_v33 = vpop.permute.xlu0 %3791 }
 0x2ba   : > { %4684 = vst.msk [vmem:[%s6753_s30 + $0x14] sm:$0xf] %vm411_vm0, %v5170_v55  ;;  %v4823_v35 = vsel %vm4711_vm5, %v4787_v49, 0.0 }
 0x2bb   : > { %3862 = vst.msk [vmem:[#allocation3 + $0x68] sm:$0xf] %vm3835_vm13, %v3792_v33  ;;  %v4724_v36 = vadd.f32 %v4723_v2, %v4722_v24  ;;  %v4824_v1 = vadd.f32 %v4823_v35, %v4822_v30 }
 0x2bc   : > { %v3794_v21 = vpop.permute.xlu1 %3793 }
 0x2bd   : > { %3863 = vst.msk [vmem:[#allocation3 + $0x6c] sm:$0xf] %vm3835_vm13, %v3794_v21  ;;  %v4826_v39 = vadd.f32 %v4825_v37, %v4824_v1  ;;  %v4125_v40 = vpop.permute.xlu0 %4124  ;;  %v4726_v41 = vadd.f32 %v4725_v38, %v4724_v36 }
 0x2be   : > { %4197 = vst.msk [vmem:[#allocation3 + $0x60] sm:$0xf] %vm4172_vm15, %v4125_v40 }
 0x2bf   : > { %v4828_v43 = vadd.f32 %v4827_v42, %v4826_v39 }
 0x2c0   : > { %v4127_v28 = vpop.permute.xlu1 %4126 }
 0x2c1   : > { %4198 = vst.msk [vmem:[#allocation3 + $0x64] sm:$0xf] %vm4172_vm15, %v4127_v28  ;;  %v4129_v44 = vpop.permute.xlu0 %4128 }
 0x2c2   : > { %4199 = vst.msk [vmem:[#allocation3 + $0x68] sm:$0xf] %vm4172_vm15, %v4129_v44 }
 0x2c4   : > { %v4131_v45 = vpop.permute.xlu1 %4130 }
 0x2c5   : > { %4200 = vst.msk [vmem:[#allocation3 + $0x6c] sm:$0xf] %vm4172_vm15, %v4131_v45  ;;  %v2143_v48 = vpop.permute.xlu0 %2142 }
 0x2c6   : > { %2211 = vst.msk [vmem:[#allocation3 + $0x70] sm:$0xf] %vm2182_vm4, %v2143_v48 }
 0x2c8   : > { %v2145_v46 = vpop.permute.xlu1 %2144  ;;  %v5373_v50 = vld [vmem:[#allocation3 + $0x60] sm:$0xff]  }
 0x2c9   : > { %2212 = vst.msk [vmem:[#allocation3 + $0x74] sm:$0xf] %vm2182_vm4, %v2145_v46  ;;  %5325 = vmatprep.mubr.msk.bf16.mxu1 %vm4337_vm2, %v5373_v50  ;;  %v2147_v51 = vpop.permute.xlu0 %2146 }
 0x2ca   : > { %2213 = vst.msk [vmem:[#allocation3 + $0x78] sm:$0xf] %vm2182_vm4, %v2147_v51 }
 0x2cc   : > { %v2149_v53 = vpop.permute.xlu1 %2148  ;;  %v5374_v54 = vld [vmem:[#allocation3 + $0x68] sm:$0xff]  }
 0x2cd   : > { %2214 = vst.msk [vmem:[#allocation3 + $0x7c] sm:$0xf] %vm2182_vm4, %v2149_v53  ;;  %5326 = vmatmul.mubr.msk.bf16.gmra.mxu1 %vm4337_vm2, %v5374_v54  ;;  %v2704_v56 = vpop.permute.xlu0 %2703 }
 0x2ce   : > { %2772 = vst.msk [vmem:[#allocation3 + $0x70] sm:$0xf] %vm2743_vm6, %v2704_v56 }
 0x2d0   : > { %v2706_v57 = vpop.permute.xlu1 %2705 }
 0x2d1   : > { %2773 = vst.msk [vmem:[#allocation3 + $0x74] sm:$0xf] %vm2743_vm6, %v2706_v57  ;;  %v2708_v58 = vpop.permute.xlu0 %2707 }
 0x2d2   : > { %2774 = vst.msk [vmem:[#allocation3 + $0x78] sm:$0xf] %vm2743_vm6, %v2708_v58 }
 0x2d4   : > { %v2710_v10 = vpop.permute.xlu1 %2709 }
 0x2d5   : > { %2775 = vst.msk [vmem:[#allocation3 + $0x7c] sm:$0xf] %vm2743_vm6, %v2710_v10  ;;  %v3041_v59 = vpop.permute.xlu0 %3040 }
 0x2d6   : > { %3109 = vst.msk [vmem:[#allocation3 + $0x70] sm:$0xf] %vm3080_vm8, %v3041_v59 }
 0x2d8   : > { %v3043_v61 = vpop.permute.xlu1 %3042 }
 0x2d9   : > { %3110 = vst.msk [vmem:[#allocation3 + $0x74] sm:$0xf] %vm3080_vm8, %v3043_v61  ;;  %v5311_v63 = vpop.f32.mrf.mxu0  ;;  %v3045_v0 = vpop.permute.xlu0 %3044 }
 0x2da   : > { %v5175_v3 = vpack.c.bf16 %v5311_v63, %v5311_v63  ;;  %3111 = vst.msk [vmem:[#allocation3 + $0x78] sm:$0xf] %vm3080_vm8, %v3045_v0  ;;  %v4792_v22 = vmul.f32 %v5311_v63, %v5311_v63  ;;  %v4731_v26 = vsel %vm4711_vm5, %v5311_v63, 0.0 }
 0x2db   : > { %v4456_v5 = vpop.f32.mrf.mxu0 }
 0x2dc   : > { %v3047_v9 = vpop.permute.xlu1 %3046  ;;  %4689 = vst.msk [vmem:[%s6753_s30 + $0x28] sm:$0xf] %vm411_vm0, %v5175_v3  ;;  %v5173_v6 = vpack.c.bf16 %v4456_v5, %v4456_v5  ;;  %v4727_v4 = vsel %vm4711_vm5, %v4456_v5, 0.0  ;;  %v4790_v7 = vmul.f32 %v4456_v5, %v4456_v5  ;;  %v4833_v31 = vsel %vm4711_vm5, %v4792_v22, 0.0 }
 0x2dd   : > { %3112 = vst.msk [vmem:[#allocation3 + $0x7c] sm:$0xf] %vm3080_vm8, %v3047_v9  ;;  %v4728_v13 = vadd.f32 %v4727_v4, %v4726_v41  ;;  %v5312_v15 = vpop.f32.mrf.mxu0  ;;  %v3235_v17 = vpop.permute.xlu0 %3234 }
 0x2de   : > { %4687 = vst.msk [vmem:[%s6753_s30 + $0x20] sm:$0xf] %vm411_vm0, %v5173_v6  ;;  %v4829_v16 = vsel %vm4711_vm5, %v4790_v7, 0.0  ;;  %v5176_v18 = vpack.c.bf16 %v5312_v15, %v5312_v15  ;;  %v4793_v20 = vmul.f32 %v5312_v15, %v5312_v15  ;;  %v4733_v32 = vsel %vm4711_vm5, %v5312_v15, 0.0 }
 0x2df   : > { %3303 = vst.msk [vmem:[#allocation3 + $0x70] sm:$0xf] %vm3274_vm12, %v3235_v17  ;;  %v4830_v12 = vadd.f32 %v4829_v16, %v4828_v43  ;;  %v4459_v19 = vpop.f32.mrf.mxu0 }
 0x2e0   : > { %v3237_v14 = vpop.permute.xlu1 %3236  ;;  %4690 = vst.msk [vmem:[%s6753_s30 + $0x2c] sm:$0xf] %vm411_vm0, %v5176_v18  ;;  %v5174_v62 = vpack.c.bf16 %v4459_v19, %v4459_v19  ;;  %v4729_v47 = vsel %vm4711_vm5, %v4459_v19, 0.0  ;;  %v4791_v23 = vmul.f32 %v4459_v19, %v4459_v19  ;;  %v4835_v49 = vsel %vm4711_vm5, %v4793_v20, 0.0 }
 0x2e1   : > { %3304 = vst.msk [vmem:[#allocation3 + $0x74] sm:$0xf] %vm3274_vm12, %v3237_v14  ;;  %v4730_v27 = vadd.f32 %v4729_v47, %v4728_v13  ;;  %v3239_v25 = vpop.permute.xlu0 %3238 }
 0x2e2   : > { %4688 = vst.msk [vmem:[%s6753_s30 + $0x24] sm:$0xf] %vm411_vm0, %v5174_v62  ;;  %v4831_v8 = vsel %vm4711_vm5, %v4791_v23, 0.0 }
 0x2e3   : > { %3305 = vst.msk [vmem:[#allocation3 + $0x78] sm:$0xf] %vm3274_vm12, %v3239_v25  ;;  %v4732_v29 = vadd.f32 %v4731_v26, %v4730_v27  ;;  %v4832_v11 = vadd.f32 %v4831_v8, %v4830_v12 }
 0x2e4   : > { %v3241_v30 = vpop.permute.xlu1 %3240 }
 0x2e5   : > { %3306 = vst.msk [vmem:[#allocation3 + $0x7c] sm:$0xf] %vm3274_vm12, %v3241_v30  ;;  %v4834_v52 = vadd.f32 %v4833_v31, %v4832_v11  ;;  %v3796_v55 = vpop.permute.xlu0 %3795  ;;  %v4734_v60 = vadd.f32 %v4733_v32, %v4732_v29 }
 0x2e6   : > { %3864 = vst.msk [vmem:[#allocation3 + $0x70] sm:$0xf] %vm3835_vm13, %v3796_v55 }
 0x2e7   : > { %v4836_v33 = vadd.f32 %v4835_v49, %v4834_v52 }
 0x2e8   : > { %v3798_v24 = vpop.permute.xlu1 %3797 }
 0x2e9   : > { %3865 = vst.msk [vmem:[#allocation3 + $0x74] sm:$0xf] %vm3835_vm13, %v3798_v24  ;;  %v3800_v2 = vpop.permute.xlu0 %3799 }
 0x2ea   : > { %3866 = vst.msk [vmem:[#allocation3 + $0x78] sm:$0xf] %vm3835_vm13, %v3800_v2 }
 0x2ec   : > { %v3802_v34 = vpop.permute.xlu1 %3801 }
 0x2ed   : > { %3867 = vst.msk [vmem:[#allocation3 + $0x7c] sm:$0xf] %vm3835_vm13, %v3802_v34  ;;  %v4133_v35 = vpop.permute.xlu0 %4132 }
 0x2ee   : > { %4201 = vst.msk [vmem:[#allocation3 + $0x70] sm:$0xf] %vm4172_vm15, %v4133_v35 }
 0x2f0   : > { %v4135_v36 = vpop.permute.xlu1 %4134 }
 0x2f1   : > { %4202 = vst.msk [vmem:[#allocation3 + $0x74] sm:$0xf] %vm4172_vm15, %v4135_v36  ;;  %v4137_v1 = vpop.permute.xlu0 %4136 }
 0x2f2   : > { %4203 = vst.msk [vmem:[#allocation3 + $0x78] sm:$0xf] %vm4172_vm15, %v4137_v1 }
 0x2f4   : > { %v4139_v21 = vpop.permute.xlu1 %4138 }
 0x2f5   : > { %4204 = vst.msk [vmem:[#allocation3 + $0x7c] sm:$0xf] %vm4172_vm15, %v4139_v21 }
 0x2f8   : > { %v5375_v37 = vld [vmem:[#allocation3 + $0x70] sm:$0xff]  }
 0x2f9   : > { %5329 = vmatprep.mubr.msk.bf16.mxu1 %vm4337_vm2, %v5375_v37 }
 0x2fc   : > { %v5376_v38 = vld [vmem:[#allocation3 + $0x78] sm:$0xff]  }
 0x2fd   : > { %5330 = vmatmul.mubr.msk.bf16.gmra.mxu1 %vm4337_vm2, %v5376_v38 }
 0x301   : > { %v5315_v39 = vpop.f32.mrf.mxu0 }
 0x302   : > { %v5179_v40 = vpack.c.bf16 %v5315_v39, %v5315_v39  ;;  %v4796_v53 = vmul.f32 %v5315_v39, %v5315_v39  ;;  %v4739_v10 = vsel %vm4711_vm5, %v5315_v39, 0.0 }
 0x303   : > { %v4472_v41 = vpop.f32.mrf.mxu0 }
 0x304   : > { %4693 = vst.msk [vmem:[%s6753_s30 + $0x38] sm:$0xf] %vm411_vm0, %v5179_v40  ;;  %v5177_v42 = vpack.c.bf16 %v4472_v41, %v4472_v41  ;;  %v4735_v28 = vsel %vm4711_vm5, %v4472_v41, 0.0  ;;  %v4794_v43 = vmul.f32 %v4472_v41, %v4472_v41  ;;  %v4841_v3 = vsel %vm4711_vm5, %v4796_v53, 0.0 }
 0x305   : > { %v4736_v44 = vadd.f32 %v4735_v28, %v4734_v60  ;;  %v5316_v45 = vpop.f32.mrf.mxu0 }
 0x306   : > { %4691 = vst.msk [vmem:[%s6753_s30 + $0x30] sm:$0xf] %vm411_vm0, %v5177_v42  ;;  %v4837_v48 = vsel %vm4711_vm5, %v4794_v43, 0.0  ;;  %v5180_v46 = vpack.c.bf16 %v5316_v45, %v5316_v45  ;;  %v4797_v59 = vmul.f32 %v5316_v45, %v5316_v45  ;;  %v4741_v9 = vsel %vm4711_vm5, %v5316_v45, 0.0 }
 0x307   : > { %v4838_v50 = vadd.f32 %v4837_v48, %v4836_v33  ;;  %v4475_v51 = vpop.f32.mrf.mxu0 }
 0x308   : > { %4694 = vst.msk [vmem:[%s6753_s30 + $0x3c] sm:$0xf] %vm411_vm0, %v5180_v46  ;;  %v5178_v54 = vpack.c.bf16 %v4475_v51, %v4475_v51  ;;  %v4737_v56 = vsel %vm4711_vm5, %v4475_v51, 0.0  ;;  %v4795_v57 = vmul.f32 %v4475_v51, %v4475_v51  ;;  %v4843_v4 = vsel %vm4711_vm5, %v4797_v59, 0.0 }
 0x309   : > { %v4738_v58 = vadd.f32 %v4737_v56, %v4736_v44 }
 0x30a   : > { %4692 = vst.msk [vmem:[%s6753_s30 + $0x34] sm:$0xf] %vm411_vm0, %v5178_v54  ;;  %v4839_v61 = vsel %vm4711_vm5, %v4795_v57, 0.0 }
 0x30b   : > { %v4740_v63 = vadd.f32 %v4739_v10, %v4738_v58  ;;  %v4840_v0 = vadd.f32 %v4839_v61, %v4838_v50 }
 0x30d   : > { %v4842_v5 = vadd.f32 %v4841_v3, %v4840_v0  ;;  %v4742_v6 = vadd.f32 %v4741_v9, %v4740_v63 }
 0x30f   : > { %v4844_v7 = vadd.f32 %v4843_v4, %v4842_v5 }
 0x32d   : > { %v5319_v13 = vpop.f32.mrf.mxu1 }
 0x32e   : > { %v5183_v15 = vpack.c.bf16 %v5319_v13, %v5319_v13  ;;  %v4800_v27 = vmul.f32 %v5319_v13, %v5319_v13  ;;  %v4747_v29 = vsel %vm4711_vm5, %v5319_v13, 0.0 }
 0x32f   : > { %v4488_v17 = vpop.f32.mrf.mxu1 }
 0x330   : > { %4697 = vst.msk [vmem:[%s6753_s30 + $0x48] sm:$0xf] %vm411_vm0, %v5183_v15  ;;  %v5181_v16 = vpack.c.bf16 %v4488_v17, %v4488_v17  ;;  %v4743_v18 = vsel %vm4711_vm5, %v4488_v17, 0.0  ;;  %v4798_v12 = vmul.f32 %v4488_v17, %v4488_v17  ;;  %v4849_v52 = vsel %vm4711_vm5, %v4800_v27, 0.0 }
 0x331   : > { %v4744_v14 = vadd.f32 %v4743_v18, %v4742_v6  ;;  %v5320_v19 = vpop.f32.mrf.mxu1 }
 0x332   : > { %4695 = vst.msk [vmem:[%s6753_s30 + $0x40] sm:$0xf] %vm411_vm0, %v5181_v16  ;;  %v4845_v22 = vsel %vm4711_vm5, %v4798_v12, 0.0  ;;  %v5184_v62 = vpack.c.bf16 %v5320_v19, %v5320_v19  ;;  %v4801_v11 = vmul.f32 %v5320_v19, %v5320_v19  ;;  %v4749_v55 = vsel %vm4711_vm5, %v5320_v19, 0.0 }
 0x333   : > { %v4846_v47 = vadd.f32 %v4845_v22, %v4844_v7  ;;  %v4491_v23 = vpop.f32.mrf.mxu1 }
 0x334   : > { %4698 = vst.msk [vmem:[%s6753_s30 + $0x4c] sm:$0xf] %vm411_vm0, %v5184_v62  ;;  %v5182_v25 = vpack.c.bf16 %v4491_v23, %v4491_v23  ;;  %v4745_v26 = vsel %vm4711_vm5, %v4491_v23, 0.0  ;;  %v4799_v20 = vmul.f32 %v4491_v23, %v4491_v23  ;;  %v4851_v24 = vsel %vm4711_vm5, %v4801_v11, 0.0 }
 0x335   : > { %v4746_v8 = vadd.f32 %v4745_v26, %v4744_v14 }
 0x336   : > { %4696 = vst.msk [vmem:[%s6753_s30 + $0x44] sm:$0xf] %vm411_vm0, %v5182_v25  ;;  %v4847_v30 = vsel %vm4711_vm5, %v4799_v20, 0.0 }
 0x337   : > { %v4748_v31 = vadd.f32 %v4747_v29, %v4746_v8  ;;  %v4848_v32 = vadd.f32 %v4847_v30, %v4846_v47 }
 0x339   : > { %v4850_v60 = vadd.f32 %v4849_v52, %v4848_v32  ;;  %v4750_v49 = vadd.f32 %v4749_v55, %v4748_v31 }
 0x33b   : > { %v4852_v33 = vadd.f32 %v4851_v24, %v4850_v60 }
 0x35d   : > { %v5323_v2 = vpop.f32.mrf.mxu1 }
 0x35e   : > { %v5187_v34 = vpack.c.bf16 %v5323_v2, %v5323_v2  ;;  %v4804_v28 = vmul.f32 %v5323_v2, %v5323_v2  ;;  %v4755_v46 = vsel %vm4711_vm5, %v5323_v2, 0.0 }
 0x35f   : > { %v4504_v35 = vpop.f32.mrf.mxu1 }
 0x360   : > { %4701 = vst.msk [vmem:[%s6753_s30 + $0x58] sm:$0xf] %vm411_vm0, %v5187_v34  ;;  %v5185_v36 = vpack.c.bf16 %v4504_v35, %v4504_v35  ;;  %v4751_v1 = vsel %vm4711_vm5, %v4504_v35, 0.0  ;;  %v4802_v21 = vmul.f32 %v4504_v35, %v4504_v35  ;;  %v4857_v56 = vsel %vm4711_vm5, %v4804_v28, 0.0 }
 0x361   : > { %v4752_v37 = vadd.f32 %v4751_v1, %v4750_v49  ;;  %v5324_v38 = vpop.f32.mrf.mxu1 }
 0x362   : > { %4699 = vst.msk [vmem:[%s6753_s30 + $0x50] sm:$0xf] %vm411_vm0, %v5185_v36  ;;  %v4853_v39 = vsel %vm4711_vm5, %v4802_v21, 0.0  ;;  %v5188_v40 = vpack.c.bf16 %v5324_v38, %v5324_v38  ;;  %v4805_v50 = vmul.f32 %v5324_v38, %v5324_v38  ;;  %v4757_v57 = vsel %vm4711_vm5, %v5324_v38, 0.0 }
 0x363   : > { %v4854_v41 = vadd.f32 %v4853_v39, %v4852_v33  ;;  %v4507_v42 = vpop.f32.mrf.mxu1 }
 0x364   : > { %4702 = vst.msk [vmem:[%s6753_s30 + $0x5c] sm:$0xf] %vm411_vm0, %v5188_v40  ;;  %v5186_v43 = vpack.c.bf16 %v4507_v42, %v4507_v42  ;;  %v4753_v44 = vsel %vm4711_vm5, %v4507_v42, 0.0  ;;  %v4803_v45 = vmul.f32 %v4507_v42, %v4507_v42  ;;  %v4859_v59 = vsel %vm4711_vm5, %v4805_v50, 0.0 }
 0x365   : > { %v4754_v48 = vadd.f32 %v4753_v44, %v4752_v37 }
 0x366   : > { %4700 = vst.msk [vmem:[%s6753_s30 + $0x54] sm:$0xf] %vm411_vm0, %v5186_v43  ;;  %v4855_v51 = vsel %vm4711_vm5, %v4803_v45, 0.0 }
 0x367   : > { %v4756_v53 = vadd.f32 %v4755_v46, %v4754_v48  ;;  %v4856_v54 = vadd.f32 %v4855_v51, %v4854_v41 }
 0x369   : > { %v4858_v58 = vadd.f32 %v4857_v56, %v4856_v54  ;;  %v4758_v10 = vadd.f32 %v4757_v57, %v4756_v53 }
 0x36b   : > { %v4860_v61 = vadd.f32 %v4859_v59, %v4858_v58 }
 0x38d   : > { %v5327_v63 = vpop.f32.mrf.mxu1 }
 0x38e   : > { %v5191_v0 = vpack.c.bf16 %v5327_v63, %v5327_v63  ;;  %v4808_v62 = vmul.f32 %v5327_v63, %v5327_v63  ;;  %v4763_v23 = vsel %vm4711_vm5, %v5327_v63, 0.0 }
 0x38f   : > { %v4520_v3 = vpop.f32.mrf.mxu1 }
 0x390   : > { %4705 = vst.msk [vmem:[%s6753_s30 + $0x68] sm:$0xf] %vm411_vm0, %v5191_v0  ;;  %v5189_v9 = vpack.c.bf16 %v4520_v3, %v4520_v3  ;;  %v4806_v13 = vmul.f32 %v4520_v3, %v4520_v3  ;;  %v4759_v15 = vsel %vm4711_vm5, %v4520_v3, 0.0  ;;  %v4865_v26 = vsel %vm4711_vm5, %v4808_v62, 0.0 }
 0x391   : > { %v5328_v5 = vpop.f32.mrf.mxu1  ;;  %v4760_v12 = vadd.f32 %v4759_v15, %v4758_v10 }
 0x392   : > { %4703 = vst.msk [vmem:[%s6753_s30 + $0x60] sm:$0xf] %vm411_vm0, %v5189_v9  ;;  %v5192_v6 = vpack.c.bf16 %v5328_v5, %v5328_v5  ;;  %v4861_v16 = vsel %vm4711_vm5, %v4806_v13, 0.0  ;;  %v4809_v20 = vmul.f32 %v5328_v5, %v5328_v5  ;;  %v4765_v30 = vsel %vm4711_vm5, %v5328_v5, 0.0 }
 0x393   : > { %v4523_v4 = vpop.f32.mrf.mxu1  ;;  %v4862_v19 = vadd.f32 %v4861_v16, %v4860_v61 }
 0x394   : > { %4706 = vst.msk [vmem:[%s6753_s30 + $0x6c] sm:$0xf] %vm411_vm0, %v5192_v6  ;;  %v5190_v7 = vpack.c.bf16 %v4523_v4, %v4523_v4  ;;  %v4807_v17 = vmul.f32 %v4523_v4, %v4523_v4  ;;  %v4761_v18 = vsel %vm4711_vm5, %v4523_v4, 0.0  ;;  %v4867_v49 = vsel %vm4711_vm5, %v4809_v20, 0.0 }
 0x395   : > { %v4762_v22 = vadd.f32 %v4761_v18, %v4760_v12 }
 0x396   : > { %4704 = vst.msk [vmem:[%s6753_s30 + $0x64] sm:$0xf] %vm411_vm0, %v5190_v7  ;;  %v4863_v14 = vsel %vm4711_vm5, %v4807_v17, 0.0 }
 0x397   : > { %v4864_v47 = vadd.f32 %v4863_v14, %v4862_v19  ;;  %v4764_v27 = vadd.f32 %v4763_v23, %v4762_v22 }
 0x399   : > { %v4866_v29 = vadd.f32 %v4865_v26, %v4864_v47  ;;  %v4766_v55 = vadd.f32 %v4765_v30, %v4764_v27 }
 0x39b   : > { %v4868_v34 = vadd.f32 %v4867_v49, %v4866_v29 }
 0x3bd   : > { %v5331_v25 = vpop.f32.mrf.mxu1 }
 0x3be   : > { %v5195_v8 = vpack.c.bf16 %v5331_v25, %v5331_v25  ;;  %v4812_v36 = vmul.f32 %v5331_v25, %v5331_v25  ;;  %v4771_v40 = vsel %vm4711_vm5, %v5331_v25, 0.0 }
 0x3bf   : > { %v4536_v11 = vpop.f32.mrf.mxu1 }
 0x3c0   : > { %4709 = vst.msk [vmem:[%s6753_s30 + $0x78] sm:$0xf] %vm411_vm0, %v5195_v8  ;;  %v5193_v31 = vpack.c.bf16 %v4536_v11, %v4536_v11  ;;  %v4767_v32 = vsel %vm4711_vm5, %v4536_v11, 0.0  ;;  %v4810_v52 = vmul.f32 %v4536_v11, %v4536_v11  ;;  %v4873_v44 = vsel %vm4711_vm5, %v4812_v36, 0.0 }
 0x3c1   : > { %v5332_v60 = vpop.f32.mrf.mxu1  ;;  %v4768_v2 = vadd.f32 %v4767_v32, %v4766_v55 }
 0x3c2   : > { %4707 = vst.msk [vmem:[%s6753_s30 + $0x70] sm:$0xf] %vm411_vm0, %v5193_v31  ;;  %v4869_v24 = vsel %vm4711_vm5, %v4810_v52, 0.0  ;;  %v5196_v33 = vpack.c.bf16 %v5332_v60, %v5332_v60  ;;  %v4813_v41 = vmul.f32 %v5332_v60, %v5332_v60  ;;  %v4773_v45 = vsel %vm4711_vm5, %v5332_v60, 0.0 }
 0x3c3   : > { %v4539_v35 = vpop.f32.mrf.mxu1  ;;  %v4870_v38 = vadd.f32 %v4869_v24, %v4868_v34 }
 0x3c4   : > { %4710 = vst.msk [vmem:[%s6753_s30 + $0x7c] sm:$0xf] %vm411_vm0, %v5196_v33  ;;  %v5194_v1 = vpack.c.bf16 %v4539_v35, %v4539_v35  ;;  %v4769_v21 = vsel %vm4711_vm5, %v4539_v35, 0.0  ;;  %v4811_v37 = vmul.f32 %v4539_v35, %v4539_v35  ;;  %v4875_v50 = vsel %vm4711_vm5, %v4813_v41, 0.0 }
 0x3c5   : > { %v4770_v39 = vadd.f32 %v4769_v21, %v4768_v2 }
 0x3c6   : > { %4708 = vst.msk [vmem:[%s6753_s30 + $0x74] sm:$0xf] %vm411_vm0, %v5194_v1  ;;  %v4871_v42 = vsel %vm4711_vm5, %v4811_v37, 0.0 }
 0x3c7   : > { %v4772_v28 = vadd.f32 %v4771_v40, %v4770_v39  ;;  %v4872_v43 = vadd.f32 %v4871_v42, %v4870_v38 }
 0x3c9   : > { %v4774_v48 = vadd.f32 %v4773_v45, %v4772_v28  ;;  %v4874_v46 = vadd.f32 %v4873_v44, %v4872_v43 }
 0x3cb   : > { %v4775_v51 = vrot.slane %v4774_v48, 4  ;;  %v4876_v53 = vadd.f32 %v4875_v50, %v4874_v46 }
 0x3cd   : > { %v4776_v54 = vadd.f32 %v4775_v51, %v4774_v48  ;;  %v4877_v56 = vrot.slane %v4876_v53, 4 }
 0x3cf   : > { %v4777_v57 = vrot.slane %v4776_v54, 2  ;;  %v4878_v58 = vadd.f32 %v4877_v56, %v4876_v53 }
 0x3d1   : > { %v4778_v10 = vadd.f32 %v4777_v57, %v4776_v54  ;;  %v4879_v59 = vrot.slane %v4878_v58, 2 }
 0x3d3   : > { %v4779_v61 = vrot.slane %v4778_v10, 1  ;;  %v4880_v63 = vadd.f32 %v4879_v59, %v4878_v58 }
 0x3d5   : > { %v4780_v0 = vadd.f32 %v4779_v61, %v4778_v10  ;;  %v4881_v3 = vrot.slane %v4880_v63, 1 }
 0x3d7   : > { %4781 = vst.msk [vmem:[%s235_s8] sm:$0x1] %vm414_vm1, %v4780_v0  ;;  %v4882_v9 = vadd.f32 %v4881_v3, %v4880_v63 }
 0x3d9   : > { %4883 = vst.msk [vmem:[%s235_s8 + $0x1] sm:$0x1] %vm414_vm1, %v4882_v9 }
 0x3da PF: > { %s16_s18 = sadd.s32 1, %s5387_s18  }
 0x3db   : > { %p13_p4 = scmp.ge.s32.totalorder %s16_s18, 4  }
 0x3dd   :  { %15 = sbr.rel (!%p13_p4) target bundleno = 1 (0x1), region = 81 }

// kernel: basic_block_forward.3
= control target key start
LH: loop header
LB: loop body
LE: loop exit
PB: predicated region body
PF: predicated region fallthrough
CT: control target
= control target key end

     0   :  { %s5137_s12 = smov 0   ;;  %s6600_s0 = inlined_call_operand.vmem [shape: f32[2,16,16,4], index: 0, kind: input, shape index: {}]   ;;  %s6601_s1 = inlined_call_operand.vmem [shape: bf16[36,4], index: 1, kind: input, shape index: {}]   ;;  %s6602_s2 = inlined_call_operand.vmem [shape: bf16[2,16,16,4], index: 2, kind: output, shape index: {0}]   ;;  %s6603_s3 = inlined_call_operand.vmem [shape: f32[2,2,4], index: 3, kind: output, shape index: {1}]  }
   0x1 LB: > { %s4774_s13 = sadd.s32 4294967295, %s5106_s12   ;;  %p4778_p0 = scmp.ge.s32.totalorder %s5106_s12, 1  ;;  %s5106_s12 = sphi %s5137_s12, %s14_s12  }
   0x2   : > { %p140_p1 = scmp.lt.s32.totalorder %s5106_s12, 3 }
   0x4   : > { %p141_p2 = pnand %p4778_p0, %p140_p1 }
   0x5   : > { %p168_p3 = scmp.lt.s32.totalorder (!%p141_p2), %s4774_s13, 1  ;;  %s5109_s18 = smov (!%p141_p2), 4  }
   0x6   : > { %144 = sbr.rel (%p141_p2) target bundleno = 962 (0x3c2), region = 28  ;;  %s5110_s19 = smov (!%p141_p2), 8  }
   0x7   : > { %s5111_s20 = smov (!%p141_p2), 12   ;;  %s5112_s21 = smov (!%p141_p2), 16  }
   0x8   : > { %s5113_s22 = smov (!%p141_p2), 20   ;;  %s5114_s23 = smov (!%p141_p2), 24  }
   0x9   : > { %s5115_s26 = smov (!%p141_p2), 28   ;;  %s5116_s4 = smov (!%p141_p2), 32  }
   0xb   : > { %vm215_vm0 = vcmask 27648   ;;  %v5108_v0 = vmov 0   ;;  %vm218_vm1 = vcmask 24576   ;;  %vm226_vm2 = vsmask.f32 256  ;;  %s6617_s13 = smov (!%p168_p3, %s4774_s13), 1 }
   0xc   : > { %216 = vst.msk [vmem:[#allocation2] sm:$0xf] %vm215_vm0, %v5108_v0  ;;  %217 = vst.msk [vmem:[#allocation2 + $0x4] sm:$0xf] %vm215_vm0, %v5108_v0  ;;  %v228_v2 = vld [vmem:[#allocation2 + $0xc] sm:$0x1] }
   0xd   : > { %221 = vst.msk [vmem:[#allocation2 + $0xcc] sm:$0xf] %vm215_vm0, %v5108_v0  ;;  %222 = vst.msk [vmem:[#allocation2 + $0xd0] sm:$0xf] %vm215_vm0, %v5108_v0  ;;  %vm276_vm4 = vsmask.f32 7938 }
   0xe   : > { %vm5151_vm3 = vmand %vm218_vm1, %vm226_vm2  ;;  %219 = vst.msk [vmem:[#allocation2 + $0x8] sm:$0x1] %vm218_vm1, %v5108_v0  ;;  %vm970_vm5 = vsmask.f32 3328  ;;  %vm971_vm6 = vsmask.f32 7440 }
   0xf   : > { %223 = vst.msk [vmem:[#allocation2 + $0xd4] sm:$0x1] %vm218_vm1, %v5108_v0  ;;  %v229_v3 = vsel %vm5151_vm3, 0, %v228_v2  ;;  %v278_v4 = vld [vmem:[#allocation2 + $0x14] sm:$0x1]  ;;  %s4933_s14 = sshll.u32 %s6617_s13, 8  ;;  %vm5166_vm7 = vmand %vm218_vm1, %vm276_vm4 }
  0x10   : > { %v231_v5 = vld [vmem:[#allocation2 + $0x18] sm:$0x1]  ;;  %230 = vst [vmem:[#allocation2 + $0xc] sm:$0x1] %v229_v3  ;;  %v281_v7 = vld [vmem:[#allocation2 + $0x20] sm:$0x1]  ;;  %s5175_s17 = scalar_lea.vmem %s6600_s0, %s4933_s14  ;;  %vm5199_vm10 = vmand %vm215_vm0, %vm276_vm4 }
  0x11   : > { %v232_v6 = vsel %vm5151_vm3, 0, %v231_v5  ;;  %v234_v8 = vld [vmem:[#allocation2 + $0x24] sm:$0x1]  ;;  %v284_v11 = vld [vmem:[#allocation2 + $0x2c] sm:$0x1]  ;;  %v279_v13 = vsel %vm5166_vm7, 0, %v278_v4  ;;  %vm5205_vm11 = vmor %vm970_vm5, %vm971_vm6 }
  0x12   : > { %233 = vst [vmem:[#allocation2 + $0x18] sm:$0x1] %v232_v6  ;;  %v235_v10 = vsel %vm5151_vm3, 0, %v234_v8  ;;  %v237_v12 = vld [vmem:[#allocation2 + $0x30] sm:$0x1]  ;;  %v282_v14 = vsel %vm5166_vm7, 0, %v281_v7 }
  0x13   : > { %236 = vst [vmem:[#allocation2 + $0x24] sm:$0x1] %v235_v10  ;;  %v285_v15 = vsel %vm5166_vm7, 0, %v284_v11  ;;  %v238_v16 = vsel %vm5151_vm3, 0, %v237_v12  ;;  %v287_v17 = vld [vmem:[#allocation2 + $0x38] sm:$0x1] }
  0x14   : > { %v183_v18 = vld [vmem:[%s5175_s17] sm:$0xff]  ;;  %v184_v19 = vld [vmem:[%s5175_s17 + $0x8] sm:$0xff]  ;;  %vm422_vm8 = vsmask.f32 4368  ;;  %280 = vst [vmem:[#allocation2 + $0x14] sm:$0x1] %v279_v13 }
  0x15   : > { %v185_v20 = vld [vmem:[%s5175_s17 + $0x10] sm:$0xff]  ;;  %283 = vst [vmem:[#allocation2 + $0x20] sm:$0x1] %v282_v14  ;;  %286 = vst [vmem:[#allocation2 + $0x2c] sm:$0x1] %v285_v15  ;;  %v288_v21 = vsel %vm5166_vm7, 0, %v287_v17  ;;  %v4935_v24 = vpack.c.bf16 %v183_v18, %v183_v18  ;;  %v4936_v25 = vpack.c.bf16 %v184_v19, %v184_v19 }
  0x16   : > { %239 = vst [vmem:[#allocation2 + $0x30] sm:$0x1] %v238_v16  ;;  %v922_v22 = vld [vmem:[#allocation2] sm:$0xf]  ;;  %v923_v23 = vld [vmem:[#allocation2 + $0x4] sm:$0xf]  ;;  %v4937_v27 = vpack.c.bf16 %v185_v20, %v185_v20  ;;  %vm5193_vm9 = vmor %vm226_vm2, %vm422_vm8 }
  0x17   : > { %v186_v26 = vld [vmem:[%s5175_s17 + $0x18] sm:$0xff]  ;;  %289 = vst [vmem:[#allocation2 + $0x38] sm:$0x1] %v288_v21  ;;  %v974_v28 = vshrl.u32 %v922_v22, 16  ;;  %v977_v29 = vshll.u32 %v922_v22, 16  ;;  %v983_v30 = vshll.u32 %v923_v23, 16 }
  0x18   : > { %v987_v31 = vshrl.u32 %v923_v23, 16  ;;  %v924_v32 = vld [vmem:[#allocation2 + $0x8] sm:$0x1]  ;;  %v425_v33 = vshrl.u32 %v4935_v24, 16  ;;  %v428_v34 = vshll.u32 %v4935_v24, 16  ;;  %v433_v35 = vshrl.u32 %v4936_v25, 16 }
  0x19   : > { %v436_v36 = vshll.u32 %v4936_v25, 16  ;;  %v976_v37 = vrot.slane %v974_v28, 4  ;;  %v979_v38 = vrot.slane %v977_v29, 5  ;;  %v985_v39 = vrot.slane %v983_v30, 5  ;;  %v746_v48 = vld [vmem:[#allocation2 + $0xc] sm:$0xf] }
  0x1a   : > { %v989_v40 = vrot.slane %v987_v31, 4  ;;  %v427_v42 = vrot.slane %v425_v33, 7  ;;  %v435_v43 = vrot.slane %v433_v35, 7  ;;  %v993_v44 = vshll.u32 %v924_v32, 16  ;;  %v187_v62 = vld [vmem:[%s5175_s17 + $0x20] sm:$0xff]  ;;  %v188_v63 = vld [vmem:[%s5175_s17 + $0x28] sm:$0xff] }
  0x1b   : > { %v4938_v45 = vpack.c.bf16 %v186_v26, %v186_v26  ;;  %v980_v46 = vor.u32 %v979_v38, %v976_v37  ;;  %v442_v50 = vshrl.u32 %v4937_v27, 16  ;;  %v445_v51 = vshll.u32 %v4937_v27, 16  ;;  %v750_v57 = vld [vmem:[#allocation2 + $0x14] sm:$0x1]  ;;  %v753_v5 = vld [vmem:[#allocation2 + $0x18] sm:$0xf] }
  0x1c   : > { %v990_v49 = vor.u32 %v989_v40, %v985_v39  ;;  %v430_v53 = vor.u32 %v428_v34, %v427_v42  ;;  %v431_v54 = vrot.slane %v427_v42, 4  ;;  %v438_v55 = vor.u32 %v436_v36, %v435_v43  ;;  %v189_v6 = vld [vmem:[%s5175_s17 + $0x30] sm:$0xff]  ;;  %v190_v7 = vld [vmem:[%s5175_s17 + $0x38] sm:$0xff]  ;;  %v757_v19 = vld [vmem:[#allocation2 + $0x20] sm:$0x1]  ;;  %s4934_s5 = sshll.u32 %s6617_s13, 7 }
  0x1d   : > { %v995_v56 = vrot.slane %v993_v44, 5  ;;  %v981_v58 = vrot.slane %v980_v46, 4  ;;  %v440_v60 = vrot.slane %v435_v43, 4  ;;  %v444_v61 = vrot.slane %v442_v50, 7  ;;  %v240_v13 = vld [vmem:[#allocation2 + $0x3c] sm:$0x1]  ;;  %s6401_s8 = scalar_lea.vmem %s6602_s2, %s4934_s5 }
  0x1e   : > { %v991_v59 = vrot.slane %v990_v49, 4  ;;  %v439_v0 = vsel %vm5193_vm9, %v431_v54, %v438_v55  ;;  %v747_v2 = vsel %vm5199_vm10, %v430_v53, %v746_v48  ;;  %v450_v3 = vshrl.u32 %v4938_v45, 16  ;;  %v191_v27 = vld [vmem:[%s5175_s17 + $0x40] sm:$0xff]  ;;  %v192_v32 = vld [vmem:[%s5175_s17 + $0x48] sm:$0xff]  ;;  %s4783_s9 = sshll.u32 %s6617_s13, 1 }
  0x1f   : > { %v453_v4 = vshll.u32 %v4938_v45, 16  ;;  %v986_v8 = vsel %vm5205_vm11, %v981_v58, %v985_v39  ;;  %748 = vst [vmem:[#allocation2 + $0xc] sm:$0xf] %v747_v2  ;;  %749 = vst.msk [vmem:[#allocation2 + $0x10] sm:$0xf] %vm215_vm0, %v439_v0  ;;  %v751_v11 = vsel %vm5151_vm3, %v440_v60, %v750_v57  ;;  %v447_v12 = vor.u32 %v445_v51, %v444_v61  ;;  %s181_s14 = scalar_lea.vmem %s6603_s3, %s4783_s9 }
  0x20   : > { %v996_v10 = vsel %vm5205_vm11, %v991_v59, %v995_v56  ;;  %1357 = vrot.lane.b32.xlu0 %v986_v8, %s5109_s18  ;;  %752 = vst [vmem:[#allocation2 + $0x14] sm:$0x1] %v751_v11  ;;  %v448_v14 = vrot.slane %v444_v61, 4  ;;  %v452_v15 = vrot.slane %v450_v3, 7  ;;  %v4939_v16 = vpack.c.bf16 %v187_v62, %v187_v62  ;;  %v760_v38 = vld [vmem:[#allocation2 + $0x24] sm:$0xf] }
  0x21   : > { %v4940_v17 = vpack.c.bf16 %v188_v63, %v188_v63  ;;  %v754_v18 = vsel %vm5199_vm10, %v447_v12, %v753_v5  ;;  %v4941_v20 = vpack.c.bf16 %v189_v6, %v189_v6  ;;  %v5227_v21 = vpack.c.bf16 %v190_v7, %v190_v7  ;;  %v764_v60 = vld [vmem:[#allocation2 + $0x2c] sm:$0x1]  ;;  %v193_v61 = vld [vmem:[%s5175_s17 + $0x50] sm:$0xff] }
  0x22   : > { %v241_v22 = vsel %vm5151_vm3, 0, %v240_v13  ;;  %v455_v23 = vor.u32 %v453_v4, %v452_v15  ;;  %755 = vst [vmem:[#allocation2 + $0x18] sm:$0xf] %v754_v18  ;;  %v457_v24 = vrot.slane %v452_v15, 4  ;;  %v459_v25 = vshrl.u32 %v4939_v16, 16 }
  0x23   : > { %v462_v26 = vshll.u32 %v4939_v16, 16  ;;  %242 = vst [vmem:[#allocation2 + $0x3c] sm:$0x1] %v241_v22  ;;  %v467_v28 = vshrl.u32 %v4940_v17, 16  ;;  %v470_v29 = vshll.u32 %v4940_v17, 16  ;;  %v476_v30 = vshrl.u32 %v4941_v20, 16 }
  0x24   : > { %v479_v31 = vshll.u32 %v4941_v20, 16  ;;  %1359 = vrot.lane.b32.xlu0 %v996_v10, %s5109_s18  ;;  %v456_v33 = vsel %vm5193_vm9, %v448_v14, %v455_v23  ;;  %v758_v34 = vsel %vm5151_vm3, %v457_v24, %v757_v19  ;;  %v461_v35 = vrot.slane %v459_v25, 7  ;;  %v767_v13 = vld [vmem:[#allocation2 + $0x30] sm:$0xf] }
  0x25   : > { %v484_v36 = vshrl.u32 %v5227_v21, 16  ;;  %756 = vst.msk [vmem:[#allocation2 + $0x1c] sm:$0xf] %vm215_vm0, %v456_v33  ;;  %759 = vst [vmem:[#allocation2 + $0x20] sm:$0x1] %v758_v34  ;;  %v469_v37 = vrot.slane %v467_v28, 7  ;;  %v5243_v42 = vpack.c.bf16 %v191_v27, %v191_v27  ;;  %v5247_v49 = vpack.c.bf16 %v192_v32, %v192_v32 }
  0x26   : > { %v5240_v39 = vrot.slane %v476_v30, 7  ;;  %v487_v40 = vshll.u32 %v5227_v21, 16  ;;  %v925_v43 = vld [vmem:[#allocation2 + $0xc] sm:$0xf]  ;;  %v926_v44 = vld [vmem:[#allocation2 + $0x10] sm:$0xf]  ;;  %v464_v45 = vor.u32 %v462_v26, %v461_v35  ;;  %v5259_v19 = vpack.c.bf16 %v193_v61, %v193_v61 }
  0x27   : > { %v465_v46 = vrot.slane %v461_v35, 4  ;;  %v5245_v48 = vrot.slane %v484_v36, 7  ;;  %v998_v50 = vshrl.u32 %v925_v43, 16  ;;  %v1001_v51 = vshll.u32 %v925_v43, 16  ;;  %v927_v55 = vld [vmem:[#allocation2 + $0x14] sm:$0x1] }
  0x28   : > { %v1007_v53 = vshll.u32 %v926_v44, 16  ;;  %v1011_v54 = vshrl.u32 %v926_v44, 16  ;;  %v1017_v56 = vshll.u32 %v927_v55, 16  ;;  %v472_v57 = vor.u32 %v470_v29, %v469_v37  ;;  %v771_v32 = vld [vmem:[#allocation2 + $0x38] sm:$0x1] }
  0x29   : > { %v761_v58 = vsel %vm5199_vm10, %v464_v45, %v760_v38  ;;  %v474_v59 = vrot.slane %v469_v37, 4  ;;  %v1000_v62 = vrot.slane %v998_v50, 4  ;;  %v1003_v63 = vrot.slane %v1001_v51, 5  ;;  %v928_v3 = vld [vmem:[#allocation2 + $0x18] sm:$0xf] }
  0x2a   : > { %v1009_v0 = vrot.slane %v1007_v53, 5  ;;  %v1013_v2 = vrot.slane %v1011_v54, 4  ;;  %762 = vst [vmem:[#allocation2 + $0x24] sm:$0xf] %v761_v58  ;;  %v1019_v4 = vrot.slane %v1017_v56, 5  ;;  %v1022_v5 = vshrl.u32 %v928_v3, 16 }
  0x2b   : > { %v1025_v6 = vshll.u32 %v928_v3, 16  ;;  %v473_v7 = vsel %vm5193_vm9, %v465_v46, %v472_v57  ;;  %v1004_v8 = vor.u32 %v1003_v63, %v1000_v62  ;;  %v765_v11 = vsel %vm5151_vm3, %v474_v59, %v764_v60 }
  0x2c   : > { %v1014_v10 = vor.u32 %v1013_v2, %v1009_v0  ;;  %763 = vst.msk [vmem:[#allocation2 + $0x28] sm:$0xf] %vm215_vm0, %v473_v7  ;;  %v481_v12 = vor.u32 %v479_v31, %v5240_v39  ;;  %v929_v14 = vld [vmem:[#allocation2 + $0x1c] sm:$0xf]  ;;  %v1024_v15 = vrot.slane %v1022_v5, 4  ;;  %v489_v18 = vor.u32 %v487_v40, %v5245_v48 }
  0x2d   : > { %v1027_v16 = vrot.slane %v1025_v6, 5  ;;  %v930_v17 = vld [vmem:[#allocation2 + $0x20] sm:$0x1]  ;;  %766 = vst [vmem:[#allocation2 + $0x2c] sm:$0x1] %v765_v11  ;;  %v1005_v20 = vrot.slane %v1004_v8, 4 }
  0x2e   : > { %v1015_v21 = vrot.slane %v1014_v10, 4  ;;  %v1031_v22 = vshll.u32 %v929_v14, 16  ;;  %v1035_v23 = vshrl.u32 %v929_v14, 16  ;;  %v1041_v25 = vshll.u32 %v930_v17, 16  ;;  %v290_v2 = vld [vmem:[#allocation2 + $0x44] sm:$0x1] }
  0x2f   : > { %v1028_v24 = vor.u32 %v1027_v16, %v1024_v15  ;;  %v482_v26 = vrot.slane %v5240_v39, 4  ;;  %v768_v27 = vsel %vm5199_vm10, %v481_v12, %v767_v13  ;;  %v1010_v28 = vsel %vm5205_vm11, %v1005_v20, %v1009_v0  ;;  %v774_v0 = vld [vmem:[#allocation2 + $0x3c] sm:$0xf]  ;;  %v243_v13 = vld [vmem:[#allocation2 + $0x48] sm:$0x1] }
  0x30   : > { %v1020_v29 = vsel %vm5205_vm11, %v1015_v21, %v1019_v4  ;;  %v1033_v30 = vrot.slane %v1031_v22, 5  ;;  %v1037_v31 = vrot.slane %v1035_v23, 4  ;;  %769 = vst [vmem:[#allocation2 + $0x30] sm:$0xf] %v768_v27  ;;  %1361 = vrot.lane.b32.xlu1 %v1010_v28, %s5109_s18  ;;  %v1043_v34 = vrot.slane %v1041_v25, 5 }
  0x31   : > { %v1029_v33 = vrot.slane %v1028_v24, 4  ;;  %v931_v35 = vld [vmem:[#allocation2 + $0x24] sm:$0xf]  ;;  %v490_v36 = vsel %vm5193_vm9, %v482_v26, %v489_v18  ;;  %v491_v37 = vrot.slane %v5245_v48, 4  ;;  %v493_v43 = vshrl.u32 %v5243_v42, 16  ;;  %v194_v18 = vld [vmem:[%s5175_s17 + $0x58] sm:$0xff] }
  0x32   : > { %v1038_v38 = vor.u32 %v1037_v31, %v1033_v30  ;;  %v1046_v39 = vshrl.u32 %v931_v35, 16  ;;  %v1049_v40 = vshll.u32 %v931_v35, 16  ;;  %770 = vst.msk [vmem:[#allocation2 + $0x34] sm:$0xf] %vm215_vm0, %v490_v36  ;;  %v496_v50 = vshll.u32 %v5243_v42, 16 }
  0x33   : > { %v1034_v44 = vsel %vm5205_vm11, %v1029_v33, %v1033_v30  ;;  %v932_v45 = vld [vmem:[#allocation2 + $0x28] sm:$0xf]  ;;  %v772_v46 = vsel %vm5151_vm3, %v491_v37, %v771_v32  ;;  %v501_v51 = vshrl.u32 %v5247_v49, 16  ;;  %v495_v59 = vrot.slane %v493_v43, 7  ;;  %v293_v33 = vld [vmem:[#allocation2 + $0x50] sm:$0x1] }
  0x34   : > { %1365 = vrot.lane.b32.xlu0 %v1034_v44, %s5109_s18  ;;  %v1039_v48 = vrot.slane %v1038_v38, 4  ;;  %v1048_v53 = vrot.slane %v1046_v39, 4  ;;  %v1051_v54 = vrot.slane %v1049_v40, 5  ;;  %v1055_v55 = vshll.u32 %v932_v45, 16  ;;  %v933_v56 = vld [vmem:[#allocation2 + $0x2c] sm:$0x1]  ;;  %1363 = vrot.lane.b32.xlu1 %v1020_v29, %s5109_s18 }
  0x35   : > { %773 = vst [vmem:[#allocation2 + $0x38] sm:$0x1] %v772_v46  ;;  %v1059_v57 = vshrl.u32 %v932_v45, 16  ;;  %v1065_v58 = vshll.u32 %v933_v56, 16  ;;  %v5282_v60 = vrot.slane %v501_v51, 7  ;;  %v504_v63 = vshll.u32 %v5247_v49, 16 }
  0x36   : > { %v1044_v42 = vsel %vm5205_vm11, %v1039_v48, %v1043_v34  ;;  %v1052_v61 = vor.u32 %v1051_v54, %v1048_v53  ;;  %v1057_v62 = vrot.slane %v1055_v55, 5  ;;  %v498_v6 = vor.u32 %v496_v50, %v495_v59  ;;  %v246_v34 = vld [vmem:[#allocation2 + $0x54] sm:$0x1]  ;;  %v195_v39 = vld [vmem:[%s5175_s17 + $0x60] sm:$0xff]  ;;  %v196_v40 = vld [vmem:[%s5175_s17 + $0x68] sm:$0xff] }
  0x37   : > { %v1061_v3 = vrot.slane %v1059_v57, 4  ;;  %v1067_v4 = vrot.slane %v1065_v58, 5  ;;  %v934_v5 = vld [vmem:[#allocation2 + $0x30] sm:$0xf]  ;;  %v499_v7 = vrot.slane %v495_v59, 4  ;;  %v506_v12 = vor.u32 %v504_v63, %v5282_v60  ;;  %v198_v58 = vld [vmem:[%s5175_s17 + $0x78] sm:$0xff] }
  0x38   : > { %v1053_v8 = vrot.slane %v1052_v61, 4  ;;  %v1070_v10 = vshrl.u32 %v934_v5, 16  ;;  %v1073_v11 = vshll.u32 %v934_v5, 16  ;;  %1367 = vrot.lane.b32.xlu1 %v1044_v42, %s5109_s18  ;;  %v775_v49 = vsel %vm5199_vm10, %v498_v6, %v774_v0  ;;  %v197_v50 = vld [vmem:[%s5175_s17 + $0x70] sm:$0xff] }
  0x39   : > { %v1062_v14 = vor.u32 %v1061_v3, %v1057_v62  ;;  %v935_v15 = vld [vmem:[#allocation2 + $0x34] sm:$0xf]  ;;  %v291_v16 = vsel %vm5166_vm7, 0, %v290_v2  ;;  %v508_v17 = vrot.slane %v5282_v60, 4  ;;  %776 = vst [vmem:[#allocation2 + $0x3c] sm:$0xf] %v775_v49  ;;  %v507_v27 = vsel %vm5193_vm9, %v499_v7, %v506_v12 }
  0x3a   : > { %v1058_v20 = vsel %vm5205_vm11, %v1053_v8, %v1057_v62  ;;  %v1072_v21 = vrot.slane %v1070_v10, 4  ;;  %v1075_v22 = vrot.slane %v1073_v11, 5  ;;  %v1079_v23 = vshll.u32 %v935_v15, 16  ;;  %292 = vst [vmem:[#allocation2 + $0x44] sm:$0x1] %v291_v16  ;;  %v199_v49 = vld [vmem:[%s5175_s17 + $0x80] sm:$0xff] }
  0x3b   : > { %1369 = vrot.lane.b32.xlu0 %v1058_v20, %s5109_s18  ;;  %v1063_v24 = vrot.slane %v1062_v14, 4  ;;  %v1083_v25 = vshrl.u32 %v935_v15, 16  ;;  %v244_v28 = vsel %vm5151_vm3, 0, %v243_v13  ;;  %777 = vst.msk [vmem:[#allocation2 + $0x40] sm:$0xf] %vm215_vm0, %v507_v27  ;;  %v4946_v32 = vpack.c.bf16 %v194_v18, %v194_v18 }
  0x3c   : > { %v936_v26 = vld [vmem:[#allocation2 + $0x38] sm:$0x1]  ;;  %v1076_v29 = vor.u32 %v1075_v22, %v1072_v21  ;;  %v1081_v30 = vrot.slane %v1079_v23, 5  ;;  %245 = vst [vmem:[#allocation2 + $0x48] sm:$0x1] %v244_v28  ;;  %v510_v37 = vshrl.u32 %v5259_v19, 16  ;;  %v4947_v56 = vpack.c.bf16 %v195_v39, %v195_v39 }
  0x3d   : > { %v1089_v31 = vshll.u32 %v936_v26, 16  ;;  %v1068_v35 = vsel %vm5205_vm11, %v1063_v24, %v1067_v4  ;;  %v1085_v36 = vrot.slane %v1083_v25, 4  ;;  %v513_v38 = vshll.u32 %v5259_v19, 16  ;;  %v296_v21 = vld [vmem:[#allocation2 + $0x5c] sm:$0x1] }
  0x3e   : > { %1371 = vrot.lane.b32.xlu1 %v1068_v35, %s5109_s18  ;;  %v1077_v43 = vrot.slane %v1076_v29, 4  ;;  %v518_v45 = vshrl.u32 %v4946_v32, 16  ;;  %v521_v46 = vshll.u32 %v4946_v32, 16  ;;  %v512_v48 = vrot.slane %v510_v37, 7  ;;  %v249_v26 = vld [vmem:[#allocation2 + $0x60] sm:$0x1] }
  0x3f   : > { %v1091_v44 = vrot.slane %v1089_v31, 5  ;;  %v1086_v51 = vor.u32 %v1085_v36, %v1081_v30  ;;  %v294_v53 = vsel %vm5166_vm7, 0, %v293_v33  ;;  %v247_v54 = vsel %vm5151_vm3, 0, %v246_v34  ;;  %v299_v37 = vld [vmem:[#allocation2 + $0x68] sm:$0x1] }
  0x40   : > { %v1082_v19 = vsel %vm5205_vm11, %v1077_v43, %v1081_v30  ;;  %v520_v55 = vrot.slane %v518_v45, 7  ;;  %295 = vst [vmem:[#allocation2 + $0x50] sm:$0x1] %v294_v53  ;;  %248 = vst [vmem:[#allocation2 + $0x54] sm:$0x1] %v247_v54  ;;  %v4948_v57 = vpack.c.bf16 %v196_v40, %v196_v40  ;;  %v515_v61 = vor.u32 %v513_v38, %v512_v48  ;;  %v200_v53 = vld [vmem:[%s5175_s17 + $0x88] sm:$0xff] }
  0x41   : > { %1373 = vrot.lane.b32.xlu0 %v1082_v19, %s5109_s18  ;;  %v1087_v59 = vrot.slane %v1086_v51, 4  ;;  %v937_v60 = vld [vmem:[#allocation2 + $0x3c] sm:$0xf]  ;;  %v778_v42 = vld [vmem:[#allocation2 + $0x44] sm:$0x1]  ;;  %v516_v62 = vrot.slane %v512_v48, 4  ;;  %v5319_v63 = vpack.c.bf16 %v197_v50, %v197_v50  ;;  %v5325_v11 = vpack.c.bf16 %v198_v58, %v198_v58 }
  0x42   : > { %v1094_v0 = vshrl.u32 %v937_v60, 16  ;;  %v1097_v2 = vshll.u32 %v937_v60, 16  ;;  %v779_v3 = vsel %vm5151_vm3, %v508_v17, %v778_v42  ;;  %v523_v4 = vor.u32 %v521_v46, %v520_v55  ;;  %v938_v6 = vld [vmem:[#allocation2 + $0x40] sm:$0xf] }
  0x43   : > { %v1092_v5 = vsel %vm5205_vm11, %v1087_v59, %v1091_v44  ;;  %780 = vst [vmem:[#allocation2 + $0x44] sm:$0x1] %v779_v3  ;;  %v781_v7 = vld [vmem:[#allocation2 + $0x48] sm:$0xf]  ;;  %v525_v8 = vrot.slane %v520_v55, 4  ;;  %v527_v10 = vshrl.u32 %v4947_v56, 16  ;;  %v5334_v32 = vpack.c.bf16 %v199_v49, %v199_v49 }
  0x44   : > { %1375 = vrot.lane.b32.xlu1 %v1092_v5, %s5109_s18  ;;  %v1096_v12 = vrot.slane %v1094_v0, 4  ;;  %v1099_v13 = vrot.slane %v1097_v2, 5  ;;  %v1103_v14 = vshll.u32 %v938_v6, 16  ;;  %v1107_v15 = vshrl.u32 %v938_v6, 16  ;;  %v252_v44 = vld [vmem:[#allocation2 + $0x6c] sm:$0x1] }
  0x45   : > { %v524_v16 = vsel %vm5193_vm9, %v516_v62, %v523_v4  ;;  %v782_v17 = vsel %vm5199_vm10, %v515_v61, %v781_v7  ;;  %v529_v18 = vrot.slane %v527_v10, 7  ;;  %v530_v20 = vshll.u32 %v4947_v56, 16  ;;  %v201_v7 = vld [vmem:[%s5175_s17 + $0x90] sm:$0xff] }
  0x46   : > { %v1100_v22 = vor.u32 %v1099_v13, %v1096_v12  ;;  %v1105_v23 = vrot.slane %v1103_v14, 5  ;;  %v1109_v24 = vrot.slane %v1107_v15, 4  ;;  %783 = vst [vmem:[#allocation2 + $0x48] sm:$0xf] %v782_v17  ;;  %784 = vst.msk [vmem:[#allocation2 + $0x4c] sm:$0xf] %vm215_vm0, %v524_v16  ;;  %v5363_v2 = vpack.c.bf16 %v200_v53, %v200_v53 }
  0x47   : > { %v535_v25 = vshrl.u32 %v4948_v57, 16  ;;  %v785_v27 = vld [vmem:[#allocation2 + $0x50] sm:$0x1]  ;;  %v532_v28 = vor.u32 %v530_v20, %v529_v18  ;;  %v533_v29 = vrot.slane %v529_v18, 4  ;;  %v538_v30 = vshll.u32 %v4948_v57, 16 }
  0x48   : > { %v788_v31 = vld [vmem:[#allocation2 + $0x54] sm:$0xf]  ;;  %v1101_v33 = vrot.slane %v1100_v22, 4  ;;  %v1110_v34 = vor.u32 %v1109_v24, %v1105_v23  ;;  %v786_v35 = vsel %vm5151_vm3, %v525_v8, %v785_v27  ;;  %v297_v39 = vsel %vm5166_vm7, 0, %v296_v21 }
  0x49   : > { %v5338_v36 = vrot.slane %v535_v25, 7  ;;  %787 = vst [vmem:[#allocation2 + $0x50] sm:$0x1] %v786_v35  ;;  %v789_v38 = vsel %vm5199_vm10, %v532_v28, %v788_v31  ;;  %v250_v40 = vsel %vm5151_vm3, 0, %v249_v26  ;;  %v544_v43 = vshrl.u32 %v5319_v63, 16 }
  0x4a   : > { %v1106_v45 = vsel %vm5205_vm11, %v1101_v33, %v1105_v23  ;;  %v939_v46 = vld [vmem:[#allocation2 + $0x44] sm:$0x1]  ;;  %v1111_v50 = vrot.slane %v1110_v34, 4  ;;  %790 = vst [vmem:[#allocation2 + $0x54] sm:$0xf] %v789_v38  ;;  %v547_v55 = vshll.u32 %v5319_v63, 16  ;;  %v5371_v23 = vpack.c.bf16 %v201_v7, %v201_v7 }
  0x4b   : > { %v540_v51 = vor.u32 %v538_v30, %v5338_v36  ;;  %298 = vst [vmem:[#allocation2 + $0x5c] sm:$0x1] %v297_v39  ;;  %v542_v48 = vrot.slane %v5338_v36, 4  ;;  %251 = vst [vmem:[#allocation2 + $0x60] sm:$0x1] %v250_v40  ;;  %1377 = vrot.lane.b32.xlu0 %v1106_v45, %s5109_s18  ;;  %v1113_v54 = vshll.u32 %v939_v46, 16 }
  0x4c   : > { %v546_v19 = vrot.slane %v544_v43, 7  ;;  %v552_v56 = vshrl.u32 %v5325_v11, 16  ;;  %v555_v58 = vshll.u32 %v5325_v11, 16  ;;  %v300_v59 = vsel %vm5166_vm7, 0, %v299_v37  ;;  %v302_v33 = vld [vmem:[#allocation2 + $0x74] sm:$0x1] }
  0x4d   : > { %v541_v57 = vsel %vm5193_vm9, %v533_v29, %v540_v51  ;;  %v253_v60 = vsel %vm5151_vm3, 0, %v252_v44  ;;  %v1115_v42 = vrot.slane %v1113_v54, 5  ;;  %v940_v61 = vld [vmem:[#allocation2 + $0x48] sm:$0xf]  ;;  %v941_v62 = vld [vmem:[#allocation2 + $0x4c] sm:$0xf] }
  0x4e   : > { %791 = vst.msk [vmem:[#allocation2 + $0x58] sm:$0xf] %vm215_vm0, %v541_v57  ;;  %v549_v63 = vor.u32 %v547_v55, %v546_v19  ;;  %v550_v0 = vrot.slane %v546_v19, 4  ;;  %301 = vst [vmem:[#allocation2 + $0x68] sm:$0x1] %v300_v59  ;;  %v1118_v3 = vshrl.u32 %v940_v61, 16 }
  0x4f   : > { %254 = vst [vmem:[#allocation2 + $0x6c] sm:$0x1] %v253_v60  ;;  %v1121_v4 = vshll.u32 %v940_v61, 16  ;;  %v1127_v5 = vshll.u32 %v941_v62, 16  ;;  %v1131_v6 = vshrl.u32 %v941_v62, 16  ;;  %v1116_v8 = vsel %vm5205_vm11, %v1111_v50, %v1115_v42  ;;  %v202_v39 = vld [vmem:[%s5175_s17 + $0x98] sm:$0xff] }
  0x50   : > { %v554_v10 = vrot.slane %v552_v56, 7  ;;  %v561_v11 = vshrl.u32 %v5334_v32, 16  ;;  %v564_v12 = vshll.u32 %v5334_v32, 16  ;;  %1379 = vrot.lane.b32.xlu1 %v1116_v8, %s5109_s18  ;;  %v1120_v13 = vrot.slane %v1118_v3, 4  ;;  %v942_v49 = vld [vmem:[#allocation2 + $0x50] sm:$0x1] }
  0x51   : > { %v1123_v14 = vrot.slane %v1121_v4, 5  ;;  %v1129_v15 = vrot.slane %v1127_v5, 5  ;;  %v1133_v16 = vrot.slane %v1131_v6, 4  ;;  %v1137_v17 = vshll.u32 %v942_v49, 16  ;;  %v943_v18 = vld [vmem:[#allocation2 + $0x54] sm:$0xf] }
  0x52   : > { %v792_v20 = vld [vmem:[#allocation2 + $0x5c] sm:$0x1]  ;;  %v557_v21 = vor.u32 %v555_v58, %v554_v10  ;;  %v559_v22 = vrot.slane %v554_v10, 4  ;;  %v1142_v26 = vshrl.u32 %v943_v18, 16  ;;  %v1145_v27 = vshll.u32 %v943_v18, 16  ;;  %v203_v55 = vld [vmem:[%s5175_s17 + $0xa0] sm:$0xff] }
  0x53   : > { %v1124_v24 = vor.u32 %v1123_v14, %v1120_v13  ;;  %v1134_v25 = vor.u32 %v1133_v16, %v1129_v15  ;;  %v795_v28 = vld [vmem:[#allocation2 + $0x60] sm:$0xf]  ;;  %v1139_v29 = vrot.slane %v1137_v17, 5  ;;  %v793_v30 = vsel %vm5151_vm3, %v542_v48, %v792_v20  ;;  %v255_v40 = vld [vmem:[#allocation2 + $0x78] sm:$0x1]  ;;  %v204_v42 = vld [vmem:[%s5175_s17 + $0xa8] sm:$0xff] }
  0x54   : > { %v558_v31 = vsel %vm5193_vm9, %v550_v0, %v557_v21  ;;  %v796_v32 = vsel %vm5199_vm10, %v549_v63, %v795_v28  ;;  %v1144_v37 = vrot.slane %v1142_v26, 4  ;;  %v1147_v38 = vrot.slane %v1145_v27, 5  ;;  %794 = vst [vmem:[#allocation2 + $0x5c] sm:$0x1] %v793_v30  ;;  %v858_v56 = vld [vmem:[#allocation2] sm:$0xf] }
  0x55   : > { %v1125_v34 = vrot.slane %v1124_v24, 4  ;;  %v1135_v35 = vrot.slane %v1134_v25, 4  ;;  %v944_v36 = vld [vmem:[#allocation2 + $0x58] sm:$0xf]  ;;  %797 = vst [vmem:[#allocation2 + $0x60] sm:$0xf] %v796_v32  ;;  %v4954_v7 = vpack.c.bf16 %v202_v39, %v202_v39  ;;  %v5408_v17 = vpack.c.bf16 %v203_v55, %v203_v55 }
  0x56   : > { %798 = vst.msk [vmem:[#allocation2 + $0x64] sm:$0xf] %vm215_vm0, %v558_v31  ;;  %v1151_v43 = vshll.u32 %v944_v36, 16  ;;  %v1155_v44 = vshrl.u32 %v944_v36, 16  ;;  %v799_v45 = vld [vmem:[#allocation2 + $0x68] sm:$0x1]  ;;  %v1148_v53 = vor.u32 %v1147_v38, %v1144_v37  ;;  %v5410_v18 = vpack.c.bf16 %v204_v42, %v204_v42 }
  0x57   : > { %v563_v46 = vrot.slane %v561_v11, 7  ;;  %v569_v50 = vshrl.u32 %v5363_v2, 16  ;;  %v1130_v51 = vsel %vm5205_vm11, %v1125_v34, %v1129_v15  ;;  %v1140_v48 = vsel %vm5205_vm11, %v1135_v35, %v1139_v29  ;;  %v802_v19 = vld [vmem:[#allocation2 + $0x6c] sm:$0xf]  ;;  %890 = vst.msk [vmem:[#allocation3] sm:$0xf] %vm215_vm0, %v858_v56 }
  0x58   : > { %v800_v54 = vsel %vm5151_vm3, %v559_v22, %v799_v45  ;;  %1381 = vrot.lane.b32.xlu0 %v1130_v51, %s5109_s18  ;;  %1383 = vrot.lane.b32.xlu1 %v1140_v48, %s5109_s18  ;;  %v1153_v57 = vrot.slane %v1151_v43, 5  ;;  %v1157_v58 = vrot.slane %v1155_v44, 4  ;;  %v860_v61 = vld [vmem:[#allocation2 + $0xc] sm:$0xf]  ;;  %v1149_v62 = vrot.slane %v1148_v53, 4 }
  0x59   : > { %801 = vst [vmem:[#allocation2 + $0x68] sm:$0x1] %v800_v54  ;;  %v566_v59 = vor.u32 %v564_v12, %v563_v46  ;;  %v567_v60 = vrot.slane %v563_v46, 4  ;;  %v571_v63 = vrot.slane %v569_v50, 7  ;;  %v572_v0 = vshll.u32 %v5363_v2, 16 }
  0x5a   : > { %v303_v3 = vsel %vm5166_vm7, 0, %v302_v33  ;;  %892 = vst.msk [vmem:[#allocation3 + $0x8] sm:$0xf] %vm215_vm0, %v860_v61  ;;  %v1158_v4 = vor.u32 %v1157_v58, %v1153_v57  ;;  %v256_v6 = vsel %vm5151_vm3, 0, %v255_v40  ;;  %v859_v8 = vld [vmem:[#allocation2 + $0x4] sm:$0xf]  ;;  %v1154_v11 = vsel %vm5205_vm11, %v1149_v62, %v1153_v57 }
  0x5b   : > { %v803_v5 = vsel %vm5199_vm10, %v566_v59, %v802_v19  ;;  %304 = vst [vmem:[#allocation2 + $0x74] sm:$0x1] %v303_v3  ;;  %v861_v10 = vld [vmem:[#allocation2 + $0x10] sm:$0xf]  ;;  %v574_v2 = vor.u32 %v572_v0, %v571_v63  ;;  %v576_v12 = vrot.slane %v571_v63, 4  ;;  %v578_v13 = vshrl.u32 %v5371_v23, 16 }
  0x5c   : > { %804 = vst [vmem:[#allocation2 + $0x6c] sm:$0xf] %v803_v5  ;;  %257 = vst [vmem:[#allocation2 + $0x78] sm:$0x1] %v256_v6  ;;  %1385 = vrot.lane.b32.xlu0 %v1154_v11, %s5109_s18  ;;  %v945_v14 = vld [vmem:[#allocation2 + $0x5c] sm:$0x1] }
  0x5d   : > { %891 = vst.msk [vmem:[#allocation3 + $0x4] sm:$0xf] %vm215_vm0, %v859_v8  ;;  %893 = vst.msk [vmem:[#allocation3 + $0xc] sm:$0xf] %vm215_vm0, %v861_v10  ;;  %v1159_v15 = vrot.slane %v1158_v4, 4  ;;  %v581_v16 = vshll.u32 %v5371_v23, 16  ;;  %v575_v25 = vsel %vm5193_vm9, %v567_v60, %v574_v2 }
  0x5e   : > { %v946_v49 = vld [vmem:[#allocation2 + $0x60] sm:$0xf]  ;;  %v1161_v20 = vshll.u32 %v945_v14, 16  ;;  %v947_v21 = vld [vmem:[#allocation2 + $0x64] sm:$0xf]  ;;  %v580_v28 = vrot.slane %v578_v13, 7 }
  0x5f   : > { %v1166_v22 = vshrl.u32 %v946_v49, 16  ;;  %v1169_v24 = vshll.u32 %v946_v49, 16  ;;  %v1175_v26 = vshll.u32 %v947_v21, 16  ;;  %v1179_v27 = vshrl.u32 %v947_v21, 16  ;;  %805 = vst.msk [vmem:[#allocation2 + $0x70] sm:$0xf] %vm215_vm0, %v575_v25 }
  0x60   : > { %v586_v29 = vshrl.u32 %v4954_v7, 16  ;;  %v305_v30 = vld [vmem:[#allocation2 + $0x80] sm:$0x1]  ;;  %v1163_v31 = vrot.slane %v1161_v20, 5  ;;  %v948_v33 = vld [vmem:[#allocation2 + $0x68] sm:$0x1]  ;;  %v583_v38 = vor.u32 %v581_v16, %v580_v28 }
  0x61   : > { %v1168_v23 = vrot.slane %v1166_v22, 4  ;;  %v1171_v32 = vrot.slane %v1169_v24, 5  ;;  %v589_v34 = vshll.u32 %v4954_v7, 16  ;;  %v1177_v35 = vrot.slane %v1175_v26, 5  ;;  %v258_v46 = vld [vmem:[#allocation2 + $0x84] sm:$0x1] }
  0x62   : > { %v1181_v36 = vrot.slane %v1179_v27, 4  ;;  %v1185_v37 = vshll.u32 %v948_v33, 16  ;;  %v1164_v39 = vsel %vm5205_vm11, %v1159_v15, %v1163_v31  ;;  %v806_v43 = vld [vmem:[#allocation2 + $0x74] sm:$0x1]  ;;  %v584_v44 = vrot.slane %v580_v28, 4  ;;  %v207_v20 = vld [vmem:[%s5175_s17 + $0xc0] sm:$0xff] }
  0x63   : > { %v1172_v40 = vor.u32 %v1171_v32, %v1168_v23  ;;  %v5417_v45 = vrot.slane %v586_v29, 7  ;;  %1387 = vrot.lane.b32.xlu1 %v1164_v39, %s5109_s18  ;;  %v949_v48 = vld [vmem:[#allocation2 + $0x6c] sm:$0xf]  ;;  %v807_v53 = vsel %vm5151_vm3, %v576_v12, %v806_v43  ;;  %v809_v54 = vld [vmem:[#allocation2 + $0x78] sm:$0xf]  ;;  %v306_v19 = vsel %vm5166_vm7, 0, %v305_v30 }
  0x64   : > { %v1182_v50 = vor.u32 %v1181_v36, %v1177_v35  ;;  %v1187_v51 = vrot.slane %v1185_v37, 5  ;;  %v1190_v56 = vshrl.u32 %v949_v48, 16  ;;  %v1193_v57 = vshll.u32 %v949_v48, 16  ;;  %808 = vst [vmem:[#allocation2 + $0x74] sm:$0x1] %v807_v53  ;;  %v205_v63 = vld [vmem:[%s5175_s17 + $0xb0] sm:$0xff] }
  0x65   : > { %v1173_v55 = vrot.slane %v1172_v40, 4  ;;  %v591_v58 = vor.u32 %v589_v34, %v5417_v45  ;;  %307 = vst [vmem:[#allocation2 + $0x80] sm:$0x1] %v306_v19  ;;  %v810_v60 = vsel %vm5199_vm10, %v583_v38, %v809_v54  ;;  %v593_v42 = vrot.slane %v5417_v45, 4  ;;  %v308_v62 = vld [vmem:[#allocation2 + $0x8c] sm:$0x1] }
  0x66   : > { %v1183_v59 = vrot.slane %v1182_v50, 4  ;;  %v259_v61 = vsel %vm5151_vm3, 0, %v258_v46  ;;  %v950_v3 = vld [vmem:[#allocation2 + $0x70] sm:$0xf]  ;;  %v1192_v4 = vrot.slane %v1190_v56, 4  ;;  %v1195_v5 = vrot.slane %v1193_v57, 5 }
  0x67   : > { %v1178_v0 = vsel %vm5205_vm11, %v1173_v55, %v1177_v35  ;;  %v592_v6 = vsel %vm5193_vm9, %v584_v44, %v591_v58  ;;  %811 = vst [vmem:[#allocation2 + $0x78] sm:$0xf] %v810_v60  ;;  %260 = vst [vmem:[#allocation2 + $0x84] sm:$0x1] %v259_v61  ;;  %v261_v7 = vld [vmem:[#allocation2 + $0x90] sm:$0x1]  ;;  %v5460_v50 = vpack.c.bf16 %v207_v20, %v207_v20 }
  0x68   : > { %1389 = vrot.lane.b32.xlu0 %v1178_v0, %s5109_s18  ;;  %v1188_v8 = vsel %vm5205_vm11, %v1183_v59, %v1187_v51  ;;  %v1199_v10 = vshll.u32 %v950_v3, 16  ;;  %v1203_v11 = vshrl.u32 %v950_v3, 16  ;;  %812 = vst.msk [vmem:[#allocation2 + $0x7c] sm:$0xf] %vm215_vm0, %v592_v6  ;;  %v595_v2 = vshrl.u32 %v5408_v17, 16  ;;  %v206_v12 = vld [vmem:[%s5175_s17 + $0xb8] sm:$0xff] }
  0x69   : > { %v862_v13 = vld [vmem:[#allocation2 + $0x18] sm:$0xf]  ;;  %1391 = vrot.lane.b32.xlu1 %v1188_v8, %s5109_s18  ;;  %v1196_v14 = vor.u32 %v1195_v5, %v1192_v4  ;;  %v598_v15 = vshll.u32 %v5408_v17, 16  ;;  %v603_v49 = vshrl.u32 %v5410_v18, 16  ;;  %v606_v16 = vshll.u32 %v5410_v18, 16  ;;  %v208_v30 = vld [vmem:[%s5175_s17 + $0xc8] sm:$0xff] }
  0x6a   : > { %894 = vst.msk [vmem:[#allocation3 + $0x10] sm:$0xf] %vm215_vm0, %v862_v13  ;;  %v863_v21 = vld [vmem:[#allocation2 + $0x1c] sm:$0xf]  ;;  %v1201_v22 = vrot.slane %v1199_v10, 5  ;;  %v1205_v24 = vrot.slane %v1203_v11, 4  ;;  %v4957_v18 = vpack.c.bf16 %v205_v63, %v205_v63  ;;  %v4958_v36 = vpack.c.bf16 %v206_v12, %v206_v12 }
  0x6b   : > { %v597_v25 = vrot.slane %v595_v2, 7  ;;  %v309_v26 = vsel %vm5166_vm7, 0, %v308_v62  ;;  %895 = vst.msk [vmem:[#allocation3 + $0x14] sm:$0xf] %vm215_vm0, %v863_v21  ;;  %v864_v27 = vld [vmem:[#allocation2 + $0x24] sm:$0xf]  ;;  %v5462_v51 = vpack.c.bf16 %v208_v30, %v208_v30 }
  0x6c   : > { %v1197_v28 = vrot.slane %v1196_v14, 4  ;;  %v605_v17 = vrot.slane %v603_v49, 7  ;;  %310 = vst [vmem:[#allocation2 + $0x8c] sm:$0x1] %v309_v26  ;;  %v262_v29 = vsel %vm5151_vm3, 0, %v261_v7  ;;  %v1206_v32 = vor.u32 %v1205_v24, %v1201_v22 }
  0x6d   : > { %896 = vst.msk [vmem:[#allocation3 + $0x18] sm:$0xf] %vm215_vm0, %v864_v27  ;;  %v865_v31 = vld [vmem:[#allocation2 + $0x28] sm:$0xf]  ;;  %v951_v23 = vld [vmem:[#allocation2 + $0x74] sm:$0x1]  ;;  %v600_v34 = vor.u32 %v598_v15, %v597_v25 }
  0x6e   : > { %v813_v33 = vld [vmem:[#allocation2 + $0x80] sm:$0x1]  ;;  %v601_v35 = vrot.slane %v597_v25, 4  ;;  %263 = vst [vmem:[#allocation2 + $0x90] sm:$0x1] %v262_v29  ;;  %v1202_v37 = vsel %vm5205_vm11, %v1197_v28, %v1201_v22  ;;  %v1209_v38 = vshll.u32 %v951_v23, 16  ;;  %v608_v40 = vor.u32 %v606_v16, %v605_v17 }
  0x6f   : > { %897 = vst.msk [vmem:[#allocation3 + $0x1c] sm:$0xf] %vm215_vm0, %v865_v31  ;;  %v814_v39 = vsel %vm5151_vm3, %v593_v42, %v813_v33  ;;  %1393 = vrot.lane.b32.xlu0 %v1202_v37, %s5109_s18  ;;  %v1207_v43 = vrot.slane %v1206_v32, 4  ;;  %v952_v44 = vld [vmem:[#allocation2 + $0x78] sm:$0xf]  ;;  %v610_v46 = vrot.slane %v605_v17, 4 }
  0x70   : > { %815 = vst [vmem:[#allocation2 + $0x80] sm:$0x1] %v814_v39  ;;  %v816_v45 = vld [vmem:[#allocation2 + $0x84] sm:$0xf]  ;;  %v1211_v48 = vrot.slane %v1209_v38, 5  ;;  %v1214_v54 = vshrl.u32 %v952_v44, 16  ;;  %v609_v55 = vsel %vm5193_vm9, %v601_v35, %v608_v40 }
  0x71   : > { %v953_v53 = vld [vmem:[#allocation2 + $0x7c] sm:$0xf]  ;;  %v1217_v19 = vshll.u32 %v952_v44, 16  ;;  %v817_v58 = vsel %vm5199_vm10, %v600_v34, %v816_v45  ;;  %819 = vst.msk [vmem:[#allocation2 + $0x88] sm:$0xf] %vm215_vm0, %v609_v55  ;;  %v612_v59 = vshrl.u32 %v4957_v18, 16 }
  0x72   : > { %v1223_v56 = vshll.u32 %v953_v53, 16  ;;  %v1227_v57 = vshrl.u32 %v953_v53, 16  ;;  %v311_v60 = vld [vmem:[#allocation2 + $0x98] sm:$0x1]  ;;  %v1212_v42 = vsel %vm5205_vm11, %v1207_v43, %v1211_v48  ;;  %v1216_v61 = vrot.slane %v1214_v54, 4  ;;  %v209_v33 = vld [vmem:[%s5175_s17 + $0xd0] sm:$0xff] }
  0x73   : > { %v1219_v62 = vrot.slane %v1217_v19, 5  ;;  %818 = vst [vmem:[#allocation2 + $0x84] sm:$0xf] %v817_v58  ;;  %v615_v63 = vshll.u32 %v4957_v18, 16  ;;  %v264_v0 = vld [vmem:[#allocation2 + $0x9c] sm:$0x1]  ;;  %1395 = vrot.lane.b32.xlu1 %v1212_v42, %s5109_s18 }
  0x74   : > { %v1225_v3 = vrot.slane %v1223_v56, 5  ;;  %v1229_v4 = vrot.slane %v1227_v57, 4  ;;  %v820_v5 = vld [vmem:[#allocation2 + $0x8c] sm:$0x1]  ;;  %v614_v6 = vrot.slane %v612_v59, 7  ;;  %v620_v7 = vshrl.u32 %v4958_v36, 16 }
  0x75   : > { %v1220_v8 = vor.u32 %v1219_v62, %v1216_v61  ;;  %v821_v10 = vsel %vm5151_vm3, %v610_v46, %v820_v5  ;;  %v623_v11 = vshll.u32 %v4958_v36, 16  ;;  %v823_v2 = vld [vmem:[#allocation2 + $0x90] sm:$0xf]  ;;  %v312_v12 = vsel %vm5166_vm7, 0, %v311_v60  ;;  %v867_v20 = vld [vmem:[#allocation2 + $0x34] sm:$0xf] }
  0x76   : > { %v1230_v13 = vor.u32 %v1229_v4, %v1225_v3  ;;  %822 = vst [vmem:[#allocation2 + $0x8c] sm:$0x1] %v821_v10  ;;  %v617_v14 = vor.u32 %v615_v63, %v614_v6  ;;  %v618_v15 = vrot.slane %v614_v6, 4  ;;  %v622_v49 = vrot.slane %v620_v7, 7  ;;  %313 = vst [vmem:[#allocation2 + $0x98] sm:$0x1] %v312_v12 }
  0x77   : > { %v866_v16 = vld [vmem:[#allocation2 + $0x30] sm:$0xf]  ;;  %v1221_v21 = vrot.slane %v1220_v8, 4  ;;  %v954_v22 = vld [vmem:[#allocation2 + $0x80] sm:$0x1]  ;;  %v265_v24 = vsel %vm5151_vm3, 0, %v264_v0  ;;  %v4961_v59 = vpack.c.bf16 %v209_v33, %v209_v33 }
  0x78   : > { %v629_v25 = vshrl.u32 %v5460_v50, 16  ;;  %v632_v26 = vshll.u32 %v5460_v50, 16  ;;  %898 = vst.msk [vmem:[#allocation3 + $0x20] sm:$0xf] %vm215_vm0, %v866_v16  ;;  %899 = vst.msk [vmem:[#allocation3 + $0x24] sm:$0xf] %vm215_vm0, %v867_v20  ;;  %v625_v17 = vor.u32 %v623_v11, %v622_v49  ;;  %v824_v29 = vsel %vm5199_vm10, %v617_v14, %v823_v2 }
  0x79   : > { %v1231_v27 = vrot.slane %v1230_v13, 4  ;;  %v1233_v28 = vshll.u32 %v954_v22, 16  ;;  %266 = vst [vmem:[#allocation2 + $0x9c] sm:$0x1] %v265_v24  ;;  %v1226_v18 = vsel %vm5205_vm11, %v1221_v21, %v1225_v3  ;;  %v956_v30 = vld [vmem:[#allocation2 + $0x88] sm:$0xf] }
  0x7a   : > { %825 = vst [vmem:[#allocation2 + $0x90] sm:$0xf] %v824_v29  ;;  %v627_v31 = vrot.slane %v622_v49, 4  ;;  %v631_v23 = vrot.slane %v629_v25, 7  ;;  %v637_v32 = vshrl.u32 %v5462_v51, 16  ;;  %1397 = vrot.lane.b32.xlu0 %v1226_v18, %s5109_s18  ;;  %v1247_v36 = vshll.u32 %v956_v30, 16 }
  0x7b   : > { %v1235_v34 = vrot.slane %v1233_v28, 5  ;;  %v955_v35 = vld [vmem:[#allocation2 + $0x84] sm:$0xf]  ;;  %v1251_v37 = vshrl.u32 %v956_v30, 16  ;;  %v626_v38 = vsel %vm5193_vm9, %v618_v15, %v625_v17  ;;  %v210_v39 = vld [vmem:[%s5175_s17 + $0xd8] sm:$0xff]  ;;  %v640_v63 = vshll.u32 %v5462_v51, 16 }
  0x7c   : > { %v1238_v40 = vshrl.u32 %v955_v35, 16  ;;  %v1241_v43 = vshll.u32 %v955_v35, 16  ;;  %826 = vst.msk [vmem:[#allocation2 + $0x94] sm:$0xf] %vm215_vm0, %v626_v38  ;;  %v634_v44 = vor.u32 %v632_v26, %v631_v23  ;;  %v635_v45 = vrot.slane %v631_v23, 4  ;;  %v212_v33 = vld [vmem:[%s5175_s17 + $0xe8] sm:$0xff] }
  0x7d   : > { %v314_v46 = vld [vmem:[#allocation2 + $0xa4] sm:$0x1]  ;;  %v1236_v50 = vsel %vm5205_vm11, %v1231_v27, %v1235_v34  ;;  %v1249_v48 = vrot.slane %v1247_v36, 5  ;;  %v1253_v53 = vrot.slane %v1251_v37, 4  ;;  %v5495_v54 = vrot.slane %v637_v32, 7 }
  0x7e   : > { %v267_v19 = vld [vmem:[#allocation2 + $0xa8] sm:$0x1]  ;;  %1399 = vrot.lane.b32.xlu1 %v1236_v50, %s5109_s18  ;;  %v1240_v55 = vrot.slane %v1238_v40, 4  ;;  %v1243_v56 = vrot.slane %v1241_v43, 5  ;;  %v957_v57 = vld [vmem:[#allocation2 + $0x8c] sm:$0x1]  ;;  %v4962_v60 = vpack.c.bf16 %v210_v39, %v210_v39 }
  0x7f   : > { %v827_v58 = vld [vmem:[#allocation2 + $0x98] sm:$0x1]  ;;  %v1254_v42 = vor.u32 %v1253_v53, %v1249_v48  ;;  %v1257_v61 = vshll.u32 %v957_v57, 16  ;;  %v315_v4 = vsel %vm5166_vm7, 0, %v314_v46  ;;  %v644_v5 = vrot.slane %v5495_v54, 4  ;;  %v211_v32 = vld [vmem:[%s5175_s17 + $0xe0] sm:$0xff] }
  0x80   : > { %v828_v62 = vsel %vm5151_vm3, %v627_v31, %v827_v58  ;;  %v1244_v0 = vor.u32 %v1243_v56, %v1240_v55  ;;  %v830_v3 = vld [vmem:[#allocation2 + $0x9c] sm:$0xf]  ;;  %v268_v6 = vsel %vm5151_vm3, 0, %v267_v19  ;;  %v642_v11 = vor.u32 %v640_v63, %v5495_v54  ;;  %316 = vst [vmem:[#allocation2 + $0xa4] sm:$0x1] %v315_v4 }
  0x81   : > { %829 = vst [vmem:[#allocation2 + $0x98] sm:$0x1] %v828_v62  ;;  %v1255_v7 = vrot.slane %v1254_v42, 4  ;;  %v1259_v8 = vrot.slane %v1257_v61, 5  ;;  %v958_v10 = vld [vmem:[#allocation2 + $0x90] sm:$0xf]  ;;  %v831_v2 = vsel %vm5199_vm10, %v634_v44, %v830_v3  ;;  %v4963_v53 = vpack.c.bf16 %v211_v32, %v211_v32 }
  0x82   : > { %269 = vst [vmem:[#allocation2 + $0xa8] sm:$0x1] %v268_v6  ;;  %v317_v51 = vld [vmem:[#allocation2 + $0xb0] sm:$0x1]  ;;  %v1245_v12 = vrot.slane %v1244_v0, 4  ;;  %v1262_v13 = vshrl.u32 %v958_v10, 16  ;;  %v643_v21 = vsel %vm5193_vm9, %v635_v45, %v642_v11  ;;  %v4964_v54 = vpack.c.bf16 %v212_v33, %v212_v33 }
  0x83   : > { %v1265_v14 = vshll.u32 %v958_v10, 16  ;;  %832 = vst [vmem:[#allocation2 + $0x9c] sm:$0xf] %v831_v2  ;;  %v646_v15 = vshrl.u32 %v4961_v59, 16  ;;  %v868_v49 = vld [vmem:[#allocation2 + $0x3c] sm:$0xf]  ;;  %v1260_v16 = vsel %vm5205_vm11, %v1255_v7, %v1259_v8 }
  0x84   : > { %v959_v20 = vld [vmem:[#allocation2 + $0x94] sm:$0xf]  ;;  %v649_v22 = vshll.u32 %v4961_v59, 16  ;;  %v654_v24 = vshrl.u32 %v4962_v60, 16  ;;  %900 = vst.msk [vmem:[#allocation3 + $0x28] sm:$0xf] %vm215_vm0, %v868_v49  ;;  %v1250_v26 = vsel %vm5205_vm11, %v1245_v12, %v1249_v48  ;;  %1403 = vrot.lane.b32.xlu1 %v1260_v16, %s5109_s18 }
  0x85   : > { %v270_v25 = vld [vmem:[#allocation2 + $0xb4] sm:$0x1]  ;;  %v1264_v27 = vrot.slane %v1262_v13, 4  ;;  %v1267_v28 = vrot.slane %v1265_v14, 5  ;;  %v1271_v17 = vshll.u32 %v959_v20, 16  ;;  %1401 = vrot.lane.b32.xlu0 %v1250_v26, %s5109_s18  ;;  %v1275_v18 = vshrl.u32 %v959_v20, 16 }
  0x86   : > { %833 = vst.msk [vmem:[#allocation2 + $0xa0] sm:$0xf] %vm215_vm0, %v643_v21  ;;  %v869_v29 = vld [vmem:[#allocation2 + $0x40] sm:$0xf]  ;;  %v648_v30 = vrot.slane %v646_v15, 7  ;;  %v656_v31 = vrot.slane %v654_v24, 7 }
  0x87   : > { %v657_v23 = vshll.u32 %v4962_v60, 16  ;;  %901 = vst.msk [vmem:[#allocation3 + $0x2c] sm:$0xf] %vm215_vm0, %v869_v29  ;;  %v1268_v34 = vor.u32 %v1267_v28, %v1264_v27  ;;  %v1273_v35 = vrot.slane %v1271_v17, 5  ;;  %v318_v36 = vsel %vm5166_vm7, 0, %v317_v51 }
  0x88   : > { %v271_v37 = vsel %vm5151_vm3, 0, %v270_v25  ;;  %v960_v38 = vld [vmem:[#allocation2 + $0x98] sm:$0x1]  ;;  %v1277_v39 = vrot.slane %v1275_v18, 4  ;;  %v651_v40 = vor.u32 %v649_v22, %v648_v30  ;;  %v652_v43 = vrot.slane %v648_v30, 4 }
  0x89   : > { %v659_v44 = vor.u32 %v657_v23, %v656_v31  ;;  %319 = vst [vmem:[#allocation2 + $0xb0] sm:$0x1] %v318_v36  ;;  %272 = vst [vmem:[#allocation2 + $0xb4] sm:$0x1] %v271_v37  ;;  %v1269_v45 = vrot.slane %v1268_v34, 4  ;;  %v1281_v46 = vshll.u32 %v960_v38, 16 }
  0x8a   : > { %v834_v50 = vld [vmem:[#allocation2 + $0xa4] sm:$0x1]  ;;  %v837_v48 = vld [vmem:[#allocation2 + $0xa8] sm:$0xf]  ;;  %v1278_v19 = vor.u32 %v1277_v39, %v1273_v35  ;;  %v961_v55 = vld [vmem:[#allocation2 + $0x9c] sm:$0xf] }
  0x8b   : > { %v835_v56 = vsel %vm5151_vm3, %v644_v5, %v834_v50  ;;  %v660_v57 = vsel %vm5193_vm9, %v652_v43, %v659_v44  ;;  %v838_v58 = vsel %vm5199_vm10, %v651_v40, %v837_v48  ;;  %v870_v59 = vld [vmem:[#allocation2 + $0x48] sm:$0xf]  ;;  %v1274_v60 = vsel %vm5205_vm11, %v1269_v45, %v1273_v35  ;;  %v871_v63 = vld [vmem:[#allocation2 + $0x4c] sm:$0xf]  ;;  %v320_v14 = vld [vmem:[#allocation2 + $0xbc] sm:$0x1] }
  0x8c   : > { %v1283_v42 = vrot.slane %v1281_v46, 5  ;;  %v1286_v61 = vshrl.u32 %v961_v55, 16  ;;  %v1289_v62 = vshll.u32 %v961_v55, 16  ;;  %836 = vst [vmem:[#allocation2 + $0xa4] sm:$0x1] %v835_v56  ;;  %1405 = vrot.lane.b32.xlu0 %v1274_v60, %s5109_s18  ;;  %v1279_v0 = vrot.slane %v1278_v19, 4 }
  0x8d   : > { %839 = vst [vmem:[#allocation2 + $0xa8] sm:$0xf] %v838_v58  ;;  %840 = vst.msk [vmem:[#allocation2 + $0xac] sm:$0xf] %vm215_vm0, %v660_v57  ;;  %v962_v3 = vld [vmem:[#allocation2 + $0xa0] sm:$0xf] }
  0x8e   : > { %902 = vst.msk [vmem:[#allocation3 + $0x30] sm:$0xf] %vm215_vm0, %v870_v59  ;;  %v661_v4 = vrot.slane %v656_v31, 4  ;;  %v663_v5 = vshrl.u32 %v4963_v53, 16  ;;  %v666_v6 = vshll.u32 %v4963_v53, 16  ;;  %v1288_v7 = vrot.slane %v1286_v61, 4 }
  0x8f   : > { %903 = vst.msk [vmem:[#allocation3 + $0x34] sm:$0xf] %vm215_vm0, %v871_v63  ;;  %v1291_v8 = vrot.slane %v1289_v62, 5  ;;  %v1295_v10 = vshll.u32 %v962_v3, 16  ;;  %v1299_v11 = vshrl.u32 %v962_v3, 16  ;;  %v1284_v2 = vsel %vm5205_vm11, %v1279_v0, %v1283_v42 }
  0x90   : > { %v665_v51 = vrot.slane %v663_v5, 7  ;;  %v671_v12 = vshrl.u32 %v4964_v54, 16  ;;  %v674_v13 = vshll.u32 %v4964_v54, 16  ;;  %1407 = vrot.lane.b32.xlu1 %v1284_v2, %s5109_s18  ;;  %v841_v20 = vld [vmem:[#allocation2 + $0xb0] sm:$0x1]  ;;  %v321_v29 = vsel %vm5166_vm7, 0, %v320_v14 }
  0x91   : > { %v1292_v15 = vor.u32 %v1291_v8, %v1288_v7  ;;  %v1297_v49 = vrot.slane %v1295_v10, 5  ;;  %v1301_v16 = vrot.slane %v1299_v11, 4  ;;  %v844_v21 = vld [vmem:[#allocation2 + $0xb4] sm:$0xf]  ;;  %v842_v22 = vsel %vm5151_vm3, %v661_v4, %v841_v20  ;;  %v873_v18 = vld [vmem:[#allocation2 + $0x58] sm:$0xf] }
  0x92   : > { %v668_v24 = vor.u32 %v666_v6, %v665_v51  ;;  %v669_v25 = vrot.slane %v665_v51, 4  ;;  %v673_v26 = vrot.slane %v671_v12, 7  ;;  %v872_v27 = vld [vmem:[#allocation2 + $0x54] sm:$0xf]  ;;  %843 = vst [vmem:[#allocation2 + $0xb0] sm:$0x1] %v842_v22 }
  0x93   : > { %v1293_v28 = vrot.slane %v1292_v15, 4  ;;  %v1302_v17 = vor.u32 %v1301_v16, %v1297_v49  ;;  %904 = vst.msk [vmem:[#allocation3 + $0x38] sm:$0xf] %vm215_vm0, %v872_v27  ;;  %v963_v30 = vld [vmem:[#allocation2 + $0xa4] sm:$0x1]  ;;  %vm1582_vm12 = vcmask 1042432  }
  0x94   : > { %v964_v31 = vld [vmem:[#allocation2 + $0xa8] sm:$0xf]  ;;  %v965_v23 = vld [vmem:[#allocation2 + $0xac] sm:$0xf]  ;;  %v676_v32 = vor.u32 %v674_v13, %v673_v26  ;;  %v845_v33 = vsel %vm5199_vm10, %v668_v24, %v844_v21  ;;  %322 = vst [vmem:[#allocation2 + $0xbc] sm:$0x1] %v321_v29 }
  0x95   : > { %905 = vst.msk [vmem:[#allocation3 + $0x3c] sm:$0xf] %vm215_vm0, %v873_v18  ;;  %v1298_v34 = vsel %vm5205_vm11, %v1293_v28, %v1297_v49  ;;  %v1303_v35 = vrot.slane %v1302_v17, 4  ;;  %v1305_v36 = vshll.u32 %v963_v30, 16  ;;  %v1310_v37 = vshrl.u32 %v964_v31, 16 }
  0x96   : > { %846 = vst [vmem:[#allocation2 + $0xb4] sm:$0xf] %v845_v33  ;;  %1409 = vrot.lane.b32.xlu0 %v1298_v34, %s5109_s18  ;;  %v1313_v38 = vshll.u32 %v964_v31, 16  ;;  %v1319_v39 = vshll.u32 %v965_v23, 16  ;;  %v1323_v40 = vshrl.u32 %v965_v23, 16  ;;  %v677_v43 = vsel %vm5193_vm9, %v669_v25, %v676_v32  ;;  %v5568_v25 = vpop.permute.xlu0 %1357 }
  0x97   : > { %v1307_v44 = vrot.slane %v1305_v36, 5  ;;  %v1312_v45 = vrot.slane %v1310_v37, 4  ;;  %847 = vst.msk [vmem:[#allocation2 + $0xb8] sm:$0xf] %vm215_vm0, %v677_v43  ;;  %v678_v53 = vrot.slane %v673_v26, 4  ;;  %vm1583_vm13 = vcmask 1046532  }
  0x98   : > { %v1315_v46 = vrot.slane %v1313_v38, 5  ;;  %v1321_v50 = vrot.slane %v1319_v39, 5  ;;  %v1325_v48 = vrot.slane %v1323_v40, 4  ;;  %v874_v3 = vld [vmem:[#allocation2 + $0x60] sm:$0xf]  ;;  %vm5572_vm14 = vmor %vm1582_vm12, %vm1583_vm13  ;;  %vm1453_vm15 = vcmask 60448  }
  0x99   : > { %v1308_v54 = vsel %vm5205_vm11, %v1303_v35, %v1307_v44  ;;  %v966_v55 = vld [vmem:[#allocation2 + $0xb0] sm:$0x1]  ;;  %906 = vst.msk [vmem:[#allocation3 + $0x40] sm:$0xf] %vm215_vm0, %v874_v3  ;;  %v1486_v11 = vld [vmem:[#allocation2] sm:$0xe] }
  0x9a   : > { %1411 = vrot.lane.b32.xlu1 %v1308_v54, %s5109_s18  ;;  %v1316_v19 = vor.u32 %v1315_v46, %v1312_v45  ;;  %v1326_v56 = vor.u32 %v1325_v48, %v1321_v50  ;;  %v1329_v57 = vshll.u32 %v966_v55, 16  ;;  %v1487_v51 = vld [vmem:[#allocation2 + $0x4] sm:$0xf]  ;;  %v1488_v15 = vld [vmem:[#allocation2 + $0x8] sm:$0x1]  ;;  %v4816_v22 = vrot.slane %v1486_v11, 9  ;;  %v1360_v45 = vpop.permute.xlu0 %1359 }
  0x9b   : > { %v848_v58 = vld [vmem:[#allocation2 + $0xbc] sm:$0x1]  ;;  %v875_v12 = vld [vmem:[#allocation2 + $0x64] sm:$0xf]  ;;  %v1489_v16 = vld [vmem:[#allocation2 + $0xc] sm:$0xe] }
  0x9c   : > { %v1317_v59 = vrot.slane %v1316_v19, 4  ;;  %v1327_v60 = vrot.slane %v1326_v56, 4  ;;  %v849_v61 = vsel %vm5151_vm3, %v678_v53, %v848_v58  ;;  %v1331_v62 = vrot.slane %v1329_v57, 5  ;;  %907 = vst.msk [vmem:[#allocation3 + $0x44] sm:$0xf] %vm215_vm0, %v875_v12 }
  0x9d   : > { %v967_v42 = vld [vmem:[#allocation2 + $0xb4] sm:$0xf]  ;;  %850 = vst [vmem:[#allocation2 + $0xbc] sm:$0x1] %v849_v61  ;;  %v876_v20 = vld [vmem:[#allocation2 + $0x6c] sm:$0xf] }
  0x9e   : > { %v1334_v63 = vshrl.u32 %v967_v42, 16  ;;  %v1337_v0 = vshll.u32 %v967_v42, 16  ;;  %v1322_v4 = vsel %vm5205_vm11, %v1317_v59, %v1321_v50  ;;  %v968_v5 = vld [vmem:[#allocation2 + $0xb8] sm:$0xf]  ;;  %v1332_v6 = vsel %vm5205_vm11, %v1327_v60, %v1331_v62  ;;  %908 = vst.msk [vmem:[#allocation3 + $0x48] sm:$0xf] %vm215_vm0, %v876_v20 }
  0x9f   : > { %1413 = vrot.lane.b32.xlu0 %v1322_v4, %s5109_s18  ;;  %v1343_v10 = vshll.u32 %v968_v5, 16  ;;  %1415 = vrot.lane.b32.xlu1 %v1332_v6, %s5109_s18  ;;  %v1347_v2 = vshrl.u32 %v968_v5, 16  ;;  %v1587_v24 = vrot.slane %v1487_v51, 5  ;;  %v877_v26 = vld [vmem:[#allocation2 + $0x70] sm:$0xf]  ;;  %v1590_v32 = vrot.slane %v1488_v15, 5 }
  0xa0   : > { %v1336_v7 = vrot.slane %v1334_v63, 4  ;;  %v1339_v8 = vrot.slane %v1337_v0, 5  ;;  %v1490_v29 = vld [vmem:[#allocation2 + $0x10] sm:$0xf]  ;;  %909 = vst.msk [vmem:[#allocation3 + $0x4c] sm:$0xf] %vm215_vm0, %v877_v26 }
  0xa1   : > { %v1345_v14 = vrot.slane %v1343_v10, 5  ;;  %v1349_v49 = vrot.slane %v1347_v2, 4  ;;  %v1491_v31 = vld [vmem:[#allocation2 + $0x14] sm:$0x1]  ;;  %v4817_v33 = vrot.slane %v1489_v16, 9  ;;  %v1588_v36 = vsel %vm5572_vm14, %v4816_v22, %v1587_v24 }
  0xa2   : > { %v1340_v13 = vor.u32 %v1339_v8, %v1336_v7  ;;  %v1493_v34 = vld [vmem:[#allocation2 + $0x1c] sm:$0xf]  ;;  %v1589_v37 = vrot.slane %v1587_v24, 4  ;;  %v1594_v38 = vrot.slane %v1490_v29, 5  ;;  %v878_v39 = vld [vmem:[#allocation2 + $0x78] sm:$0xf]  ;;  %v1362_v60 = vpop.permute.xlu1 %1361 }
  0xa3   : > { %v1350_v28 = vor.u32 %v1349_v49, %v1345_v14  ;;  %v1492_v40 = vld [vmem:[#allocation2 + $0x18] sm:$0xe]  ;;  %910 = vst.msk [vmem:[#allocation3 + $0x50] sm:$0xf] %vm215_vm0, %v878_v39  ;;  %v879_v43 = vld [vmem:[#allocation2 + $0x7c] sm:$0xf] }
  0xa4   : > { %v1341_v21 = vrot.slane %v1340_v13, 4  ;;  %v969_v27 = vld [vmem:[#allocation2 + $0xbc] sm:$0x1]  ;;  %911 = vst.msk [vmem:[#allocation3 + $0x54] sm:$0xf] %vm215_vm0, %v879_v43  ;;  %v1597_v46 = vrot.slane %v1491_v31, 5  ;;  %v1591_v53 = vsel %vm5572_vm14, %v1589_v37, %v1590_v32  ;;  %v1595_v54 = vsel %vm5572_vm14, %v4817_v33, %v1594_v38 }
  0xa5   : > { %v1353_v30 = vshll.u32 %v969_v27, 16  ;;  %v1351_v23 = vrot.slane %v1350_v28, 4  ;;  %v1601_v50 = vrot.slane %v1493_v34, 5  ;;  %v880_v48 = vld [vmem:[#allocation2 + $0x84] sm:$0xf]  ;;  %v1596_v19 = vrot.slane %v1594_v38, 4 }
  0xa6   : > { %v1346_v18 = vsel %vm5205_vm11, %v1341_v21, %v1345_v14  ;;  %v4818_v55 = vrot.slane %v1492_v40, 9  ;;  %v1494_v56 = vld [vmem:[#allocation2 + $0x20] sm:$0x1]  ;;  %912 = vst.msk [vmem:[#allocation3 + $0x58] sm:$0xf] %vm215_vm0, %v880_v48  ;;  %v1366_v6 = vpop.permute.xlu0 %1365  ;;  %v1364_v11 = vpop.permute.xlu1 %1363  ;;  %vm1793_vm2 = vcmask 93248  }
  0xa7   : > { %1417 = vrot.lane.b32.xlu0 %v1346_v18, %s5109_s18  ;;  %v1355_v35 = vrot.slane %v1353_v30, 5  ;;  %v881_v57 = vld [vmem:[#allocation2 + $0x88] sm:$0xf]  ;;  %v1495_v58 = vld [vmem:[#allocation2 + $0x24] sm:$0xe]  ;;  %v1603_v42 = vrot.slane %v1601_v50, 4  ;;  %v1598_v63 = vsel %vm5572_vm14, %v1596_v19, %v1597_v46 }
  0xa8   : > { %v1496_v59 = vld [vmem:[#allocation2 + $0x28] sm:$0xf]  ;;  %913 = vst.msk [vmem:[#allocation3 + $0x5c] sm:$0xf] %vm215_vm0, %v881_v57  ;;  %v1604_v61 = vrot.slane %v1494_v56, 5  ;;  %v1602_v0 = vsel %vm5572_vm14, %v4818_v55, %v1601_v50  ;;  %v4819_v3 = vrot.slane %v1495_v58, 9 }
  0xa9   : > { %v1356_v44 = vsel %vm5205_vm11, %v1351_v23, %v1355_v35  ;;  %v882_v62 = vld [vmem:[#allocation2 + $0x90] sm:$0xf]  ;;  %v1608_v4 = vrot.slane %v1496_v59, 5  ;;  %v1497_v5 = vld [vmem:[#allocation2 + $0x2c] sm:$0x1]  ;;  %vm4190_vm4 = vcmask 1041408  }
  0xaa   : > { %1419 = vrot.lane.b32.xlu1 %v1356_v44, %s5109_s18  ;;  %914 = vst.msk [vmem:[#allocation3 + $0x60] sm:$0xf] %vm215_vm0, %v882_v62  ;;  %v883_v7 = vld [vmem:[#allocation2 + $0x94] sm:$0xf]  ;;  %v1498_v8 = vld [vmem:[#allocation2 + $0x30] sm:$0xe]  ;;  %v1605_v51 = vsel %vm5572_vm14, %v1603_v42, %v1604_v61  ;;  %v1368_v24 = vpop.permute.xlu1 %1367 }
  0xab   : > { %1697 = vrot.lane.b32.xlu0 %v1588_v36, %s5110_s19  ;;  %v1499_v10 = vld [vmem:[#allocation2 + $0x34] sm:$0xf]  ;;  %915 = vst.msk [vmem:[#allocation3 + $0x64] sm:$0xf] %vm215_vm0, %v883_v7  ;;  %v884_v2 = vld [vmem:[#allocation2 + $0x9c] sm:$0xf]  ;;  %v1609_v15 = vsel %vm5572_vm14, %v4819_v3, %v1608_v4 }
  0xac   : > { %v1611_v12 = vrot.slane %v1497_v5, 5  ;;  %v1501_v13 = vld [vmem:[#allocation2 + $0x3c] sm:$0xe]  ;;  %1454 = vst.msk [vmem:[#allocation3] sm:$0xf] %vm1453_vm15, %v5568_v25  ;;  %v1610_v49 = vrot.slane %v1608_v4, 4 }
  0xad   : > { %1456 = vst.msk [vmem:[#allocation3 + $0x8] sm:$0xf] %vm1453_vm15, %v1362_v60  ;;  %1455 = vst.msk [vmem:[#allocation3 + $0x4] sm:$0xf] %vm1453_vm15, %v1360_v45  ;;  %v885_v14 = vld [vmem:[#allocation2 + $0xa0] sm:$0xf]  ;;  %v1370_v28 = vpop.permute.xlu0 %1369 }
  0xae   : > { %1699 = vrot.lane.b32.xlu1 %v1591_v53, %s5110_s19  ;;  %1457 = vst.msk [vmem:[#allocation3 + $0xc] sm:$0xf] %vm1453_vm15, %v1364_v11  ;;  %1458 = vst.msk [vmem:[#allocation3 + $0x10] sm:$0xf] %vm1453_vm15, %v1366_v6  ;;  %v4820_v16 = vrot.slane %v1498_v8, 9  ;;  %v1615_v20 = vrot.slane %v1499_v10, 5  ;;  %v1612_v18 = vsel %vm5572_vm14, %v1610_v49, %v1611_v12 }
  0xaf   : > { %1701 = vrot.lane.b32.xlu0 %v1595_v54, %s5110_s19  ;;  %916 = vst.msk [vmem:[#allocation3 + $0x68] sm:$0xf] %vm215_vm0, %v884_v2  ;;  %v1502_v21 = vld [vmem:[#allocation2 + $0x40] sm:$0xf]  ;;  %917 = vst.msk [vmem:[#allocation3 + $0x6c] sm:$0xf] %vm215_vm0, %v885_v14 }
  0xb0   : > { %v1500_v22 = vld [vmem:[#allocation2 + $0x38] sm:$0x1]  ;;  %1459 = vst.msk [vmem:[#allocation3 + $0x14] sm:$0xf] %vm1453_vm15, %v1368_v24  ;;  %v886_v25 = vld [vmem:[#allocation2 + $0xa8] sm:$0xf]  ;;  %v1616_v30 = vsel %vm5572_vm14, %v4820_v16, %v1615_v20  ;;  %v1372_v35 = vpop.permute.xlu1 %1371 }
  0xb1   : > { %v4821_v26 = vrot.slane %v1501_v13, 9  ;;  %v1622_v27 = vrot.slane %v1502_v21, 5  ;;  %918 = vst.msk [vmem:[#allocation3 + $0x70] sm:$0xf] %vm215_vm0, %v886_v25  ;;  %v887_v29 = vld [vmem:[#allocation2 + $0xac] sm:$0xf] }
  0xb2   : > { %1703 = vrot.lane.b32.xlu1 %v1598_v63, %s5110_s19  ;;  %v1617_v31 = vrot.slane %v1615_v20, 4  ;;  %v1618_v23 = vrot.slane %v1500_v22, 5  ;;  %1460 = vst.msk [vmem:[#allocation3 + $0x18] sm:$0xf] %vm1453_vm15, %v1370_v28  ;;  %v1503_v32 = vld [vmem:[#allocation2 + $0x44] sm:$0x1] }
  0xb3   : > { %1705 = vrot.lane.b32.xlu0 %v1602_v0, %s5110_s19  ;;  %919 = vst.msk [vmem:[#allocation3 + $0x74] sm:$0xf] %vm215_vm0, %v887_v29  ;;  %v1504_v33 = vld [vmem:[#allocation2 + $0x48] sm:$0xe]  ;;  %v1505_v34 = vld [vmem:[#allocation2 + $0x4c] sm:$0xf]  ;;  %v1623_v37 = vsel %vm5572_vm14, %v4821_v26, %v1622_v27  ;;  %v1374_v53 = vpop.permute.xlu0 %1373 }
  0xb4   : > { %v888_v36 = vld [vmem:[#allocation2 + $0xb4] sm:$0xf]  ;;  %v1624_v38 = vrot.slane %v1622_v27, 4  ;;  %1461 = vst.msk [vmem:[#allocation3 + $0x1c] sm:$0xf] %vm1453_vm15, %v1372_v35  ;;  %v1619_v43 = vsel %vm5572_vm14, %v1617_v31, %v1618_v23  ;;  %v1625_v44 = vrot.slane %v1503_v32, 5 }
  0xb5   : > { %v1507_v39 = vld [vmem:[#allocation2 + $0x54] sm:$0xe]  ;;  %920 = vst.msk [vmem:[#allocation3 + $0x78] sm:$0xf] %vm215_vm0, %v888_v36  ;;  %v889_v40 = vld [vmem:[#allocation2 + $0xb8] sm:$0xf] }
  0xb6   : > { %1707 = vrot.lane.b32.xlu1 %v1605_v51, %s5110_s19  ;;  %v4822_v45 = vrot.slane %v1504_v33, 9  ;;  %v1629_v46 = vrot.slane %v1505_v34, 5  ;;  %v1508_v50 = vld [vmem:[#allocation2 + $0x58] sm:$0xf]  ;;  %921 = vst.msk [vmem:[#allocation3 + $0x7c] sm:$0xf] %vm215_vm0, %v889_v40  ;;  %v1626_v55 = vsel %vm5572_vm14, %v1624_v38, %v1625_v44  ;;  %v1376_v59 = vpop.permute.xlu1 %1375 }
  0xb7   : > { %1709 = vrot.lane.b32.xlu0 %v1609_v15, %s5110_s19  ;;  %v1506_v48 = vld [vmem:[#allocation2 + $0x50] sm:$0x1]  ;;  %1462 = vst.msk [vmem:[#allocation3 + $0x20] sm:$0xf] %vm1453_vm15, %v1374_v53  ;;  %v4823_v54 = vrot.slane %v1507_v39, 9  ;;  %v1636_v19 = vrot.slane %v1508_v50, 5 }
  0xb8   : > { %v1630_v56 = vsel %vm5572_vm14, %v4822_v45, %v1629_v46  ;;  %v1631_v57 = vrot.slane %v1629_v46, 4  ;;  %v1632_v58 = vrot.slane %v1506_v48, 5  ;;  %v1509_v60 = vld [vmem:[#allocation2 + $0x5c] sm:$0x1]  ;;  %v1510_v42 = vld [vmem:[#allocation2 + $0x60] sm:$0xe] }
  0xb9   : > { %v1511_v61 = vld [vmem:[#allocation2 + $0x64] sm:$0xf]  ;;  %1463 = vst.msk [vmem:[#allocation3 + $0x24] sm:$0xf] %vm1453_vm15, %v1376_v59  ;;  %v1637_v62 = vsel %vm5572_vm14, %v4823_v54, %v1636_v19  ;;  %v1638_v63 = vrot.slane %v1636_v19, 4  ;;  %v1639_v4 = vrot.slane %v1509_v60, 5 }
  0xba   : > { %1711 = vrot.lane.b32.xlu1 %v1612_v18, %s5110_s19  ;;  %v1512_v0 = vld [vmem:[#allocation2 + $0x68] sm:$0x1]  ;;  %v1633_v3 = vsel %vm5572_vm14, %v1631_v57, %v1632_v58  ;;  %v4824_v5 = vrot.slane %v1510_v42, 9  ;;  %v1643_v6 = vrot.slane %v1511_v61, 5  ;;  %v1513_v7 = vld [vmem:[#allocation2 + $0x6c] sm:$0xe] }
  0xbb   : > { %1713 = vrot.lane.b32.xlu0 %v1616_v30, %s5110_s19  ;;  %v1514_v8 = vld [vmem:[#allocation2 + $0x70] sm:$0xf]  ;;  %v1646_v10 = vrot.slane %v1512_v0, 5  ;;  %v4825_v11 = vrot.slane %v1513_v7, 9  ;;  %v1640_v51 = vsel %vm5572_vm14, %v1638_v63, %v1639_v4  ;;  %v1515_v15 = vld [vmem:[#allocation2 + $0x74] sm:$0x1] }
  0xbc   : > { %v1644_v12 = vsel %vm5572_vm14, %v4824_v5, %v1643_v6  ;;  %v1645_v13 = vrot.slane %v1643_v6, 4  ;;  %v1650_v14 = vrot.slane %v1514_v8, 5  ;;  %v1516_v49 = vld [vmem:[#allocation2 + $0x78] sm:$0xe]  ;;  %v1517_v16 = vld [vmem:[#allocation2 + $0x7c] sm:$0xf] }
  0xbd   : > { %v1378_v2 = vpop.permute.xlu0 %1377  ;;  %v1653_v20 = vrot.slane %v1515_v15, 5  ;;  %v4826_v21 = vrot.slane %v1516_v49, 9  ;;  %v1657_v26 = vrot.slane %v1517_v16, 5  ;;  %v1518_v27 = vld [vmem:[#allocation2 + $0x80] sm:$0x1]  ;;  %vm1986_vm5 = vcmask 126048  }
  0xbe   : > { %1715 = vrot.lane.b32.xlu1 %v1619_v43, %s5110_s19  ;;  %1464 = vst.msk [vmem:[#allocation3 + $0x28] sm:$0xf] %vm1453_vm15, %v1378_v2  ;;  %v1647_v22 = vsel %vm5572_vm14, %v1645_v13, %v1646_v10  ;;  %v1651_v24 = vsel %vm5572_vm14, %v4825_v11, %v1650_v14  ;;  %v1652_v25 = vrot.slane %v1650_v14, 4  ;;  %v1520_v28 = vld [vmem:[#allocation2 + $0x88] sm:$0xf]  ;;  %v1660_v30 = vrot.slane %v1518_v27, 5 }
  0xbf   : > { %1717 = vrot.lane.b32.xlu0 %v1623_v37, %s5110_s19  ;;  %v1519_v18 = vld [vmem:[#allocation2 + $0x84] sm:$0xe]  ;;  %v1664_v31 = vrot.slane %v1520_v28, 5  ;;  %v1658_v32 = vsel %vm5572_vm14, %v4826_v21, %v1657_v26  ;;  %v1659_v33 = vrot.slane %v1657_v26, 4  ;;  %v1521_v35 = vld [vmem:[#allocation2 + $0x8c] sm:$0x1] }
  0xc0   : > { %v1654_v23 = vsel %vm5572_vm14, %v1652_v25, %v1653_v20  ;;  %v4827_v34 = vrot.slane %v1519_v18, 9  ;;  %v1522_v36 = vld [vmem:[#allocation2 + $0x90] sm:$0xe]  ;;  %v1523_v37 = vld [vmem:[#allocation2 + $0x94] sm:$0xf]  ;;  %v1667_v39 = vrot.slane %v1521_v35, 5 }
  0xc1   : > { %v1666_v38 = vrot.slane %v1664_v31, 4  ;;  %v1661_v44 = vsel %vm5572_vm14, %v1659_v33, %v1660_v30  ;;  %v4828_v46 = vrot.slane %v1522_v36, 9  ;;  %v1671_v50 = vrot.slane %v1523_v37, 5  ;;  %v1524_v48 = vld [vmem:[#allocation2 + $0x98] sm:$0x1] }
  0xc2   : > { %1719 = vrot.lane.b32.xlu1 %v1626_v55, %s5110_s19  ;;  %v1380_v29 = vpop.permute.xlu1 %1379  ;;  %v1665_v45 = vsel %vm5572_vm14, %v4827_v34, %v1664_v31  ;;  %v1525_v53 = vld [vmem:[#allocation2 + $0x9c] sm:$0xe]  ;;  %v1526_v54 = vld [vmem:[#allocation2 + $0xa0] sm:$0xf]  ;;  %v1674_v55 = vrot.slane %v1524_v48, 5  ;;  %vm2547_vm6 = vcmask 158848  }
  0xc3   : > { %1721 = vrot.lane.b32.xlu0 %v1630_v56, %s5110_s19  ;;  %1465 = vst.msk [vmem:[#allocation3 + $0x2c] sm:$0xf] %vm1453_vm15, %v1380_v29  ;;  %v1668_v19 = vsel %vm5572_vm14, %v1666_v38, %v1667_v39  ;;  %v1527_v56 = vld [vmem:[#allocation2 + $0xa4] sm:$0x1]  ;;  %v1672_v58 = vsel %vm5572_vm14, %v4828_v46, %v1671_v50  ;;  %v1673_v59 = vrot.slane %v1671_v50, 4  ;;  %v4829_v60 = vrot.slane %v1525_v53, 9 }
  0xc4   : > { %v1678_v42 = vrot.slane %v1526_v54, 5  ;;  %v1528_v61 = vld [vmem:[#allocation2 + $0xa8] sm:$0xe]  ;;  %v1681_v63 = vrot.slane %v1527_v56, 5  ;;  %v1530_v7 = vld [vmem:[#allocation2 + $0xb0] sm:$0x1] }
  0xc5   : > { %v4830_v0 = vrot.slane %v1528_v61, 9  ;;  %v1531_v8 = vld [vmem:[#allocation2 + $0xb4] sm:$0xe]  ;;  %v1532_v10 = vld [vmem:[#allocation2 + $0xb8] sm:$0xf]  ;;  %v1688_v2 = vrot.slane %v1530_v7, 5 }
  0xc6   : > { %1723 = vrot.lane.b32.xlu1 %v1633_v3, %s5110_s19  ;;  %v1675_v3 = vsel %vm5572_vm14, %v1673_v59, %v1674_v55  ;;  %v1679_v4 = vsel %vm5572_vm14, %v4829_v60, %v1678_v42  ;;  %v1680_v5 = vrot.slane %v1678_v42, 4  ;;  %v1692_v15 = vrot.slane %v1532_v10, 5  ;;  %v1533_v49 = vld [vmem:[#allocation2 + $0xbc] sm:$0x1]  ;;  %v1826_v28 = vld [vmem:[#allocation2 + $0xc] sm:$0xf] }
  0xc7   : > { %1725 = vrot.lane.b32.xlu0 %v1637_v62, %s5110_s19  ;;  %v1529_v62 = vld [vmem:[#allocation2 + $0xac] sm:$0xf]  ;;  %v1695_v25 = vrot.slane %v1533_v49, 5  ;;  %v1827_v18 = vld [vmem:[#allocation2 + $0x10] sm:$0xf]  ;;  %vm2884_vm8 = vcmask 191648  }
  0xc8   : > { %v1685_v6 = vrot.slane %v1529_v62, 5  ;;  %v1828_v30 = vld [vmem:[#allocation2 + $0x18] sm:$0xf]  ;;  %v1829_v31 = vld [vmem:[#allocation2 + $0x1c] sm:$0xf]  ;;  %vm3078_vm12 = vcmask 224448  }
  0xc9   : > { %v1831_v33 = vld [vmem:[#allocation2 + $0x28] sm:$0xf]  ;;  %v1832_v34 = vld [vmem:[#allocation2 + $0x30] sm:$0xf]  ;;  %v1833_v36 = vld [vmem:[#allocation2 + $0x34] sm:$0xf] }
  0xca   : > { %1727 = vrot.lane.b32.xlu1 %v1640_v51, %s5110_s19  ;;  %v1382_v40 = vpop.permute.xlu0 %1381  ;;  %v1384_v43 = vpop.permute.xlu1 %1383  ;;  %v4831_v51 = vrot.slane %v1531_v8, 9  ;;  %v1686_v13 = vsel %vm5572_vm14, %v4830_v0, %v1685_v6  ;;  %v1687_v14 = vrot.slane %v1685_v6, 4  ;;  %v1834_v37 = vld [vmem:[#allocation2 + $0x3c] sm:$0xf]  ;;  %v2019_v38 = vld [vmem:[#allocation2 + $0xc] sm:$0xf] }
  0xcb   : > { %1729 = vrot.lane.b32.xlu0 %v1644_v12, %s5110_s19  ;;  %1466 = vst.msk [vmem:[#allocation3 + $0x30] sm:$0xf] %vm1453_vm15, %v1382_v40  ;;  %1467 = vst.msk [vmem:[#allocation3 + $0x34] sm:$0xf] %vm1453_vm15, %v1384_v43  ;;  %v1682_v12 = vsel %vm5572_vm14, %v1680_v5, %v1681_v63  ;;  %v2068_v43 = vshrl.u32 %v2019_v38, 16  ;;  %vm3639_vm13 = vcmask 257248  }
  0xcc   : > { %v1689_v21 = vsel %vm5572_vm14, %v1687_v14, %v1688_v2  ;;  %v1836_v46 = vld [vmem:[#allocation2 + $0x48] sm:$0xf]  ;;  %v2020_v50 = vld [vmem:[#allocation2 + $0x10] sm:$0xf]  ;;  %v2022_v48 = vld [vmem:[#allocation2 + $0x18] sm:$0xf] }
  0xcd   : > { %v2070_v53 = vrot.slane %v2068_v43, 4  ;;  %v2081_v55 = vshrl.u32 %v2020_v50, 16  ;;  %v1837_v56 = vld [vmem:[#allocation2 + $0x4c] sm:$0xf]  ;;  %v2095_v59 = vshll.u32 %v2022_v48, 16 }
  0xce   : > { %1731 = vrot.lane.b32.xlu1 %v1647_v22, %s5110_s19  ;;  %v1386_v57 = vpop.permute.xlu0 %1385  ;;  %v1693_v22 = vsel %vm5572_vm14, %v4831_v51, %v1692_v15  ;;  %v2023_v42 = vld [vmem:[#allocation2 + $0x1c] sm:$0xf]  ;;  %v1839_v61 = vld [vmem:[#allocation2 + $0x58] sm:$0xf]  ;;  %v1840_v62 = vld [vmem:[#allocation2 + $0x60] sm:$0xf] }
  0xcf   : > { %1733 = vrot.lane.b32.xlu0 %v1651_v24, %s5110_s19  ;;  %1468 = vst.msk [vmem:[#allocation3 + $0x38] sm:$0xf] %vm1453_vm15, %v1386_v57  ;;  %v1694_v24 = vrot.slane %v1692_v15, 4  ;;  %v1838_v57 = vld [vmem:[#allocation2 + $0x54] sm:$0xf]  ;;  %v2097_v7 = vrot.slane %v2095_v59, 5 }
  0xd0   : > { %v2021_v5 = vld [vmem:[#allocation2 + $0x14] sm:$0x1]  ;;  %v2101_v8 = vshll.u32 %v2023_v42, 16  ;;  %v2105_v10 = vshrl.u32 %v2023_v42, 16  ;;  %v2024_v49 = vld [vmem:[#allocation2 + $0x20] sm:$0x1] }
  0xd1   : > { %v1696_v27 = vsel %vm5572_vm14, %v1694_v24, %v1695_v25  ;;  %v2087_v51 = vshll.u32 %v2021_v5, 16  ;;  %v2111_v24 = vshll.u32 %v2024_v49, 16  ;;  %v2585_v43 = vld [vmem:[#allocation2 + $0x20] sm:$0x1] }
  0xd2   : > { %1735 = vrot.lane.b32.xlu1 %v1654_v23, %s5110_s19  ;;  %v1830_v23 = vld [vmem:[#allocation2 + $0x24] sm:$0xf]  ;;  %v2103_v15 = vrot.slane %v2101_v8, 5  ;;  %v2688_v42 = vrot.slane %v2585_v43, 5  ;;  %v5781_v43 = vld [vmem:[#allocation2 + $0x20] sm:$0x1] }
  0xd3   : > { %1737 = vrot.lane.b32.xlu0 %v1658_v32, %s5110_s19 }
  0xd5   : > { %v1388_v11 = vpop.permute.xlu1 %1387 }
  0xd6   : > { %1739 = vrot.lane.b32.xlu1 %v1661_v44, %s5110_s19  ;;  %1469 = vst.msk [vmem:[#allocation3 + $0x3c] sm:$0xf] %vm1453_vm15, %v1388_v11  ;;  %v2071_v44 = vshll.u32 %v2019_v38, 16  ;;  %v1841_v11 = vld [vmem:[#allocation2 + $0x64] sm:$0xf] }
  0xd7   : > { %1741 = vrot.lane.b32.xlu0 %v1665_v45, %s5110_s19  ;;  %v1835_v45 = vld [vmem:[#allocation2 + $0x40] sm:$0xf]  ;;  %v2584_v38 = vld [vmem:[#allocation2 + $0x1c] sm:$0xf] }
  0xd8   : > { %v2073_v54 = vrot.slane %v2071_v44, 5 }
  0xda   : > { %1743 = vrot.lane.b32.xlu1 %v1668_v19, %s5110_s19  ;;  %v1390_v16 = vpop.permute.xlu0 %1389  ;;  %v2077_v19 = vshll.u32 %v2020_v50, 16  ;;  %v2074_v63 = vor.u32 %v2073_v54, %v2070_v53  ;;  %v3112_v53 = vld [vmem:[#allocation2 + $0x1c] sm:$0xf] }
  0xdb   : > { %1745 = vrot.lane.b32.xlu0 %v1672_v58, %s5110_s19  ;;  %1470 = vst.msk [vmem:[#allocation3 + $0x40] sm:$0xf] %vm1453_vm15, %v1390_v16  ;;  %v1392_v20 = vpop.permute.xlu1 %1391  ;;  %v2092_v58 = vshrl.u32 %v2022_v48, 16  ;;  %v2107_v16 = vrot.slane %v2105_v10, 4  ;;  %v3173_v59 = vshrl.u32 %v3112_v53, 16 }
  0xdc   : > { %1471 = vst.msk [vmem:[#allocation3 + $0x44] sm:$0xf] %vm1453_vm15, %v1392_v20  ;;  %v2079_v0 = vrot.slane %v2077_v19, 5  ;;  %v2075_v2 = vrot.slane %v2074_v63, 4  ;;  %v2685_v19 = vrot.slane %v2584_v38, 5 }
  0xdd   : > { %v2094_v6 = vrot.slane %v2092_v58, 4  ;;  %v3169_v58 = vshll.u32 %v3112_v53, 16  ;;  %v3175_v8 = vrot.slane %v3173_v59, 4 }
  0xde   : > { %1747 = vrot.lane.b32.xlu1 %v1675_v3, %s5110_s19  ;;  %v2083_v3 = vrot.slane %v2081_v55, 4  ;;  %v2080_v25 = vsel %vm5205_vm11, %v2075_v2, %v2079_v0  ;;  %v3113_v2 = vld [vmem:[#allocation2 + $0x20] sm:$0x1] }
  0xdf   : > { %1749 = vrot.lane.b32.xlu0 %v1679_v4, %s5110_s19  ;;  %v2098_v14 = vor.u32 %v2097_v7, %v2094_v6  ;;  %v5760_v7 = vrot.slane %v3169_v58, 5  ;;  %v3675_v58 = vld [vmem:[#allocation2 + $0x24] sm:$0xe] }
  0xe1   : > { %v1394_v26 = vpop.permute.xlu0 %1393 }
  0xe2   : > { %1751 = vrot.lane.b32.xlu1 %v1682_v12, %s5110_s19  ;;  %1472 = vst.msk [vmem:[#allocation3 + $0x48] sm:$0xf] %vm1453_vm15, %v1394_v26  ;;  %v1842_v12 = vld [vmem:[#allocation2 + $0x6c] sm:$0xf] }
  0xe3   : > { %1753 = vrot.lane.b32.xlu0 %v1686_v13, %s5110_s19  ;;  %v2084_v13 = vor.u32 %v2083_v3, %v2079_v0  ;;  %v2687_v3 = vrot.slane %v2685_v19, 4 }
  0xe5   : > { %v1396_v29 = vpop.permute.xlu1 %1395  ;;  %v2085_v26 = vrot.slane %v2084_v13, 4  ;;  %v2689_v13 = vsel %vm5572_vm14, %v2687_v3, %v2688_v42  ;;  %v2029_v3 = vld [vmem:[#allocation2 + $0x34] sm:$0xf] }
  0xe6   : > { %1755 = vrot.lane.b32.xlu1 %v1689_v21, %s5110_s19  ;;  %1473 = vst.msk [vmem:[#allocation3 + $0x4c] sm:$0xf] %vm1453_vm15, %v1396_v29  ;;  %v1843_v21 = vld [vmem:[#allocation2 + $0x70] sm:$0xf]  ;;  %v2580_v29 = vld [vmem:[#allocation2 + $0xc] sm:$0xe] }
  0xe7   : > { %1757 = vrot.lane.b32.xlu0 %v1693_v22, %s5110_s19  ;;  %v2089_v22 = vrot.slane %v2087_v51, 5 }
  0xea   : > { %1759 = vrot.lane.b32.xlu1 %v1696_v27, %s5110_s19  ;;  %v2099_v27 = vrot.slane %v2098_v14, 4  ;;  %v2918_v14 = vld [vmem:[#allocation2 + $0x18] sm:$0xf] }
  0xeb   : > { %1890 = vrot.lane.b32.xlu0 %v1826_v28, %s5111_s20  ;;  %v2108_v28 = vor.u32 %v2107_v16, %v2103_v15 }
  0xec   : > { %v1398_v32 = vpop.permute.xlu0 %1397 }
  0xed   : > { %1474 = vst.msk [vmem:[#allocation3 + $0x50] sm:$0xf] %vm1453_vm15, %v1398_v32  ;;  %v2090_v32 = vsel %vm5205_vm11, %v2085_v26, %v2089_v22 }
  0xee   : > { %1892 = vrot.lane.b32.xlu1 %v1827_v18, %s5111_s20  ;;  %v2581_v18 = vld [vmem:[#allocation2 + $0x10] sm:$0xf] }
  0xef   : > { %1894 = vrot.lane.b32.xlu0 %v1828_v30, %s5111_s20 }
  0xf0   : > { %v1400_v35 = vpop.permute.xlu1 %1399 }
  0xf1   : > { %1475 = vst.msk [vmem:[#allocation3 + $0x54] sm:$0xf] %vm1453_vm15, %v1400_v35  ;;  %v2113_v35 = vrot.slane %v2111_v24, 5 }
  0xf2   : > { %1896 = vrot.lane.b32.xlu1 %v1829_v31, %s5111_s20  ;;  %v4832_v31 = vrot.slane %v2580_v29, 9 }
  0xf3   : > { %1898 = vrot.lane.b32.xlu0 %v1830_v23, %s5111_s20  ;;  %v2678_v23 = vrot.slane %v2581_v18, 5  ;;  %v3672_v18 = vld [vmem:[#allocation2 + $0x18] sm:$0xe] }
  0xf6   : > { %1900 = vrot.lane.b32.xlu1 %v1831_v33, %s5111_s20  ;;  %v1404_v39 = vpop.permute.xlu1 %1403  ;;  %v2104_v33 = vsel %vm5205_vm11, %v2099_v27, %v2103_v15  ;;  %v3116_v27 = vld [vmem:[#allocation2 + $0x2c] sm:$0x1] }
  0xf7   : > { %1902 = vrot.lane.b32.xlu0 %v1832_v34, %s5111_s20  ;;  %v1402_v40 = vpop.permute.xlu0 %1401  ;;  %1477 = vst.msk [vmem:[#allocation3 + $0x5c] sm:$0xf] %vm1453_vm15, %v1404_v39  ;;  %v2109_v34 = vrot.slane %v2108_v28, 4  ;;  %v3111_v39 = vld [vmem:[#allocation2 + $0x18] sm:$0xf] }
  0xf8   : > { %1476 = vst.msk [vmem:[#allocation3 + $0x58] sm:$0xf] %vm1453_vm15, %v1402_v40  ;;  %v3160_v55 = vshrl.u32 %v3111_v39, 16  ;;  %v2920_v28 = vld [vmem:[#allocation2 + $0x24] sm:$0xf] }
  0xf9   : > { %v2114_v54 = vsel %vm5205_vm11, %v2109_v34, %v2113_v35  ;;  %v3203_v35 = vshll.u32 %v3116_v27, 16 }
  0xfa   : > { %1904 = vrot.lane.b32.xlu1 %v1833_v36, %s5111_s20  ;;  %v2582_v36 = vld [vmem:[#allocation2 + $0x14] sm:$0x1] }
  0xfb   : > { %1906 = vrot.lane.b32.xlu0 %v1834_v37, %s5111_s20  ;;  %v2583_v37 = vld [vmem:[#allocation2 + $0x18] sm:$0xe]  ;;  %v2681_v50 = vrot.slane %v2582_v36, 5  ;;  %v3673_v36 = vld [vmem:[#allocation2 + $0x1c] sm:$0xf] }
  0xfc   : > { %v4833_v48 = vrot.slane %v2583_v37, 9  ;;  %v2921_v37 = vld [vmem:[#allocation2 + $0x28] sm:$0xf]  ;;  %v3770_v53 = vrot.slane %v3673_v36, 5  ;;  %v2030_v36 = vld [vmem:[#allocation2 + $0x38] sm:$0x1] }
  0xfe   : > { %1908 = vrot.lane.b32.xlu1 %v1835_v45, %s5111_s20  ;;  %v1406_v60 = vpop.permute.xlu0 %1405  ;;  %v2679_v45 = vsel %vm5572_vm14, %v4832_v31, %v2678_v23  ;;  %v2686_v0 = vsel %vm5572_vm14, %v4833_v48, %v2685_v19  ;;  %v5081_v19 = vld [vmem:[%s6601_s1 + $0x10] ss:$0 sps:$4 sm:$0x33]  }
  0xff   : > { %1910 = vrot.lane.b32.xlu0 %v1836_v46, %s5111_s20  ;;  %1478 = vst.msk [vmem:[#allocation3 + $0x60] sm:$0xf] %vm1453_vm15, %v1406_v60  ;;  %v2680_v46 = vrot.slane %v2678_v23, 4  ;;  %v2025_v23 = vld [vmem:[#allocation2 + $0x24] sm:$0xf]  ;;  %5062 = vmatprep.subr.msk.bf16.mxu0 %vm4190_vm4, %v5081_v19 }
 0x100   : > { %5063 = vmatprep.subr.msk.bf16.mxu1 %vm4190_vm4, %v5081_v19 }
 0x101   : > { %v2682_v60 = vsel %vm5572_vm14, %v2680_v46, %v2681_v50  ;;  %v2119_v46 = vshll.u32 %v2025_v23, 16 }
 0x102   : > { %1912 = vrot.lane.b32.xlu1 %v1837_v56, %s5111_s20  ;;  %v1408_v4 = vpop.permute.xlu1 %1407  ;;  %v3163_v56 = vshll.u32 %v3111_v39, 16  ;;  %v4848_v39 = vrot.slane %v3672_v18, 9 }
 0x103   : > { %1914 = vrot.lane.b32.xlu0 %v1838_v57, %s5111_s20  ;;  %1479 = vst.msk [vmem:[#allocation3 + $0x64] sm:$0xf] %vm1453_vm15, %v1408_v4  ;;  %v3114_v57 = vld [vmem:[#allocation2 + $0x24] sm:$0xf]  ;;  %v3162_v4 = vrot.slane %v3160_v55, 4 }
 0x104   : > { %v3187_v63 = vshll.u32 %v3114_v57, 16  ;;  %v3165_v5 = vrot.slane %v3163_v56, 5 }
 0x106   : > { %1916 = vrot.lane.b32.xlu1 %v1839_v61, %s5111_s20  ;;  %v3115_v61 = vld [vmem:[#allocation2 + $0x28] sm:$0xf]  ;;  %v3166_v15 = vor.u32 %v3165_v5, %v3162_v4 }
 0x107   : > { %1918 = vrot.lane.b32.xlu0 %v1840_v62, %s5111_s20  ;;  %v3184_v62 = vshrl.u32 %v3114_v57, 16  ;;  %v3193_v10 = vshll.u32 %v3115_v61, 16  ;;  %v3205_v57 = vrot.slane %v3203_v35, 5 }
 0x108   : > { %v1410_v20 = vpop.permute.xlu0 %1409  ;;  %v3167_v29 = vrot.slane %v3166_v15, 4 }
 0x109   : > { %1480 = vst.msk [vmem:[#allocation3 + $0x68] sm:$0xf] %vm1453_vm15, %v1410_v20  ;;  %v3186_v51 = vrot.slane %v3184_v62, 4  ;;  %v3176_v20 = vor.u32 %v3175_v8, %v5760_v7  ;;  %v5769_v22 = vrot.slane %v3193_v10, 5  ;;  %v4192_v62 = vsel %vm4190_vm4, %v5081_v19, 0  ;;  %v5082_v10 = vld [vmem:[%s6601_s1 + $0x8] sm:$0xff]  }
 0x10a   : > { %1920 = vrot.lane.b32.xlu1 %v1841_v11, %s5111_s20  ;;  %v3197_v11 = vshrl.u32 %v3115_v61, 16  ;;  %v3773_v8 = vrot.slane %v5781_v43, 5  ;;  %5019 = vmatpush3.bf16.msra.mxu0 %v4192_v62 }
 0x10b   : > { %1922 = vrot.lane.b32.xlu0 %v1842_v12, %s5111_s20  ;;  %v3189_v12 = vrot.slane %v3187_v63, 5  ;;  %5059 = vmatpush3.bf16.msra.mxu1 %v4192_v62  ;;  %v2589_v62 = vld [vmem:[#allocation2 + $0x30] sm:$0xe] }
 0x10c   : > { %v1412_v30 = vpop.permute.xlu1 %1411  ;;  %v3199_v24 = vrot.slane %v3197_v11, 4  ;;  %v3771_v11 = vsel %vm5572_vm14, %v4848_v39, %v3770_v53  ;;  %5020 = vmatprep.subr.bf16.mxu0 %v5082_v10  ;;  %5057 = vmatprep.subr.bf16.mxu1 %v5082_v10 }
 0x10d   : > { %1481 = vst.msk [vmem:[#allocation3 + $0x6c] sm:$0xf] %vm1453_vm15, %v1412_v30  ;;  %v3190_v26 = vor.u32 %v3189_v12, %v3186_v51  ;;  %v4849_v51 = vrot.slane %v3675_v58, 9  ;;  %v2588_v58 = vld [vmem:[#allocation2 + $0x2c] sm:$0x1] }
 0x10e   : > { %1924 = vrot.lane.b32.xlu1 %v1843_v21, %s5111_s20  ;;  %v3179_v21 = vshll.u32 %v3113_v2, 16  ;;  %v3200_v34 = vor.u32 %v3199_v24, %v5769_v22  ;;  %v3772_v2 = vrot.slane %v3770_v53, 4  ;;  %5021 = vmatpush3.bf16.msra.mxu0 %v5082_v10  ;;  %v2586_v53 = vld [vmem:[#allocation2 + $0x24] sm:$0xe] }
 0x10f   : > { %2451 = vrot.lane.b32.xlu0 %v2080_v25, %s5112_s21  ;;  %v2919_v25 = vld [vmem:[#allocation2 + $0x1c] sm:$0xf]  ;;  %v3191_v38 = vrot.slane %v3190_v26, 4  ;;  %5060 = vmatpush3.bf16.msra.mxu1 %v5082_v10  ;;  %v2591_v10 = vld [vmem:[#allocation2 + $0x38] sm:$0x1] }
 0x110   : > { %v3201_v56 = vrot.slane %v3200_v34, 4 }
 0x111   : > { %v1414_v40 = vpop.permute.xlu0 %1413  ;;  %v1416_v44 = vpop.permute.xlu1 %1415  ;;  %v3196_v59 = vsel %vm5205_vm11, %v3191_v38, %v5769_v22 }
 0x112   : > { %2453 = vrot.lane.b32.xlu1 %v2090_v32, %s5112_s21  ;;  %1482 = vst.msk [vmem:[#allocation3 + $0x70] sm:$0xf] %vm1453_vm15, %v1414_v40  ;;  %1483 = vst.msk [vmem:[#allocation3 + $0x74] sm:$0xf] %vm1453_vm15, %v1416_v44  ;;  %v3177_v32 = vrot.slane %v3176_v20, 4  ;;  %v3172_v40 = vsel %vm5205_vm11, %v3167_v29, %v5760_v7  ;;  %v3774_v29 = vsel %vm5572_vm14, %v3772_v2, %v3773_v8  ;;  %v4835_v8 = vrot.slane %v2589_v62, 9 }
 0x113   : > { %2455 = vrot.lane.b32.xlu0 %v2104_v33, %s5112_s21  ;;  %v3181_v33 = vrot.slane %v3179_v21, 5  ;;  %v2026_v44 = vld [vmem:[#allocation2 + $0x28] sm:$0xf]  ;;  %v2027_v21 = vld [vmem:[#allocation2 + $0x2c] sm:$0x1] }
 0x114   : > { %v2125_v42 = vshll.u32 %v2026_v44, 16  ;;  %v2129_v61 = vshrl.u32 %v2026_v44, 16  ;;  %v2159_v44 = vshll.u32 %v2030_v36, 16  ;;  %v3678_v62 = vld [vmem:[#allocation2 + $0x30] sm:$0xe] }
 0x115   : > { %v3182_v55 = vsel %vm5205_vm11, %v3177_v32, %v3181_v33  ;;  %v2135_v32 = vshll.u32 %v2027_v21, 16 }
 0x116   : > { %2457 = vrot.lane.b32.xlu1 %v2114_v54, %s5112_s21  ;;  %v2028_v54 = vld [vmem:[#allocation2 + $0x30] sm:$0xf]  ;;  %v2127_v15 = vrot.slane %v2125_v42, 5 }
 0x117   : > { %2788 = vrot.lane.b32.xlu0 %v2679_v45, %s5113_s22  ;;  %v2116_v45 = vshrl.u32 %v2025_v23, 16  ;;  %v2140_v4 = vshrl.u32 %v2028_v54, 16  ;;  %v2143_v5 = vshll.u32 %v2028_v54, 16  ;;  %v2137_v43 = vrot.slane %v2135_v32, 5  ;;  %v2587_v54 = vld [vmem:[#allocation2 + $0x28] sm:$0xf] }
 0x119   : > { %v1418_v6 = vpop.permute.xlu0 %1417  ;;  %v2118_v63 = vrot.slane %v2116_v45, 4  ;;  %v2142_v22 = vrot.slane %v2140_v4, 4  ;;  %v2145_v24 = vrot.slane %v2143_v5, 5  ;;  %v3117_v4 = vld [vmem:[#allocation2 + $0x30] sm:$0xf]  ;;  %v2695_v5 = vrot.slane %v2588_v58, 5 }
 0x11a   : > { %1484 = vst.msk [vmem:[#allocation3 + $0x78] sm:$0xf] %vm1453_vm15, %v1418_v6  ;;  %2790 = vrot.lane.b32.xlu1 %v2682_v60, %s5113_s22  ;;  %v3676_v60 = vld [vmem:[#allocation2 + $0x28] sm:$0xf] }
 0x11b   : > { %2792 = vrot.lane.b32.xlu0 %v2686_v0, %s5113_s22  ;;  %v2121_v0 = vrot.slane %v2119_v46, 5  ;;  %v3777_v12 = vrot.slane %v3676_v60, 5  ;;  %v2146_v34 = vor.u32 %v2145_v24, %v2142_v22  ;;  %v2702_v22 = vrot.slane %v2591_v10, 5 }
 0x11c   : > { %v1420_v49 = vpop.permute.xlu1 %1419 }
 0x11d   : > { %v1698_v16 = vpop.permute.xlu0 %1697  ;;  %1485 = vst.msk [vmem:[#allocation3 + $0x7c] sm:$0xf] %vm1453_vm15, %v1420_v49  ;;  %v2131_v49 = vrot.slane %v2129_v61, 4  ;;  %v2122_v20 = vor.u32 %v2121_v0, %v2118_v63  ;;  %v2161_v61 = vrot.slane %v2159_v44, 5  ;;  %vm3976_vm15 = vcmask 290048  }
 0x11e   : > { %1794 = vst.msk [vmem:[#allocation3] sm:$0xf] %vm1793_vm2, %v1698_v16  ;;  %2794 = vrot.lane.b32.xlu1 %v2689_v13, %s5113_s22  ;;  %v3206_v13 = vsel %vm5205_vm11, %v3201_v56, %v3205_v57  ;;  %v2149_v16 = vshll.u32 %v2029_v3, 16  ;;  %v4834_v56 = vrot.slane %v2586_v53, 9  ;;  %v2692_v57 = vrot.slane %v2587_v54, 5 }
 0x11f   : > { %2982 = vrot.lane.b32.xlu0 %v2918_v14, %s5114_s23  ;;  %v3677_v14 = vld [vmem:[#allocation2 + $0x2c] sm:$0x1]  ;;  %v2132_v23 = vor.u32 %v2131_v49, %v2127_v15  ;;  %v2123_v33 = vrot.slane %v2122_v20, 4  ;;  %v3122_v53 = vld [vmem:[#allocation2 + $0x44] sm:$0x1] }
 0x120   : > { %v1700_v30 = vpop.permute.xlu1 %1699  ;;  %v3780_v18 = vrot.slane %v3677_v14, 5  ;;  %v2151_v35 = vrot.slane %v2149_v16, 5  ;;  %v3120_v14 = vld [vmem:[#allocation2 + $0x3c] sm:$0xf] }
 0x121   : > { %v1702_v31 = vpop.permute.xlu0 %1701  ;;  %1795 = vst.msk [vmem:[#allocation3 + $0x4] sm:$0xf] %vm1793_vm2, %v1700_v30  ;;  %v3778_v30 = vsel %vm5572_vm14, %v4849_v51, %v3777_v12  ;;  %v2128_v45 = vsel %vm5205_vm11, %v2123_v33, %v2127_v15  ;;  %v2133_v46 = vrot.slane %v2132_v23, 4  ;;  %v3232_v24 = vshrl.u32 %v3120_v14, 16  ;;  %v3119_v33 = vld [vmem:[#allocation2 + $0x38] sm:$0x1] }
 0x122   : > { %1796 = vst.msk [vmem:[#allocation3 + $0x8] sm:$0xf] %vm1793_vm2, %v1702_v31  ;;  %2984 = vrot.lane.b32.xlu1 %v2919_v25, %s5114_s23  ;;  %v2153_v25 = vshrl.u32 %v2029_v3, 16  ;;  %v3779_v31 = vrot.slane %v3777_v12, 4  ;;  %v2590_v3 = vld [vmem:[#allocation2 + $0x34] sm:$0xf] }
 0x123   : > { %2986 = vrot.lane.b32.xlu0 %v2920_v28, %s5114_s23  ;;  %v5083_v28 = vld [vmem:[%s6601_s1] sm:$0xff]   ;;  %v2699_v51 = vrot.slane %v2590_v3, 5  ;;  %v3208_v12 = vshrl.u32 %v3117_v4, 16  ;;  %v3679_v3 = vld [vmem:[#allocation2 + $0x34] sm:$0xf] }
 0x124   : > { %v1704_v50 = vpop.permute.xlu1 %1703  ;;  %5022 = vmatprep.subr.bf16.mxu0 %v5083_v28  ;;  %5058 = vmatprep.subr.bf16.mxu1 %v5083_v28 }
 0x125   : > { %v1706_v48 = vpop.permute.xlu0 %1705  ;;  %1797 = vst.msk [vmem:[#allocation3 + $0xc] sm:$0xf] %vm1793_vm2, %v1704_v50  ;;  %5023 = vmatpush3.bf16.msra.mxu0 %v5083_v28  ;;  %5061 = vmatpush3.bf16.msra.mxu1 %v5083_v28  ;;  %v2147_v50 = vrot.slane %v2146_v34, 4  ;;  %v3210_v28 = vrot.slane %v3208_v12, 4  ;;  %v3234_v34 = vrot.slane %v3232_v24, 4 }
 0x126   : > { %1798 = vst.msk [vmem:[#allocation3 + $0x10] sm:$0xf] %vm1793_vm2, %v1706_v48  ;;  %2988 = vrot.lane.b32.xlu1 %v2921_v37, %s5114_s23  ;;  %v2155_v37 = vrot.slane %v2153_v25, 4  ;;  %v3235_v25 = vshll.u32 %v3120_v14, 16  ;;  %v3784_v14 = vrot.slane %v3679_v3, 5 }
 0x127   : > { %3543 = vrot.lane.b32.xlu0 %v3172_v40, %s5115_s26  ;;  %v3781_v40 = vsel %vm5572_vm14, %v3779_v31, %v3780_v18  ;;  %v2152_v60 = vsel %vm5205_vm11, %v2147_v50, %v2151_v35  ;;  %v3121_v18 = vld [vmem:[#allocation2 + $0x40] sm:$0xf] }
 0x128   : > { %v1708_v6 = vpop.permute.xlu1 %1707  ;;  %v2156_v48 = vor.u32 %v2155_v37, %v2151_v35  ;;  %v3237_v35 = vrot.slane %v3235_v25, 5  ;;  %v3241_v36 = vshll.u32 %v3121_v18, 16  ;;  %v3245_v37 = vshrl.u32 %v3121_v18, 16 }
 0x129   : > { %v1710_v7 = vpop.permute.xlu0 %1709  ;;  %1799 = vst.msk [vmem:[#allocation3 + $0x14] sm:$0xf] %vm1793_vm2, %v1708_v6  ;;  %v2693_v6 = vsel %vm5572_vm14, %v4834_v56, %v2692_v57 }
 0x12a   : > { %1800 = vst.msk [vmem:[#allocation3 + $0x18] sm:$0xf] %vm1793_vm2, %v1710_v7  ;;  %3545 = vrot.lane.b32.xlu1 %v3182_v55, %s5115_s26  ;;  %v2157_v42 = vrot.slane %v2156_v48, 4  ;;  %v2694_v7 = vrot.slane %v2692_v57, 4  ;;  %v3238_v50 = vor.u32 %v3237_v35, %v3234_v34  ;;  %v3243_v48 = vrot.slane %v3241_v36, 5 }
 0x12b   : > { %3547 = vrot.lane.b32.xlu0 %v3196_v59, %s5115_s26  ;;  %v2138_v59 = vsel %vm5205_vm11, %v2133_v46, %v2137_v43  ;;  %v3227_v46 = vshll.u32 %v3119_v33, 16  ;;  %v3247_v54 = vrot.slane %v3245_v37, 4  ;;  %v3683_v36 = vld [vmem:[#allocation2 + $0x44] sm:$0x1] }
 0x12c   : > { %v1712_v26 = vpop.permute.xlu1 %1711  ;;  %v2162_v2 = vsel %vm5205_vm11, %v2157_v42, %v2161_v61  ;;  %v2696_v21 = vsel %vm5572_vm14, %v2694_v7, %v2695_v5  ;;  %v3251_v61 = vshll.u32 %v3122_v53, 16 }
 0x12d   : > { %v1714_v27 = vpop.permute.xlu0 %1713  ;;  %1801 = vst.msk [vmem:[#allocation3 + $0x1c] sm:$0xf] %vm1793_vm2, %v1712_v26  ;;  %v2700_v26 = vsel %vm5572_vm14, %v4835_v8, %v2699_v51  ;;  %v3229_v42 = vrot.slane %v3227_v46, 5 }
 0x12e   : > { %1802 = vst.msk [vmem:[#allocation3 + $0x20] sm:$0xf] %vm1793_vm2, %v1714_v27  ;;  %3549 = vrot.lane.b32.xlu1 %v3206_v13, %s5115_s26  ;;  %v3211_v13 = vshll.u32 %v3117_v4, 16  ;;  %v2701_v27 = vrot.slane %v2699_v51, 4  ;;  %v2925_v4 = vld [vmem:[#allocation2 + $0x40] sm:$0xf] }
 0x12f   : > { %3880 = vrot.lane.b32.xlu0 %v3771_v11, %s5116_s4  ;;  %v3118_v11 = vld [vmem:[#allocation2 + $0x34] sm:$0xf]  ;;  %v2034_v51 = vld [vmem:[#allocation2 + $0x48] sm:$0xf] }
 0x130   : > { %v1716_v38 = vpop.permute.xlu1 %1715  ;;  %v3217_v16 = vshll.u32 %v3118_v11, 16  ;;  %v3221_v20 = vshrl.u32 %v3118_v11, 16 }
 0x131   : > { %v1718_v39 = vpop.permute.xlu0 %1717  ;;  %1803 = vst.msk [vmem:[#allocation3 + $0x24] sm:$0xf] %vm1793_vm2, %v1716_v38  ;;  %v2703_v38 = vsel %vm5572_vm14, %v2701_v27, %v2702_v22  ;;  %v2035_v27 = vld [vmem:[#allocation2 + $0x4c] sm:$0xf] }
 0x132   : > { %1804 = vst.msk [vmem:[#allocation3 + $0x28] sm:$0xf] %vm1793_vm2, %v1718_v39  ;;  %3882 = vrot.lane.b32.xlu1 %v3774_v29, %s5116_s4  ;;  %v3213_v29 = vrot.slane %v3211_v13, 5  ;;  %v3219_v23 = vrot.slane %v3217_v16, 5  ;;  %v3223_v32 = vrot.slane %v3221_v20, 4  ;;  %v3253_v13 = vrot.slane %v3251_v61, 5 }
 0x133   : > { %3884 = vrot.lane.b32.xlu0 %v3778_v30, %s5116_s4  ;;  %v2922_v39 = vld [vmem:[#allocation2 + $0x30] sm:$0xf]  ;;  %v2201_v46 = vshrl.u32 %v2035_v27, 16 }
 0x134   : > { %v1720_v19 = vpop.permute.xlu1 %1719 }
 0x135   : > { %v1722_v55 = vpop.permute.xlu0 %1721  ;;  %1805 = vst.msk [vmem:[#allocation3 + $0x2c] sm:$0xf] %vm1793_vm2, %v1720_v19  ;;  %v2923_v19 = vld [vmem:[#allocation2 + $0x34] sm:$0xf]  ;;  %v2203_v61 = vrot.slane %v2201_v46, 4 }
 0x136   : > { %1806 = vst.msk [vmem:[#allocation3 + $0x30] sm:$0xf] %vm1793_vm2, %v1722_v55  ;;  %3886 = vrot.lane.b32.xlu1 %v3781_v40, %s5116_s4  ;;  %v3214_v40 = vor.u32 %v3213_v29, %v3210_v28  ;;  %v2924_v55 = vld [vmem:[#allocation2 + $0x3c] sm:$0xf]  ;;  %v2188_v28 = vshrl.u32 %v2034_v51, 16  ;;  %v2191_v29 = vshll.u32 %v2034_v51, 16 }
 0x137   : > { %2459 = vrot.lane.b32.xlu0 %v2128_v45, %s5112_s21  ;;  %v3224_v45 = vor.u32 %v3223_v32, %v3219_v23  ;;  %v3786_v32 = vrot.slane %v3784_v14, 4  ;;  %v3127_v46 = vld [vmem:[#allocation2 + $0x58] sm:$0xf] }
 0x138   : > { %v1724_v63 = vpop.permute.xlu1 %1723  ;;  %v3215_v56 = vrot.slane %v3214_v40, 4 }
 0x139   : > { %v1726_v0 = vpop.permute.xlu0 %1725  ;;  %1807 = vst.msk [vmem:[#allocation3 + $0x34] sm:$0xf] %vm1793_vm2, %v1724_v63  ;;  %v3239_v63 = vrot.slane %v3238_v50, 4 }
 0x13a   : > { %1808 = vst.msk [vmem:[#allocation3 + $0x38] sm:$0xf] %vm1793_vm2, %v1726_v0  ;;  %2461 = vrot.lane.b32.xlu1 %v2138_v59, %s5112_s21  ;;  %v2031_v59 = vld [vmem:[#allocation2 + $0x3c] sm:$0xf]  ;;  %v3248_v0 = vor.u32 %v3247_v54, %v3243_v48  ;;  %v3220_v5 = vsel %vm5205_vm11, %v3215_v56, %v3219_v23  ;;  %v3794_v54 = vrot.slane %v3683_v36, 5 }
 0x13b   : > { %2463 = vrot.lane.b32.xlu0 %v2152_v60, %s5112_s21  ;;  %v3225_v60 = vrot.slane %v3224_v45, 4  ;;  %v2164_v7 = vshrl.u32 %v2031_v59, 16  ;;  %v2167_v8 = vshll.u32 %v2031_v59, 16  ;;  %v3244_v16 = vsel %vm5205_vm11, %v3239_v63, %v3243_v48 }
 0x13c   : > { %v1728_v15 = vpop.permute.xlu1 %1727  ;;  %v3249_v20 = vrot.slane %v3248_v0, 4  ;;  %v2193_v45 = vrot.slane %v2191_v29, 5 }
 0x13d   : > { %v1730_v49 = vpop.permute.xlu0 %1729  ;;  %1809 = vst.msk [vmem:[#allocation3 + $0x3c] sm:$0xf] %vm1793_vm2, %v1728_v15  ;;  %v3230_v12 = vsel %vm5205_vm11, %v3225_v60, %v3229_v42  ;;  %v3680_v15 = vld [vmem:[#allocation2 + $0x38] sm:$0x1]  ;;  %v2166_v25 = vrot.slane %v2164_v7, 4 }
 0x13e   : > { %1810 = vst.msk [vmem:[#allocation3 + $0x40] sm:$0xf] %vm1793_vm2, %v1730_v49  ;;  %2465 = vrot.lane.b32.xlu1 %v2162_v2, %s5112_s21  ;;  %v4850_v2 = vrot.slane %v3678_v62, 9  ;;  %v3681_v49 = vld [vmem:[#allocation2 + $0x3c] sm:$0xe]  ;;  %v3254_v35 = vsel %vm5205_vm11, %v3249_v20, %v3253_v13 }
 0x13f   : > { %2796 = vrot.lane.b32.xlu0 %v2693_v6, %s5113_s22  ;;  %v2032_v6 = vld [vmem:[#allocation2 + $0x40] sm:$0xf]  ;;  %v4851_v33 = vrot.slane %v3681_v49, 9  ;;  %v2036_v42 = vld [vmem:[#allocation2 + $0x50] sm:$0x1] }
 0x140   : > { %v1732_v30 = vpop.permute.xlu1 %1731  ;;  %v2173_v22 = vshll.u32 %v2032_v6, 16  ;;  %v2177_v24 = vshrl.u32 %v2032_v6, 16  ;;  %v3785_v23 = vsel %vm5572_vm14, %v4850_v2, %v3784_v14  ;;  %v2594_v14 = vld [vmem:[#allocation2 + $0x44] sm:$0x1] }
 0x141   : > { %v1734_v31 = vpop.permute.xlu0 %1733  ;;  %1811 = vst.msk [vmem:[#allocation3 + $0x44] sm:$0xf] %vm1793_vm2, %v1732_v30 }
 0x142   : > { %1812 = vst.msk [vmem:[#allocation3 + $0x48] sm:$0xf] %vm1793_vm2, %v1734_v31  ;;  %2798 = vrot.lane.b32.xlu1 %v2696_v21, %s5113_s22  ;;  %v3682_v21 = vld [vmem:[#allocation2 + $0x40] sm:$0xf]  ;;  %v3787_v31 = vrot.slane %v3680_v15, 5  ;;  %v2175_v37 = vrot.slane %v2173_v22, 5 }
 0x143   : > { %2800 = vrot.lane.b32.xlu0 %v2700_v26, %s5113_s22  ;;  %v2169_v26 = vrot.slane %v2167_v8, 5  ;;  %v3791_v34 = vrot.slane %v3682_v21, 5  ;;  %v2595_v21 = vld [vmem:[#allocation2 + $0x48] sm:$0xe]  ;;  %v2596_v22 = vld [vmem:[#allocation2 + $0x4c] sm:$0xf] }
 0x144   : > { %v1736_v43 = vpop.permute.xlu1 %1735  ;;  %v3788_v53 = vsel %vm5572_vm14, %v3786_v32, %v3787_v31  ;;  %v4837_v29 = vrot.slane %v2595_v21, 9  ;;  %v3124_v32 = vld [vmem:[#allocation2 + $0x4c] sm:$0xf]  ;;  %v2929_v21 = vld [vmem:[#allocation2 + $0x58] sm:$0xf] }
 0x145   : > { %v1738_v44 = vpop.permute.xlu0 %1737  ;;  %1813 = vst.msk [vmem:[#allocation3 + $0x4c] sm:$0xf] %vm1793_vm2, %v1736_v43  ;;  %v2170_v40 = vor.u32 %v2169_v26, %v2166_v25  ;;  %v2033_v43 = vld [vmem:[#allocation2 + $0x44] sm:$0x1]  ;;  %v3123_v26 = vld [vmem:[#allocation2 + $0x48] sm:$0xf] }
 0x146   : > { %1814 = vst.msk [vmem:[#allocation3 + $0x50] sm:$0xf] %vm1793_vm2, %v1738_v44  ;;  %2802 = vrot.lane.b32.xlu1 %v2703_v38, %s5113_s22  ;;  %v2179_v38 = vrot.slane %v2177_v24, 4  ;;  %v2190_v44 = vrot.slane %v2188_v28, 4  ;;  %v2709_v28 = vrot.slane %v2594_v14, 5 }
 0x147   : > { %2990 = vrot.lane.b32.xlu0 %v2922_v39, %s5114_s23  ;;  %v2197_v39 = vshll.u32 %v2035_v27, 16 }
 0x148   : > { %v1740_v57 = vpop.permute.xlu1 %1739  ;;  %v2180_v56 = vor.u32 %v2179_v38, %v2175_v37  ;;  %v2194_v59 = vor.u32 %v2193_v45, %v2190_v44  ;;  %v3265_v44 = vshll.u32 %v3124_v32, 16  ;;  %v3269_v45 = vshrl.u32 %v3124_v32, 16  ;;  %v2040_v32 = vld [vmem:[#allocation2 + $0x60] sm:$0xf] }
 0x149   : > { %v1742_v58 = vpop.permute.xlu0 %1741  ;;  %1815 = vst.msk [vmem:[#allocation3 + $0x54] sm:$0xf] %vm1793_vm2, %v1740_v57  ;;  %v2183_v57 = vshll.u32 %v2033_v43, 16  ;;  %v2199_v60 = vrot.slane %v2197_v39, 5 }
 0x14a   : > { %1816 = vst.msk [vmem:[#allocation3 + $0x58] sm:$0xf] %vm1793_vm2, %v1742_v58  ;;  %2992 = vrot.lane.b32.xlu1 %v2923_v19, %s5114_s23  ;;  %v3792_v19 = vsel %vm5572_vm14, %v4851_v33, %v3791_v34  ;;  %v2171_v58 = vrot.slane %v2170_v40, 4  ;;  %v2181_v7 = vrot.slane %v2180_v56, 4  ;;  %v2195_v8 = vrot.slane %v2194_v59, 4 }
 0x14b   : > { %2994 = vrot.lane.b32.xlu0 %v2924_v55, %s5114_s23  ;;  %v3793_v55 = vrot.slane %v3791_v34, 4  ;;  %v2185_v3 = vrot.slane %v2183_v57, 5  ;;  %v3256_v33 = vshrl.u32 %v3123_v26, 16  ;;  %v3259_v34 = vshll.u32 %v3123_v26, 16 }
 0x14c   : > { %v1744_v10 = vpop.permute.xlu1 %1743  ;;  %v2176_v6 = vsel %vm5205_vm11, %v2171_v58, %v2175_v37  ;;  %v2200_v49 = vsel %vm5205_vm11, %v2195_v8, %v2199_v60  ;;  %v3126_v37 = vld [vmem:[#allocation2 + $0x54] sm:$0xf]  ;;  %v3289_v56 = vshll.u32 %v3127_v46, 16  ;;  %v3293_v57 = vshrl.u32 %v3127_v46, 16  ;;  %v3128_v8 = vld [vmem:[#allocation2 + $0x5c] sm:$0x1] }
 0x14d   : > { %v1746_v11 = vpop.permute.xlu0 %1745  ;;  %1817 = vst.msk [vmem:[#allocation3 + $0x5c] sm:$0xf] %vm1793_vm2, %v1744_v10  ;;  %v3795_v0 = vsel %vm5572_vm14, %v3793_v55, %v3794_v54  ;;  %v2204_v10 = vor.u32 %v2203_v61, %v2199_v60  ;;  %v2186_v15 = vsel %vm5205_vm11, %v2181_v7, %v2185_v3  ;;  %v3283_v54 = vshll.u32 %v3126_v37, 16  ;;  %v2926_v60 = vld [vmem:[#allocation2 + $0x48] sm:$0xf] }
 0x14e   : > { %1818 = vst.msk [vmem:[#allocation3 + $0x60] sm:$0xf] %vm1793_vm2, %v1746_v11  ;;  %2996 = vrot.lane.b32.xlu1 %v2925_v4, %s5114_s23  ;;  %v2207_v4 = vshll.u32 %v2036_v42, 16  ;;  %v2592_v11 = vld [vmem:[#allocation2 + $0x3c] sm:$0xe]  ;;  %v3267_v59 = vrot.slane %v3265_v44, 5 }
 0x14f   : > { %3551 = vrot.lane.b32.xlu0 %v3220_v5, %s5115_s26  ;;  %v2593_v5 = vld [vmem:[#allocation2 + $0x40] sm:$0xf]  ;;  %v4836_v13 = vrot.slane %v2592_v11, 9  ;;  %v3271_v61 = vrot.slane %v3269_v45, 4  ;;  %v2927_v7 = vld [vmem:[#allocation2 + $0x4c] sm:$0xf] }
 0x150   : > { %v1748_v18 = vpop.permute.xlu1 %1747  ;;  %v2209_v20 = vrot.slane %v2207_v4, 5  ;;  %v3125_v4 = vld [vmem:[#allocation2 + $0x50] sm:$0x1]  ;;  %v3687_v46 = vld [vmem:[#allocation2 + $0x54] sm:$0xe] }
 0x151   : > { %v1750_v30 = vpop.permute.xlu0 %1749  ;;  %1819 = vst.msk [vmem:[#allocation3 + $0x64] sm:$0xf] %vm1793_vm2, %v1748_v18  ;;  %v2713_v18 = vrot.slane %v2596_v22, 5  ;;  %v3684_v22 = vld [vmem:[#allocation2 + $0x48] sm:$0xe] }
 0x152   : > { %1820 = vst.msk [vmem:[#allocation3 + $0x68] sm:$0xf] %vm1793_vm2, %v1750_v30  ;;  %3553 = vrot.lane.b32.xlu1 %v3230_v12, %s5115_s26  ;;  %v2706_v12 = vrot.slane %v2593_v5, 5  ;;  %v2597_v30 = vld [vmem:[#allocation2 + $0x50] sm:$0x1]  ;;  %v5930_v5 = vrot.slane %v3289_v56, 5 }
 0x153   : > { %3555 = vrot.lane.b32.xlu0 %v3244_v16, %s5115_s26  ;;  %v2205_v16 = vrot.slane %v2204_v10, 4  ;;  %v2716_v39 = vrot.slane %v2597_v30, 5  ;;  %v2714_v40 = vsel %vm5572_vm14, %v4837_v29, %v2713_v18  ;;  %v2715_v43 = vrot.slane %v2713_v18, 4  ;;  %v2928_v10 = vld [vmem:[#allocation2 + $0x54] sm:$0xf] }
 0x154   : > { %v1752_v50 = vpop.permute.xlu1 %1751  ;;  %v2708_v27 = vrot.slane %v2706_v12, 4  ;;  %v2038_v18 = vld [vmem:[#allocation2 + $0x58] sm:$0xf] }
 0x155   : > { %v1754_v48 = vpop.permute.xlu0 %1753  ;;  %1821 = vst.msk [vmem:[#allocation3 + $0x6c] sm:$0xf] %vm1793_vm2, %v1752_v50  ;;  %v2210_v31 = vsel %vm5205_vm11, %v2205_v16, %v2209_v20  ;;  %v3258_v50 = vrot.slane %v3256_v33, 4  ;;  %v2717_v58 = vsel %vm5572_vm14, %v2715_v43, %v2716_v39  ;;  %v3299_v16 = vshll.u32 %v3128_v8, 16  ;;  %v3685_v20 = vld [vmem:[#allocation2 + $0x4c] sm:$0xf] }
 0x156   : > { %1822 = vst.msk [vmem:[#allocation3 + $0x70] sm:$0xf] %vm1793_vm2, %v1754_v48  ;;  %3557 = vrot.lane.b32.xlu1 %v3254_v35, %s5115_s26  ;;  %v2710_v38 = vsel %vm5572_vm14, %v2708_v27, %v2709_v28  ;;  %v3261_v48 = vrot.slane %v3259_v34, 5  ;;  %v2225_v43 = vshrl.u32 %v2038_v18, 16 }
 0x157   : > { %3888 = vrot.lane.b32.xlu0 %v3785_v23, %s5116_s4  ;;  %v2707_v23 = vsel %vm5572_vm14, %v4836_v13, %v2706_v12  ;;  %v2037_v13 = vld [vmem:[#allocation2 + $0x54] sm:$0xf]  ;;  %v3301_v34 = vrot.slane %v3299_v16, 5  ;;  %v2042_v16 = vld [vmem:[#allocation2 + $0x68] sm:$0x1] }
 0x158   : > { %v1756_v62 = vpop.permute.xlu1 %1755  ;;  %v3262_v42 = vor.u32 %v3261_v48, %v3258_v50  ;;  %v2236_v50 = vshrl.u32 %v2040_v32, 16  ;;  %v2239_v48 = vshll.u32 %v2040_v32, 16  ;;  %v2598_v32 = vld [vmem:[#allocation2 + $0x54] sm:$0xe] }
 0x159   : > { %v1758_v63 = vpop.permute.xlu0 %1757  ;;  %1823 = vst.msk [vmem:[#allocation3 + $0x74] sm:$0xf] %vm1793_vm2, %v1756_v62 }
 0x15a   : > { %1824 = vst.msk [vmem:[#allocation3 + $0x78] sm:$0xf] %vm1793_vm2, %v1758_v63  ;;  %3890 = vrot.lane.b32.xlu1 %v3788_v53, %s5116_s4  ;;  %v3280_v53 = vshrl.u32 %v3126_v37, 16  ;;  %v3285_v63 = vrot.slane %v3283_v54, 5  ;;  %v3263_v11 = vrot.slane %v3262_v42, 4 }
 0x15b   : > { %3892 = vrot.lane.b32.xlu0 %v3792_v19, %s5116_s4  ;;  %v3688_v37 = vld [vmem:[#allocation2 + $0x58] sm:$0xf]  ;;  %v3689_v42 = vld [vmem:[#allocation2 + $0x5c] sm:$0x1] }
 0x15c   : > { %v1760_v2 = vpop.permute.xlu1 %1759  ;;  %v3282_v62 = vrot.slane %v3280_v53, 4  ;;  %v3268_v26 = vsel %vm5205_vm11, %v3263_v11, %v3267_v59 }
 0x15d   : > { %v1891_v51 = vpop.permute.xlu0 %1890  ;;  %1825 = vst.msk [vmem:[#allocation3 + $0x7c] sm:$0xf] %vm1793_vm2, %v1760_v2  ;;  %v3272_v2 = vor.u32 %v3271_v61, %v3267_v59  ;;  %v3805_v59 = vrot.slane %v3688_v37, 5  ;;  %vm4141_vm2 = vcmask 293888  }
 0x15e   : > { %1987 = vst.msk [vmem:[#allocation3] sm:$0xf] %vm1986_vm5, %v1891_v51  ;;  %3894 = vrot.lane.b32.xlu1 %v3795_v0, %s5116_s4  ;;  %v3275_v51 = vshll.u32 %v3125_v4, 16  ;;  %v3286_v12 = vor.u32 %v3285_v63, %v3282_v62  ;;  %v2227_v63 = vrot.slane %v2225_v43, 4  ;;  %v2241_v4 = vrot.slane %v2239_v48, 5 }
 0x15f   : > { %2467 = vrot.lane.b32.xlu0 %v2176_v6, %s5112_s21  ;;  %v3295_v6 = vrot.slane %v3293_v57, 4  ;;  %v3273_v27 = vrot.slane %v3272_v2, 4  ;;  %v3807_v11 = vrot.slane %v3805_v59, 4  ;;  %v2601_v43 = vld [vmem:[#allocation2 + $0x60] sm:$0xe] }
 0x160   : > { %v1893_v24 = vpop.permute.xlu1 %1892  ;;  %v3277_v28 = vrot.slane %v3275_v51, 5  ;;  %v3287_v29 = vrot.slane %v3286_v12, 4  ;;  %v3808_v51 = vrot.slane %v3689_v42, 5 }
 0x161   : > { %v1895_v25 = vpop.permute.xlu0 %1894  ;;  %1988 = vst.msk [vmem:[#allocation3 + $0x4] sm:$0xf] %vm1986_vm5, %v1893_v24  ;;  %v2212_v24 = vshrl.u32 %v2037_v13, 16 }
 0x162   : > { %1989 = vst.msk [vmem:[#allocation3 + $0x8] sm:$0xf] %vm1986_vm5, %v1895_v25  ;;  %2469 = vrot.lane.b32.xlu1 %v2186_v15, %s5112_s21  ;;  %v2215_v25 = vshll.u32 %v2037_v13, 16  ;;  %v3278_v44 = vsel %vm5205_vm11, %v3273_v27, %v3277_v28  ;;  %v3292_v45 = vsel %vm5205_vm11, %v3287_v29, %v5930_v5  ;;  %v2599_v27 = vld [vmem:[#allocation2 + $0x58] sm:$0xf] }
 0x163   : > { %2471 = vrot.lane.b32.xlu0 %v2200_v49, %s5112_s21  ;;  %v3296_v49 = vor.u32 %v3295_v6, %v5930_v5 }
 0x164   : > { %v1897_v35 = vpop.permute.xlu1 %1896  ;;  %v2217_v39 = vrot.slane %v2215_v25, 5 }
 0x165   : > { %v1899_v36 = vpop.permute.xlu0 %1898  ;;  %1990 = vst.msk [vmem:[#allocation3 + $0xc] sm:$0xf] %vm1986_vm5, %v1897_v35  ;;  %v3297_v33 = vrot.slane %v3296_v49, 4  ;;  %v4852_v35 = vrot.slane %v3684_v22, 9 }
 0x166   : > { %1991 = vst.msk [vmem:[#allocation3 + $0x10] sm:$0xf] %vm1986_vm5, %v1899_v36  ;;  %2473 = vrot.lane.b32.xlu1 %v2210_v31, %s5112_s21  ;;  %v3686_v36 = vld [vmem:[#allocation2 + $0x50] sm:$0x1] }
 0x167   : > { %2804 = vrot.lane.b32.xlu0 %v2707_v23, %s5113_s22  ;;  %v3798_v23 = vrot.slane %v3685_v20, 5  ;;  %v3302_v56 = vsel %vm5205_vm11, %v3297_v33, %v3301_v34  ;;  %v2720_v33 = vrot.slane %v2599_v27, 5 }
 0x168   : > { %v1901_v19 = vpop.permute.xlu1 %1900 }
 0x169   : > { %v1903_v55 = vpop.permute.xlu0 %1902  ;;  %1992 = vst.msk [vmem:[#allocation3 + $0x14] sm:$0xf] %vm1986_vm5, %v1901_v19  ;;  %v3800_v19 = vrot.slane %v3798_v23, 4  ;;  %v3799_v57 = vsel %vm5572_vm14, %v4852_v35, %v3798_v23  ;;  %v2600_v35 = vld [vmem:[#allocation2 + $0x5c] sm:$0x1] }
 0x16a   : > { %1993 = vst.msk [vmem:[#allocation3 + $0x18] sm:$0xf] %vm1986_vm5, %v1903_v55  ;;  %2806 = vrot.lane.b32.xlu1 %v2710_v38, %s5113_s22  ;;  %v2214_v38 = vrot.slane %v2212_v24, 4  ;;  %v2041_v55 = vld [vmem:[#allocation2 + $0x64] sm:$0xf]  ;;  %v3809_v24 = vsel %vm5572_vm14, %v3807_v11, %v3808_v51  ;;  %v2723_v48 = vrot.slane %v2600_v35, 5 }
 0x16b   : > { %2808 = vrot.lane.b32.xlu0 %v2714_v40, %s5113_s22  ;;  %v2221_v40 = vshll.u32 %v2038_v18, 16  ;;  %v2245_v5 = vshll.u32 %v2041_v55, 16  ;;  %v2249_v6 = vshrl.u32 %v2041_v55, 16 }
 0x16c   : > { %v1905_v0 = vpop.permute.xlu1 %1904  ;;  %v2218_v61 = vor.u32 %v2217_v39, %v2214_v38 }
 0x16d   : > { %v1907_v3 = vpop.permute.xlu0 %1906  ;;  %1994 = vst.msk [vmem:[#allocation3 + $0x1c] sm:$0xf] %vm1986_vm5, %v1905_v0  ;;  %v2223_v62 = vrot.slane %v2221_v40, 5  ;;  %v2039_v0 = vld [vmem:[#allocation2 + $0x5c] sm:$0x1]  ;;  %v2247_v49 = vrot.slane %v2245_v5, 5 }
 0x16e   : > { %1995 = vst.msk [vmem:[#allocation3 + $0x20] sm:$0xf] %vm1986_vm5, %v1907_v3  ;;  %2810 = vrot.lane.b32.xlu1 %v2717_v58, %s5113_s22  ;;  %v3801_v58 = vrot.slane %v3686_v36, 5  ;;  %v2238_v3 = vrot.slane %v2236_v50, 4  ;;  %v2219_v12 = vrot.slane %v2218_v61, 4  ;;  %v2231_v13 = vshll.u32 %v2039_v0, 16 }
 0x16f   : > { %2998 = vrot.lane.b32.xlu0 %v2926_v60, %s5114_s23  ;;  %v4853_v60 = vrot.slane %v3687_v46, 9  ;;  %v2251_v20 = vrot.slane %v2249_v6, 4  ;;  %v2602_v36 = vld [vmem:[#allocation2 + $0x64] sm:$0xf]  ;;  %v4838_v40 = vrot.slane %v2598_v32, 9  ;;  %v2722_v50 = vrot.slane %v2720_v33, 4 }
 0x170   : > { %v1909_v14 = vpop.permute.xlu1 %1908  ;;  %v2233_v25 = vrot.slane %v2231_v13, 5  ;;  %v2224_v28 = vsel %vm5205_vm11, %v2219_v12, %v2223_v62  ;;  %v3129_v46 = vld [vmem:[#allocation2 + $0x60] sm:$0xf]  ;;  %v3132_v61 = vld [vmem:[#allocation2 + $0x6c] sm:$0xf] }
 0x171   : > { %v1911_v15 = vpop.permute.xlu0 %1910  ;;  %1996 = vst.msk [vmem:[#allocation3 + $0x24] sm:$0xf] %vm1986_vm5, %v1909_v14  ;;  %v3806_v2 = vsel %vm5572_vm14, %v4853_v60, %v3805_v59  ;;  %v2228_v14 = vor.u32 %v2227_v63, %v2223_v62  ;;  %v2721_v55 = vsel %vm5572_vm14, %v4838_v40, %v2720_v33  ;;  %v3307_v59 = vshll.u32 %v3129_v46, 16 }
 0x172   : > { %1997 = vst.msk [vmem:[#allocation3 + $0x28] sm:$0xf] %vm1986_vm5, %v1911_v15  ;;  %3000 = vrot.lane.b32.xlu1 %v2927_v7, %s5114_s23  ;;  %v2242_v15 = vor.u32 %v2241_v4, %v2238_v3  ;;  %v2724_v62 = vsel %vm5572_vm14, %v2722_v50, %v2723_v48  ;;  %v3331_v11 = vshll.u32 %v3132_v61, 16 }
 0x173   : > { %3002 = vrot.lane.b32.xlu0 %v2928_v10, %s5114_s23  ;;  %v3802_v10 = vsel %vm5572_vm14, %v3800_v19, %v3801_v58  ;;  %v2229_v29 = vrot.slane %v2228_v14, 4  ;;  %v3304_v58 = vshrl.u32 %v3129_v46, 16  ;;  %v3690_v46 = vld [vmem:[#allocation2 + $0x60] sm:$0xe] }
 0x174   : > { %v1913_v30 = vpop.permute.xlu1 %1912  ;;  %v2243_v18 = vrot.slane %v2242_v15, 4 }
 0x175   : > { %v1915_v31 = vpop.permute.xlu0 %1914  ;;  %1998 = vst.msk [vmem:[#allocation3 + $0x2c] sm:$0xf] %vm1986_vm5, %v1913_v30  ;;  %v2252_v30 = vor.u32 %v2251_v20, %v2247_v49  ;;  %v2234_v37 = vsel %vm5205_vm11, %v2229_v29, %v2233_v25  ;;  %v3306_v6 = vrot.slane %v3304_v58, 4  ;;  %v3694_v58 = vld [vmem:[#allocation2 + $0x70] sm:$0xf] }
 0x176   : > { %1999 = vst.msk [vmem:[#allocation3 + $0x30] sm:$0xf] %vm1986_vm5, %v1915_v31  ;;  %3004 = vrot.lane.b32.xlu1 %v2929_v21, %s5114_s23  ;;  %v2248_v38 = vsel %vm5205_vm11, %v2243_v18, %v2247_v49  ;;  %v2930_v49 = vld [vmem:[#allocation2 + $0x60] sm:$0xf]  ;;  %v2931_v18 = vld [vmem:[#allocation2 + $0x64] sm:$0xf] }
 0x177   : > { %3559 = vrot.lane.b32.xlu0 %v3268_v26, %s5115_s26  ;;  %v2255_v26 = vshll.u32 %v2042_v16, 16  ;;  %v2253_v39 = vrot.slane %v2252_v30, 4  ;;  %v2932_v30 = vld [vmem:[#allocation2 + $0x6c] sm:$0xf] }
 0x178   : > { %v1917_v53 = vpop.permute.xlu1 %1916 }
 0x179   : > { %v1919_v54 = vpop.permute.xlu0 %1918  ;;  %2000 = vst.msk [vmem:[#allocation3 + $0x34] sm:$0xf] %vm1986_vm5, %v1917_v53  ;;  %v2257_v34 = vrot.slane %v2255_v26, 5  ;;  %v2727_v53 = vrot.slane %v2602_v36, 5  ;;  %v3131_v26 = vld [vmem:[#allocation2 + $0x68] sm:$0x1] }
 0x17a   : > { %2001 = vst.msk [vmem:[#allocation3 + $0x38] sm:$0xf] %vm1986_vm5, %v1919_v54  ;;  %3561 = vrot.lane.b32.xlu1 %v3278_v44, %s5115_s26  ;;  %v4839_v54 = vrot.slane %v2601_v43, 9  ;;  %v3323_v32 = vshll.u32 %v3131_v26, 16 }
 0x17b   : > { %3563 = vrot.lane.b32.xlu0 %v3292_v45, %s5115_s26  ;;  %v2258_v19 = vsel %vm5205_vm11, %v2253_v39, %v2257_v34  ;;  %v2729_v63 = vrot.slane %v2727_v53, 4  ;;  %v3691_v39 = vld [vmem:[#allocation2 + $0x64] sm:$0xf] }
 0x17c   : > { %v1921_v7 = vpop.permute.xlu1 %1920  ;;  %v2728_v0 = vsel %vm5572_vm14, %v4839_v54, %v2727_v53  ;;  %v3812_v54 = vrot.slane %v3691_v39, 5 }
 0x17d   : > { %v1923_v8 = vpop.permute.xlu0 %1922  ;;  %2002 = vst.msk [vmem:[#allocation3 + $0x3c] sm:$0xf] %vm1986_vm5, %v1921_v7  ;;  %v3309_v7 = vrot.slane %v3307_v59, 5 }
 0x17e   : > { %2003 = vst.msk [vmem:[#allocation3 + $0x40] sm:$0xf] %vm1986_vm5, %v1923_v8  ;;  %3565 = vrot.lane.b32.xlu1 %v3302_v56, %s5115_s26  ;;  %v2603_v56 = vld [vmem:[#allocation2 + $0x68] sm:$0x1]  ;;  %v3133_v8 = vld [vmem:[#allocation2 + $0x70] sm:$0xf] }
 0x17f   : > { %3896 = vrot.lane.b32.xlu0 %v3799_v57, %s5116_s4  ;;  %v3130_v57 = vld [vmem:[#allocation2 + $0x64] sm:$0xf]  ;;  %v2730_v3 = vrot.slane %v2603_v56, 5  ;;  %v3337_v14 = vshll.u32 %v3133_v8, 16  ;;  %v3341_v15 = vshrl.u32 %v3133_v8, 16  ;;  %v3310_v16 = vor.u32 %v3309_v7, %v3306_v6 }
 0x180   : > { %v1925_v21 = vpop.permute.xlu1 %1924  ;;  %v3313_v4 = vshll.u32 %v3130_v57, 16  ;;  %v3317_v5 = vshrl.u32 %v3130_v57, 16  ;;  %v4854_v56 = vrot.slane %v3690_v46, 9  ;;  %v3692_v57 = vld [vmem:[#allocation2 + $0x68] sm:$0x1]  ;;  %v3819_v7 = vrot.slane %v3694_v58, 5 }
 0x181   : > { %v2452_v22 = vpop.permute.xlu0 %2451  ;;  %2004 = vst.msk [vmem:[#allocation3 + $0x44] sm:$0xf] %vm1986_vm5, %v1925_v21  ;;  %v2731_v12 = vsel %vm5572_vm14, %v2729_v63, %v2730_v3  ;;  %v3339_v27 = vrot.slane %v3337_v14, 5  ;;  %v3343_v29 = vrot.slane %v3341_v15, 4  ;;  %v2044_v63 = vld [vmem:[#allocation2 + $0x70] sm:$0xf] }
 0x182   : > { %2548 = vst.msk [vmem:[#allocation3] sm:$0xf] %vm2547_vm6, %v2452_v22  ;;  %3898 = vrot.lane.b32.xlu1 %v3802_v10, %s5116_s4  ;;  %v3328_v10 = vshrl.u32 %v3132_v61, 16  ;;  %v3315_v13 = vrot.slane %v3313_v4, 5  ;;  %v3319_v20 = vrot.slane %v3317_v5, 4  ;;  %v3333_v22 = vrot.slane %v3331_v11, 5 }
 0x183   : > { %3900 = vrot.lane.b32.xlu0 %v3806_v2, %s5116_s4  ;;  %v2046_v4 = vld [vmem:[#allocation2 + $0x78] sm:$0xf]  ;;  %v3814_v5 = vrot.slane %v3812_v54, 4  ;;  %v3815_v6 = vrot.slane %v3692_v57, 5 }
 0x184   : > { %v2454_v31 = vpop.permute.xlu1 %2453  ;;  %v3330_v21 = vrot.slane %v3328_v10, 4  ;;  %v3813_v10 = vsel %vm5572_vm14, %v4854_v56, %v3812_v54  ;;  %v2284_v14 = vshrl.u32 %v2046_v4, 16  ;;  %v2287_v15 = vshll.u32 %v2046_v4, 16  ;;  %v1845_v54 = vld [vmem:[#allocation2 + $0x7c] sm:$0xf] }
 0x185   : > { %v2456_v23 = vpop.permute.xlu0 %2455  ;;  %2549 = vst.msk [vmem:[#allocation3 + $0x4] sm:$0xf] %vm2547_vm6, %v2454_v31  ;;  %v3311_v31 = vrot.slane %v3310_v16, 4  ;;  %v273_v56 = vld [vmem:[#allocation2 + $0xc0] sm:$0x1] }
 0x186   : > { %2550 = vst.msk [vmem:[#allocation3 + $0x8] sm:$0xf] %vm2547_vm6, %v2456_v23  ;;  %3902 = vrot.lane.b32.xlu1 %v3809_v24, %s5116_s4  ;;  %v3320_v23 = vor.u32 %v3319_v20, %v3315_v13  ;;  %v3334_v33 = vor.u32 %v3333_v22, %v3330_v21  ;;  %v3816_v22 = vsel %vm5572_vm14, %v3814_v5, %v3815_v6  ;;  %v2604_v4 = vld [vmem:[#allocation2 + $0x6c] sm:$0xe] }
 0x187   : > { %2475 = vrot.lane.b32.xlu0 %v2224_v28, %s5112_s21  ;;  %v3134_v28 = vld [vmem:[#allocation2 + $0x74] sm:$0x1]  ;;  %v3316_v40 = vsel %vm5205_vm11, %v3311_v31, %v3315_v13  ;;  %v2047_v13 = vld [vmem:[#allocation2 + $0x7c] sm:$0xf]  ;;  %v2289_v31 = vrot.slane %v2287_v15, 5 }
 0x188   : > { %v2458_v44 = vpop.permute.xlu1 %2457  ;;  %v3347_v36 = vshll.u32 %v3134_v28, 16  ;;  %v3321_v43 = vrot.slane %v3320_v23, 4  ;;  %v2297_v28 = vshrl.u32 %v2047_v13, 16 }
 0x189   : > { %v2789_v45 = vpop.permute.xlu0 %2788  ;;  %2551 = vst.msk [vmem:[#allocation3 + $0xc] sm:$0xf] %vm2547_vm6, %v2458_v44  ;;  %v3325_v44 = vrot.slane %v3323_v32, 5 }
 0x18a   : > { %2885 = vst.msk [vmem:[#allocation3] sm:$0xf] %vm2884_vm8, %v2789_v45  ;;  %2477 = vrot.lane.b32.xlu1 %v2234_v37, %s5112_s21  ;;  %v2933_v37 = vld [vmem:[#allocation2 + $0x70] sm:$0xf]  ;;  %v3335_v45 = vrot.slane %v3334_v33, 4  ;;  %v3349_v53 = vrot.slane %v3347_v36, 5 }
 0x18b   : > { %2479 = vrot.lane.b32.xlu0 %v2248_v38, %s5112_s21  ;;  %v3344_v38 = vor.u32 %v3343_v29, %v3339_v27  ;;  %v3326_v59 = vsel %vm5205_vm11, %v3321_v43, %v3325_v44  ;;  %v2048_v44 = vld [vmem:[#allocation2 + $0x80] sm:$0x1] }
 0x18c   : > { %v2791_v60 = vpop.permute.xlu1 %2790 }
 0x18d   : > { %v2793_v42 = vpop.permute.xlu0 %2792  ;;  %2886 = vst.msk [vmem:[#allocation3 + $0x4] sm:$0xf] %vm2884_vm8, %v2791_v60  ;;  %v3340_v60 = vsel %vm5205_vm11, %v3335_v45, %v3339_v27  ;;  %v2293_v27 = vshll.u32 %v2047_v13, 16  ;;  %v2608_v13 = vld [vmem:[#allocation2 + $0x7c] sm:$0xf] }
 0x18e   : > { %2887 = vst.msk [vmem:[#allocation3 + $0x8] sm:$0xf] %vm2884_vm8, %v2793_v42  ;;  %2481 = vrot.lane.b32.xlu1 %v2258_v19, %s5112_s21  ;;  %v2043_v19 = vld [vmem:[#allocation2 + $0x6c] sm:$0xf] }
 0x18f   : > { %2812 = vrot.lane.b32.xlu0 %v2721_v55, %s5113_s22  ;;  %v3345_v55 = vrot.slane %v3344_v38, 4  ;;  %v3693_v42 = vld [vmem:[#allocation2 + $0x6c] sm:$0xe]  ;;  %v2263_v3 = vshll.u32 %v2043_v19, 16  ;;  %v6044_v36 = vrot.slane %v2293_v27, 5 }
 0x190   : > { %v2795_v2 = vpop.permute.xlu1 %2794  ;;  %v4855_v11 = vrot.slane %v3693_v42, 9  ;;  %v1844_v38 = vld [vmem:[#allocation2 + $0x78] sm:$0xf]  ;;  %v274_v42 = vsel %vm5151_vm3, 0, %v273_v56 }
 0x191   : > { %v2983_v51 = vpop.permute.xlu0 %2982  ;;  %2888 = vst.msk [vmem:[#allocation3 + $0xc] sm:$0xf] %vm2884_vm8, %v2795_v2  ;;  %v3350_v8 = vsel %vm5205_vm11, %v3345_v55, %v3349_v53  ;;  %v3695_v2 = vld [vmem:[#allocation2 + $0x74] sm:$0x1]  ;;  %v2265_v21 = vrot.slane %v2263_v3, 5  ;;  %v2303_v55 = vshll.u32 %v2048_v44, 16 }
 0x192   : > { %3079 = vst.msk [vmem:[#allocation3] sm:$0xf] %vm3078_vm12, %v2983_v51  ;;  %2814 = vrot.lane.b32.xlu1 %v2724_v62, %s5113_s22  ;;  %v2269_v51 = vshll.u32 %v2044_v63, 16  ;;  %v3822_v26 = vrot.slane %v3695_v2, 5  ;;  %v2605_v53 = vld [vmem:[#allocation2 + $0x70] sm:$0xf] }
 0x193   : > { %2816 = vrot.lane.b32.xlu0 %v2728_v0, %s5113_s22  ;;  %v2260_v0 = vshrl.u32 %v2043_v19, 16  ;;  %v2734_v5 = vrot.slane %v2605_v53, 5  ;;  %275 = vst [vmem:[#allocation2 + $0xc0] sm:$0x1] %v274_v42 }
 0x194   : > { %v2985_v24 = vpop.permute.xlu1 %2984  ;;  %v2271_v29 = vrot.slane %v2269_v51, 5  ;;  %v4840_v51 = vrot.slane %v2604_v4, 9 }
 0x195   : > { %v2987_v25 = vpop.permute.xlu0 %2986  ;;  %3080 = vst.msk [vmem:[#allocation3 + $0x4] sm:$0xf] %vm3078_vm12, %v2985_v24  ;;  %v2262_v20 = vrot.slane %v2260_v0, 4  ;;  %v3821_v24 = vrot.slane %v3819_v7, 4 }
 0x196   : > { %3081 = vst.msk [vmem:[#allocation3 + $0x8] sm:$0xf] %vm3078_vm12, %v2987_v25  ;;  %2818 = vrot.lane.b32.xlu1 %v2731_v12, %s5113_s22  ;;  %v2273_v12 = vshrl.u32 %v2044_v63, 16  ;;  %v3820_v25 = vsel %vm5572_vm14, %v4855_v11, %v3819_v7 }
 0x197   : > { %3006 = vrot.lane.b32.xlu0 %v2930_v49, %s5114_s23  ;;  %v2266_v33 = vor.u32 %v2265_v21, %v2262_v20  ;;  %v2736_v20 = vrot.slane %v2734_v5, 4  ;;  %v2607_v21 = vld [vmem:[#allocation2 + $0x78] sm:$0xe] }
 0x198   : > { %v2989_v34 = vpop.permute.xlu1 %2988 }
 0x199   : > { %v3544_v35 = vpop.permute.xlu0 %3543  ;;  %3082 = vst.msk [vmem:[#allocation3 + $0xc] sm:$0xf] %vm3078_vm12, %v2989_v34  ;;  %v2045_v34 = vld [vmem:[#allocation2 + $0x74] sm:$0x1] }
 0x19a   : > { %3640 = vst.msk [vmem:[#allocation3] sm:$0xf] %vm3639_vm13, %v3544_v35  ;;  %3008 = vrot.lane.b32.xlu1 %v2931_v18, %s5114_s23  ;;  %v2275_v18 = vrot.slane %v2273_v12, 4  ;;  %v3823_v35 = vsel %vm5572_vm14, %v3821_v24, %v3822_v26  ;;  %v2606_v12 = vld [vmem:[#allocation2 + $0x74] sm:$0x1] }
 0x19b   : > { %3010 = vrot.lane.b32.xlu0 %v2932_v30, %s5114_s23  ;;  %v2286_v30 = vrot.slane %v2284_v14, 4 }
 0x19c   : > { %v3546_v50 = vpop.permute.xlu1 %3545  ;;  %v2276_v39 = vor.u32 %v2275_v18, %v2271_v29  ;;  %v2741_v18 = vrot.slane %v2608_v13, 5 }
 0x19d   : > { %v3548_v48 = vpop.permute.xlu0 %3547  ;;  %3641 = vst.msk [vmem:[#allocation3 + $0x4] sm:$0xf] %vm3639_vm13, %v3546_v50  ;;  %v2290_v43 = vor.u32 %v2289_v31, %v2286_v30 }
 0x19e   : > { %3642 = vst.msk [vmem:[#allocation3 + $0x8] sm:$0xf] %vm3639_vm13, %v3548_v48  ;;  %3012 = vrot.lane.b32.xlu1 %v2933_v37, %s5114_s23  ;;  %v2299_v37 = vrot.slane %v2297_v28, 4  ;;  %v2267_v48 = vrot.slane %v2266_v33, 4  ;;  %v2277_v57 = vrot.slane %v2276_v39, 4  ;;  %v4841_v33 = vrot.slane %v2607_v21, 9 }
 0x19f   : > { %3567 = vrot.lane.b32.xlu0 %v3316_v40, %s5115_s26  ;;  %v2279_v40 = vshll.u32 %v2045_v34, 16  ;;  %v323_v28 = vld [vmem:[#allocation2 + $0xc8] sm:$0x1]  ;;  %v2609_v34 = vld [vmem:[#allocation2 + $0x80] sm:$0x1] }
 0x1a0   : > { %v3550_v61 = vpop.permute.xlu1 %3549  ;;  %v2300_v19 = vor.u32 %v2299_v37, %v6044_v36  ;;  %v2272_v3 = vsel %vm5205_vm11, %v2267_v48, %v2271_v29  ;;  %v2737_v29 = vrot.slane %v2606_v12, 5  ;;  %v3136_v39 = vld [vmem:[#allocation2 + $0x7c] sm:$0xf]  ;;  %v2743_v48 = vrot.slane %v2741_v18, 4 }
 0x1a1   : > { %v3881_v62 = vpop.permute.xlu0 %3880  ;;  %3643 = vst.msk [vmem:[#allocation3 + $0xc] sm:$0xf] %vm3639_vm13, %v3550_v61  ;;  %v2281_v58 = vrot.slane %v2279_v40, 5  ;;  %v214_v61 = vld [vmem:[%s5175_s17 + $0xf8] sm:$0xff]  ;;  %v2744_v53 = vrot.slane %v2609_v34, 5  ;;  %v2742_v47 = vsel %vm5572_vm14, %v4841_v33, %v2741_v18 }
 0x1a2   : > { %3977 = vst.msk [vmem:[#allocation3] sm:$0xf] %vm3976_vm15, %v3881_v62  ;;  %3569 = vrot.lane.b32.xlu1 %v3326_v59, %s5115_s26  ;;  %v2291_v59 = vrot.slane %v2290_v43, 4  ;;  %v4966_v7 = vpack.c.bf16 %v214_v61, %v214_v61  ;;  %v2738_v9 = vsel %vm5572_vm14, %v2736_v20, %v2737_v29  ;;  %v2934_v61 = vld [vmem:[#allocation2 + $0x78] sm:$0xf] }
 0x1a3   : > { %3571 = vrot.lane.b32.xlu0 %v3340_v60, %s5115_s26  ;;  %v213_v60 = vld [vmem:[%s5175_s17 + $0xf0] sm:$0xff]  ;;  %v2282_v2 = vsel %vm5205_vm11, %v2277_v57, %v2281_v58  ;;  %v3139_v58 = vld [vmem:[#allocation2 + $0x88] sm:$0xf]  ;;  %v2745_v42 = vsel %vm5572_vm14, %v2743_v48, %v2744_v53  ;;  %v2936_v20 = vld [vmem:[#allocation2 + $0x84] sm:$0xf] }
 0x1a4   : > { %v3883_v49 = vpop.permute.xlu1 %3882  ;;  %v4965_v6 = vpack.c.bf16 %v213_v60, %v213_v60  ;;  %v688_v14 = vshrl.u32 %v4966_v7, 16  ;;  %v691_v27 = vshll.u32 %v4966_v7, 16  ;;  %v3137_v7 = vld [vmem:[#allocation2 + $0x80] sm:$0x1]  ;;  %v3696_v33 = vld [vmem:[#allocation2 + $0x78] sm:$0xe] }
 0x1a5   : > { %v3885_v16 = vpop.permute.xlu0 %3884  ;;  %3978 = vst.msk [vmem:[#allocation3 + $0x4] sm:$0xf] %vm3976_vm15, %v3883_v49  ;;  %v3371_v13 = vshll.u32 %v3137_v7, 16 }
 0x1a6   : > { %3979 = vst.msk [vmem:[#allocation3 + $0x8] sm:$0xf] %vm3976_vm15, %v3885_v16  ;;  %3573 = vrot.lane.b32.xlu1 %v3350_v8, %s5115_s26  ;;  %v2301_v8 = vrot.slane %v2300_v19, 4  ;;  %v680_v11 = vshrl.u32 %v4965_v6, 16  ;;  %v2296_v16 = vsel %vm5205_vm11, %v2291_v59, %v6044_v36  ;;  %v683_v24 = vshll.u32 %v4965_v6, 16 }
 0x1a7   : > { %3904 = vrot.lane.b32.xlu0 %v3813_v10, %s5116_s4  ;;  %v2305_v10 = vrot.slane %v2303_v55, 5  ;;  %v6070_v26 = vrot.slane %v688_v14, 7  ;;  %v3365_v19 = vshrl.u32 %v3136_v39, 16 }
 0x1a8   : > { %v3887_v23 = vpop.permute.xlu1 %3886 }
 0x1a9   : > { %v2460_v32 = vpop.permute.xlu0 %2459  ;;  %3980 = vst.msk [vmem:[#allocation3 + $0xc] sm:$0xf] %vm3976_vm15, %v3887_v23  ;;  %v2306_v23 = vsel %vm5205_vm11, %v2301_v8, %v2305_v10  ;;  %v693_v36 = vor.u32 %v691_v27, %v6070_v26 }
 0x1aa   : > { %2552 = vst.msk [vmem:[#allocation3 + $0x10] sm:$0xf] %vm2547_vm6, %v2460_v32  ;;  %3906 = vrot.lane.b32.xlu1 %v3816_v22, %s5116_s4  ;;  %v682_v22 = vrot.slane %v680_v11, 7  ;;  %v2735_v32 = vsel %vm5572_vm14, %v4840_v51, %v2734_v5  ;;  %v695_v11 = vrot.slane %v6070_v26, 4  ;;  %v2935_v51 = vld [vmem:[#allocation2 + $0x7c] sm:$0xf] }
 0x1ab   : > { %3908 = vrot.lane.b32.xlu0 %v3820_v25, %s5116_s4  ;;  %v3135_v25 = vld [vmem:[#allocation2 + $0x78] sm:$0xf]  ;;  %v2937_v26 = vld [vmem:[#allocation2 + $0x88] sm:$0xf] }
 0x1ac   : > { %v2462_v45 = vpop.permute.xlu1 %2461  ;;  %v5084_v46 = vld [vmem:[#allocation3] sm:$0xff]   ;;  %v685_v30 = vor.u32 %v683_v24, %v682_v22  ;;  %v686_v31 = vrot.slane %v682_v22, 4  ;;  %v3352_v40 = vshrl.u32 %v3135_v25, 16  ;;  %v3355_v43 = vshll.u32 %v3135_v25, 16  ;;  %v3140_v24 = vld [vmem:[#allocation2 + $0x8c] sm:$0x1] }
 0x1ad   : > { %v2464_v50 = vpop.permute.xlu0 %2463  ;;  %2553 = vst.msk [vmem:[#allocation3 + $0x14] sm:$0xf] %vm2547_vm6, %v2462_v45  ;;  %5024 = vmatprep.mubr.msk.bf16.mxu0 %vm4141_vm2, %v5084_v46  ;;  %v324_v45 = vsel %vm5166_vm7, 0, %v323_v28  ;;  %v3138_v46 = vld [vmem:[#allocation2 + $0x84] sm:$0xf]  ;;  %v3373_v28 = vrot.slane %v3371_v13, 5 }
 0x1ae   : > { %2554 = vst.msk [vmem:[#allocation3 + $0x18] sm:$0xf] %vm2547_vm6, %v2464_v50  ;;  %3910 = vrot.lane.b32.xlu1 %v3823_v35, %s5116_s4  ;;  %v851_v35 = vld [vmem:[#allocation2 + $0xc0] sm:$0xf]  ;;  %v694_v50 = vsel %vm5193_vm9, %v686_v31, %v693_v36  ;;  %325 = vst [vmem:[#allocation2 + $0xc8] sm:$0x1] %v324_v45 }
 0x1af   : > { %1926 = vrot.lane.b32.xlu0 %v1844_v38, %s5111_s20  ;;  %v852_v44 = vsel %vm5199_vm10, %v685_v30, %v851_v35  ;;  %854 = vst.msk [vmem:[#allocation2 + $0xc4] sm:$0xf] %vm215_vm0, %v694_v50  ;;  %v3354_v56 = vrot.slane %v3352_v40, 4  ;;  %v3357_v57 = vrot.slane %v3355_v43, 5  ;;  %v3376_v59 = vshrl.u32 %v3138_v46, 16 }
 0x1b0   : > { %v2466_v62 = vpop.permute.xlu1 %2465  ;;  %v5085_v63 = vld [vmem:[#allocation3 + $0x8] sm:$0xff]   ;;  %853 = vst [vmem:[#allocation2 + $0xc0] sm:$0xf] %v852_v44  ;;  %v3379_v60 = vshll.u32 %v3138_v46, 16  ;;  %v3395_v18 = vshll.u32 %v3140_v24, 16  ;;  %v4856_v45 = vrot.slane %v3696_v33, 9 }
 0x1b1   : > { %v2797_v0 = vpop.permute.xlu0 %2796  ;;  %2555 = vst.msk [vmem:[#allocation3 + $0x1c] sm:$0xf] %vm2547_vm6, %v2466_v62  ;;  %5025 = vmatmul.mubr.msk.bf16.vlgmr.msra.gmra.mxu0 %vm4141_vm2, %v5085_v63  ;;  %v3367_v63 = vrot.slane %v3365_v19, 4  ;;  %v3358_v6 = vor.u32 %v3357_v57, %v3354_v56  ;;  %v3378_v8 = vrot.slane %v3376_v59, 4  ;;  %v3697_v30 = vld [vmem:[#allocation2 + $0x7c] sm:$0xf] }
 0x1b2   : > { %2889 = vst.msk [vmem:[#allocation3 + $0x10] sm:$0xf] %vm2884_vm8, %v2797_v0  ;;  %1928 = vrot.lane.b32.xlu1 %v1845_v54, %s5111_s20  ;;  %v3361_v54 = vshll.u32 %v3136_v39, 16  ;;  %v3385_v0 = vshll.u32 %v3139_v58, 16  ;;  %v3381_v10 = vrot.slane %v3379_v60, 5  ;;  %v3826_v34 = vrot.slane %v3697_v30, 5 }
 0x1b3   : > { %2483 = vrot.lane.b32.xlu0 %v2272_v3, %s5112_s21  ;;  %v3389_v3 = vshrl.u32 %v3139_v58, 16  ;;  %v3359_v21 = vrot.slane %v3358_v6, 4  ;;  %v3700_v39 = vld [vmem:[#allocation2 + $0x88] sm:$0xf]  ;;  %v2049_v46 = vld [vmem:[#allocation2 + $0x84] sm:$0xf] }
 0x1b4   : > { %v2799_v15 = vpop.permute.xlu1 %2798  ;;  %v3363_v62 = vrot.slane %v3361_v54, 5  ;;  %v3387_v14 = vrot.slane %v3385_v0, 5  ;;  %v3382_v22 = vor.u32 %v3381_v10, %v3378_v8  ;;  %v3699_v50 = vld [vmem:[#allocation2 + $0x84] sm:$0xe]  ;;  %v3828_v48 = vrot.slane %v3826_v34, 4 }
 0x1b5   : > { %v2801_v49 = vpop.permute.xlu0 %2800  ;;  %2890 = vst.msk [vmem:[#allocation3 + $0x14] sm:$0xf] %vm2884_vm8, %v2799_v15  ;;  %v3391_v15 = vrot.slane %v3389_v3, 4  ;;  %v3701_v54 = vld [vmem:[#allocation2 + $0x8c] sm:$0x1]  ;;  %v3827_v58 = vsel %vm5572_vm14, %v4856_v45, %v3826_v34  ;;  %v4857_v59 = vrot.slane %v3699_v50, 9 }
 0x1b6   : > { %2891 = vst.msk [vmem:[#allocation3 + $0x18] sm:$0xf] %vm2884_vm8, %v2801_v49  ;;  %2485 = vrot.lane.b32.xlu1 %v2282_v2, %s5112_s21  ;;  %v855_v2 = vld [vmem:[#allocation2 + $0xc8] sm:$0x1]  ;;  %v3368_v12 = vor.u32 %v3367_v63, %v3363_v62  ;;  %v3364_v1 = vsel %vm5205_vm11, %v3359_v21, %v3363_v62  ;;  %v2052_v60 = vld [vmem:[#allocation2 + $0x90] sm:$0xf] }
 0x1b7   : > { %2487 = vrot.lane.b32.xlu0 %v2296_v16, %s5112_s21  ;;  %v856_v25 = vsel %vm5151_vm3, %v695_v11, %v855_v2  ;;  %v3392_v29 = vor.u32 %v3391_v15, %v3387_v14  ;;  %v2050_v19 = vld [vmem:[#allocation2 + $0x88] sm:$0xf]  ;;  %v3836_v62 = vrot.slane %v3701_v54, 5  ;;  %v2332_v6 = vshrl.u32 %v2052_v60, 16  ;;  %v2054_v34 = vld [vmem:[#allocation2 + $0x98] sm:$0x1] }
 0x1b8   : > { %v2803_v37 = vpop.permute.xlu1 %2802  ;;  %857 = vst [vmem:[#allocation2 + $0xc8] sm:$0x1] %v856_v25  ;;  %v3369_v27 = vrot.slane %v3368_v12, 4  ;;  %v2317_v63 = vshll.u32 %v2050_v19, 16  ;;  %v2335_v2 = vshll.u32 %v2052_v60, 16  ;;  %vm4515_vm3 = vcmask 31744  }
 0x1b9   : > { %v2991_v38 = vpop.permute.xlu0 %2990  ;;  %2892 = vst.msk [vmem:[#allocation3 + $0x1c] sm:$0xf] %vm2884_vm8, %v2803_v37  ;;  %v3393_v36 = vrot.slane %v3392_v29, 4  ;;  %v3397_v37 = vrot.slane %v3395_v18, 5  ;;  %v1846_v12 = vld [vmem:[#allocation2 + $0x84] sm:$0xf] }
 0x1ba   : > { %3083 = vst.msk [vmem:[#allocation3 + $0x10] sm:$0xf] %vm3078_vm12, %v2991_v38  ;;  %2489 = vrot.lane.b32.xlu1 %v2306_v23, %s5112_s21  ;;  %v3374_v35 = vsel %vm5205_vm11, %v3369_v27, %v3373_v28  ;;  %v3698_v38 = vld [vmem:[#allocation2 + $0x80] sm:$0x1]  ;;  %v2319_v13 = vrot.slane %v2317_v63, 5  ;;  %v2334_v25 = vrot.slane %v2332_v6, 4 }
 0x1bb   : > { %2820 = vrot.lane.b32.xlu0 %v2735_v32, %s5113_s22  ;;  %v3383_v32 = vrot.slane %v3382_v22, 4  ;;  %v3829_v53 = vrot.slane %v3698_v38, 5  ;;  %v1847_v27 = vld [vmem:[#allocation2 + $0x88] sm:$0xf]  ;;  %v2610_v50 = vld [vmem:[#allocation2 + $0x84] sm:$0xe] }
 0x1bc   : > { %v2993_v55 = vpop.permute.xlu1 %2992  ;;  %v2612_v54 = vld [vmem:[#allocation2 + $0x8c] sm:$0x1]  ;;  %v3142_v6 = vld [vmem:[#allocation2 + $0x94] sm:$0xf] }
 0x1bd   : > { %v2995_v41 = vpop.permute.xlu0 %2994  ;;  %3084 = vst.msk [vmem:[#allocation3 + $0x14] sm:$0xf] %vm3078_vm12, %v2993_v55  ;;  %v3388_v44 = vsel %vm5205_vm11, %v3383_v32, %v3387_v14  ;;  %v2308_v55 = vshrl.u32 %v2049_v46, 16  ;;  %v2051_v14 = vld [vmem:[#allocation2 + $0x8c] sm:$0x1] }
 0x1be   : > { %3085 = vst.msk [vmem:[#allocation3 + $0x18] sm:$0xf] %vm3078_vm12, %v2995_v41  ;;  %2822 = vrot.lane.b32.xlu1 %v2738_v9, %s5113_s22  ;;  %v3833_v9 = vrot.slane %v3700_v39, 5  ;;  %v2311_v41 = vshll.u32 %v2049_v46, 16  ;;  %v2327_v29 = vshll.u32 %v2051_v14, 16  ;;  %v2351_v39 = vshll.u32 %v2054_v34, 16 }
 0x1bf   : > { %2824 = vrot.lane.b32.xlu0 %v2742_v47, %s5113_s22  ;;  %v3398_v47 = vsel %vm5205_vm11, %v3393_v36, %v3397_v37  ;;  %v2310_v0 = vrot.slane %v2308_v55, 4  ;;  %v3413_v14 = vshrl.u32 %v3142_v6, 16 }
 0x1c0   : > { %v2997_v4 = vpop.permute.xlu1 %2996  ;;  %v2313_v3 = vrot.slane %v2311_v41, 5  ;;  %v3834_v11 = vsel %vm5572_vm14, %v4857_v59, %v3833_v9  ;;  %v2329_v37 = vrot.slane %v2327_v29, 5  ;;  %v3141_v59 = vld [vmem:[#allocation2 + $0x90] sm:$0xf] }
 0x1c1   : > { %v3552_v5 = vpop.permute.xlu0 %3551  ;;  %3086 = vst.msk [vmem:[#allocation3 + $0x1c] sm:$0xf] %vm3078_vm12, %v2997_v4  ;;  %v2321_v4 = vshrl.u32 %v2050_v19, 16  ;;  %v2614_v19 = vld [vmem:[#allocation2 + $0x94] sm:$0xf]  ;;  %v3415_v29 = vrot.slane %v3413_v14, 4 }
 0x1c2   : > { %3644 = vst.msk [vmem:[#allocation3 + $0x10] sm:$0xf] %vm3639_vm13, %v3552_v5  ;;  %2826 = vrot.lane.b32.xlu1 %v2745_v42, %s5113_s22  ;;  %v3830_v42 = vsel %vm5572_vm14, %v3828_v48, %v3829_v53  ;;  %v2053_v5 = vld [vmem:[#allocation2 + $0x94] sm:$0xf]  ;;  %v2314_v24 = vor.u32 %v2313_v3, %v2310_v0 }
 0x1c3   : > { %3014 = vrot.lane.b32.xlu0 %v2934_v61, %s5114_s23  ;;  %v3835_v61 = vrot.slane %v3833_v9, 4  ;;  %v2323_v15 = vrot.slane %v2321_v4, 4 }
 0x1c4   : > { %v3554_v49 = vpop.permute.xlu1 %3553  ;;  %v2315_v32 = vrot.slane %v2314_v24, 4 }
 0x1c5   : > { %v3556_v16 = vpop.permute.xlu0 %3555  ;;  %3645 = vst.msk [vmem:[#allocation3 + $0x14] sm:$0xf] %vm3639_vm13, %v3554_v49  ;;  %v2341_v49 = vshll.u32 %v2053_v5, 16  ;;  %v2324_v28 = vor.u32 %v2323_v15, %v2319_v13  ;;  %v3145_v15 = vld [vmem:[#allocation2 + $0xa0] sm:$0xf] }
 0x1c6   : > { %3646 = vst.msk [vmem:[#allocation3 + $0x18] sm:$0xf] %vm3639_vm13, %v3556_v16  ;;  %3016 = vrot.lane.b32.xlu1 %v2935_v51, %s5114_s23  ;;  %v3837_v51 = vsel %vm5572_vm14, %v3835_v61, %v3836_v62  ;;  %v2345_v16 = vshrl.u32 %v2053_v5, 16  ;;  %v2320_v45 = vsel %vm5205_vm11, %v2315_v32, %v2319_v13  ;;  %v2755_v61 = vrot.slane %v2614_v19, 5  ;;  %v2615_v5 = vld [vmem:[#allocation2 + $0x98] sm:$0x1] }
 0x1c7   : > { %3018 = vrot.lane.b32.xlu0 %v2936_v20, %s5114_s23  ;;  %v2343_v18 = vrot.slane %v2341_v49, 5  ;;  %v2325_v36 = vrot.slane %v2324_v28, 4  ;;  %v3409_v13 = vshll.u32 %v3142_v6, 16 }
 0x1c8   : > { %v3558_v31 = vpop.permute.xlu1 %3557  ;;  %v2347_v30 = vrot.slane %v2345_v16, 4 }
 0x1c9   : > { %v3889_v23 = vpop.permute.xlu0 %3888  ;;  %3647 = vst.msk [vmem:[#allocation3 + $0x1c] sm:$0xf] %vm3639_vm13, %v3558_v31  ;;  %v2330_v53 = vsel %vm5205_vm11, %v2325_v36, %v2329_v37  ;;  %v3411_v28 = vrot.slane %v3409_v13, 5  ;;  %v2939_v36 = vld [vmem:[#allocation2 + $0x94] sm:$0xf] }
 0x1ca   : > { %3981 = vst.msk [vmem:[#allocation3 + $0x10] sm:$0xf] %vm3976_vm15, %v3889_v23  ;;  %3020 = vrot.lane.b32.xlu1 %v2937_v26, %s5114_s23  ;;  %v2337_v26 = vrot.slane %v2335_v2, 5  ;;  %v2348_v38 = vor.u32 %v2347_v30, %v2343_v18  ;;  %v2757_v2 = vrot.slane %v2755_v61, 4  ;;  %v2056_v13 = vld [vmem:[#allocation2 + $0xa0] sm:$0xf] }
 0x1cb   : > { %3575 = vrot.lane.b32.xlu0 %v3364_v1, %s5115_s26  ;;  %v1848_v1 = vld [vmem:[#allocation2 + $0x90] sm:$0xf]  ;;  %v3416_v37 = vor.u32 %v3415_v29, %v3411_v28  ;;  %v2369_v29 = vshrl.u32 %v2056_v13, 16 }
 0x1cc   : > { %v3891_v40 = vpop.permute.xlu1 %3890  ;;  %v2338_v33 = vor.u32 %v2337_v26, %v2334_v25  ;;  %v2349_v9 = vrot.slane %v2348_v38, 4  ;;  %v3433_v25 = vshll.u32 %v3145_v15, 16  ;;  %v3437_v26 = vshrl.u32 %v3145_v15, 16 }
 0x1cd   : > { %v3893_v43 = vpop.permute.xlu0 %3892  ;;  %3982 = vst.msk [vmem:[#allocation3 + $0x14] sm:$0xf] %vm3976_vm15, %v3891_v40  ;;  %v2611_v40 = vld [vmem:[#allocation2 + $0x88] sm:$0xf] }
 0x1ce   : > { %3983 = vst.msk [vmem:[#allocation3 + $0x18] sm:$0xf] %vm3976_vm15, %v3893_v43  ;;  %3577 = vrot.lane.b32.xlu1 %v3374_v35, %s5115_s26  ;;  %v1849_v35 = vld [vmem:[#allocation2 + $0x94] sm:$0xf]  ;;  %v2339_v46 = vrot.slane %v2338_v33, 4  ;;  %v2748_v48 = vrot.slane %v2611_v40, 5 }
 0x1cf   : > { %3579 = vrot.lane.b32.xlu0 %v3388_v44, %s5115_s26  ;;  %v3435_v34 = vrot.slane %v3433_v25, 5 }
 0x1d0   : > { %v3895_v56 = vpop.permute.xlu1 %3894  ;;  %v2750_v60 = vrot.slane %v2748_v48, 4 }
 0x1d1   : > { %v2468_v57 = vpop.permute.xlu0 %2467  ;;  %3984 = vst.msk [vmem:[#allocation3 + $0x1c] sm:$0xf] %vm3976_vm15, %v3895_v56  ;;  %v2344_v56 = vsel %vm5205_vm11, %v2339_v46, %v2343_v18 }
 0x1d2   : > { %2556 = vst.msk [vmem:[#allocation3 + $0x20] sm:$0xf] %vm2547_vm6, %v2468_v57  ;;  %3581 = vrot.lane.b32.xlu1 %v3398_v47, %s5115_s26  ;;  %v2353_v47 = vrot.slane %v2351_v39, 5  ;;  %v4842_v57 = vrot.slane %v2610_v50, 9  ;;  %v3146_v39 = vld [vmem:[#allocation2 + $0xa4] sm:$0x1] }
 0x1d3   : > { %3912 = vrot.lane.b32.xlu0 %v3827_v58, %s5116_s4  ;;  %v2613_v58 = vld [vmem:[#allocation2 + $0x90] sm:$0xe] }
 0x1d4   : > { %v2470_v7 = vpop.permute.xlu1 %2469  ;;  %v5086_v8 = vld [vmem:[#allocation3 + $0x10] sm:$0xff]   ;;  %v2354_v62 = vsel %vm5205_vm11, %v2349_v9, %v2353_v47  ;;  %v4843_v63 = vrot.slane %v2613_v58, 9  ;;  %v2749_v4 = vsel %vm5572_vm14, %v4842_v57, %v2748_v48  ;;  %v3443_v48 = vshll.u32 %v3146_v39, 16  ;;  %v3702_v57 = vld [vmem:[#allocation2 + $0x90] sm:$0xe] }
 0x1d5   : > { %v2472_v10 = vpop.permute.xlu0 %2471  ;;  %2557 = vst.msk [vmem:[#allocation3 + $0x24] sm:$0xf] %vm2547_vm6, %v2470_v7  ;;  %5028 = vmatprep.mubr.msk.bf16.mxu0 %vm4141_vm2, %v5086_v8  ;;  %v3400_v7 = vshrl.u32 %v3141_v59, 16  ;;  %v3403_v8 = vshll.u32 %v3141_v59, 16  ;;  %v3417_v9 = vrot.slane %v3416_v37, 4  ;;  %v4858_v6 = vrot.slane %v3702_v57, 9 }
 0x1d6   : > { %2558 = vst.msk [vmem:[#allocation3 + $0x28] sm:$0xf] %vm2547_vm6, %v2472_v10  ;;  %3914 = vrot.lane.b32.xlu1 %v3830_v42, %s5116_s4  ;;  %v2751_v42 = vrot.slane %v2612_v54, 5  ;;  %v3144_v10 = vld [vmem:[#allocation2 + $0x9c] sm:$0xf]  ;;  %v3445_v59 = vrot.slane %v3443_v48, 5 }
 0x1d7   : > { %3916 = vrot.lane.b32.xlu0 %v3834_v11, %s5116_s4  ;;  %v3427_v24 = vshll.u32 %v3144_v10, 16  ;;  %v3703_v54 = vld [vmem:[#allocation2 + $0x94] sm:$0xf]  ;;  %v1851_v48 = vld [vmem:[#allocation2 + $0xa0] sm:$0xf] }
 0x1d8   : > { %v2474_v20 = vpop.permute.xlu1 %2473  ;;  %v5087_v21 = vld [vmem:[#allocation3 + $0x18] sm:$0xff]   ;;  %v2752_v11 = vsel %vm5572_vm14, %v2750_v60, %v2751_v42  ;;  %v3840_v60 = vrot.slane %v3703_v54, 5 }
 0x1d9   : > { %v2805_v22 = vpop.permute.xlu0 %2804  ;;  %2559 = vst.msk [vmem:[#allocation3 + $0x2c] sm:$0xf] %vm2547_vm6, %v2474_v20  ;;  %5029 = vmatmul.mubr.msk.bf16.gmra.mxu0 %vm4141_vm2, %v5087_v21  ;;  %v3402_v20 = vrot.slane %v3400_v7, 4  ;;  %v3405_v21 = vrot.slane %v3403_v8, 5  ;;  %v3429_v33 = vrot.slane %v3427_v24, 5 }
 0x1da   : > { %2893 = vst.msk [vmem:[#allocation3 + $0x20] sm:$0xf] %vm2884_vm8, %v2805_v22  ;;  %3918 = vrot.lane.b32.xlu1 %v3837_v51, %s5116_s4  ;;  %v2756_v51 = vsel %vm5572_vm14, %v4843_v63, %v2755_v61  ;;  %v3424_v22 = vshrl.u32 %v3144_v10, 16  ;;  %v3704_v61 = vld [vmem:[#allocation2 + $0x98] sm:$0x1]  ;;  %v3842_v8 = vrot.slane %v3840_v60, 4 }
 0x1db   : > { %1930 = vrot.lane.b32.xlu0 %v1846_v12, %s5111_s20  ;;  %v2758_v12 = vrot.slane %v2615_v5, 5  ;;  %v3706_v63 = vld [vmem:[#allocation2 + $0xa0] sm:$0xf]  ;;  %v2055_v7 = vld [vmem:[#allocation2 + $0x9c] sm:$0xf] }
 0x1dc   : > { %v2807_v31 = vpop.permute.xlu1 %2806  ;;  %v3426_v32 = vrot.slane %v3424_v22, 4  ;;  %v3847_v10 = vrot.slane %v3706_v63, 5  ;;  %v2058_v22 = vld [vmem:[#allocation2 + $0xa8] sm:$0xf] }
 0x1dd   : > { %v2809_v23 = vpop.permute.xlu0 %2808  ;;  %2894 = vst.msk [vmem:[#allocation3 + $0x24] sm:$0xf] %vm2884_vm8, %v2807_v31  ;;  %v2938_v31 = vld [vmem:[#allocation2 + $0x90] sm:$0xf] }
 0x1de   : > { %2895 = vst.msk [vmem:[#allocation3 + $0x28] sm:$0xf] %vm2884_vm8, %v2809_v23  ;;  %1932 = vrot.lane.b32.xlu1 %v1847_v27, %s5111_s20  ;;  %v2759_v27 = vsel %vm5572_vm14, %v2757_v2, %v2758_v12  ;;  %v3406_v23 = vor.u32 %v3405_v21, %v3402_v20  ;;  %v3430_v46 = vor.u32 %v3429_v33, %v3426_v32  ;;  %v3843_v2 = vrot.slane %v3704_v61, 5  ;;  %v3707_v12 = vld [vmem:[#allocation2 + $0xa4] sm:$0x1] }
 0x1df   : > { %1934 = vrot.lane.b32.xlu0 %v1848_v1, %s5111_s20  ;;  %v3143_v1 = vld [vmem:[#allocation2 + $0x98] sm:$0x1]  ;;  %v2356_v20 = vshrl.u32 %v2055_v7, 16  ;;  %v2359_v21 = vshll.u32 %v2055_v7, 16  ;;  %v3849_v24 = vrot.slane %v3847_v10, 4  ;;  %v3850_v25 = vrot.slane %v3707_v12, 5 }
 0x1e0   : > { %v2811_v43 = vpop.permute.xlu1 %2810  ;;  %v3419_v38 = vshll.u32 %v3143_v1, 16  ;;  %v2059_v1 = vld [vmem:[#allocation2 + $0xac] sm:$0xf]  ;;  %v2380_v32 = vshrl.u32 %v2058_v22, 16  ;;  %v2383_v33 = vshll.u32 %v2058_v22, 16 }
 0x1e1   : > { %v2999_v44 = vpop.permute.xlu0 %2998  ;;  %2896 = vst.msk [vmem:[#allocation3 + $0x2c] sm:$0xf] %vm2884_vm8, %v2811_v43  ;;  %v2389_v37 = vshll.u32 %v2059_v1, 16 }
 0x1e2   : > { %3087 = vst.msk [vmem:[#allocation3 + $0x20] sm:$0xf] %vm3078_vm12, %v2999_v44  ;;  %1936 = vrot.lane.b32.xlu1 %v1849_v35, %s5111_s20  ;;  %v3439_v35 = vrot.slane %v3437_v26, 4  ;;  %v2940_v44 = vld [vmem:[#allocation2 + $0x9c] sm:$0xf]  ;;  %v3421_v47 = vrot.slane %v3419_v38, 5  ;;  %v3844_v26 = vsel %vm5572_vm14, %v3842_v8, %v3843_v2 }
 0x1e3   : > { %2491 = vrot.lane.b32.xlu0 %v2320_v45, %s5112_s21  ;;  %v3407_v45 = vrot.slane %v3406_v23, 4  ;;  %v2361_v23 = vrot.slane %v2359_v21, 5  ;;  %v2393_v38 = vshrl.u32 %v2059_v1, 16  ;;  %v2620_v2 = vld [vmem:[#allocation2 + $0xac] sm:$0xf] }
 0x1e4   : > { %v3001_v55 = vpop.permute.xlu1 %3000  ;;  %v3440_v50 = vor.u32 %v3439_v35, %v3435_v34  ;;  %v3422_v42 = vsel %vm5205_vm11, %v3417_v9, %v3421_v47  ;;  %v2391_v47 = vrot.slane %v2389_v37, 5 }
 0x1e5   : > { %v3003_v41 = vpop.permute.xlu0 %3002  ;;  %3088 = vst.msk [vmem:[#allocation3 + $0x24] sm:$0xf] %vm3078_vm12, %v3001_v55  ;;  %v2395_v54 = vrot.slane %v2393_v38, 4 }
 0x1e6   : > { %3089 = vst.msk [vmem:[#allocation3 + $0x28] sm:$0xf] %vm3078_vm12, %v3003_v41  ;;  %2493 = vrot.lane.b32.xlu1 %v2330_v53, %s5112_s21  ;;  %v2941_v53 = vld [vmem:[#allocation2 + $0xa0] sm:$0xf]  ;;  %v3412_v41 = vsel %vm5205_vm11, %v3407_v45, %v3411_v28  ;;  %v3441_v58 = vrot.slane %v3440_v50, 4  ;;  %v2365_v28 = vshll.u32 %v2056_v13, 16 }
 0x1e7   : > { %2495 = vrot.lane.b32.xlu0 %v2344_v56, %s5112_s21  ;;  %v3431_v56 = vrot.slane %v3430_v46, 4  ;;  %v2057_v45 = vld [vmem:[#allocation2 + $0xa4] sm:$0x1]  ;;  %v2382_v46 = vrot.slane %v2380_v32, 4  ;;  %v2385_v50 = vrot.slane %v2383_v33, 5  ;;  %v2396_v61 = vor.u32 %v2395_v54, %v2391_v47 }
 0x1e8   : > { %v3005_v0 = vpop.permute.xlu1 %3004  ;;  %v2367_v35 = vrot.slane %v2365_v28, 5  ;;  %v2375_v9 = vshll.u32 %v2057_v45, 16 }
 0x1e9   : > { %v3560_v3 = vpop.permute.xlu0 %3559  ;;  %3090 = vst.msk [vmem:[#allocation3 + $0x2c] sm:$0xf] %vm3078_vm12, %v3005_v0  ;;  %v3436_v5 = vsel %vm5205_vm11, %v3431_v56, %v3435_v34  ;;  %v3851_v34 = vsel %vm5572_vm14, %v3849_v24, %v3850_v25  ;;  %v2386_v57 = vor.u32 %v2385_v50, %v2382_v46  ;;  %v2397_v8 = vrot.slane %v2396_v61, 4  ;;  %v2942_v50 = vld [vmem:[#allocation2 + $0xa8] sm:$0xf] }
 0x1ea   : > { %3648 = vst.msk [vmem:[#allocation3 + $0x20] sm:$0xf] %vm3639_vm13, %v3560_v3  ;;  %2497 = vrot.lane.b32.xlu1 %v2354_v62, %s5112_s21  ;;  %v3705_v62 = vld [vmem:[#allocation2 + $0x9c] sm:$0xe] }
 0x1eb   : > { %2828 = vrot.lane.b32.xlu0 %v2749_v4, %s5113_s22 }
 0x1ec   : > { %v3562_v49 = vpop.permute.xlu1 %3561 }
 0x1ed   : > { %v3564_v16 = vpop.permute.xlu0 %3563  ;;  %3649 = vst.msk [vmem:[#allocation3 + $0x24] sm:$0xf] %vm3639_vm13, %v3562_v49 }
 0x1ee   : > { %3650 = vst.msk [vmem:[#allocation3 + $0x28] sm:$0xf] %vm3639_vm13, %v3564_v16  ;;  %2830 = vrot.lane.b32.xlu1 %v2752_v11, %s5113_s22  ;;  %v3446_v11 = vsel %vm5205_vm11, %v3441_v58, %v3445_v59  ;;  %v3841_v16 = vsel %vm5572_vm14, %v4858_v6, %v3840_v60  ;;  %v2060_v58 = vld [vmem:[#allocation2 + $0xb0] sm:$0x1]  ;;  %v1853_v59 = vld [vmem:[#allocation2 + $0xac] sm:$0xf] }
 0x1ef   : > { %2832 = vrot.lane.b32.xlu0 %v2756_v51, %s5113_s22  ;;  %v4859_v51 = vrot.slane %v3705_v62, 9  ;;  %v2399_v62 = vshll.u32 %v2060_v58, 16  ;;  %v2616_v6 = vld [vmem:[#allocation2 + $0x9c] sm:$0xe]  ;;  %v2943_v58 = vld [vmem:[#allocation2 + $0xac] sm:$0xf] }
 0x1f0   : > { %v3566_v18 = vpop.permute.xlu1 %3565 }
 0x1f1   : > { %v3897_v30 = vpop.permute.xlu0 %3896  ;;  %3651 = vst.msk [vmem:[#allocation3 + $0x2c] sm:$0xf] %vm3639_vm13, %v3566_v18 }
 0x1f2   : > { %3985 = vst.msk [vmem:[#allocation3 + $0x20] sm:$0xf] %vm3976_vm15, %v3897_v30  ;;  %2834 = vrot.lane.b32.xlu1 %v2759_v27, %s5113_s22  ;;  %v3848_v27 = vsel %vm5572_vm14, %v4859_v51, %v3847_v10  ;;  %v2401_v10 = vrot.slane %v2399_v62, 5  ;;  %v3152_v62 = vld [vmem:[#allocation2 + $0xbc] sm:$0x1] }
 0x1f3   : > { %3022 = vrot.lane.b32.xlu0 %v2938_v31, %s5114_s23  ;;  %v2358_v31 = vrot.slane %v2356_v20, 4  ;;  %v2769_v20 = vrot.slane %v2620_v2, 5  ;;  %v3491_v2 = vshll.u32 %v3152_v62, 16 }
 0x1f4   : > { %v3899_v40 = vpop.permute.xlu1 %3898  ;;  %v2402_v21 = vsel %vm5205_vm11, %v2397_v8, %v2401_v10 }
 0x1f5   : > { %v3901_v43 = vpop.permute.xlu0 %3900  ;;  %3986 = vst.msk [vmem:[#allocation3 + $0x24] sm:$0xf] %vm3976_vm15, %v3899_v40  ;;  %v2771_v1 = vrot.slane %v2769_v20, 4 }
 0x1f6   : > { %3987 = vst.msk [vmem:[#allocation3 + $0x28] sm:$0xf] %vm3976_vm15, %v3901_v43  ;;  %3024 = vrot.lane.b32.xlu1 %v2939_v36, %s5114_s23  ;;  %v2371_v36 = vrot.slane %v2369_v29, 4  ;;  %v1850_v43 = vld [vmem:[#allocation2 + $0x9c] sm:$0xf] }
 0x1f7   : > { %3026 = vrot.lane.b32.xlu0 %v2940_v44, %s5114_s23  ;;  %v2362_v44 = vor.u32 %v2361_v23, %v2358_v31  ;;  %v3150_v23 = vld [vmem:[#allocation2 + $0xb4] sm:$0xf] }
 0x1f8   : > { %v3903_v19 = vpop.permute.xlu1 %3902  ;;  %v3475_v45 = vshll.u32 %v3150_v23, 16 }
 0x1f9   : > { %v2476_v55 = vpop.permute.xlu0 %2475  ;;  %3988 = vst.msk [vmem:[#allocation3 + $0x2c] sm:$0xf] %vm3976_vm15, %v3903_v19  ;;  %v2363_v56 = vrot.slane %v2362_v44, 4  ;;  %v3472_v44 = vshrl.u32 %v3150_v23, 16 }
 0x1fa   : > { %2560 = vst.msk [vmem:[#allocation3 + $0x30] sm:$0xf] %vm2547_vm6, %v2476_v55  ;;  %3028 = vrot.lane.b32.xlu1 %v2941_v53, %s5114_s23  ;;  %v2372_v53 = vor.u32 %v2371_v36, %v2367_v35 }
 0x1fb   : > { %3583 = vrot.lane.b32.xlu0 %v3412_v41, %s5115_s26  ;;  %v1852_v41 = vld [vmem:[#allocation2 + $0xa8] sm:$0xf] }
 0x1fc   : > { %v2478_v0 = vpop.permute.xlu1 %2477  ;;  %v5088_v3 = vld [vmem:[#allocation3 + $0x20] sm:$0xff]   ;;  %v2373_v60 = vrot.slane %v2372_v53, 4 }
 0x1fd   : > { %v2480_v4 = vpop.permute.xlu0 %2479  ;;  %2561 = vst.msk [vmem:[#allocation3 + $0x34] sm:$0xf] %vm2547_vm6, %v2478_v0  ;;  %5032 = vmatprep.mubr.msk.bf16.mxu0 %vm4141_vm2, %v5088_v3  ;;  %v2368_v3 = vsel %vm5205_vm11, %v2363_v56, %v2367_v35  ;;  %v3477_v56 = vrot.slane %v3475_v45, 5 }
 0x1fe   : > { %2562 = vst.msk [vmem:[#allocation3 + $0x38] sm:$0xf] %vm2547_vm6, %v2480_v4  ;;  %3585 = vrot.lane.b32.xlu1 %v3422_v42, %s5115_s26  ;;  %v2377_v42 = vrot.slane %v2375_v9, 5  ;;  %v2387_v4 = vrot.slane %v2386_v57, 4 }
 0x1ff   : > { %3587 = vrot.lane.b32.xlu0 %v3436_v5, %s5115_s26  ;;  %v2617_v5 = vld [vmem:[#allocation2 + $0xa0] sm:$0xf] }
 0x200   : > { %v2482_v14 = vpop.permute.xlu1 %2481  ;;  %v5089_v15 = vld [vmem:[#allocation3 + $0x28] sm:$0xff]   ;;  %v2378_v7 = vsel %vm5205_vm11, %v2373_v60, %v2377_v42  ;;  %v2392_v13 = vsel %vm5205_vm11, %v2387_v4, %v2391_v47 }
 0x201   : > { %v2813_v49 = vpop.permute.xlu0 %2812  ;;  %2563 = vst.msk [vmem:[#allocation3 + $0x3c] sm:$0xf] %vm2547_vm6, %v2482_v14  ;;  %5033 = vmatmul.mubr.msk.bf16.gmra.mxu0 %vm4141_vm2, %v5089_v15  ;;  %v4844_v14 = vrot.slane %v2616_v6, 9  ;;  %v2618_v15 = vld [vmem:[#allocation2 + $0xa4] sm:$0x1] }
 0x202   : > { %2897 = vst.msk [vmem:[#allocation3 + $0x30] sm:$0xf] %vm2884_vm8, %v2813_v49  ;;  %3589 = vrot.lane.b32.xlu1 %v3446_v11, %s5115_s26  ;;  %v2762_v11 = vrot.slane %v2617_v5, 5  ;;  %v2619_v49 = vld [vmem:[#allocation2 + $0xa8] sm:$0xe]  ;;  %v2765_v24 = vrot.slane %v2618_v15, 5 }
 0x203   : > { %3920 = vrot.lane.b32.xlu0 %v3841_v16, %s5116_s4  ;;  %v3147_v16 = vld [vmem:[#allocation2 + $0xa8] sm:$0xf]  ;;  %v4845_v25 = vrot.slane %v2619_v49, 9  ;;  %v3709_v15 = vld [vmem:[#allocation2 + $0xac] sm:$0xf] }
 0x204   : > { %v2815_v18 = vpop.permute.xlu1 %2814  ;;  %v2764_v22 = vrot.slane %v2762_v11, 4  ;;  %v2763_v29 = vsel %vm5572_vm14, %v4844_v14, %v2762_v11  ;;  %v3451_v31 = vshll.u32 %v3147_v16, 16 }
 0x205   : > { %v2817_v30 = vpop.permute.xlu0 %2816  ;;  %2898 = vst.msk [vmem:[#allocation3 + $0x34] sm:$0xf] %vm2884_vm8, %v2815_v18  ;;  %v3148_v18 = vld [vmem:[#allocation2 + $0xac] sm:$0xf] }
 0x206   : > { %2899 = vst.msk [vmem:[#allocation3 + $0x38] sm:$0xf] %vm2884_vm8, %v2817_v30  ;;  %3922 = vrot.lane.b32.xlu1 %v3844_v26, %s5116_s4  ;;  %v2621_v26 = vld [vmem:[#allocation2 + $0xb0] sm:$0x1]  ;;  %v3448_v30 = vshrl.u32 %v3147_v16, 16  ;;  %v2766_v33 = vsel %vm5572_vm14, %v2764_v22, %v2765_v24  ;;  %v3457_v35 = vshll.u32 %v3148_v18, 16 }
 0x207   : > { %3924 = vrot.lane.b32.xlu0 %v3848_v27, %s5116_s4  ;;  %v2772_v32 = vrot.slane %v2621_v26, 5  ;;  %v3461_v36 = vshrl.u32 %v3148_v18, 16  ;;  %v3708_v16 = vld [vmem:[#allocation2 + $0xa8] sm:$0xe]  ;;  %v3493_v22 = vrot.slane %v3491_v2, 5  ;;  %v3854_v24 = vrot.slane %v3709_v15, 5 }
 0x208   : > { %v2819_v39 = vpop.permute.xlu1 %2818  ;;  %v3711_v18 = vld [vmem:[#allocation2 + $0xb4] sm:$0xe]  ;;  %v2066_v15 = vld [vmem:[#allocation2 + $0xc8] sm:$0x1] }
 0x209   : > { %v3007_v40 = vpop.permute.xlu0 %3006  ;;  %2900 = vst.msk [vmem:[#allocation3 + $0x3c] sm:$0xf] %vm2884_vm8, %v2819_v39  ;;  %v3450_v39 = vrot.slane %v3448_v30, 4  ;;  %v2773_v46 = vsel %vm5572_vm14, %v2771_v1, %v2772_v32  ;;  %v3463_v53 = vrot.slane %v3461_v36, 4  ;;  %v3856_v32 = vrot.slane %v3854_v24, 4 }
 0x20a   : > { %3091 = vst.msk [vmem:[#allocation3 + $0x30] sm:$0xf] %vm3078_vm12, %v3007_v40  ;;  %3926 = vrot.lane.b32.xlu1 %v3851_v34, %s5116_s4  ;;  %v2770_v34 = vsel %vm5572_vm14, %v4845_v25, %v2769_v20  ;;  %v3453_v40 = vrot.slane %v3451_v31, 5  ;;  %v3712_v25 = vld [vmem:[#allocation2 + $0xb8] sm:$0xf] }
 0x20b   : > { %1938 = vrot.lane.b32.xlu0 %v1850_v43, %s5111_s20  ;;  %v3151_v43 = vld [vmem:[#allocation2 + $0xb8] sm:$0xf]  ;;  %v2061_v31 = vld [vmem:[#allocation2 + $0xb4] sm:$0xf]  ;;  %v3861_v23 = vrot.slane %v3712_v25, 5 }
 0x20c   : > { %v3009_v19 = vpop.permute.xlu1 %3008  ;;  %v3481_v9 = vshll.u32 %v3151_v43, 16  ;;  %v3485_v47 = vshrl.u32 %v3151_v43, 16 }
 0x20d   : > { %v3011_v55 = vpop.permute.xlu0 %3010  ;;  %3092 = vst.msk [vmem:[#allocation3 + $0x34] sm:$0xf] %vm3078_vm12, %v3009_v19  ;;  %v3454_v19 = vor.u32 %v3453_v40, %v3450_v39  ;;  %v2404_v39 = vshrl.u32 %v2061_v31, 16  ;;  %v2407_v40 = vshll.u32 %v2061_v31, 16  ;;  %v3863_v45 = vrot.slane %v3861_v23, 4 }
 0x20e   : > { %3093 = vst.msk [vmem:[#allocation3 + $0x38] sm:$0xf] %vm3078_vm12, %v3011_v55  ;;  %1940 = vrot.lane.b32.xlu1 %v1851_v48, %s5111_s20  ;;  %v3459_v48 = vrot.slane %v3457_v35, 5  ;;  %v3149_v55 = vld [vmem:[#allocation2 + $0xb0] sm:$0x1]  ;;  %v3483_v61 = vrot.slane %v3481_v9, 5 }
 0x20f   : > { %1942 = vrot.lane.b32.xlu0 %v1852_v41, %s5111_s20  ;;  %v3474_v41 = vrot.slane %v3472_v44, 4  ;;  %v3467_v42 = vshll.u32 %v3149_v55, 16  ;;  %v3455_v4 = vrot.slane %v3454_v19, 4  ;;  %v3713_v35 = vld [vmem:[#allocation2 + $0xbc] sm:$0x1]  ;;  %v2409_v19 = vrot.slane %v2407_v40, 5 }
 0x210   : > { %v3013_v63 = vpop.permute.xlu1 %3012  ;;  %v3464_v60 = vor.u32 %v3463_v53, %v3459_v48  ;;  %v2064_v44 = vld [vmem:[#allocation2 + $0xc0] sm:$0xf]  ;;  %v2065_v55 = vld [vmem:[#allocation2 + $0xc4] sm:$0xf] }
 0x211   : > { %v3568_v0 = vpop.permute.xlu0 %3567  ;;  %3094 = vst.msk [vmem:[#allocation3 + $0x3c] sm:$0xf] %vm3078_vm12, %v3013_v63  ;;  %v3487_v63 = vrot.slane %v3485_v47, 4  ;;  %v3478_v5 = vor.u32 %v3477_v56, %v3474_v41  ;;  %v3469_v10 = vrot.slane %v3467_v42, 5  ;;  %v2428_v41 = vshrl.u32 %v2064_v44, 16 }
 0x212   : > { %3652 = vst.msk [vmem:[#allocation3 + $0x30] sm:$0xf] %vm3639_vm13, %v3568_v0  ;;  %1944 = vrot.lane.b32.xlu1 %v1853_v59, %s5111_s20  ;;  %v2944_v59 = vld [vmem:[#allocation2 + $0xb4] sm:$0xf]  ;;  %v3465_v8 = vrot.slane %v3464_v60, 4  ;;  %v2431_v56 = vshll.u32 %v2064_v44, 16 }
 0x213   : > { %2499 = vrot.lane.b32.xlu0 %v2368_v3, %s5112_s21  ;;  %v3488_v11 = vor.u32 %v3487_v63, %v3483_v61  ;;  %v3479_v14 = vrot.slane %v3478_v5, 4  ;;  %v2437_v42 = vshll.u32 %v2065_v55, 16  ;;  %v1854_v63 = vld [vmem:[#allocation2 + $0xb4] sm:$0xf] }
 0x214   : > { %v3570_v51 = vpop.permute.xlu1 %3569  ;;  %v3470_v20 = vsel %vm5205_vm11, %v3465_v8, %v3469_v10  ;;  %v2433_v5 = vrot.slane %v2431_v56, 5 }
 0x215   : > { %v3572_v12 = vpop.permute.xlu0 %3571  ;;  %3653 = vst.msk [vmem:[#allocation3 + $0x34] sm:$0xf] %vm3639_vm13, %v3570_v51 }
 0x216   : > { %3654 = vst.msk [vmem:[#allocation3 + $0x38] sm:$0xf] %vm3639_vm13, %v3572_v12  ;;  %2501 = vrot.lane.b32.xlu1 %v2378_v7, %s5112_s21  ;;  %v2945_v7 = vld [vmem:[#allocation2 + $0xb8] sm:$0xf] }
 0x217   : > { %2503 = vrot.lane.b32.xlu0 %v2392_v13, %s5112_s21  ;;  %v3460_v13 = vsel %vm5205_vm11, %v3455_v4, %v3459_v48  ;;  %v2430_v4 = vrot.slane %v2428_v41, 4 }
 0x218   : > { %v3574_v27 = vpop.permute.xlu1 %3573 }
 0x219   : > { %v3905_v28 = vpop.permute.xlu0 %3904  ;;  %3655 = vst.msk [vmem:[#allocation3 + $0x3c] sm:$0xf] %vm3639_vm13, %v3574_v27  ;;  %v3484_v27 = vsel %vm5205_vm11, %v3479_v14, %v3483_v61  ;;  %v2441_v61 = vshrl.u32 %v2065_v55, 16  ;;  %v2434_v14 = vor.u32 %v2433_v5, %v2430_v4  ;;  %v3156_v55 = vld [vmem:[#allocation2 + $0xcc] sm:$0xf] }
 0x21a   : > { %3989 = vst.msk [vmem:[#allocation3 + $0x30] sm:$0xf] %vm3976_vm15, %v3905_v28  ;;  %2505 = vrot.lane.b32.xlu1 %v2402_v21, %s5112_s21  ;;  %v3489_v21 = vrot.slane %v3488_v11, 4  ;;  %v4860_v28 = vrot.slane %v3708_v16, 9  ;;  %v2439_v11 = vrot.slane %v2437_v42, 5 }
 0x21b   : > { %2836 = vrot.lane.b32.xlu0 %v2763_v29, %s5113_s22  ;;  %v3710_v29 = vld [vmem:[#allocation2 + $0xb0] sm:$0x1]  ;;  %v2443_v2 = vrot.slane %v2441_v61, 4  ;;  %v1857_v16 = vld [vmem:[#allocation2 + $0xc4] sm:$0xf] }
 0x21c   : > { %v3907_v37 = vpop.permute.xlu1 %3906  ;;  %v3494_v1 = vsel %vm5205_vm11, %v3489_v21, %v3493_v22 }
 0x21d   : > { %v3909_v38 = vpop.permute.xlu0 %3908  ;;  %3990 = vst.msk [vmem:[#allocation3 + $0x34] sm:$0xf] %vm3976_vm15, %v3907_v37  ;;  %v3855_v37 = vsel %vm5572_vm14, %v4860_v28, %v3854_v24  ;;  %v2444_v22 = vor.u32 %v2443_v2, %v2439_v11  ;;  %v2447_v24 = vshll.u32 %v2066_v15, 16  ;;  %v2623_v28 = vld [vmem:[#allocation2 + $0xb8] sm:$0xf] }
 0x21e   : > { %3991 = vst.msk [vmem:[#allocation3 + $0x38] sm:$0xf] %vm3976_vm15, %v3909_v38  ;;  %2838 = vrot.lane.b32.xlu1 %v2766_v33, %s5113_s22  ;;  %v3857_v33 = vrot.slane %v3710_v29, 5  ;;  %v2062_v38 = vld [vmem:[#allocation2 + $0xb8] sm:$0xf] }
 0x21f   : > { %2840 = vrot.lane.b32.xlu0 %v2770_v34, %s5113_s22  ;;  %v4861_v34 = vrot.slane %v3711_v18, 9  ;;  %v2413_v53 = vshll.u32 %v2062_v38, 16  ;;  %v2417_v9 = vshrl.u32 %v2062_v38, 16  ;;  %v2622_v18 = vld [vmem:[#allocation2 + $0xb4] sm:$0xe]  ;;  %v2445_v31 = vrot.slane %v2444_v22, 4 }
 0x220   : > { %v3911_v54 = vpop.permute.xlu1 %3910 }
 0x221   : > { %3992 = vst.msk [vmem:[#allocation3 + $0x3c] sm:$0xf] %vm3976_vm15, %v3911_v54  ;;  %v1927_v57 = vpop.permute.xlu0 %1926  ;;  %v3862_v48 = vsel %vm5572_vm14, %v4861_v34, %v3861_v23  ;;  %v2406_v54 = vrot.slane %v2404_v39, 4  ;;  %v2419_v60 = vrot.slane %v2417_v9, 4  ;;  %v2449_v23 = vrot.slane %v2447_v24, 5 }
 0x222   : > { %2842 = vrot.lane.b32.xlu1 %v2773_v46, %s5113_s22  ;;  %2005 = vst.msk [vmem:[#allocation3 + $0x48] sm:$0xf] %vm1986_vm5, %v1927_v57  ;;  %v3864_v46 = vrot.slane %v3713_v35, 5  ;;  %v4846_v35 = vrot.slane %v2622_v18, 9  ;;  %v3153_v39 = vld [vmem:[#allocation2 + $0xc0] sm:$0xf] }
 0x223   : > { %3030 = vrot.lane.b32.xlu0 %v2942_v50, %s5114_s23  ;;  %v3858_v50 = vsel %vm5572_vm14, %v3856_v32, %v3857_v33  ;;  %v2626_v32 = vld [vmem:[#allocation2 + $0xc4] sm:$0xf]  ;;  %v3158_v18 = vld [vmem:[#allocation2 + $0xd4] sm:$0x1] }
 0x224   : > { %v1929_v0 = vpop.permute.xlu1 %1928  ;;  %v5090_v3 = vld [vmem:[#allocation3 + $0x30] sm:$0xff]   ;;  %v2783_v40 = vrot.slane %v2626_v32, 5  ;;  %v3154_v9 = vld [vmem:[#allocation2 + $0xc4] sm:$0xf] }
 0x225   : > { %2006 = vst.msk [vmem:[#allocation3 + $0x4c] sm:$0xf] %vm1986_vm5, %v1929_v0  ;;  %v2484_v6 = vpop.permute.xlu0 %2483  ;;  %5036 = vmatprep.mubr.msk.bf16.mxu0 %vm4141_vm2, %v5090_v3  ;;  %v2410_v0 = vor.u32 %v2409_v19, %v2406_v54  ;;  %v2063_v3 = vld [vmem:[#allocation2 + $0xbc] sm:$0x1]  ;;  %v3499_v54 = vshll.u32 %v3153_v39, 16 }
 0x226   : > { %3032 = vrot.lane.b32.xlu1 %v2943_v58, %s5114_s23  ;;  %2564 = vst.msk [vmem:[#allocation3 + $0x40] sm:$0xf] %vm2547_vm6, %v2484_v6  ;;  %v3865_v58 = vsel %vm5572_vm14, %v3863_v45, %v3864_v46  ;;  %v2423_v10 = vshll.u32 %v2063_v3, 16  ;;  %v2785_v41 = vrot.slane %v2783_v40, 4  ;;  %v3523_v3 = vshll.u32 %v3156_v55, 16 }
 0x227   : > { %3034 = vrot.lane.b32.xlu0 %v2944_v59, %s5114_s23  ;;  %v2415_v59 = vrot.slane %v2413_v53, 5 }
 0x228   : > { %v2486_v51 = vpop.permute.xlu1 %2485  ;;  %v5091_v12 = vld [vmem:[#allocation3 + $0x38] sm:$0xff]   ;;  %v2425_v21 = vrot.slane %v2423_v10, 5  ;;  %v3525_v15 = vrot.slane %v3523_v3, 5 }
 0x229   : > { %2565 = vst.msk [vmem:[#allocation3 + $0x44] sm:$0xf] %vm2547_vm6, %v2486_v51  ;;  %v2488_v49 = vpop.permute.xlu0 %2487  ;;  %5037 = vmatmul.mubr.msk.bf16.gmra.mxu0 %vm4141_vm2, %v5091_v12  ;;  %v2420_v8 = vor.u32 %v2419_v60, %v2415_v59  ;;  %v1856_v12 = vld [vmem:[#allocation2 + $0xc0] sm:$0xf]  ;;  %v3509_v60 = vshrl.u32 %v3154_v9, 16 }
 0x22a   : > { %3036 = vrot.lane.b32.xlu1 %v2945_v7, %s5114_s23  ;;  %2566 = vst.msk [vmem:[#allocation3 + $0x48] sm:$0xf] %vm2547_vm6, %v2488_v49  ;;  %v1855_v7 = vld [vmem:[#allocation2 + $0xb8] sm:$0xf] }
 0x22b   : > { %3591 = vrot.lane.b32.xlu0 %v3460_v13, %s5115_s26  ;;  %v2411_v13 = vrot.slane %v2410_v0, 4  ;;  %v3520_v0 = vshrl.u32 %v3156_v55, 16  ;;  %v3511_v10 = vrot.slane %v3509_v60, 4  ;;  %v3719_v60 = vld [vmem:[#allocation2 + $0xd4] sm:$0x1] }
 0x22c   : > { %v2490_v26 = vpop.permute.xlu1 %2489 }
 0x22d   : > { %2567 = vst.msk [vmem:[#allocation3 + $0x4c] sm:$0xf] %vm2547_vm6, %v2490_v26  ;;  %v2821_v30 = vpop.permute.xlu0 %2820  ;;  %v2416_v26 = vsel %vm5205_vm11, %v2411_v13, %v2415_v59  ;;  %v3505_v59 = vshll.u32 %v3154_v9, 16  ;;  %v3718_v9 = vld [vmem:[#allocation2 + $0xd0] sm:$0xf] }
 0x22e   : > { %3593 = vrot.lane.b32.xlu1 %v3470_v20, %s5115_s26  ;;  %2901 = vst.msk [vmem:[#allocation3 + $0x40] sm:$0xf] %vm2884_vm8, %v2821_v30  ;;  %v2421_v20 = vrot.slane %v2420_v8, 4  ;;  %v3155_v8 = vld [vmem:[#allocation2 + $0xc8] sm:$0x1] }
 0x22f   : > { %3595 = vrot.lane.b32.xlu0 %v3484_v27, %s5115_s26  ;;  %v2435_v27 = vrot.slane %v2434_v14, 4  ;;  %v3522_v14 = vrot.slane %v3520_v0, 4  ;;  %v3515_v22 = vshll.u32 %v3155_v8, 16 }
 0x230   : > { %v2823_v36 = vpop.permute.xlu1 %2822  ;;  %v2426_v30 = vsel %vm5205_vm11, %v2421_v20, %v2425_v21  ;;  %v2948_v20 = vld [vmem:[#allocation2 + $0xcc] sm:$0xf] }
 0x231   : > { %2902 = vst.msk [vmem:[#allocation3 + $0x44] sm:$0xf] %vm2884_vm8, %v2823_v36  ;;  %v2825_v43 = vpop.permute.xlu0 %2824  ;;  %v2440_v34 = vsel %vm5205_vm11, %v2435_v27, %v2439_v11  ;;  %v2624_v36 = vld [vmem:[#allocation2 + $0xbc] sm:$0x1] }
 0x232   : > { %3597 = vrot.lane.b32.xlu1 %v3494_v1, %s5115_s26  ;;  %2903 = vst.msk [vmem:[#allocation3 + $0x48] sm:$0xf] %vm2884_vm8, %v2825_v43  ;;  %v2776_v1 = vrot.slane %v2623_v28, 5  ;;  %v2450_v43 = vsel %vm5205_vm11, %v2445_v31, %v2449_v23  ;;  %v2779_v45 = vrot.slane %v2624_v36, 5  ;;  %v2949_v31 = vld [vmem:[#allocation2 + $0xd0] sm:$0xf] }
 0x233   : > { %3928 = vrot.lane.b32.xlu0 %v3855_v37, %s5116_s4  ;;  %v2625_v37 = vld [vmem:[#allocation2 + $0xc0] sm:$0xe] }
 0x234   : > { %v2827_v47 = vpop.permute.xlu1 %2826  ;;  %v2778_v44 = vrot.slane %v2776_v1, 4  ;;  %v4847_v46 = vrot.slane %v2625_v37, 9  ;;  %v2777_v53 = vsel %vm5572_vm14, %v4846_v35, %v2776_v1  ;;  %v3517_v1 = vrot.slane %v3515_v22, 5  ;;  %v3715_v37 = vld [vmem:[#allocation2 + $0xc4] sm:$0xf] }
 0x235   : > { %2904 = vst.msk [vmem:[#allocation3 + $0x4c] sm:$0xf] %vm2884_vm8, %v2827_v47  ;;  %v3015_v57 = vpop.permute.xlu0 %3014  ;;  %v3496_v47 = vshrl.u32 %v3153_v39, 16  ;;  %v3714_v39 = vld [vmem:[#allocation2 + $0xc0] sm:$0xe] }
 0x236   : > { %3930 = vrot.lane.b32.xlu1 %v3858_v50, %s5116_s4  ;;  %3095 = vst.msk [vmem:[#allocation3 + $0x40] sm:$0xf] %vm3078_vm12, %v3015_v57  ;;  %v2627_v50 = vld [vmem:[#allocation2 + $0xc8] sm:$0x1]  ;;  %v2780_v57 = vsel %vm5572_vm14, %v2778_v44, %v2779_v45  ;;  %v3868_v45 = vrot.slane %v3715_v37, 5 }
 0x237   : > { %3932 = vrot.lane.b32.xlu0 %v3862_v48, %s5116_s4  ;;  %v2786_v56 = vrot.slane %v2627_v50, 5  ;;  %v3498_v61 = vrot.slane %v3496_v47, 4 }
 0x238   : > { %v3017_v62 = vpop.permute.xlu1 %3016  ;;  %v3870_v55 = vrot.slane %v3868_v45, 4 }
 0x239   : > { %3096 = vst.msk [vmem:[#allocation3 + $0x44] sm:$0xf] %vm3078_vm12, %v3017_v62  ;;  %v3019_v6 = vpop.permute.xlu0 %3018  ;;  %v3501_v62 = vrot.slane %v3499_v54, 5  ;;  %v2787_v5 = vsel %vm5572_vm14, %v2785_v41, %v2786_v56  ;;  %v3717_v54 = vld [vmem:[#allocation2 + $0xcc] sm:$0xe]  ;;  %v3875_v56 = vrot.slane %v3718_v9, 5 }
 0x23a   : > { %3934 = vrot.lane.b32.xlu1 %v3865_v58, %s5116_s4  ;;  %3097 = vst.msk [vmem:[#allocation3 + $0x48] sm:$0xf] %vm3078_vm12, %v3019_v6  ;;  %v2784_v58 = vsel %vm5572_vm14, %v4847_v46, %v2783_v40  ;;  %v2946_v6 = vld [vmem:[#allocation2 + $0xc0] sm:$0xf] }
 0x23b   : > { %1946 = vrot.lane.b32.xlu0 %v1854_v63, %s5111_s20  ;;  %v3157_v63 = vld [vmem:[#allocation2 + $0xd0] sm:$0xf]  ;;  %v3502_v13 = vor.u32 %v3501_v62, %v3498_v61  ;;  %v3877_v61 = vrot.slane %v3875_v56, 4  ;;  %v3878_v62 = vrot.slane %v3719_v60, 5 }
 0x23c   : > { %v3021_v51 = vpop.permute.xlu1 %3020  ;;  %v3529_v11 = vshll.u32 %v3157_v63, 16  ;;  %v3533_v2 = vshrl.u32 %v3157_v63, 16 }
 0x23d   : > { %3098 = vst.msk [vmem:[#allocation3 + $0x4c] sm:$0xf] %vm3078_vm12, %v3021_v51  ;;  %v3576_v49 = vpop.permute.xlu0 %3575  ;;  %v3503_v28 = vrot.slane %v3502_v13, 4 }
 0x23e   : > { %1948 = vrot.lane.b32.xlu1 %v1855_v7, %s5111_s20  ;;  %3656 = vst.msk [vmem:[#allocation3 + $0x40] sm:$0xf] %vm3639_vm13, %v3576_v49  ;;  %v3507_v7 = vrot.slane %v3505_v59, 5  ;;  %v3531_v24 = vrot.slane %v3529_v11, 5  ;;  %v4863_v59 = vrot.slane %v3717_v54, 9 }
 0x23f   : > { %1950 = vrot.lane.b32.xlu0 %v1856_v12, %s5111_s20 }
 0x240   : > { %v3578_v25 = vpop.permute.xlu1 %3577  ;;  %v3512_v21 = vor.u32 %v3511_v10, %v3507_v7  ;;  %v3508_v35 = vsel %vm5205_vm11, %v3503_v28, %v3507_v7  ;;  %v3876_v0 = vsel %vm5572_vm14, %v4863_v59, %v3875_v56 }
 0x241   : > { %3657 = vst.msk [vmem:[#allocation3 + $0x44] sm:$0xf] %vm3639_vm13, %v3578_v25  ;;  %v3580_v29 = vpop.permute.xlu0 %3579  ;;  %v3535_v25 = vrot.slane %v3533_v2, 4 }
 0x242   : > { %1952 = vrot.lane.b32.xlu1 %v1857_v16, %s5111_s20  ;;  %3658 = vst.msk [vmem:[#allocation3 + $0x48] sm:$0xf] %vm3639_vm13, %v3580_v29  ;;  %v2947_v16 = vld [vmem:[#allocation2 + $0xc4] sm:$0xf]  ;;  %v3526_v29 = vor.u32 %v3525_v15, %v3522_v14  ;;  %v3513_v23 = vrot.slane %v3512_v21, 4 }
 0x243   : > { %2507 = vrot.lane.b32.xlu0 %v2416_v26, %s5112_s21  ;;  %v3536_v32 = vor.u32 %v3535_v25, %v3531_v24 }
 0x244   : > { %v3582_v33 = vpop.permute.xlu1 %3581  ;;  %v3527_v36 = vrot.slane %v3526_v29, 4  ;;  %v3518_v40 = vsel %vm5205_vm11, %v3513_v23, %v3517_v1 }
 0x245   : > { %3659 = vst.msk [vmem:[#allocation3 + $0x4c] sm:$0xf] %vm3639_vm13, %v3582_v33  ;;  %v3913_v38 = vpop.permute.xlu0 %3912  ;;  %v3539_v33 = vshll.u32 %v3158_v18, 16 }
 0x246   : > { %2509 = vrot.lane.b32.xlu1 %v2426_v30, %s5112_s21  ;;  %3993 = vst.msk [vmem:[#allocation3 + $0x40] sm:$0xf] %vm3976_vm15, %v3913_v38  ;;  %v3532_v50 = vsel %vm5205_vm11, %v3527_v36, %v3531_v24 }
 0x247   : > { %2511 = vrot.lane.b32.xlu0 %v2440_v34, %s5112_s21  ;;  %v3541_v44 = vrot.slane %v3539_v33, 5 }
 0x248   : > { %v3915_v48 = vpop.permute.xlu1 %3914 }
 0x249   : > { %3994 = vst.msk [vmem:[#allocation3 + $0x44] sm:$0xf] %vm3976_vm15, %v3915_v48  ;;  %v3917_v19 = vpop.permute.xlu0 %3916  ;;  %v4862_v48 = vrot.slane %v3714_v39, 9 }
 0x24a   : > { %2513 = vrot.lane.b32.xlu1 %v2450_v43, %s5112_s21  ;;  %3995 = vst.msk [vmem:[#allocation3 + $0x48] sm:$0xf] %vm3976_vm15, %v3917_v19  ;;  %v3537_v43 = vrot.slane %v3536_v32, 4 }
 0x24b   : > { %2844 = vrot.lane.b32.xlu0 %v2777_v53, %s5113_s22  ;;  %v3716_v53 = vld [vmem:[#allocation2 + $0xc8] sm:$0x1] }
 0x24c   : > { %v3919_v42 = vpop.permute.xlu1 %3918  ;;  %v3542_v19 = vsel %vm5205_vm11, %v3537_v43, %v3541_v44  ;;  %v3871_v41 = vrot.slane %v3716_v53, 5 }
 0x24d   : > { %3996 = vst.msk [vmem:[#allocation3 + $0x4c] sm:$0xf] %vm3976_vm15, %v3919_v42  ;;  %v1931_v4 = vpop.permute.xlu0 %1930 }
 0x24e   : > { %2846 = vrot.lane.b32.xlu1 %v2780_v57, %s5113_s22  ;;  %2007 = vst.msk [vmem:[#allocation3 + $0x50] sm:$0xf] %vm1986_vm5, %v1931_v4  ;;  %v3872_v52 = vsel %vm5572_vm14, %v3870_v55, %v3871_v41  ;;  %v3879_v4 = vsel %vm5572_vm14, %v3877_v61, %v3878_v62 }
 0x24f   : > { %2848 = vrot.lane.b32.xlu0 %v2784_v58, %s5113_s22  ;;  %v3869_v58 = vsel %vm5572_vm14, %v4862_v48, %v3868_v45 }
 0x250   : > { %v1933_v51 = vpop.permute.xlu1 %1932  ;;  %v5092_v12 = vld [vmem:[#allocation3 + $0x40] sm:$0xff]  }
 0x251   : > { %2008 = vst.msk [vmem:[#allocation3 + $0x54] sm:$0xf] %vm1986_vm5, %v1933_v51  ;;  %v1935_v49 = vpop.permute.xlu0 %1934  ;;  %5040 = vmatprep.mubr.msk.bf16.mxu1 %vm4141_vm2, %v5092_v12 }
 0x252   : > { %2850 = vrot.lane.b32.xlu1 %v2787_v5, %s5113_s22  ;;  %2009 = vst.msk [vmem:[#allocation3 + $0x58] sm:$0xf] %vm1986_vm5, %v1935_v49 }
 0x253   : > { %3038 = vrot.lane.b32.xlu0 %v2946_v6, %s5114_s23 }
 0x254   : > { %v1937_v26 = vpop.permute.xlu1 %1936  ;;  %v5093_v27 = vld [vmem:[#allocation3 + $0x48] sm:$0xff]  }
 0x255   : > { %2010 = vst.msk [vmem:[#allocation3 + $0x5c] sm:$0xf] %vm1986_vm5, %v1937_v26  ;;  %v2492_v30 = vpop.permute.xlu0 %2491  ;;  %5041 = vmatmul.mubr.msk.bf16.vlgmr.msra.gmra.mxu1 %vm4141_vm2, %v5093_v27 }
 0x256   : > { %3040 = vrot.lane.b32.xlu1 %v2947_v16, %s5114_s23  ;;  %2568 = vst.msk [vmem:[#allocation3 + $0x50] sm:$0xf] %vm2547_vm6, %v2492_v30 }
 0x257   : > { %3042 = vrot.lane.b32.xlu0 %v2948_v20, %s5114_s23 }
 0x258   : > { %v2494_v34 = vpop.permute.xlu1 %2493 }
 0x259   : > { %2569 = vst.msk [vmem:[#allocation3 + $0x54] sm:$0xf] %vm2547_vm6, %v2494_v34  ;;  %v2496_v38 = vpop.permute.xlu0 %2495 }
 0x25a   : > { %3044 = vrot.lane.b32.xlu1 %v2949_v31, %s5114_s23  ;;  %2570 = vst.msk [vmem:[#allocation3 + $0x58] sm:$0xf] %vm2547_vm6, %v2496_v38 }
 0x25b   : > { %3599 = vrot.lane.b32.xlu0 %v3508_v35, %s5115_s26 }
 0x25c   : > { %v2498_v46 = vpop.permute.xlu1 %2497 }
 0x25d   : > { %2571 = vst.msk [vmem:[#allocation3 + $0x5c] sm:$0xf] %vm2547_vm6, %v2498_v46  ;;  %v2829_v47 = vpop.permute.xlu0 %2828 }
 0x25e   : > { %3601 = vrot.lane.b32.xlu1 %v3518_v40, %s5115_s26  ;;  %2905 = vst.msk [vmem:[#allocation3 + $0x50] sm:$0xf] %vm2884_vm8, %v2829_v47 }
 0x25f   : > { %3603 = vrot.lane.b32.xlu0 %v3532_v50, %s5115_s26 }
 0x260   : > { %v2831_v57 = vpop.permute.xlu1 %2830 }
 0x261   : > { %2906 = vst.msk [vmem:[#allocation3 + $0x54] sm:$0xf] %vm2884_vm8, %v2831_v57  ;;  %v2833_v42 = vpop.permute.xlu0 %2832 }
 0x262   : > { %3605 = vrot.lane.b32.xlu1 %v3542_v19, %s5115_s26  ;;  %2907 = vst.msk [vmem:[#allocation3 + $0x58] sm:$0xf] %vm2884_vm8, %v2833_v42 }
 0x263   : > { %3936 = vrot.lane.b32.xlu0 %v3869_v58, %s5116_s4 }
 0x264   : > { %v2835_v63 = vpop.permute.xlu1 %2834 }
 0x265   : > { %2908 = vst.msk [vmem:[#allocation3 + $0x5c] sm:$0xf] %vm2884_vm8, %v2835_v63  ;;  %v3023_v3 = vpop.permute.xlu0 %3022 }
 0x266   : > { %3938 = vrot.lane.b32.xlu1 %v3872_v52, %s5116_s4  ;;  %3099 = vst.msk [vmem:[#allocation3 + $0x50] sm:$0xf] %vm3078_vm12, %v3023_v3 }
 0x267   : > { %3940 = vrot.lane.b32.xlu0 %v3876_v0, %s5116_s4 }
 0x268   : > { %v3025_v5 = vpop.permute.xlu1 %3024 }
 0x269   : > { %3100 = vst.msk [vmem:[#allocation3 + $0x54] sm:$0xf] %vm3078_vm12, %v3025_v5  ;;  %v3027_v6 = vpop.permute.xlu0 %3026 }
 0x26a   : > { %3942 = vrot.lane.b32.xlu1 %v3879_v4, %s5116_s4  ;;  %3101 = vst.msk [vmem:[#allocation3 + $0x58] sm:$0xf] %vm3078_vm12, %v3027_v6 }
 0x26c   : > { %v3029_v7 = vpop.permute.xlu1 %3028 }
 0x26d   : > { %3102 = vst.msk [vmem:[#allocation3 + $0x5c] sm:$0xf] %vm3078_vm12, %v3029_v7  ;;  %v3584_v8 = vpop.permute.xlu0 %3583 }
 0x26e   : > { %3660 = vst.msk [vmem:[#allocation3 + $0x50] sm:$0xf] %vm3639_vm13, %v3584_v8 }
 0x270   : > { %v3586_v10 = vpop.permute.xlu1 %3585 }
 0x271   : > { %3661 = vst.msk [vmem:[#allocation3 + $0x54] sm:$0xf] %vm3639_vm13, %v3586_v10  ;;  %v3588_v17 = vpop.permute.xlu0 %3587  ;;  %v5026_v11 = vpop.f32.mrf.mxu0 }
 0x272   : > { %3662 = vst.msk [vmem:[#allocation3 + $0x58] sm:$0xf] %vm3639_vm13, %v3588_v17  ;;  %v4969_v2 = vpack.c.bf16 %v5026_v11, %v5026_v11  ;;  %v4588_v20 = vmul.f32 %v5026_v11, %v5026_v11  ;;  %v4519_v18 = vsel %vm4515_vm3, %v5026_v11, 0.0 }
 0x273   : > { %v4228_v12 = vpop.f32.mrf.mxu0 }
 0x274   : > { %v3590_v51 = vpop.permute.xlu1 %3589  ;;  %4485 = vst.msk [vmem:[%s6401_s8 + $0x8] sm:$0xf] %vm215_vm0, %v4969_v2  ;;  %v4967_v13 = vpack.c.bf16 %v4228_v12, %v4228_v12  ;;  %v4586_v49 = vmul.f32 %v4228_v12, %v4228_v12  ;;  %v4516_v24 = vsel %vm4515_vm3, %v4228_v12, 0.0  ;;  %v4621_v34 = vsel %vm4515_vm3, %v4588_v20, 0.0 }
 0x275   : > { %3663 = vst.msk [vmem:[#allocation3 + $0x5c] sm:$0xf] %vm3639_vm13, %v3590_v51  ;;  %v3921_v14 = vpop.permute.xlu0 %3920  ;;  %v5027_v15 = vpop.f32.mrf.mxu0 }
 0x276   : > { %3997 = vst.msk [vmem:[#allocation3 + $0x50] sm:$0xf] %vm3976_vm15, %v3921_v14  ;;  %v4970_v16 = vpack.c.bf16 %v5027_v15, %v5027_v15  ;;  %v4618_v30 = vsel %vm4515_vm3, %v4586_v49, 0.0  ;;  %v4589_v31 = vmul.f32 %v5027_v15, %v5027_v15  ;;  %v4521_v35 = vsel %vm4515_vm3, %v5027_v15, 0.0 }
 0x277   : > { %4483 = vst.msk [vmem:[%s6401_s8] sm:$0xf] %vm215_vm0, %v4967_v13  ;;  %v4231_v22 = vpop.f32.mrf.mxu0 }
 0x278   : > { %v3923_v21 = vpop.permute.xlu1 %3922  ;;  %4486 = vst.msk [vmem:[%s6401_s8 + $0xc] sm:$0xf] %vm215_vm0, %v4970_v16  ;;  %v4968_v25 = vpack.c.bf16 %v4231_v22, %v4231_v22  ;;  %v4517_v26 = vsel %vm4515_vm3, %v4231_v22, 0.0  ;;  %v4587_v27 = vmul.f32 %v4231_v22, %v4231_v22  ;;  %v4623_v39 = vsel %vm4515_vm3, %v4589_v31, 0.0 }
 0x279   : > { %3998 = vst.msk [vmem:[#allocation3 + $0x54] sm:$0xf] %vm3976_vm15, %v3923_v21  ;;  %v3925_v28 = vpop.permute.xlu0 %3924  ;;  %v4518_v29 = vadd.f32 %v4517_v26, %v4516_v24 }
 0x27a   : > { %3999 = vst.msk [vmem:[#allocation3 + $0x58] sm:$0xf] %vm3976_vm15, %v3925_v28  ;;  %v4619_v23 = vsel %vm4515_vm3, %v4587_v27, 0.0 }
 0x27b   : > { %4484 = vst.msk [vmem:[%s6401_s8 + $0x4] sm:$0xf] %vm215_vm0, %v4968_v25  ;;  %v4520_v1 = vadd.f32 %v4519_v18, %v4518_v29  ;;  %v4620_v32 = vadd.f32 %v4619_v23, %v4618_v30 }
 0x27c   : > { %v3927_v33 = vpop.permute.xlu1 %3926 }
 0x27d   : > { %4000 = vst.msk [vmem:[#allocation3 + $0x5c] sm:$0xf] %vm3976_vm15, %v3927_v33  ;;  %v1939_v36 = vpop.permute.xlu0 %1938  ;;  %v4622_v37 = vadd.f32 %v4621_v34, %v4620_v32  ;;  %v4522_v38 = vadd.f32 %v4521_v35, %v4520_v1 }
 0x27e   : > { %2011 = vst.msk [vmem:[#allocation3 + $0x60] sm:$0xf] %vm1986_vm5, %v1939_v36 }
 0x27f   : > { %v4624_v44 = vadd.f32 %v4623_v39, %v4622_v37 }
 0x280   : > { %v1941_v40 = vpop.permute.xlu1 %1940  ;;  %v5094_v43 = vld [vmem:[#allocation3 + $0x50] sm:$0xff]  }
 0x281   : > { %2012 = vst.msk [vmem:[#allocation3 + $0x64] sm:$0xf] %vm1986_vm5, %v1941_v40  ;;  %v1943_v45 = vpop.permute.xlu0 %1942  ;;  %5044 = vmatprep.mubr.msk.bf16.mxu1 %vm4141_vm2, %v5094_v43 }
 0x282   : > { %2013 = vst.msk [vmem:[#allocation3 + $0x68] sm:$0xf] %vm1986_vm5, %v1943_v45 }
 0x284   : > { %v1945_v46 = vpop.permute.xlu1 %1944  ;;  %v5095_v50 = vld [vmem:[#allocation3 + $0x58] sm:$0xff]  }
 0x285   : > { %2014 = vst.msk [vmem:[#allocation3 + $0x6c] sm:$0xf] %vm1986_vm5, %v1945_v46  ;;  %v2500_v48 = vpop.permute.xlu0 %2499  ;;  %5045 = vmatmul.mubr.msk.bf16.gmra.mxu1 %vm4141_vm2, %v5095_v50 }
 0x286   : > { %2572 = vst.msk [vmem:[#allocation3 + $0x60] sm:$0xf] %vm2547_vm6, %v2500_v48 }
 0x288   : > { %v2502_v53 = vpop.permute.xlu1 %2501 }
 0x289   : > { %2573 = vst.msk [vmem:[#allocation3 + $0x64] sm:$0xf] %vm2547_vm6, %v2502_v53  ;;  %v2504_v9 = vpop.permute.xlu0 %2503 }
 0x28a   : > { %2574 = vst.msk [vmem:[#allocation3 + $0x68] sm:$0xf] %vm2547_vm6, %v2504_v9 }
 0x28c   : > { %v2506_v47 = vpop.permute.xlu1 %2505 }
 0x28d   : > { %2575 = vst.msk [vmem:[#allocation3 + $0x6c] sm:$0xf] %vm2547_vm6, %v2506_v47  ;;  %v2837_v54 = vpop.permute.xlu0 %2836 }
 0x28e   : > { %2909 = vst.msk [vmem:[#allocation3 + $0x60] sm:$0xf] %vm2884_vm8, %v2837_v54 }
 0x290   : > { %v2839_v19 = vpop.permute.xlu1 %2838 }
 0x291   : > { %2910 = vst.msk [vmem:[#allocation3 + $0x64] sm:$0xf] %vm2884_vm8, %v2839_v19  ;;  %v2841_v55 = vpop.permute.xlu0 %2840 }
 0x292   : > { %2911 = vst.msk [vmem:[#allocation3 + $0x68] sm:$0xf] %vm2884_vm8, %v2841_v55 }
 0x294   : > { %v2843_v41 = vpop.permute.xlu1 %2842 }
 0x295   : > { %2912 = vst.msk [vmem:[#allocation3 + $0x6c] sm:$0xf] %vm2884_vm8, %v2843_v41  ;;  %v3031_v56 = vpop.permute.xlu0 %3030 }
 0x296   : > { %3103 = vst.msk [vmem:[#allocation3 + $0x60] sm:$0xf] %vm3078_vm12, %v3031_v56 }
 0x298   : > { %v3033_v57 = vpop.permute.xlu1 %3032 }
 0x299   : > { %3104 = vst.msk [vmem:[#allocation3 + $0x64] sm:$0xf] %vm3078_vm12, %v3033_v57  ;;  %v3035_v58 = vpop.permute.xlu0 %3034  ;;  %v5030_v59 = vpop.f32.mrf.mxu0 }
 0x29a   : > { %3105 = vst.msk [vmem:[#allocation3 + $0x68] sm:$0xf] %vm3078_vm12, %v3035_v58  ;;  %v4973_v60 = vpack.c.bf16 %v5030_v59, %v5030_v59  ;;  %v4592_v17 = vmul.f32 %v5030_v59, %v5030_v59  ;;  %v4527_v14 = vsel %vm4515_vm3, %v5030_v59, 0.0 }
 0x29b   : > { %v4244_v52 = vpop.f32.mrf.mxu0 }
 0x29c   : > { %v3037_v42 = vpop.permute.xlu1 %3036  ;;  %4489 = vst.msk [vmem:[%s6401_s8 + $0x18] sm:$0xf] %vm215_vm0, %v4973_v60  ;;  %v4971_v61 = vpack.c.bf16 %v4244_v52, %v4244_v52  ;;  %v4523_v62 = vsel %vm4515_vm3, %v4244_v52, 0.0  ;;  %v4590_v63 = vmul.f32 %v4244_v52, %v4244_v52  ;;  %v4629_v22 = vsel %vm4515_vm3, %v4592_v17, 0.0 }
 0x29d   : > { %3106 = vst.msk [vmem:[#allocation3 + $0x6c] sm:$0xf] %vm3078_vm12, %v3037_v42  ;;  %v3592_v0 = vpop.permute.xlu0 %3591  ;;  %v4524_v3 = vadd.f32 %v4523_v62, %v4522_v38  ;;  %v5031_v4 = vpop.f32.mrf.mxu0 }
 0x29e   : > { %3664 = vst.msk [vmem:[#allocation3 + $0x60] sm:$0xf] %vm3639_vm13, %v3592_v0  ;;  %v4625_v5 = vsel %vm4515_vm3, %v4590_v63, 0.0  ;;  %v4974_v6 = vpack.c.bf16 %v5031_v4, %v5031_v4  ;;  %v4593_v15 = vmul.f32 %v5031_v4, %v5031_v4  ;;  %v4529_v24 = vsel %vm4515_vm3, %v5031_v4, 0.0 }
 0x29f   : > { %4487 = vst.msk [vmem:[%s6401_s8 + $0x10] sm:$0xf] %vm215_vm0, %v4971_v61  ;;  %v4626_v7 = vadd.f32 %v4625_v5, %v4624_v44  ;;  %v4247_v10 = vpop.f32.mrf.mxu0 }
 0x2a0   : > { %v3594_v8 = vpop.permute.xlu1 %3593  ;;  %4490 = vst.msk [vmem:[%s6401_s8 + $0x1c] sm:$0xf] %vm215_vm0, %v4974_v6  ;;  %v4972_v11 = vpack.c.bf16 %v4247_v10, %v4247_v10  ;;  %v4525_v2 = vsel %vm4515_vm3, %v4247_v10, 0.0  ;;  %v4591_v51 = vmul.f32 %v4247_v10, %v4247_v10  ;;  %v4631_v28 = vsel %vm4515_vm3, %v4593_v15, 0.0 }
 0x2a1   : > { %3665 = vst.msk [vmem:[#allocation3 + $0x64] sm:$0xf] %vm3639_vm13, %v3594_v8  ;;  %v3596_v12 = vpop.permute.xlu0 %3595  ;;  %v4526_v13 = vadd.f32 %v4525_v2, %v4524_v3 }
 0x2a2   : > { %3666 = vst.msk [vmem:[#allocation3 + $0x68] sm:$0xf] %vm3639_vm13, %v3596_v12  ;;  %v4627_v49 = vsel %vm4515_vm3, %v4591_v51, 0.0 }
 0x2a3   : > { %4488 = vst.msk [vmem:[%s6401_s8 + $0x14] sm:$0xf] %vm215_vm0, %v4972_v11  ;;  %v4528_v16 = vadd.f32 %v4527_v14, %v4526_v13  ;;  %v4628_v20 = vadd.f32 %v4627_v49, %v4626_v7 }
 0x2a4   : > { %v3598_v21 = vpop.permute.xlu1 %3597 }
 0x2a5   : > { %3667 = vst.msk [vmem:[#allocation3 + $0x6c] sm:$0xf] %vm3639_vm13, %v3598_v21  ;;  %v3929_v25 = vpop.permute.xlu0 %3928  ;;  %v4630_v26 = vadd.f32 %v4629_v22, %v4628_v20  ;;  %v4530_v27 = vadd.f32 %v4529_v24, %v4528_v16 }
 0x2a6   : > { %4001 = vst.msk [vmem:[#allocation3 + $0x60] sm:$0xf] %vm3976_vm15, %v3929_v25 }
 0x2a7   : > { %v4632_v18 = vadd.f32 %v4631_v28, %v4630_v26 }
 0x2a8   : > { %v3931_v29 = vpop.permute.xlu1 %3930 }
 0x2a9   : > { %4002 = vst.msk [vmem:[#allocation3 + $0x64] sm:$0xf] %vm3976_vm15, %v3931_v29  ;;  %v3933_v30 = vpop.permute.xlu0 %3932 }
 0x2aa   : > { %4003 = vst.msk [vmem:[#allocation3 + $0x68] sm:$0xf] %vm3976_vm15, %v3933_v30 }
 0x2ac   : > { %v3935_v31 = vpop.permute.xlu1 %3934 }
 0x2ad   : > { %4004 = vst.msk [vmem:[#allocation3 + $0x6c] sm:$0xf] %vm3976_vm15, %v3935_v31  ;;  %v1947_v23 = vpop.permute.xlu0 %1946 }
 0x2ae   : > { %2015 = vst.msk [vmem:[#allocation3 + $0x70] sm:$0xf] %vm1986_vm5, %v1947_v23 }
 0x2b0   : > { %v1949_v1 = vpop.permute.xlu1 %1948  ;;  %v5096_v32 = vld [vmem:[#allocation3 + $0x60] sm:$0xff]  }
 0x2b1   : > { %2016 = vst.msk [vmem:[#allocation3 + $0x74] sm:$0xf] %vm1986_vm5, %v1949_v1  ;;  %v1951_v33 = vpop.permute.xlu0 %1950  ;;  %5048 = vmatprep.mubr.msk.bf16.mxu1 %vm4141_vm2, %v5096_v32 }
 0x2b2   : > { %2017 = vst.msk [vmem:[#allocation3 + $0x78] sm:$0xf] %vm1986_vm5, %v1951_v33 }
 0x2b4   : > { %v1953_v34 = vpop.permute.xlu1 %1952  ;;  %v5097_v35 = vld [vmem:[#allocation3 + $0x68] sm:$0xff]  }
 0x2b5   : > { %2018 = vst.msk [vmem:[#allocation3 + $0x7c] sm:$0xf] %vm1986_vm5, %v1953_v34  ;;  %v2508_v36 = vpop.permute.xlu0 %2507  ;;  %5049 = vmatmul.mubr.msk.bf16.gmra.mxu1 %vm4141_vm2, %v5097_v35 }
 0x2b6   : > { %2576 = vst.msk [vmem:[#allocation3 + $0x70] sm:$0xf] %vm2547_vm6, %v2508_v36 }
 0x2b8   : > { %v2510_v37 = vpop.permute.xlu1 %2509 }
 0x2b9   : > { %2577 = vst.msk [vmem:[#allocation3 + $0x74] sm:$0xf] %vm2547_vm6, %v2510_v37  ;;  %v2512_v38 = vpop.permute.xlu0 %2511 }
 0x2ba   : > { %2578 = vst.msk [vmem:[#allocation3 + $0x78] sm:$0xf] %vm2547_vm6, %v2512_v38 }
 0x2bc   : > { %v2514_v39 = vpop.permute.xlu1 %2513 }
 0x2bd   : > { %2579 = vst.msk [vmem:[#allocation3 + $0x7c] sm:$0xf] %vm2547_vm6, %v2514_v39  ;;  %v2845_v40 = vpop.permute.xlu0 %2844 }
 0x2be   : > { %2913 = vst.msk [vmem:[#allocation3 + $0x70] sm:$0xf] %vm2884_vm8, %v2845_v40 }
 0x2c0   : > { %v2847_v43 = vpop.permute.xlu1 %2846 }
 0x2c1   : > { %2914 = vst.msk [vmem:[#allocation3 + $0x74] sm:$0xf] %vm2884_vm8, %v2847_v43  ;;  %v2849_v44 = vpop.permute.xlu0 %2848  ;;  %v5034_v45 = vpop.f32.mrf.mxu0 }
 0x2c2   : > { %2915 = vst.msk [vmem:[#allocation3 + $0x78] sm:$0xf] %vm2884_vm8, %v2849_v44  ;;  %v4977_v46 = vpack.c.bf16 %v5034_v45, %v5034_v45  ;;  %v4596_v60 = vmul.f32 %v5034_v45, %v5034_v45  ;;  %v4535_v0 = vsel %vm4515_vm3, %v5034_v45, 0.0 }
 0x2c3   : > { %v4260_v48 = vpop.f32.mrf.mxu0 }
 0x2c4   : > { %v2851_v50 = vpop.permute.xlu1 %2850  ;;  %4493 = vst.msk [vmem:[%s6401_s8 + $0x28] sm:$0xf] %vm215_vm0, %v4977_v46  ;;  %v4975_v53 = vpack.c.bf16 %v4260_v48, %v4260_v48  ;;  %v4531_v9 = vsel %vm4515_vm3, %v4260_v48, 0.0  ;;  %v4594_v47 = vmul.f32 %v4260_v48, %v4260_v48  ;;  %v4637_v8 = vsel %vm4515_vm3, %v4596_v60, 0.0 }
 0x2c5   : > { %2916 = vst.msk [vmem:[#allocation3 + $0x7c] sm:$0xf] %vm2884_vm8, %v2851_v50  ;;  %v3039_v54 = vpop.permute.xlu0 %3038  ;;  %v4532_v19 = vadd.f32 %v4531_v9, %v4530_v27  ;;  %v5035_v55 = vpop.f32.mrf.mxu0 }
 0x2c6   : > { %3107 = vst.msk [vmem:[#allocation3 + $0x70] sm:$0xf] %vm3078_vm12, %v3039_v54  ;;  %v4633_v41 = vsel %vm4515_vm3, %v4594_v47, 0.0  ;;  %v4978_v56 = vpack.c.bf16 %v5035_v55, %v5035_v55  ;;  %v4597_v3 = vmul.f32 %v5035_v55, %v5035_v55  ;;  %v4537_v10 = vsel %vm4515_vm3, %v5035_v55, 0.0 }
 0x2c7   : > { %4491 = vst.msk [vmem:[%s6401_s8 + $0x20] sm:$0xf] %vm215_vm0, %v4975_v53  ;;  %v4634_v57 = vadd.f32 %v4633_v41, %v4632_v18  ;;  %v4263_v59 = vpop.f32.mrf.mxu0 }
 0x2c8   : > { %v3041_v58 = vpop.permute.xlu1 %3040  ;;  %4494 = vst.msk [vmem:[%s6401_s8 + $0x2c] sm:$0xf] %vm215_vm0, %v4978_v56  ;;  %v4976_v42 = vpack.c.bf16 %v4263_v59, %v4263_v59  ;;  %v4533_v52 = vsel %vm4515_vm3, %v4263_v59, 0.0  ;;  %v4595_v61 = vmul.f32 %v4263_v59, %v4263_v59  ;;  %v4639_v51 = vsel %vm4515_vm3, %v4597_v3, 0.0 }
 0x2c9   : > { %3108 = vst.msk [vmem:[#allocation3 + $0x74] sm:$0xf] %vm3078_vm12, %v3041_v58  ;;  %v3043_v62 = vpop.permute.xlu0 %3042  ;;  %v4534_v63 = vadd.f32 %v4533_v52, %v4532_v19 }
 0x2ca   : > { %3109 = vst.msk [vmem:[#allocation3 + $0x78] sm:$0xf] %vm3078_vm12, %v3043_v62  ;;  %v4635_v4 = vsel %vm4515_vm3, %v4595_v61, 0.0 }
 0x2cb   : > { %4492 = vst.msk [vmem:[%s6401_s8 + $0x24] sm:$0xf] %vm215_vm0, %v4976_v42  ;;  %v4536_v5 = vadd.f32 %v4535_v0, %v4534_v63  ;;  %v4636_v6 = vadd.f32 %v4635_v4, %v4634_v57 }
 0x2cc   : > { %v3045_v7 = vpop.permute.xlu1 %3044 }
 0x2cd   : > { %3110 = vst.msk [vmem:[#allocation3 + $0x7c] sm:$0xf] %vm3078_vm12, %v3045_v7  ;;  %v3600_v17 = vpop.permute.xlu0 %3599  ;;  %v4638_v11 = vadd.f32 %v4637_v8, %v4636_v6  ;;  %v4538_v2 = vadd.f32 %v4537_v10, %v4536_v5 }
 0x2ce   : > { %3668 = vst.msk [vmem:[#allocation3 + $0x70] sm:$0xf] %vm3639_vm13, %v3600_v17 }
 0x2cf   : > { %v4640_v13 = vadd.f32 %v4639_v51, %v4638_v11 }
 0x2d0   : > { %v3602_v12 = vpop.permute.xlu1 %3601 }
 0x2d1   : > { %3669 = vst.msk [vmem:[#allocation3 + $0x74] sm:$0xf] %vm3639_vm13, %v3602_v12  ;;  %v3604_v14 = vpop.permute.xlu0 %3603 }
 0x2d2   : > { %3670 = vst.msk [vmem:[#allocation3 + $0x78] sm:$0xf] %vm3639_vm13, %v3604_v14 }
 0x2d4   : > { %v3606_v15 = vpop.permute.xlu1 %3605 }
 0x2d5   : > { %3671 = vst.msk [vmem:[#allocation3 + $0x7c] sm:$0xf] %vm3639_vm13, %v3606_v15  ;;  %v3937_v49 = vpop.permute.xlu0 %3936 }
 0x2d6   : > { %4005 = vst.msk [vmem:[#allocation3 + $0x70] sm:$0xf] %vm3976_vm15, %v3937_v49 }
 0x2d8   : > { %v3939_v16 = vpop.permute.xlu1 %3938 }
 0x2d9   : > { %4006 = vst.msk [vmem:[#allocation3 + $0x74] sm:$0xf] %vm3976_vm15, %v3939_v16  ;;  %v3941_v20 = vpop.permute.xlu0 %3940 }
 0x2da   : > { %4007 = vst.msk [vmem:[#allocation3 + $0x78] sm:$0xf] %vm3976_vm15, %v3941_v20 }
 0x2dc   : > { %v3943_v21 = vpop.permute.xlu1 %3942 }
 0x2dd   : > { %4008 = vst.msk [vmem:[#allocation3 + $0x7c] sm:$0xf] %vm3976_vm15, %v3943_v21 }
 0x2e0   : > { %v5098_v22 = vld [vmem:[#allocation3 + $0x70] sm:$0xff]  }
 0x2e1   : > { %5052 = vmatprep.mubr.msk.bf16.mxu1 %vm4141_vm2, %v5098_v22 }
 0x2e4   : > { %v5099_v24 = vld [vmem:[#allocation3 + $0x78] sm:$0xff]  }
 0x2e5   : > { %5053 = vmatmul.mubr.msk.bf16.gmra.mxu1 %vm4141_vm2, %v5099_v24 }
 0x2e9   : > { %v5038_v25 = vpop.f32.mrf.mxu0 }
 0x2ea   : > { %v4981_v26 = vpack.c.bf16 %v5038_v25, %v5038_v25  ;;  %v4600_v34 = vmul.f32 %v5038_v25, %v5038_v25  ;;  %v4543_v39 = vsel %vm4515_vm3, %v5038_v25, 0.0 }
 0x2eb   : > { %v4276_v27 = vpop.f32.mrf.mxu0 }
 0x2ec   : > { %4497 = vst.msk [vmem:[%s6401_s8 + $0x38] sm:$0xf] %vm215_vm0, %v4981_v26  ;;  %v4979_v28 = vpack.c.bf16 %v4276_v27, %v4276_v27  ;;  %v4539_v29 = vsel %vm4515_vm3, %v4276_v27, 0.0  ;;  %v4598_v18 = vmul.f32 %v4276_v27, %v4276_v27  ;;  %v4645_v46 = vsel %vm4515_vm3, %v4600_v34, 0.0 }
 0x2ed   : > { %v4540_v30 = vadd.f32 %v4539_v29, %v4538_v2  ;;  %v5039_v31 = vpop.f32.mrf.mxu0 }
 0x2ee   : > { %4495 = vst.msk [vmem:[%s6401_s8 + $0x30] sm:$0xf] %vm215_vm0, %v4979_v28  ;;  %v4641_v23 = vsel %vm4515_vm3, %v4598_v18, 0.0  ;;  %v4982_v1 = vpack.c.bf16 %v5039_v31, %v5039_v31  ;;  %v4601_v40 = vmul.f32 %v5039_v31, %v5039_v31  ;;  %v4545_v50 = vsel %vm4515_vm3, %v5039_v31, 0.0 }
 0x2ef   : > { %v4642_v32 = vadd.f32 %v4641_v23, %v4640_v13  ;;  %v4279_v33 = vpop.f32.mrf.mxu0 }
 0x2f0   : > { %4498 = vst.msk [vmem:[%s6401_s8 + $0x3c] sm:$0xf] %vm215_vm0, %v4982_v1  ;;  %v4980_v35 = vpack.c.bf16 %v4279_v33, %v4279_v33  ;;  %v4541_v36 = vsel %vm4515_vm3, %v4279_v33, 0.0  ;;  %v4599_v37 = vmul.f32 %v4279_v33, %v4279_v33  ;;  %v4647_v9 = vsel %vm4515_vm3, %v4601_v40, 0.0 }
 0x2f1   : > { %v4542_v38 = vadd.f32 %v4541_v36, %v4540_v30 }
 0x2f2   : > { %4496 = vst.msk [vmem:[%s6401_s8 + $0x34] sm:$0xf] %vm215_vm0, %v4980_v35  ;;  %v4643_v43 = vsel %vm4515_vm3, %v4599_v37, 0.0 }
 0x2f3   : > { %v4544_v44 = vadd.f32 %v4543_v39, %v4542_v38  ;;  %v4644_v45 = vadd.f32 %v4643_v43, %v4642_v32 }
 0x2f5   : > { %v4646_v48 = vadd.f32 %v4645_v46, %v4644_v45  ;;  %v4546_v53 = vadd.f32 %v4545_v50, %v4544_v44 }
 0x2f7   : > { %v4648_v47 = vadd.f32 %v4647_v9, %v4646_v48 }
 0x315   : > { %v5042_v54 = vpop.f32.mrf.mxu1 }
 0x316   : > { %v4985_v19 = vpack.c.bf16 %v5042_v54, %v5042_v54  ;;  %v4604_v62 = vmul.f32 %v5042_v54, %v5042_v54  ;;  %v4551_v5 = vsel %vm4515_vm3, %v5042_v54, 0.0 }
 0x317   : > { %v4292_v55 = vpop.f32.mrf.mxu1 }
 0x318   : > { %4501 = vst.msk [vmem:[%s6401_s8 + $0x48] sm:$0xf] %vm215_vm0, %v4985_v19  ;;  %v4983_v41 = vpack.c.bf16 %v4292_v55, %v4292_v55  ;;  %v4547_v56 = vsel %vm4515_vm3, %v4292_v55, 0.0  ;;  %v4602_v57 = vmul.f32 %v4292_v55, %v4292_v55  ;;  %v4653_v17 = vsel %vm4515_vm3, %v4604_v62, 0.0 }
 0x319   : > { %v4548_v58 = vadd.f32 %v4547_v56, %v4546_v53  ;;  %v5043_v59 = vpop.f32.mrf.mxu1 }
 0x31a   : > { %4499 = vst.msk [vmem:[%s6401_s8 + $0x40] sm:$0xf] %vm215_vm0, %v4983_v41  ;;  %v4649_v60 = vsel %vm4515_vm3, %v4602_v57, 0.0  ;;  %v4986_v42 = vpack.c.bf16 %v5043_v59, %v5043_v59  ;;  %v4605_v6 = vmul.f32 %v5043_v59, %v5043_v59  ;;  %v4553_v11 = vsel %vm4515_vm3, %v5043_v59, 0.0 }
 0x31b   : > { %v4650_v52 = vadd.f32 %v4649_v60, %v4648_v47  ;;  %v4295_v61 = vpop.f32.mrf.mxu1 }
 0x31c   : > { %4502 = vst.msk [vmem:[%s6401_s8 + $0x4c] sm:$0xf] %vm215_vm0, %v4986_v42  ;;  %v4984_v63 = vpack.c.bf16 %v4295_v61, %v4295_v61  ;;  %v4549_v0 = vsel %vm4515_vm3, %v4295_v61, 0.0  ;;  %v4603_v3 = vmul.f32 %v4295_v61, %v4295_v61  ;;  %v4655_v12 = vsel %vm4515_vm3, %v4605_v6, 0.0 }
 0x31d   : > { %v4550_v4 = vadd.f32 %v4549_v0, %v4548_v58 }
 0x31e   : > { %4500 = vst.msk [vmem:[%s6401_s8 + $0x44] sm:$0xf] %vm215_vm0, %v4984_v63  ;;  %v4651_v7 = vsel %vm4515_vm3, %v4603_v3, 0.0 }
 0x31f   : > { %v4552_v8 = vadd.f32 %v4551_v5, %v4550_v4  ;;  %v4652_v10 = vadd.f32 %v4651_v7, %v4650_v52 }
 0x321   : > { %v4654_v2 = vadd.f32 %v4653_v17, %v4652_v10  ;;  %v4554_v51 = vadd.f32 %v4553_v11, %v4552_v8 }
 0x323   : > { %v4656_v13 = vadd.f32 %v4655_v12, %v4654_v2 }
 0x345   : > { %v5046_v14 = vpop.f32.mrf.mxu1 }
 0x346   : > { %v4989_v15 = vpack.c.bf16 %v5046_v14, %v5046_v14  ;;  %v4608_v29 = vmul.f32 %v5046_v14, %v5046_v14  ;;  %v4559_v1 = vsel %vm4515_vm3, %v5046_v14, 0.0 }
 0x347   : > { %v4308_v49 = vpop.f32.mrf.mxu1 }
 0x348   : > { %4505 = vst.msk [vmem:[%s6401_s8 + $0x58] sm:$0xf] %vm215_vm0, %v4989_v15  ;;  %v4987_v16 = vpack.c.bf16 %v4308_v49, %v4308_v49  ;;  %v4555_v20 = vsel %vm4515_vm3, %v4308_v49, 0.0  ;;  %v4606_v21 = vmul.f32 %v4308_v49, %v4308_v49  ;;  %v4661_v36 = vsel %vm4515_vm3, %v4608_v29, 0.0 }
 0x349   : > { %v4556_v22 = vadd.f32 %v4555_v20, %v4554_v51  ;;  %v5047_v24 = vpop.f32.mrf.mxu1 }
 0x34a   : > { %4503 = vst.msk [vmem:[%s6401_s8 + $0x50] sm:$0xf] %vm215_vm0, %v4987_v16  ;;  %v4657_v25 = vsel %vm4515_vm3, %v4606_v21, 0.0  ;;  %v4990_v26 = vpack.c.bf16 %v5047_v24, %v5047_v24  ;;  %v4609_v32 = vmul.f32 %v5047_v24, %v5047_v24  ;;  %v4561_v37 = vsel %vm4515_vm3, %v5047_v24, 0.0 }
 0x34b   : > { %v4658_v27 = vadd.f32 %v4657_v25, %v4656_v13  ;;  %v4311_v28 = vpop.f32.mrf.mxu1 }
 0x34c   : > { %4506 = vst.msk [vmem:[%s6401_s8 + $0x5c] sm:$0xf] %vm215_vm0, %v4990_v26  ;;  %v4988_v18 = vpack.c.bf16 %v4311_v28, %v4311_v28  ;;  %v4557_v30 = vsel %vm4515_vm3, %v4311_v28, 0.0  ;;  %v4607_v31 = vmul.f32 %v4311_v28, %v4311_v28  ;;  %v4663_v40 = vsel %vm4515_vm3, %v4609_v32, 0.0 }
 0x34d   : > { %v4558_v23 = vadd.f32 %v4557_v30, %v4556_v22 }
 0x34e   : > { %4504 = vst.msk [vmem:[%s6401_s8 + $0x54] sm:$0xf] %vm215_vm0, %v4988_v18  ;;  %v4659_v33 = vsel %vm4515_vm3, %v4607_v31, 0.0 }
 0x34f   : > { %v4560_v34 = vadd.f32 %v4559_v1, %v4558_v23  ;;  %v4660_v35 = vadd.f32 %v4659_v33, %v4658_v27 }
 0x351   : > { %v4662_v38 = vadd.f32 %v4661_v36, %v4660_v35  ;;  %v4562_v39 = vadd.f32 %v4561_v37, %v4560_v34 }
 0x353   : > { %v4664_v43 = vadd.f32 %v4663_v40, %v4662_v38 }
 0x375   : > { %v5050_v44 = vpop.f32.mrf.mxu1 }
 0x376   : > { %v4993_v45 = vpack.c.bf16 %v5050_v44, %v5050_v44  ;;  %v4612_v42 = vmul.f32 %v5050_v44, %v5050_v44  ;;  %v4567_v61 = vsel %vm4515_vm3, %v5050_v44, 0.0 }
 0x377   : > { %v4324_v46 = vpop.f32.mrf.mxu1 }
 0x378   : > { %4509 = vst.msk [vmem:[%s6401_s8 + $0x68] sm:$0xf] %vm215_vm0, %v4993_v45  ;;  %v4991_v50 = vpack.c.bf16 %v4324_v46, %v4324_v46  ;;  %v4610_v54 = vmul.f32 %v4324_v46, %v4324_v46  ;;  %v4563_v19 = vsel %vm4515_vm3, %v4324_v46, 0.0  ;;  %v4669_v0 = vsel %vm4515_vm3, %v4612_v42, 0.0 }
 0x379   : > { %v5051_v48 = vpop.f32.mrf.mxu1  ;;  %v4564_v57 = vadd.f32 %v4563_v19, %v4562_v39 }
 0x37a   : > { %4507 = vst.msk [vmem:[%s6401_s8 + $0x60] sm:$0xf] %vm215_vm0, %v4991_v50  ;;  %v4994_v53 = vpack.c.bf16 %v5051_v48, %v5051_v48  ;;  %v4665_v41 = vsel %vm4515_vm3, %v4610_v54, 0.0  ;;  %v4613_v3 = vmul.f32 %v5051_v48, %v5051_v48  ;;  %v4569_v7 = vsel %vm4515_vm3, %v5051_v48, 0.0 }
 0x37b   : > { %v4327_v9 = vpop.f32.mrf.mxu1  ;;  %v4666_v59 = vadd.f32 %v4665_v41, %v4664_v43 }
 0x37c   : > { %4510 = vst.msk [vmem:[%s6401_s8 + $0x6c] sm:$0xf] %vm215_vm0, %v4994_v53  ;;  %v4992_v47 = vpack.c.bf16 %v4327_v9, %v4327_v9  ;;  %v4611_v55 = vmul.f32 %v4327_v9, %v4327_v9  ;;  %v4565_v56 = vsel %vm4515_vm3, %v4327_v9, 0.0  ;;  %v4671_v51 = vsel %vm4515_vm3, %v4613_v3, 0.0 }
 0x37d   : > { %v4566_v60 = vadd.f32 %v4565_v56, %v4564_v57 }
 0x37e   : > { %4508 = vst.msk [vmem:[%s6401_s8 + $0x64] sm:$0xf] %vm215_vm0, %v4992_v47  ;;  %v4667_v58 = vsel %vm4515_vm3, %v4611_v55, 0.0 }
 0x37f   : > { %v4668_v52 = vadd.f32 %v4667_v58, %v4666_v59  ;;  %v4568_v62 = vadd.f32 %v4567_v61, %v4566_v60 }
 0x381   : > { %v4670_v5 = vadd.f32 %v4669_v0, %v4668_v52  ;;  %v4570_v11 = vadd.f32 %v4569_v7, %v4568_v62 }
 0x383   : > { %v4672_v15 = vadd.f32 %v4671_v51, %v4670_v5 }
 0x3a5   : > { %v5054_v63 = vpop.f32.mrf.mxu1 }
 0x3a6   : > { %v4997_v4 = vpack.c.bf16 %v5054_v63, %v5054_v63  ;;  %v4616_v16 = vmul.f32 %v5054_v63, %v5054_v63  ;;  %v4575_v26 = vsel %vm4515_vm3, %v5054_v63, 0.0 }
 0x3a7   : > { %v4340_v6 = vpop.f32.mrf.mxu1 }
 0x3a8   : > { %4513 = vst.msk [vmem:[%s6401_s8 + $0x78] sm:$0xf] %vm215_vm0, %v4997_v4  ;;  %v4995_v8 = vpack.c.bf16 %v4340_v6, %v4340_v6  ;;  %v4571_v10 = vsel %vm4515_vm3, %v4340_v6, 0.0  ;;  %v4614_v17 = vmul.f32 %v4340_v6, %v4340_v6  ;;  %v4677_v30 = vsel %vm4515_vm3, %v4616_v16, 0.0 }
 0x3a9   : > { %v5055_v2 = vpop.f32.mrf.mxu1  ;;  %v4572_v14 = vadd.f32 %v4571_v10, %v4570_v11 }
 0x3aa   : > { %4511 = vst.msk [vmem:[%s6401_s8 + $0x70] sm:$0xf] %vm215_vm0, %v4995_v8  ;;  %v4673_v12 = vsel %vm4515_vm3, %v4614_v17, 0.0  ;;  %v4998_v13 = vpack.c.bf16 %v5055_v2, %v5055_v2  ;;  %v4617_v27 = vmul.f32 %v5055_v2, %v5055_v2  ;;  %v4577_v31 = vsel %vm4515_vm3, %v5055_v2, 0.0 }
 0x3ab   : > { %v4343_v49 = vpop.f32.mrf.mxu1  ;;  %v4674_v24 = vadd.f32 %v4673_v12, %v4672_v15 }
 0x3ac   : > { %4514 = vst.msk [vmem:[%s6401_s8 + $0x7c] sm:$0xf] %vm215_vm0, %v4998_v13  ;;  %v4996_v20 = vpack.c.bf16 %v4343_v49, %v4343_v49  ;;  %v4573_v21 = vsel %vm4515_vm3, %v4343_v49, 0.0  ;;  %v4615_v22 = vmul.f32 %v4343_v49, %v4343_v49  ;;  %v4679_v32 = vsel %vm4515_vm3, %v4617_v27, 0.0 }
 0x3ad   : > { %v4574_v25 = vadd.f32 %v4573_v21, %v4572_v14 }
 0x3ae   : > { %4512 = vst.msk [vmem:[%s6401_s8 + $0x74] sm:$0xf] %vm215_vm0, %v4996_v20  ;;  %v4675_v28 = vsel %vm4515_vm3, %v4615_v22, 0.0 }
 0x3af   : > { %v4576_v29 = vadd.f32 %v4575_v26, %v4574_v25  ;;  %v4676_v18 = vadd.f32 %v4675_v28, %v4674_v24 }
 0x3b1   : > { %v4578_v23 = vadd.f32 %v4577_v31, %v4576_v29  ;;  %v4678_v1 = vadd.f32 %v4677_v30, %v4676_v18 }
 0x3b3   : > { %v4579_v33 = vrot.slane %v4578_v23, 4  ;;  %v4680_v34 = vadd.f32 %v4679_v32, %v4678_v1 }
 0x3b5   : > { %v4580_v35 = vadd.f32 %v4579_v33, %v4578_v23  ;;  %v4681_v36 = vrot.slane %v4680_v34, 4 }
 0x3b7   : > { %v4581_v37 = vrot.slane %v4580_v35, 2  ;;  %v4682_v38 = vadd.f32 %v4681_v36, %v4680_v34 }
 0x3b9   : > { %v4582_v39 = vadd.f32 %v4581_v37, %v4580_v35  ;;  %v4683_v40 = vrot.slane %v4682_v38, 2 }
 0x3bb   : > { %v4583_v43 = vrot.slane %v4582_v39, 1  ;;  %v4684_v44 = vadd.f32 %v4683_v40, %v4682_v38 }
 0x3bd   : > { %v4584_v45 = vadd.f32 %v4583_v43, %v4582_v39  ;;  %v4685_v46 = vrot.slane %v4684_v44, 1 }
 0x3bf   : > { %4585 = vst.msk [vmem:[%s181_s14] sm:$0x1] %vm218_vm1, %v4584_v45  ;;  %v4686_v50 = vadd.f32 %v4685_v46, %v4684_v44 }
 0x3c1   : > { %4687 = vst.msk [vmem:[%s181_s14 + $0x1] sm:$0x1] %vm218_vm1, %v4686_v50 }
 0x3c2 PF: > { %s14_s12 = sadd.s32 1, %s5106_s12  }
 0x3c3   : > { %p11_p4 = scmp.ge.s32.totalorder %s14_s12, 4  }
 0x3c5   :  { %13 = sbr.rel (!%p11_p4) target bundleno = 1 (0x1), region = 73 }

</bundles_post_ra>
